<compile_context>
chip_gen: v5e
topology: v5e:2x2
jax: 0.10.0
libtpu: 0.0.40
codegen_flags: <defaults>
</compile_context>

<pallas_src>
import jax
import jax.numpy as jnp
from jax.experimental import pallas as pl
from jax.experimental.pallas import tpu as pltpu

_LAYERS = (
    ("down", 1, 4), ("down", 4, 16), ("down", 16, 32), ("down", 32, 64),
    ("up", 64, 32), ("up", 32, 16), ("up", 16, 4), ("up", 4, 4),
    ("out", 4, 1),
)
_H0 = 16
_W0 = 16
_BN_EPS = 1e-5


# ----------------------------------------------------------------------------
# In-kernel building blocks (operate on (C, H*W) f32 values, H/W static, pow2)
# ----------------------------------------------------------------------------
def _shift_flat(x, dy, dx, H, W):
    """y[c, h*W + w] = x[c, (h+dy)*W + (w+dx)], zero where the source pixel is out of range.

    x is (C, H*W) row-major flattened spatial. dy, dx, H, W are Python ints; W and H*W are
    powers of two.
    """
    _, HW = x.shape
    off = dy * W + dx
    if off == 0:
        return x
    if HW % 128 == 0:
        # Large maps: shift with an XLU lane rotation.  The rotation wraps, so wrapped
        # positions are masked below.  Both rotation directions are computed and the
        # correct one is selected per lane by comparing a rotated index vector with the
        # expected source index -> correct independent of the rotate sign convention,
        # and the extra roll is free XLU filler.
        lane = jax.lax.broadcasted_iota(jnp.int32, (1, HW), 1)
        col = lane & (W - 1)                       # w coordinate (W is a power of two)
        src = lane + off
        valid = (src >= 0) & (src < HW) & (col + dx >= 0) & (col + dx < W)
        src_mod = (src + HW) & (HW - 1)            # (lane + off) mod HW, HW power of two
        s = off % HW
        x_a = pltpu.roll(x, HW - s, axis=1)
        x_b = pltpu.roll(x, s, axis=1)
        idx_a = pltpu.roll(lane, HW - s, axis=1)
        shifted = jnp.where(idx_a == src_mod, x_a, x_b)
        return jnp.where(valid, shifted, 0.0)
    # Small maps: express the shift (+ boundary masking) as a tiny 0/1 selection matrix
    # and use the MXU -- guaranteed layout-friendly for sub-128 lane extents.
    src_i = jax.lax.broadcasted_iota(jnp.int32, (HW, HW), 0)
    dst_i = jax.lax.broadcasted_iota(jnp.int32, (HW, HW), 1)
    dcol = dst_i & (W - 1)
    ok = (src_i == dst_i + off) & (dcol + dx >= 0) & (dcol + dx < W)
    sel = jnp.where(ok, 1.0, 0.0)
    return jnp.dot(x, sel, preferred_element_type=jnp.float32)


def _pool_matrix(H, W):
    """(H*W, (H//2)*(W//2)) 0/1 matrix selecting the top-left corner of each 2x2 window."""
    Hq, Wq = H // 2, W // 2
    HW, HWq = H * W, Hq * Wq
    src = jax.lax.broadcasted_iota(jnp.int32, (HW, HWq), 0)
    dst = jax.lax.broadcasted_iota(jnp.int32, (HW, HWq), 1)
    go = dst >> (Wq.bit_length() - 1)
    gw = dst & (Wq - 1)
    anchor = go * (2 * W) + gw * 2
    return jnp.where(src == anchor, 1.0, 0.0)


def _upsample_matrix(H, W):
    """(H*W, 4*H*W) 0/1 matrix implementing nearest-neighbor 2x upsampling (right-mult)."""
    W2 = 2 * W
    HW, HW2 = H * W, 4 * H * W
    src = jax.lax.broadcasted_iota(jnp.int32, (HW, HW2), 0)
    dst = jax.lax.broadcasted_iota(jnp.int32, (HW, HW2), 1)
    dh2 = dst >> (W2.bit_length() - 1)
    dw2 = dst & (W2 - 1)
    s = (dh2 >> 1) * W + (dw2 >> 1)
    return jnp.where(src == s, 1.0, 0.0)


def _conv3x3(x, w_ref, b, H, W):
    """3x3 same-padded conv + folded-BN bias + ReLU.  x: (Cin, H*W), w_ref: (9, Cout, Cin)."""
    _, cout, cin = w_ref.shape
    acc = jnp.zeros((cout, H * W), jnp.float32)
    t = 0
    for dy in (-1, 0, 1):
        for dx in (-1, 0, 1):
            xs = _shift_flat(x, dy, dx, H, W)            # (Cin, H*W)
            wt = w_ref[t].reshape(cout, cin)             # per-tap (Cout, Cin)
            if cin == 1:
                acc = acc + wt * xs                      # outer-product broadcast (VPU)
            else:
                acc = acc + jnp.dot(wt, xs, preferred_element_type=jnp.float32)
            t += 1
    return jnp.maximum(acc + b, 0.0)                     # bias broadcast once per layer


def _maxpool2(x, H, W):
    """2x2/stride-2 max pool on (C, H*W) -> (C, (H//2)*(W//2))."""
    m = x
    for dy, dx in ((0, 1), (1, 0), (1, 1)):
        m = jnp.maximum(m, _shift_flat(x, dy, dx, H, W))
    if H * W == 4:                                       # 2x2 -> 1x1: single window
        return m[:, 0:1]
    return jnp.dot(m, _pool_matrix(H, W), preferred_element_type=jnp.float32)


def _upsample2(x, H, W):
    """Nearest-neighbor 2x upsample on (C, H*W) -> (C, 4*H*W)."""
    c, hw = x.shape
    if hw == 1:                                          # 1x1 -> 2x2 is pure replication
        return jnp.broadcast_to(x, (c, 4))
    return jnp.dot(x, _upsample_matrix(H, W), preferred_element_type=jnp.float32)


# ----------------------------------------------------------------------------
# Fused whole-network kernel (one grid step == one batch element)
# ----------------------------------------------------------------------------
def _fused_kernel(x_ref, *refs):
    out_ref = refs[-1]
    prm = refs[:-1]                                      # (w, b) pairs per layer
    H, W = _H0, _W0
    x = x_ref[...].reshape(_LAYERS[0][1], H * W)         # (Cin0, H*W) f32
    for li, (kind, cin, cout) in enumerate(_LAYERS):
        w_ref = prm[2 * li]
        b = prm[2 * li + 1][...]                         # (Cout, 1)
        if kind == "down":
            x = _conv3x3(x, w_ref, b, H, W)
            x = _maxpool2(x, H, W)
            H, W = H // 2, W // 2
        elif kind == "up":
            x = _upsample2(x, H, W)
            H, W = 2 * H, 2 * W
            x = _conv3x3(x, w_ref, b, H, W)
        else:                                            # 1x1 outconv: no BN, no activation
            w0 = w_ref[0].reshape(cout, cin)
            x = jnp.dot(w0, x, preferred_element_type=jnp.float32) + b
    out_ref[...] = x.reshape(1, 1, H * W)


# ----------------------------------------------------------------------------
# Host-side wrapper: BN folding, weight layout, pallas_call
# ----------------------------------------------------------------------------
def _prep_layer(kind, p):
    """Fold eval-mode BatchNorm into the conv; lay weights out as (K*K, Cout, Cin),
    bias as a (Cout, 1) column so it broadcasts over the lane (spatial) dim."""
    w, b = p["w"], p["b"]
    if kind != "out":
        scale = p["gamma"] * jax.lax.rsqrt(p["var"] + _BN_EPS)
        w = w * scale
        b = (b - p["mean"]) * scale + p["beta"]
    k = w.shape[0]
    cin, cout = w.shape[2], w.shape[3]
    w_taps = jnp.transpose(w, (0, 1, 3, 2)).reshape(k * k, cout, cin)
    return w_taps.astype(jnp.float32), b.reshape(cout, 1).astype(jnp.float32)


@jax.jit
def autoencoder_cab_forward(params, x_nchw):
    n, c0, h0, w0 = x_nchw.shape
    if (c0, h0, w0) != (_LAYERS[0][1], _H0, _W0):
        raise ValueError(f"expected (*, 1, {_H0}, {_W0}) input, got {x_nchw.shape}")
    hw0 = h0 * w0
    # NCHW reshaped to (N, C, H*W) is already the in-kernel layout -> no transposes.
    inputs = [x_nchw.reshape(n, c0, hw0).astype(jnp.float32)]
    in_specs = [pl.BlockSpec((1, c0, hw0), lambda i: (i, 0, 0))]
    for (kind, _, _), p in zip(_LAYERS, params):
        w_taps, b_col = _prep_layer(kind, p)
        inputs += [w_taps, b_col]
        in_specs += [pl.BlockSpec(w_taps.shape, lambda i: (0, 0, 0)),
                     pl.BlockSpec(b_col.shape, lambda i: (0, 0))]

    out = pl.pallas_call(
        _fused_kernel,
        out_shape=jax.ShapeDtypeStruct((n, 1, hw0), jnp.float32),
        grid=(n,),
        in_specs=in_specs,
        out_specs=pl.BlockSpec((1, 1, hw0), lambda i: (i, 0, 0)),
        compiler_params=pltpu.CompilerParams(dimension_semantics=("parallel",)),
    )(*inputs)
    return out.reshape(n, 1, h0, w0)


# ----------------------------------------------------------------------------
# Parameters (PyTorch-style init, HWIO weights) and a pure-JAX reference
# ----------------------------------------------------------------------------
def init_params(key):
    params = []
    for kind, cin, cout in _LAYERS:
        k = 1 if kind == "out" else 3
        key, kw, kb = jax.random.split(key, 3)
        bound = float(k * k * cin) ** -0.5
        p = {"w": jax.random.uniform(kw, (k, k, cin, cout), jnp.float32, -bound, bound),
             "b": jax.random.uniform(kb, (cout,), jnp.float32, -bound, bound)}
        if kind != "out":
            p["gamma"] = jnp.ones((cout,), jnp.float32)
            p["beta"] = jnp.zeros((cout,), jnp.float32)
            p["mean"] = jnp.zeros((cout,), jnp.float32)
            p["var"] = jnp.ones((cout,), jnp.float32)
        params.append(p)
    return params


def _reference_forward(params, x_nchw):
    """Pure-JAX (XLA) reference with identical semantics, used to validate the kernel."""
    x = jnp.transpose(x_nchw, (0, 2, 3, 1))  # NHWC
    for (kind, _, _), p in zip(_LAYERS, params):
        w, b = p["w"], p["b"]
        if kind != "out":
            scale = p["gamma"] * jax.lax.rsqrt(p["var"] + _BN_EPS)
            w = w * scale
            b = (b - p["mean"]) * scale + p["beta"]
        if kind == "up":
            x = jnp.repeat(jnp.repeat(x, 2, axis=1), 2, axis=2)
        x = jax.lax.conv_general_dilated(
            x, w, window_strides=(1, 1), padding="SAME",
            dimension_numbers=("NHWC", "HWIO", "NHWC"),
            precision=jax.lax.Precision.HIGHEST) + b
        if kind != "out":
            x = jnp.maximum(x, 0.0)
        if kind == "down":
            x = jax.lax.reduce_window(x, -jnp.inf, jax.lax.max,
                                      (1, 2, 2, 1), (1, 2, 2, 1), "VALID")
    return jnp.transpose(x, (0, 3, 1, 2))


if __name__ == "__main__":
    root = jax.random.PRNGKey(0)
    params = init_params(root)
    # PyTorch input convention: NCHW with a single input channel (down1 = down(1, 4)).
    x = jax.random.normal(jax.random.fold_in(root, 1), (2, 1, 16, 16), jnp.float32)

    y = jax.block_until_ready(autoencoder_cab_forward(params, x))
    assert y.shape == (2, 1, 16, 16), y.shape
    assert y.dtype == jnp.float32

    y_ref = jax.block_until_ready(_reference_forward(params, x))
    err = float(jnp.max(jnp.abs(y - y_ref)))
    scale = max(float(jnp.max(jnp.abs(y_ref))), 1.0)
    assert err <= 2e-2 * scale, f"kernel vs reference mismatch: max|diff|={err}, scale={scale}"
    print("KERNEL_OK")
</pallas_src>

<mosaic_0001>
module attributes {stable_mosaic.version = 11 : i64} {
  func.func @_fused_kernel(%arg0: i32, %arg1: memref<1x1x256xf32, #tpu.memory_space<vmem>>, %arg2: memref<9x4x1xf32, #tpu.memory_space<vmem>>, %arg3: memref<4x1xf32, #tpu.memory_space<vmem>>, %arg4: memref<9x16x4xf32, #tpu.memory_space<vmem>>, %arg5: memref<16x1xf32, #tpu.memory_space<vmem>>, %arg6: memref<9x32x16xf32, #tpu.memory_space<vmem>>, %arg7: memref<32x1xf32, #tpu.memory_space<vmem>>, %arg8: memref<9x64x32xf32, #tpu.memory_space<vmem>>, %arg9: memref<64x1xf32, #tpu.memory_space<vmem>>, %arg10: memref<9x32x64xf32, #tpu.memory_space<vmem>>, %arg11: memref<32x1xf32, #tpu.memory_space<vmem>>, %arg12: memref<9x16x32xf32, #tpu.memory_space<vmem>>, %arg13: memref<16x1xf32, #tpu.memory_space<vmem>>, %arg14: memref<9x4x16xf32, #tpu.memory_space<vmem>>, %arg15: memref<4x1xf32, #tpu.memory_space<vmem>>, %arg16: memref<9x4x4xf32, #tpu.memory_space<vmem>>, %arg17: memref<4x1xf32, #tpu.memory_space<vmem>>, %arg18: memref<1x1x4xf32, #tpu.memory_space<vmem>>, %arg19: memref<1x1xf32, #tpu.memory_space<vmem>>, %arg20: memref<1x1x256xf32, #tpu.memory_space<vmem>>) attributes {dimension_semantics = [#tpu.dimension_semantics<parallel>], iteration_bounds = array<i64: 2>, scalar_prefetch = 0 : i64, scratch_operands = 0 : i64, tpu.core_type = #tpu.core_type<tc>, window_params = [{transform_indices = @transform_0, window_bounds = array<i64: 1, 1, 256>}, {pipeline_mode = #tpu.pipeline_mode<synchronous>, transform_indices = @transform_1, window_bounds = array<i64: 9, 4, 1>}, {pipeline_mode = #tpu.pipeline_mode<synchronous>, transform_indices = @transform_2, window_bounds = array<i64: 4, 1>}, {pipeline_mode = #tpu.pipeline_mode<synchronous>, transform_indices = @transform_3, window_bounds = array<i64: 9, 16, 4>}, {pipeline_mode = #tpu.pipeline_mode<synchronous>, transform_indices = @transform_4, window_bounds = array<i64: 16, 1>}, {pipeline_mode = #tpu.pipeline_mode<synchronous>, transform_indices = @transform_5, window_bounds = array<i64: 9, 32, 16>}, {pipeline_mode = #tpu.pipeline_mode<synchronous>, transform_indices = @transform_6, window_bounds = array<i64: 32, 1>}, {pipeline_mode = #tpu.pipeline_mode<synchronous>, transform_indices = @transform_7, window_bounds = array<i64: 9, 64, 32>}, {pipeline_mode = #tpu.pipeline_mode<synchronous>, transform_indices = @transform_8, window_bounds = array<i64: 64, 1>}, {pipeline_mode = #tpu.pipeline_mode<synchronous>, transform_indices = @transform_9, window_bounds = array<i64: 9, 32, 64>}, {pipeline_mode = #tpu.pipeline_mode<synchronous>, transform_indices = @transform_10, window_bounds = array<i64: 32, 1>}, {pipeline_mode = #tpu.pipeline_mode<synchronous>, transform_indices = @transform_11, window_bounds = array<i64: 9, 16, 32>}, {pipeline_mode = #tpu.pipeline_mode<synchronous>, transform_indices = @transform_12, window_bounds = array<i64: 16, 1>}, {pipeline_mode = #tpu.pipeline_mode<synchronous>, transform_indices = @transform_13, window_bounds = array<i64: 9, 4, 16>}, {pipeline_mode = #tpu.pipeline_mode<synchronous>, transform_indices = @transform_14, window_bounds = array<i64: 4, 1>}, {pipeline_mode = #tpu.pipeline_mode<synchronous>, transform_indices = @transform_15, window_bounds = array<i64: 9, 4, 4>}, {pipeline_mode = #tpu.pipeline_mode<synchronous>, transform_indices = @transform_16, window_bounds = array<i64: 4, 1>}, {pipeline_mode = #tpu.pipeline_mode<synchronous>, transform_indices = @transform_17, window_bounds = array<i64: 1, 1, 4>}, {pipeline_mode = #tpu.pipeline_mode<synchronous>, transform_indices = @transform_18, window_bounds = array<i64: 1, 1>}, {transform_indices = @transform_19, window_bounds = array<i64: 1, 1, 256>}]} {
    %c0 = arith.constant 0 : index
    %c0_0 = arith.constant 0 : index
    %c0_1 = arith.constant 0 : index
    %0 = vector.load %arg1[%c0, %c0_0, %c0_1] : memref<1x1x256xf32, #tpu.memory_space<vmem>>, vector<1x1x256xf32>
    %1 = vector.shape_cast %0 : vector<1x1x256xf32> to vector<1x256xf32>
    %c0_2 = arith.constant 0 : index
    %c0_3 = arith.constant 0 : index
    %2 = vector.load %arg3[%c0_2, %c0_3] : memref<4x1xf32, #tpu.memory_space<vmem>>, vector<4x1xf32>
    %cst = arith.constant 0.000000e+00 : f32
    %3 = vector.broadcast %cst : f32 to vector<4x256xf32>
    %4 = tpu.iota {dimensions = array<i32: 1>} : vector<1x256xi32>
    %c15_i32 = arith.constant 15 : i32
    %5 = vector.broadcast %c15_i32 : i32 to vector<1x256xi32>
    %6 = arith.andi %4, %5 : vector<1x256xi32>
    %c-17_i32 = arith.constant -17 : i32
    %7 = vector.broadcast %c-17_i32 : i32 to vector<1x256xi32>
    %8 = arith.addi %4, %7 : vector<1x256xi32>
    %c0_i32 = arith.constant 0 : i32
    %9 = vector.broadcast %c0_i32 : i32 to vector<1x256xi32>
    %10 = arith.cmpi sge, %8, %9 : vector<1x256xi32>
    %c256_i32 = arith.constant 256 : i32
    %11 = vector.broadcast %c256_i32 : i32 to vector<1x256xi32>
    %12 = arith.cmpi slt, %8, %11 : vector<1x256xi32>
    %13 = arith.andi %10, %12 : vector<1x256xi1>
    %c-1_i32 = arith.constant -1 : i32
    %14 = vector.broadcast %c-1_i32 : i32 to vector<1x256xi32>
    %15 = arith.addi %6, %14 : vector<1x256xi32>
    %c0_i32_4 = arith.constant 0 : i32
    %16 = vector.broadcast %c0_i32_4 : i32 to vector<1x256xi32>
    %17 = arith.cmpi sge, %15, %16 : vector<1x256xi32>
    %18 = arith.andi %13, %17 : vector<1x256xi1>
    %c-1_i32_5 = arith.constant -1 : i32
    %19 = vector.broadcast %c-1_i32_5 : i32 to vector<1x256xi32>
    %20 = arith.addi %6, %19 : vector<1x256xi32>
    %c16_i32 = arith.constant 16 : i32
    %21 = vector.broadcast %c16_i32 : i32 to vector<1x256xi32>
    %22 = arith.cmpi slt, %20, %21 : vector<1x256xi32>
    %23 = arith.andi %18, %22 : vector<1x256xi1>
    %c256_i32_6 = arith.constant 256 : i32
    %24 = vector.broadcast %c256_i32_6 : i32 to vector<1x256xi32>
    %25 = arith.addi %8, %24 : vector<1x256xi32>
    %c255_i32 = arith.constant 255 : i32
    %26 = vector.broadcast %c255_i32 : i32 to vector<1x256xi32>
    %27 = arith.andi %25, %26 : vector<1x256xi32>
    %c17_i32 = arith.constant 17 : i32
    %28 = tpu.dynamic_rotate %1 by %c17_i32 dim 1 : vector<1x256xf32>, i32 -> vector<1x256xf32>
    %c239_i32 = arith.constant 239 : i32
    %29 = tpu.dynamic_rotate %1 by %c239_i32 dim 1 : vector<1x256xf32>, i32 -> vector<1x256xf32>
    %c17_i32_7 = arith.constant 17 : i32
    %30 = tpu.dynamic_rotate %4 by %c17_i32_7 dim 1 : vector<1x256xi32>, i32 -> vector<1x256xi32>
    %31 = arith.cmpi eq, %30, %27 : vector<1x256xi32>
    %32 = arith.select %31, %28, %29 : vector<1x256xi1>, vector<1x256xf32>
    %cst_8 = arith.constant 0.000000e+00 : f32
    %33 = vector.broadcast %cst_8 : f32 to vector<1x256xf32>
    %34 = arith.select %23, %32, %33 : vector<1x256xi1>, vector<1x256xf32>
    %c0_9 = arith.constant 0 : index
    %c0_10 = arith.constant 0 : index
    %c0_11 = arith.constant 0 : index
    %35 = vector.load %arg2[%c0_9, %c0_10, %c0_11] : memref<9x4x1xf32, #tpu.memory_space<vmem>>, vector<1x4x1xf32>
    %36 = vector.shape_cast %35 : vector<1x4x1xf32> to vector<4x1xf32>
    %37 = vector.broadcast %36 : vector<4x1xf32> to vector<4x256xf32>
    %38 = vector.broadcast %34 : vector<1x256xf32> to vector<4x256xf32>
    %39 = arith.mulf %37, %38 : vector<4x256xf32>
    %40 = arith.addf %3, %39 : vector<4x256xf32>
    %41 = tpu.iota {dimensions = array<i32: 1>} : vector<1x256xi32>
    %c15_i32_12 = arith.constant 15 : i32
    %42 = vector.broadcast %c15_i32_12 : i32 to vector<1x256xi32>
    %43 = arith.andi %41, %42 : vector<1x256xi32>
    %c-16_i32 = arith.constant -16 : i32
    %44 = vector.broadcast %c-16_i32 : i32 to vector<1x256xi32>
    %45 = arith.addi %41, %44 : vector<1x256xi32>
    %c0_i32_13 = arith.constant 0 : i32
    %46 = vector.broadcast %c0_i32_13 : i32 to vector<1x256xi32>
    %47 = arith.cmpi sge, %45, %46 : vector<1x256xi32>
    %c256_i32_14 = arith.constant 256 : i32
    %48 = vector.broadcast %c256_i32_14 : i32 to vector<1x256xi32>
    %49 = arith.cmpi slt, %45, %48 : vector<1x256xi32>
    %50 = arith.andi %47, %49 : vector<1x256xi1>
    %c0_i32_15 = arith.constant 0 : i32
    %51 = vector.broadcast %c0_i32_15 : i32 to vector<1x256xi32>
    %52 = arith.addi %43, %51 : vector<1x256xi32>
    %c0_i32_16 = arith.constant 0 : i32
    %53 = vector.broadcast %c0_i32_16 : i32 to vector<1x256xi32>
    %54 = arith.cmpi sge, %52, %53 : vector<1x256xi32>
    %55 = arith.andi %50, %54 : vector<1x256xi1>
    %c0_i32_17 = arith.constant 0 : i32
    %56 = vector.broadcast %c0_i32_17 : i32 to vector<1x256xi32>
    %57 = arith.addi %43, %56 : vector<1x256xi32>
    %c16_i32_18 = arith.constant 16 : i32
    %58 = vector.broadcast %c16_i32_18 : i32 to vector<1x256xi32>
    %59 = arith.cmpi slt, %57, %58 : vector<1x256xi32>
    %60 = arith.andi %55, %59 : vector<1x256xi1>
    %c256_i32_19 = arith.constant 256 : i32
    %61 = vector.broadcast %c256_i32_19 : i32 to vector<1x256xi32>
    %62 = arith.addi %45, %61 : vector<1x256xi32>
    %c255_i32_20 = arith.constant 255 : i32
    %63 = vector.broadcast %c255_i32_20 : i32 to vector<1x256xi32>
    %64 = arith.andi %62, %63 : vector<1x256xi32>
    %c16_i32_21 = arith.constant 16 : i32
    %65 = tpu.dynamic_rotate %1 by %c16_i32_21 dim 1 : vector<1x256xf32>, i32 -> vector<1x256xf32>
    %c240_i32 = arith.constant 240 : i32
    %66 = tpu.dynamic_rotate %1 by %c240_i32 dim 1 : vector<1x256xf32>, i32 -> vector<1x256xf32>
    %c16_i32_22 = arith.constant 16 : i32
    %67 = tpu.dynamic_rotate %41 by %c16_i32_22 dim 1 : vector<1x256xi32>, i32 -> vector<1x256xi32>
    %68 = arith.cmpi eq, %67, %64 : vector<1x256xi32>
    %69 = arith.select %68, %65, %66 : vector<1x256xi1>, vector<1x256xf32>
    %cst_23 = arith.constant 0.000000e+00 : f32
    %70 = vector.broadcast %cst_23 : f32 to vector<1x256xf32>
    %71 = arith.select %60, %69, %70 : vector<1x256xi1>, vector<1x256xf32>
    %c1 = arith.constant 1 : index
    %c0_24 = arith.constant 0 : index
    %c0_25 = arith.constant 0 : index
    %72 = vector.load %arg2[%c1, %c0_24, %c0_25] : memref<9x4x1xf32, #tpu.memory_space<vmem>>, vector<1x4x1xf32>
    %73 = vector.shape_cast %72 : vector<1x4x1xf32> to vector<4x1xf32>
    %74 = vector.broadcast %73 : vector<4x1xf32> to vector<4x256xf32>
    %75 = vector.broadcast %71 : vector<1x256xf32> to vector<4x256xf32>
    %76 = arith.mulf %74, %75 : vector<4x256xf32>
    %77 = arith.addf %40, %76 : vector<4x256xf32>
    %78 = tpu.iota {dimensions = array<i32: 1>} : vector<1x256xi32>
    %c15_i32_26 = arith.constant 15 : i32
    %79 = vector.broadcast %c15_i32_26 : i32 to vector<1x256xi32>
    %80 = arith.andi %78, %79 : vector<1x256xi32>
    %c-15_i32 = arith.constant -15 : i32
    %81 = vector.broadcast %c-15_i32 : i32 to vector<1x256xi32>
    %82 = arith.addi %78, %81 : vector<1x256xi32>
    %c0_i32_27 = arith.constant 0 : i32
    %83 = vector.broadcast %c0_i32_27 : i32 to vector<1x256xi32>
    %84 = arith.cmpi sge, %82, %83 : vector<1x256xi32>
    %c256_i32_28 = arith.constant 256 : i32
    %85 = vector.broadcast %c256_i32_28 : i32 to vector<1x256xi32>
    %86 = arith.cmpi slt, %82, %85 : vector<1x256xi32>
    %87 = arith.andi %84, %86 : vector<1x256xi1>
    %c1_i32 = arith.constant 1 : i32
    %88 = vector.broadcast %c1_i32 : i32 to vector<1x256xi32>
    %89 = arith.addi %80, %88 : vector<1x256xi32>
    %c0_i32_29 = arith.constant 0 : i32
    %90 = vector.broadcast %c0_i32_29 : i32 to vector<1x256xi32>
    %91 = arith.cmpi sge, %89, %90 : vector<1x256xi32>
    %92 = arith.andi %87, %91 : vector<1x256xi1>
    %c1_i32_30 = arith.constant 1 : i32
    %93 = vector.broadcast %c1_i32_30 : i32 to vector<1x256xi32>
    %94 = arith.addi %80, %93 : vector<1x256xi32>
    %c16_i32_31 = arith.constant 16 : i32
    %95 = vector.broadcast %c16_i32_31 : i32 to vector<1x256xi32>
    %96 = arith.cmpi slt, %94, %95 : vector<1x256xi32>
    %97 = arith.andi %92, %96 : vector<1x256xi1>
    %c256_i32_32 = arith.constant 256 : i32
    %98 = vector.broadcast %c256_i32_32 : i32 to vector<1x256xi32>
    %99 = arith.addi %82, %98 : vector<1x256xi32>
    %c255_i32_33 = arith.constant 255 : i32
    %100 = vector.broadcast %c255_i32_33 : i32 to vector<1x256xi32>
    %101 = arith.andi %99, %100 : vector<1x256xi32>
    %c15_i32_34 = arith.constant 15 : i32
    %102 = tpu.dynamic_rotate %1 by %c15_i32_34 dim 1 : vector<1x256xf32>, i32 -> vector<1x256xf32>
    %c241_i32 = arith.constant 241 : i32
    %103 = tpu.dynamic_rotate %1 by %c241_i32 dim 1 : vector<1x256xf32>, i32 -> vector<1x256xf32>
    %c15_i32_35 = arith.constant 15 : i32
    %104 = tpu.dynamic_rotate %78 by %c15_i32_35 dim 1 : vector<1x256xi32>, i32 -> vector<1x256xi32>
    %105 = arith.cmpi eq, %104, %101 : vector<1x256xi32>
    %106 = arith.select %105, %102, %103 : vector<1x256xi1>, vector<1x256xf32>
    %cst_36 = arith.constant 0.000000e+00 : f32
    %107 = vector.broadcast %cst_36 : f32 to vector<1x256xf32>
    %108 = arith.select %97, %106, %107 : vector<1x256xi1>, vector<1x256xf32>
    %c2 = arith.constant 2 : index
    %c0_37 = arith.constant 0 : index
    %c0_38 = arith.constant 0 : index
    %109 = vector.load %arg2[%c2, %c0_37, %c0_38] : memref<9x4x1xf32, #tpu.memory_space<vmem>>, vector<1x4x1xf32>
    %110 = vector.shape_cast %109 : vector<1x4x1xf32> to vector<4x1xf32>
    %111 = vector.broadcast %110 : vector<4x1xf32> to vector<4x256xf32>
    %112 = vector.broadcast %108 : vector<1x256xf32> to vector<4x256xf32>
    %113 = arith.mulf %111, %112 : vector<4x256xf32>
    %114 = arith.addf %77, %113 : vector<4x256xf32>
    %115 = tpu.iota {dimensions = array<i32: 1>} : vector<1x256xi32>
    %c15_i32_39 = arith.constant 15 : i32
    %116 = vector.broadcast %c15_i32_39 : i32 to vector<1x256xi32>
    %117 = arith.andi %115, %116 : vector<1x256xi32>
    %c-1_i32_40 = arith.constant -1 : i32
    %118 = vector.broadcast %c-1_i32_40 : i32 to vector<1x256xi32>
    %119 = arith.addi %115, %118 : vector<1x256xi32>
    %c0_i32_41 = arith.constant 0 : i32
    %120 = vector.broadcast %c0_i32_41 : i32 to vector<1x256xi32>
    %121 = arith.cmpi sge, %119, %120 : vector<1x256xi32>
    %c256_i32_42 = arith.constant 256 : i32
    %122 = vector.broadcast %c256_i32_42 : i32 to vector<1x256xi32>
    %123 = arith.cmpi slt, %119, %122 : vector<1x256xi32>
    %124 = arith.andi %121, %123 : vector<1x256xi1>
    %c-1_i32_43 = arith.constant -1 : i32
    %125 = vector.broadcast %c-1_i32_43 : i32 to vector<1x256xi32>
    %126 = arith.addi %117, %125 : vector<1x256xi32>
    %c0_i32_44 = arith.constant 0 : i32
    %127 = vector.broadcast %c0_i32_44 : i32 to vector<1x256xi32>
    %128 = arith.cmpi sge, %126, %127 : vector<1x256xi32>
    %129 = arith.andi %124, %128 : vector<1x256xi1>
    %c-1_i32_45 = arith.constant -1 : i32
    %130 = vector.broadcast %c-1_i32_45 : i32 to vector<1x256xi32>
    %131 = arith.addi %117, %130 : vector<1x256xi32>
    %c16_i32_46 = arith.constant 16 : i32
    %132 = vector.broadcast %c16_i32_46 : i32 to vector<1x256xi32>
    %133 = arith.cmpi slt, %131, %132 : vector<1x256xi32>
    %134 = arith.andi %129, %133 : vector<1x256xi1>
    %c256_i32_47 = arith.constant 256 : i32
    %135 = vector.broadcast %c256_i32_47 : i32 to vector<1x256xi32>
    %136 = arith.addi %119, %135 : vector<1x256xi32>
    %c255_i32_48 = arith.constant 255 : i32
    %137 = vector.broadcast %c255_i32_48 : i32 to vector<1x256xi32>
    %138 = arith.andi %136, %137 : vector<1x256xi32>
    %c1_i32_49 = arith.constant 1 : i32
    %139 = tpu.dynamic_rotate %1 by %c1_i32_49 dim 1 : vector<1x256xf32>, i32 -> vector<1x256xf32>
    %c255_i32_50 = arith.constant 255 : i32
    %140 = tpu.dynamic_rotate %1 by %c255_i32_50 dim 1 : vector<1x256xf32>, i32 -> vector<1x256xf32>
    %c1_i32_51 = arith.constant 1 : i32
    %141 = tpu.dynamic_rotate %115 by %c1_i32_51 dim 1 : vector<1x256xi32>, i32 -> vector<1x256xi32>
    %142 = arith.cmpi eq, %141, %138 : vector<1x256xi32>
    %143 = arith.select %142, %139, %140 : vector<1x256xi1>, vector<1x256xf32>
    %cst_52 = arith.constant 0.000000e+00 : f32
    %144 = vector.broadcast %cst_52 : f32 to vector<1x256xf32>
    %145 = arith.select %134, %143, %144 : vector<1x256xi1>, vector<1x256xf32>
    %c3 = arith.constant 3 : index
    %c0_53 = arith.constant 0 : index
    %c0_54 = arith.constant 0 : index
    %146 = vector.load %arg2[%c3, %c0_53, %c0_54] : memref<9x4x1xf32, #tpu.memory_space<vmem>>, vector<1x4x1xf32>
    %147 = vector.shape_cast %146 : vector<1x4x1xf32> to vector<4x1xf32>
    %148 = vector.broadcast %147 : vector<4x1xf32> to vector<4x256xf32>
    %149 = vector.broadcast %145 : vector<1x256xf32> to vector<4x256xf32>
    %150 = arith.mulf %148, %149 : vector<4x256xf32>
    %151 = arith.addf %114, %150 : vector<4x256xf32>
    %c4 = arith.constant 4 : index
    %c0_55 = arith.constant 0 : index
    %c0_56 = arith.constant 0 : index
    %152 = vector.load %arg2[%c4, %c0_55, %c0_56] : memref<9x4x1xf32, #tpu.memory_space<vmem>>, vector<1x4x1xf32>
    %153 = vector.shape_cast %152 : vector<1x4x1xf32> to vector<4x1xf32>
    %154 = vector.broadcast %153 : vector<4x1xf32> to vector<4x256xf32>
    %155 = vector.broadcast %1 : vector<1x256xf32> to vector<4x256xf32>
    %156 = arith.mulf %154, %155 : vector<4x256xf32>
    %157 = arith.addf %151, %156 : vector<4x256xf32>
    %158 = tpu.iota {dimensions = array<i32: 1>} : vector<1x256xi32>
    %c15_i32_57 = arith.constant 15 : i32
    %159 = vector.broadcast %c15_i32_57 : i32 to vector<1x256xi32>
    %160 = arith.andi %158, %159 : vector<1x256xi32>
    %c1_i32_58 = arith.constant 1 : i32
    %161 = vector.broadcast %c1_i32_58 : i32 to vector<1x256xi32>
    %162 = arith.addi %158, %161 : vector<1x256xi32>
    %c0_i32_59 = arith.constant 0 : i32
    %163 = vector.broadcast %c0_i32_59 : i32 to vector<1x256xi32>
    %164 = arith.cmpi sge, %162, %163 : vector<1x256xi32>
    %c256_i32_60 = arith.constant 256 : i32
    %165 = vector.broadcast %c256_i32_60 : i32 to vector<1x256xi32>
    %166 = arith.cmpi slt, %162, %165 : vector<1x256xi32>
    %167 = arith.andi %164, %166 : vector<1x256xi1>
    %c1_i32_61 = arith.constant 1 : i32
    %168 = vector.broadcast %c1_i32_61 : i32 to vector<1x256xi32>
    %169 = arith.addi %160, %168 : vector<1x256xi32>
    %c0_i32_62 = arith.constant 0 : i32
    %170 = vector.broadcast %c0_i32_62 : i32 to vector<1x256xi32>
    %171 = arith.cmpi sge, %169, %170 : vector<1x256xi32>
    %172 = arith.andi %167, %171 : vector<1x256xi1>
    %c1_i32_63 = arith.constant 1 : i32
    %173 = vector.broadcast %c1_i32_63 : i32 to vector<1x256xi32>
    %174 = arith.addi %160, %173 : vector<1x256xi32>
    %c16_i32_64 = arith.constant 16 : i32
    %175 = vector.broadcast %c16_i32_64 : i32 to vector<1x256xi32>
    %176 = arith.cmpi slt, %174, %175 : vector<1x256xi32>
    %177 = arith.andi %172, %176 : vector<1x256xi1>
    %c256_i32_65 = arith.constant 256 : i32
    %178 = vector.broadcast %c256_i32_65 : i32 to vector<1x256xi32>
    %179 = arith.addi %162, %178 : vector<1x256xi32>
    %c255_i32_66 = arith.constant 255 : i32
    %180 = vector.broadcast %c255_i32_66 : i32 to vector<1x256xi32>
    %181 = arith.andi %179, %180 : vector<1x256xi32>
    %c255_i32_67 = arith.constant 255 : i32
    %182 = tpu.dynamic_rotate %1 by %c255_i32_67 dim 1 : vector<1x256xf32>, i32 -> vector<1x256xf32>
    %c1_i32_68 = arith.constant 1 : i32
    %183 = tpu.dynamic_rotate %1 by %c1_i32_68 dim 1 : vector<1x256xf32>, i32 -> vector<1x256xf32>
    %c255_i32_69 = arith.constant 255 : i32
    %184 = tpu.dynamic_rotate %158 by %c255_i32_69 dim 1 : vector<1x256xi32>, i32 -> vector<1x256xi32>
    %185 = arith.cmpi eq, %184, %181 : vector<1x256xi32>
    %186 = arith.select %185, %182, %183 : vector<1x256xi1>, vector<1x256xf32>
    %cst_70 = arith.constant 0.000000e+00 : f32
    %187 = vector.broadcast %cst_70 : f32 to vector<1x256xf32>
    %188 = arith.select %177, %186, %187 : vector<1x256xi1>, vector<1x256xf32>
    %c5 = arith.constant 5 : index
    %c0_71 = arith.constant 0 : index
    %c0_72 = arith.constant 0 : index
    %189 = vector.load %arg2[%c5, %c0_71, %c0_72] : memref<9x4x1xf32, #tpu.memory_space<vmem>>, vector<1x4x1xf32>
    %190 = vector.shape_cast %189 : vector<1x4x1xf32> to vector<4x1xf32>
    %191 = vector.broadcast %190 : vector<4x1xf32> to vector<4x256xf32>
    %192 = vector.broadcast %188 : vector<1x256xf32> to vector<4x256xf32>
    %193 = arith.mulf %191, %192 : vector<4x256xf32>
    %194 = arith.addf %157, %193 : vector<4x256xf32>
    %195 = tpu.iota {dimensions = array<i32: 1>} : vector<1x256xi32>
    %c15_i32_73 = arith.constant 15 : i32
    %196 = vector.broadcast %c15_i32_73 : i32 to vector<1x256xi32>
    %197 = arith.andi %195, %196 : vector<1x256xi32>
    %c15_i32_74 = arith.constant 15 : i32
    %198 = vector.broadcast %c15_i32_74 : i32 to vector<1x256xi32>
    %199 = arith.addi %195, %198 : vector<1x256xi32>
    %c0_i32_75 = arith.constant 0 : i32
    %200 = vector.broadcast %c0_i32_75 : i32 to vector<1x256xi32>
    %201 = arith.cmpi sge, %199, %200 : vector<1x256xi32>
    %c256_i32_76 = arith.constant 256 : i32
    %202 = vector.broadcast %c256_i32_76 : i32 to vector<1x256xi32>
    %203 = arith.cmpi slt, %199, %202 : vector<1x256xi32>
    %204 = arith.andi %201, %203 : vector<1x256xi1>
    %c-1_i32_77 = arith.constant -1 : i32
    %205 = vector.broadcast %c-1_i32_77 : i32 to vector<1x256xi32>
    %206 = arith.addi %197, %205 : vector<1x256xi32>
    %c0_i32_78 = arith.constant 0 : i32
    %207 = vector.broadcast %c0_i32_78 : i32 to vector<1x256xi32>
    %208 = arith.cmpi sge, %206, %207 : vector<1x256xi32>
    %209 = arith.andi %204, %208 : vector<1x256xi1>
    %c-1_i32_79 = arith.constant -1 : i32
    %210 = vector.broadcast %c-1_i32_79 : i32 to vector<1x256xi32>
    %211 = arith.addi %197, %210 : vector<1x256xi32>
    %c16_i32_80 = arith.constant 16 : i32
    %212 = vector.broadcast %c16_i32_80 : i32 to vector<1x256xi32>
    %213 = arith.cmpi slt, %211, %212 : vector<1x256xi32>
    %214 = arith.andi %209, %213 : vector<1x256xi1>
    %c256_i32_81 = arith.constant 256 : i32
    %215 = vector.broadcast %c256_i32_81 : i32 to vector<1x256xi32>
    %216 = arith.addi %199, %215 : vector<1x256xi32>
    %c255_i32_82 = arith.constant 255 : i32
    %217 = vector.broadcast %c255_i32_82 : i32 to vector<1x256xi32>
    %218 = arith.andi %216, %217 : vector<1x256xi32>
    %c241_i32_83 = arith.constant 241 : i32
    %219 = tpu.dynamic_rotate %1 by %c241_i32_83 dim 1 : vector<1x256xf32>, i32 -> vector<1x256xf32>
    %c15_i32_84 = arith.constant 15 : i32
    %220 = tpu.dynamic_rotate %1 by %c15_i32_84 dim 1 : vector<1x256xf32>, i32 -> vector<1x256xf32>
    %c241_i32_85 = arith.constant 241 : i32
    %221 = tpu.dynamic_rotate %195 by %c241_i32_85 dim 1 : vector<1x256xi32>, i32 -> vector<1x256xi32>
    %222 = arith.cmpi eq, %221, %218 : vector<1x256xi32>
    %223 = arith.select %222, %219, %220 : vector<1x256xi1>, vector<1x256xf32>
    %cst_86 = arith.constant 0.000000e+00 : f32
    %224 = vector.broadcast %cst_86 : f32 to vector<1x256xf32>
    %225 = arith.select %214, %223, %224 : vector<1x256xi1>, vector<1x256xf32>
    %c6 = arith.constant 6 : index
    %c0_87 = arith.constant 0 : index
    %c0_88 = arith.constant 0 : index
    %226 = vector.load %arg2[%c6, %c0_87, %c0_88] : memref<9x4x1xf32, #tpu.memory_space<vmem>>, vector<1x4x1xf32>
    %227 = vector.shape_cast %226 : vector<1x4x1xf32> to vector<4x1xf32>
    %228 = vector.broadcast %227 : vector<4x1xf32> to vector<4x256xf32>
    %229 = vector.broadcast %225 : vector<1x256xf32> to vector<4x256xf32>
    %230 = arith.mulf %228, %229 : vector<4x256xf32>
    %231 = arith.addf %194, %230 : vector<4x256xf32>
    %232 = tpu.iota {dimensions = array<i32: 1>} : vector<1x256xi32>
    %c15_i32_89 = arith.constant 15 : i32
    %233 = vector.broadcast %c15_i32_89 : i32 to vector<1x256xi32>
    %234 = arith.andi %232, %233 : vector<1x256xi32>
    %c16_i32_90 = arith.constant 16 : i32
    %235 = vector.broadcast %c16_i32_90 : i32 to vector<1x256xi32>
    %236 = arith.addi %232, %235 : vector<1x256xi32>
    %c0_i32_91 = arith.constant 0 : i32
    %237 = vector.broadcast %c0_i32_91 : i32 to vector<1x256xi32>
    %238 = arith.cmpi sge, %236, %237 : vector<1x256xi32>
    %c256_i32_92 = arith.constant 256 : i32
    %239 = vector.broadcast %c256_i32_92 : i32 to vector<1x256xi32>
    %240 = arith.cmpi slt, %236, %239 : vector<1x256xi32>
    %241 = arith.andi %238, %240 : vector<1x256xi1>
    %c0_i32_93 = arith.constant 0 : i32
    %242 = vector.broadcast %c0_i32_93 : i32 to vector<1x256xi32>
    %243 = arith.addi %234, %242 : vector<1x256xi32>
    %c0_i32_94 = arith.constant 0 : i32
    %244 = vector.broadcast %c0_i32_94 : i32 to vector<1x256xi32>
    %245 = arith.cmpi sge, %243, %244 : vector<1x256xi32>
    %246 = arith.andi %241, %245 : vector<1x256xi1>
    %c0_i32_95 = arith.constant 0 : i32
    %247 = vector.broadcast %c0_i32_95 : i32 to vector<1x256xi32>
    %248 = arith.addi %234, %247 : vector<1x256xi32>
    %c16_i32_96 = arith.constant 16 : i32
    %249 = vector.broadcast %c16_i32_96 : i32 to vector<1x256xi32>
    %250 = arith.cmpi slt, %248, %249 : vector<1x256xi32>
    %251 = arith.andi %246, %250 : vector<1x256xi1>
    %c256_i32_97 = arith.constant 256 : i32
    %252 = vector.broadcast %c256_i32_97 : i32 to vector<1x256xi32>
    %253 = arith.addi %236, %252 : vector<1x256xi32>
    %c255_i32_98 = arith.constant 255 : i32
    %254 = vector.broadcast %c255_i32_98 : i32 to vector<1x256xi32>
    %255 = arith.andi %253, %254 : vector<1x256xi32>
    %c240_i32_99 = arith.constant 240 : i32
    %256 = tpu.dynamic_rotate %1 by %c240_i32_99 dim 1 : vector<1x256xf32>, i32 -> vector<1x256xf32>
    %c16_i32_100 = arith.constant 16 : i32
    %257 = tpu.dynamic_rotate %1 by %c16_i32_100 dim 1 : vector<1x256xf32>, i32 -> vector<1x256xf32>
    %c240_i32_101 = arith.constant 240 : i32
    %258 = tpu.dynamic_rotate %232 by %c240_i32_101 dim 1 : vector<1x256xi32>, i32 -> vector<1x256xi32>
    %259 = arith.cmpi eq, %258, %255 : vector<1x256xi32>
    %260 = arith.select %259, %256, %257 : vector<1x256xi1>, vector<1x256xf32>
    %cst_102 = arith.constant 0.000000e+00 : f32
    %261 = vector.broadcast %cst_102 : f32 to vector<1x256xf32>
    %262 = arith.select %251, %260, %261 : vector<1x256xi1>, vector<1x256xf32>
    %c7 = arith.constant 7 : index
    %c0_103 = arith.constant 0 : index
    %c0_104 = arith.constant 0 : index
    %263 = vector.load %arg2[%c7, %c0_103, %c0_104] : memref<9x4x1xf32, #tpu.memory_space<vmem>>, vector<1x4x1xf32>
    %264 = vector.shape_cast %263 : vector<1x4x1xf32> to vector<4x1xf32>
    %265 = vector.broadcast %264 : vector<4x1xf32> to vector<4x256xf32>
    %266 = vector.broadcast %262 : vector<1x256xf32> to vector<4x256xf32>
    %267 = arith.mulf %265, %266 : vector<4x256xf32>
    %268 = arith.addf %231, %267 : vector<4x256xf32>
    %269 = tpu.iota {dimensions = array<i32: 1>} : vector<1x256xi32>
    %c15_i32_105 = arith.constant 15 : i32
    %270 = vector.broadcast %c15_i32_105 : i32 to vector<1x256xi32>
    %271 = arith.andi %269, %270 : vector<1x256xi32>
    %c17_i32_106 = arith.constant 17 : i32
    %272 = vector.broadcast %c17_i32_106 : i32 to vector<1x256xi32>
    %273 = arith.addi %269, %272 : vector<1x256xi32>
    %c0_i32_107 = arith.constant 0 : i32
    %274 = vector.broadcast %c0_i32_107 : i32 to vector<1x256xi32>
    %275 = arith.cmpi sge, %273, %274 : vector<1x256xi32>
    %c256_i32_108 = arith.constant 256 : i32
    %276 = vector.broadcast %c256_i32_108 : i32 to vector<1x256xi32>
    %277 = arith.cmpi slt, %273, %276 : vector<1x256xi32>
    %278 = arith.andi %275, %277 : vector<1x256xi1>
    %c1_i32_109 = arith.constant 1 : i32
    %279 = vector.broadcast %c1_i32_109 : i32 to vector<1x256xi32>
    %280 = arith.addi %271, %279 : vector<1x256xi32>
    %c0_i32_110 = arith.constant 0 : i32
    %281 = vector.broadcast %c0_i32_110 : i32 to vector<1x256xi32>
    %282 = arith.cmpi sge, %280, %281 : vector<1x256xi32>
    %283 = arith.andi %278, %282 : vector<1x256xi1>
    %c1_i32_111 = arith.constant 1 : i32
    %284 = vector.broadcast %c1_i32_111 : i32 to vector<1x256xi32>
    %285 = arith.addi %271, %284 : vector<1x256xi32>
    %c16_i32_112 = arith.constant 16 : i32
    %286 = vector.broadcast %c16_i32_112 : i32 to vector<1x256xi32>
    %287 = arith.cmpi slt, %285, %286 : vector<1x256xi32>
    %288 = arith.andi %283, %287 : vector<1x256xi1>
    %c256_i32_113 = arith.constant 256 : i32
    %289 = vector.broadcast %c256_i32_113 : i32 to vector<1x256xi32>
    %290 = arith.addi %273, %289 : vector<1x256xi32>
    %c255_i32_114 = arith.constant 255 : i32
    %291 = vector.broadcast %c255_i32_114 : i32 to vector<1x256xi32>
    %292 = arith.andi %290, %291 : vector<1x256xi32>
    %c239_i32_115 = arith.constant 239 : i32
    %293 = tpu.dynamic_rotate %1 by %c239_i32_115 dim 1 : vector<1x256xf32>, i32 -> vector<1x256xf32>
    %c17_i32_116 = arith.constant 17 : i32
    %294 = tpu.dynamic_rotate %1 by %c17_i32_116 dim 1 : vector<1x256xf32>, i32 -> vector<1x256xf32>
    %c239_i32_117 = arith.constant 239 : i32
    %295 = tpu.dynamic_rotate %269 by %c239_i32_117 dim 1 : vector<1x256xi32>, i32 -> vector<1x256xi32>
    %296 = arith.cmpi eq, %295, %292 : vector<1x256xi32>
    %297 = arith.select %296, %293, %294 : vector<1x256xi1>, vector<1x256xf32>
    %cst_118 = arith.constant 0.000000e+00 : f32
    %298 = vector.broadcast %cst_118 : f32 to vector<1x256xf32>
    %299 = arith.select %288, %297, %298 : vector<1x256xi1>, vector<1x256xf32>
    %c8 = arith.constant 8 : index
    %c0_119 = arith.constant 0 : index
    %c0_120 = arith.constant 0 : index
    %300 = vector.load %arg2[%c8, %c0_119, %c0_120] : memref<9x4x1xf32, #tpu.memory_space<vmem>>, vector<1x4x1xf32>
    %301 = vector.shape_cast %300 : vector<1x4x1xf32> to vector<4x1xf32>
    %302 = vector.broadcast %301 : vector<4x1xf32> to vector<4x256xf32>
    %303 = vector.broadcast %299 : vector<1x256xf32> to vector<4x256xf32>
    %304 = arith.mulf %302, %303 : vector<4x256xf32>
    %305 = arith.addf %268, %304 : vector<4x256xf32>
    %306 = vector.broadcast %2 : vector<4x1xf32> to vector<4x256xf32>
    %307 = arith.addf %305, %306 : vector<4x256xf32>
    %cst_121 = arith.constant 0.000000e+00 : f32
    %308 = vector.broadcast %cst_121 : f32 to vector<4x256xf32>
    %309 = arith.maximumf %307, %308 : vector<4x256xf32>
    %310 = tpu.iota {dimensions = array<i32: 1>} : vector<1x256xi32>
    %c15_i32_122 = arith.constant 15 : i32
    %311 = vector.broadcast %c15_i32_122 : i32 to vector<1x256xi32>
    %312 = arith.andi %310, %311 : vector<1x256xi32>
    %c1_i32_123 = arith.constant 1 : i32
    %313 = vector.broadcast %c1_i32_123 : i32 to vector<1x256xi32>
    %314 = arith.addi %310, %313 : vector<1x256xi32>
    %c0_i32_124 = arith.constant 0 : i32
    %315 = vector.broadcast %c0_i32_124 : i32 to vector<1x256xi32>
    %316 = arith.cmpi sge, %314, %315 : vector<1x256xi32>
    %c256_i32_125 = arith.constant 256 : i32
    %317 = vector.broadcast %c256_i32_125 : i32 to vector<1x256xi32>
    %318 = arith.cmpi slt, %314, %317 : vector<1x256xi32>
    %319 = arith.andi %316, %318 : vector<1x256xi1>
    %c1_i32_126 = arith.constant 1 : i32
    %320 = vector.broadcast %c1_i32_126 : i32 to vector<1x256xi32>
    %321 = arith.addi %312, %320 : vector<1x256xi32>
    %c0_i32_127 = arith.constant 0 : i32
    %322 = vector.broadcast %c0_i32_127 : i32 to vector<1x256xi32>
    %323 = arith.cmpi sge, %321, %322 : vector<1x256xi32>
    %324 = arith.andi %319, %323 : vector<1x256xi1>
    %c1_i32_128 = arith.constant 1 : i32
    %325 = vector.broadcast %c1_i32_128 : i32 to vector<1x256xi32>
    %326 = arith.addi %312, %325 : vector<1x256xi32>
    %c16_i32_129 = arith.constant 16 : i32
    %327 = vector.broadcast %c16_i32_129 : i32 to vector<1x256xi32>
    %328 = arith.cmpi slt, %326, %327 : vector<1x256xi32>
    %329 = arith.andi %324, %328 : vector<1x256xi1>
    %c256_i32_130 = arith.constant 256 : i32
    %330 = vector.broadcast %c256_i32_130 : i32 to vector<1x256xi32>
    %331 = arith.addi %314, %330 : vector<1x256xi32>
    %c255_i32_131 = arith.constant 255 : i32
    %332 = vector.broadcast %c255_i32_131 : i32 to vector<1x256xi32>
    %333 = arith.andi %331, %332 : vector<1x256xi32>
    %c255_i32_132 = arith.constant 255 : i32
    %334 = tpu.dynamic_rotate %309 by %c255_i32_132 dim 1 : vector<4x256xf32>, i32 -> vector<4x256xf32>
    %c1_i32_133 = arith.constant 1 : i32
    %335 = tpu.dynamic_rotate %309 by %c1_i32_133 dim 1 : vector<4x256xf32>, i32 -> vector<4x256xf32>
    %c255_i32_134 = arith.constant 255 : i32
    %336 = tpu.dynamic_rotate %310 by %c255_i32_134 dim 1 : vector<1x256xi32>, i32 -> vector<1x256xi32>
    %337 = arith.cmpi eq, %336, %333 : vector<1x256xi32>
    %338 = vector.shape_cast %337 : vector<1x256xi1> to vector<1x256xi1>
    %339 = vector.broadcast %338 : vector<1x256xi1> to vector<4x256xi1>
    %340 = arith.select %339, %334, %335 : vector<4x256xi1>, vector<4x256xf32>
    %cst_135 = arith.constant 0.000000e+00 : f32
    %341 = vector.shape_cast %329 : vector<1x256xi1> to vector<1x256xi1>
    %342 = vector.broadcast %341 : vector<1x256xi1> to vector<4x256xi1>
    %343 = vector.broadcast %cst_135 : f32 to vector<4x256xf32>
    %344 = arith.select %342, %340, %343 : vector<4x256xi1>, vector<4x256xf32>
    %345 = arith.maximumf %309, %344 : vector<4x256xf32>
    %346 = tpu.iota {dimensions = array<i32: 1>} : vector<1x256xi32>
    %c15_i32_136 = arith.constant 15 : i32
    %347 = vector.broadcast %c15_i32_136 : i32 to vector<1x256xi32>
    %348 = arith.andi %346, %347 : vector<1x256xi32>
    %c16_i32_137 = arith.constant 16 : i32
    %349 = vector.broadcast %c16_i32_137 : i32 to vector<1x256xi32>
    %350 = arith.addi %346, %349 : vector<1x256xi32>
    %c0_i32_138 = arith.constant 0 : i32
    %351 = vector.broadcast %c0_i32_138 : i32 to vector<1x256xi32>
    %352 = arith.cmpi sge, %350, %351 : vector<1x256xi32>
    %c256_i32_139 = arith.constant 256 : i32
    %353 = vector.broadcast %c256_i32_139 : i32 to vector<1x256xi32>
    %354 = arith.cmpi slt, %350, %353 : vector<1x256xi32>
    %355 = arith.andi %352, %354 : vector<1x256xi1>
    %c0_i32_140 = arith.constant 0 : i32
    %356 = vector.broadcast %c0_i32_140 : i32 to vector<1x256xi32>
    %357 = arith.addi %348, %356 : vector<1x256xi32>
    %c0_i32_141 = arith.constant 0 : i32
    %358 = vector.broadcast %c0_i32_141 : i32 to vector<1x256xi32>
    %359 = arith.cmpi sge, %357, %358 : vector<1x256xi32>
    %360 = arith.andi %355, %359 : vector<1x256xi1>
    %c0_i32_142 = arith.constant 0 : i32
    %361 = vector.broadcast %c0_i32_142 : i32 to vector<1x256xi32>
    %362 = arith.addi %348, %361 : vector<1x256xi32>
    %c16_i32_143 = arith.constant 16 : i32
    %363 = vector.broadcast %c16_i32_143 : i32 to vector<1x256xi32>
    %364 = arith.cmpi slt, %362, %363 : vector<1x256xi32>
    %365 = arith.andi %360, %364 : vector<1x256xi1>
    %c256_i32_144 = arith.constant 256 : i32
    %366 = vector.broadcast %c256_i32_144 : i32 to vector<1x256xi32>
    %367 = arith.addi %350, %366 : vector<1x256xi32>
    %c255_i32_145 = arith.constant 255 : i32
    %368 = vector.broadcast %c255_i32_145 : i32 to vector<1x256xi32>
    %369 = arith.andi %367, %368 : vector<1x256xi32>
    %c240_i32_146 = arith.constant 240 : i32
    %370 = tpu.dynamic_rotate %309 by %c240_i32_146 dim 1 : vector<4x256xf32>, i32 -> vector<4x256xf32>
    %c16_i32_147 = arith.constant 16 : i32
    %371 = tpu.dynamic_rotate %309 by %c16_i32_147 dim 1 : vector<4x256xf32>, i32 -> vector<4x256xf32>
    %c240_i32_148 = arith.constant 240 : i32
    %372 = tpu.dynamic_rotate %346 by %c240_i32_148 dim 1 : vector<1x256xi32>, i32 -> vector<1x256xi32>
    %373 = arith.cmpi eq, %372, %369 : vector<1x256xi32>
    %374 = vector.shape_cast %373 : vector<1x256xi1> to vector<1x256xi1>
    %375 = vector.broadcast %374 : vector<1x256xi1> to vector<4x256xi1>
    %376 = arith.select %375, %370, %371 : vector<4x256xi1>, vector<4x256xf32>
    %cst_149 = arith.constant 0.000000e+00 : f32
    %377 = vector.shape_cast %365 : vector<1x256xi1> to vector<1x256xi1>
    %378 = vector.broadcast %377 : vector<1x256xi1> to vector<4x256xi1>
    %379 = vector.broadcast %cst_149 : f32 to vector<4x256xf32>
    %380 = arith.select %378, %376, %379 : vector<4x256xi1>, vector<4x256xf32>
    %381 = arith.maximumf %345, %380 : vector<4x256xf32>
    %382 = tpu.iota {dimensions = array<i32: 1>} : vector<1x256xi32>
    %c15_i32_150 = arith.constant 15 : i32
    %383 = vector.broadcast %c15_i32_150 : i32 to vector<1x256xi32>
    %384 = arith.andi %382, %383 : vector<1x256xi32>
    %c17_i32_151 = arith.constant 17 : i32
    %385 = vector.broadcast %c17_i32_151 : i32 to vector<1x256xi32>
    %386 = arith.addi %382, %385 : vector<1x256xi32>
    %c0_i32_152 = arith.constant 0 : i32
    %387 = vector.broadcast %c0_i32_152 : i32 to vector<1x256xi32>
    %388 = arith.cmpi sge, %386, %387 : vector<1x256xi32>
    %c256_i32_153 = arith.constant 256 : i32
    %389 = vector.broadcast %c256_i32_153 : i32 to vector<1x256xi32>
    %390 = arith.cmpi slt, %386, %389 : vector<1x256xi32>
    %391 = arith.andi %388, %390 : vector<1x256xi1>
    %c1_i32_154 = arith.constant 1 : i32
    %392 = vector.broadcast %c1_i32_154 : i32 to vector<1x256xi32>
    %393 = arith.addi %384, %392 : vector<1x256xi32>
    %c0_i32_155 = arith.constant 0 : i32
    %394 = vector.broadcast %c0_i32_155 : i32 to vector<1x256xi32>
    %395 = arith.cmpi sge, %393, %394 : vector<1x256xi32>
    %396 = arith.andi %391, %395 : vector<1x256xi1>
    %c1_i32_156 = arith.constant 1 : i32
    %397 = vector.broadcast %c1_i32_156 : i32 to vector<1x256xi32>
    %398 = arith.addi %384, %397 : vector<1x256xi32>
    %c16_i32_157 = arith.constant 16 : i32
    %399 = vector.broadcast %c16_i32_157 : i32 to vector<1x256xi32>
    %400 = arith.cmpi slt, %398, %399 : vector<1x256xi32>
    %401 = arith.andi %396, %400 : vector<1x256xi1>
    %c256_i32_158 = arith.constant 256 : i32
    %402 = vector.broadcast %c256_i32_158 : i32 to vector<1x256xi32>
    %403 = arith.addi %386, %402 : vector<1x256xi32>
    %c255_i32_159 = arith.constant 255 : i32
    %404 = vector.broadcast %c255_i32_159 : i32 to vector<1x256xi32>
    %405 = arith.andi %403, %404 : vector<1x256xi32>
    %c239_i32_160 = arith.constant 239 : i32
    %406 = tpu.dynamic_rotate %309 by %c239_i32_160 dim 1 : vector<4x256xf32>, i32 -> vector<4x256xf32>
    %c17_i32_161 = arith.constant 17 : i32
    %407 = tpu.dynamic_rotate %309 by %c17_i32_161 dim 1 : vector<4x256xf32>, i32 -> vector<4x256xf32>
    %c239_i32_162 = arith.constant 239 : i32
    %408 = tpu.dynamic_rotate %382 by %c239_i32_162 dim 1 : vector<1x256xi32>, i32 -> vector<1x256xi32>
    %409 = arith.cmpi eq, %408, %405 : vector<1x256xi32>
    %410 = vector.shape_cast %409 : vector<1x256xi1> to vector<1x256xi1>
    %411 = vector.broadcast %410 : vector<1x256xi1> to vector<4x256xi1>
    %412 = arith.select %411, %406, %407 : vector<4x256xi1>, vector<4x256xf32>
    %cst_163 = arith.constant 0.000000e+00 : f32
    %413 = vector.shape_cast %401 : vector<1x256xi1> to vector<1x256xi1>
    %414 = vector.broadcast %413 : vector<1x256xi1> to vector<4x256xi1>
    %415 = vector.broadcast %cst_163 : f32 to vector<4x256xf32>
    %416 = arith.select %414, %412, %415 : vector<4x256xi1>, vector<4x256xf32>
    %417 = arith.maximumf %381, %416 : vector<4x256xf32>
    %418 = tpu.iota {dimensions = array<i32: 0>} : vector<256x64xi32>
    %419 = tpu.iota {dimensions = array<i32: 1>} : vector<256x64xi32>
    %c3_i32 = arith.constant 3 : i32
    %420 = vector.broadcast %c3_i32 : i32 to vector<256x64xi32>
    %421 = arith.shrsi %419, %420 : vector<256x64xi32>
    %c7_i32 = arith.constant 7 : i32
    %422 = vector.broadcast %c7_i32 : i32 to vector<256x64xi32>
    %423 = arith.andi %419, %422 : vector<256x64xi32>
    %c32_i32 = arith.constant 32 : i32
    %424 = vector.broadcast %c32_i32 : i32 to vector<256x64xi32>
    %425 = arith.muli %421, %424 : vector<256x64xi32>
    %c2_i32 = arith.constant 2 : i32
    %426 = vector.broadcast %c2_i32 : i32 to vector<256x64xi32>
    %427 = arith.muli %423, %426 : vector<256x64xi32>
    %428 = arith.addi %425, %427 : vector<256x64xi32>
    %429 = arith.cmpi eq, %418, %428 : vector<256x64xi32>
    %cst_164 = arith.constant 1.000000e+00 : f32
    %cst_165 = arith.constant 0.000000e+00 : f32
    %430 = vector.broadcast %cst_164 : f32 to vector<256x64xf32>
    %431 = vector.broadcast %cst_165 : f32 to vector<256x64xf32>
    %432 = arith.select %429, %430, %431 : vector<256x64xi1>, vector<256x64xf32>
    %cst_166 = arith.constant dense<0.000000e+00> : vector<4x64xf32>
    %433 = tpu.matmul %417, %432, %cst_166 {dimension_numbers = #tpu.dot_dimension_numbers<[1], [0], [0], [1], [0, 0, 1, 1], [], []>} : vector<4x256xf32>, vector<256x64xf32>, vector<4x64xf32> -> vector<4x64xf32>
    %c0_167 = arith.constant 0 : index
    %c0_168 = arith.constant 0 : index
    %434 = vector.load %arg5[%c0_167, %c0_168] : memref<16x1xf32, #tpu.memory_space<vmem>>, vector<16x1xf32>
    %cst_169 = arith.constant 0.000000e+00 : f32
    %435 = vector.broadcast %cst_169 : f32 to vector<16x64xf32>
    %436 = tpu.iota {dimensions = array<i32: 0>} : vector<64x64xi32>
    %437 = tpu.iota {dimensions = array<i32: 1>} : vector<64x64xi32>
    %c7_i32_170 = arith.constant 7 : i32
    %438 = vector.broadcast %c7_i32_170 : i32 to vector<64x64xi32>
    %439 = arith.andi %437, %438 : vector<64x64xi32>
    %c-9_i32 = arith.constant -9 : i32
    %440 = vector.broadcast %c-9_i32 : i32 to vector<64x64xi32>
    %441 = arith.addi %437, %440 : vector<64x64xi32>
    %442 = arith.cmpi eq, %436, %441 : vector<64x64xi32>
    %c-1_i32_171 = arith.constant -1 : i32
    %443 = vector.broadcast %c-1_i32_171 : i32 to vector<64x64xi32>
    %444 = arith.addi %439, %443 : vector<64x64xi32>
    %c0_i32_172 = arith.constant 0 : i32
    %445 = vector.broadcast %c0_i32_172 : i32 to vector<64x64xi32>
    %446 = arith.cmpi sge, %444, %445 : vector<64x64xi32>
    %447 = arith.andi %442, %446 : vector<64x64xi1>
    %c-1_i32_173 = arith.constant -1 : i32
    %448 = vector.broadcast %c-1_i32_173 : i32 to vector<64x64xi32>
    %449 = arith.addi %439, %448 : vector<64x64xi32>
    %c8_i32 = arith.constant 8 : i32
    %450 = vector.broadcast %c8_i32 : i32 to vector<64x64xi32>
    %451 = arith.cmpi slt, %449, %450 : vector<64x64xi32>
    %452 = arith.andi %447, %451 : vector<64x64xi1>
    %cst_174 = arith.constant 1.000000e+00 : f32
    %cst_175 = arith.constant 0.000000e+00 : f32
    %453 = vector.broadcast %cst_174 : f32 to vector<64x64xf32>
    %454 = vector.broadcast %cst_175 : f32 to vector<64x64xf32>
    %455 = arith.select %452, %453, %454 : vector<64x64xi1>, vector<64x64xf32>
    %cst_176 = arith.constant dense<0.000000e+00> : vector<4x64xf32>
    %456 = tpu.matmul %433, %455, %cst_176 {dimension_numbers = #tpu.dot_dimension_numbers<[1], [0], [0], [1], [0, 0, 1, 1], [], []>} : vector<4x64xf32>, vector<64x64xf32>, vector<4x64xf32> -> vector<4x64xf32>
    %c0_177 = arith.constant 0 : index
    %c0_178 = arith.constant 0 : index
    %c0_179 = arith.constant 0 : index
    %457 = vector.load %arg4[%c0_177, %c0_178, %c0_179] : memref<9x16x4xf32, #tpu.memory_space<vmem>>, vector<1x16x4xf32>
    %458 = vector.shape_cast %457 : vector<1x16x4xf32> to vector<16x4xf32>
    %cst_180 = arith.constant dense<0.000000e+00> : vector<16x64xf32>
    %459 = tpu.matmul %458, %456, %cst_180 {dimension_numbers = #tpu.dot_dimension_numbers<[1], [0], [0], [1], [0, 0, 1, 1], [], []>} : vector<16x4xf32>, vector<4x64xf32>, vector<16x64xf32> -> vector<16x64xf32>
    %460 = arith.addf %435, %459 : vector<16x64xf32>
    %461 = tpu.iota {dimensions = array<i32: 0>} : vector<64x64xi32>
    %462 = tpu.iota {dimensions = array<i32: 1>} : vector<64x64xi32>
    %c7_i32_181 = arith.constant 7 : i32
    %463 = vector.broadcast %c7_i32_181 : i32 to vector<64x64xi32>
    %464 = arith.andi %462, %463 : vector<64x64xi32>
    %c-8_i32 = arith.constant -8 : i32
    %465 = vector.broadcast %c-8_i32 : i32 to vector<64x64xi32>
    %466 = arith.addi %462, %465 : vector<64x64xi32>
    %467 = arith.cmpi eq, %461, %466 : vector<64x64xi32>
    %c0_i32_182 = arith.constant 0 : i32
    %468 = vector.broadcast %c0_i32_182 : i32 to vector<64x64xi32>
    %469 = arith.addi %464, %468 : vector<64x64xi32>
    %c0_i32_183 = arith.constant 0 : i32
    %470 = vector.broadcast %c0_i32_183 : i32 to vector<64x64xi32>
    %471 = arith.cmpi sge, %469, %470 : vector<64x64xi32>
    %472 = arith.andi %467, %471 : vector<64x64xi1>
    %c0_i32_184 = arith.constant 0 : i32
    %473 = vector.broadcast %c0_i32_184 : i32 to vector<64x64xi32>
    %474 = arith.addi %464, %473 : vector<64x64xi32>
    %c8_i32_185 = arith.constant 8 : i32
    %475 = vector.broadcast %c8_i32_185 : i32 to vector<64x64xi32>
    %476 = arith.cmpi slt, %474, %475 : vector<64x64xi32>
    %477 = arith.andi %472, %476 : vector<64x64xi1>
    %cst_186 = arith.constant 1.000000e+00 : f32
    %cst_187 = arith.constant 0.000000e+00 : f32
    %478 = vector.broadcast %cst_186 : f32 to vector<64x64xf32>
    %479 = vector.broadcast %cst_187 : f32 to vector<64x64xf32>
    %480 = arith.select %477, %478, %479 : vector<64x64xi1>, vector<64x64xf32>
    %cst_188 = arith.constant dense<0.000000e+00> : vector<4x64xf32>
    %481 = tpu.matmul %433, %480, %cst_188 {dimension_numbers = #tpu.dot_dimension_numbers<[1], [0], [0], [1], [0, 0, 1, 1], [], []>} : vector<4x64xf32>, vector<64x64xf32>, vector<4x64xf32> -> vector<4x64xf32>
    %c1_189 = arith.constant 1 : index
    %c0_190 = arith.constant 0 : index
    %c0_191 = arith.constant 0 : index
    %482 = vector.load %arg4[%c1_189, %c0_190, %c0_191] : memref<9x16x4xf32, #tpu.memory_space<vmem>>, vector<1x16x4xf32>
    %483 = vector.shape_cast %482 : vector<1x16x4xf32> to vector<16x4xf32>
    %cst_192 = arith.constant dense<0.000000e+00> : vector<16x64xf32>
    %484 = tpu.matmul %483, %481, %cst_192 {dimension_numbers = #tpu.dot_dimension_numbers<[1], [0], [0], [1], [0, 0, 1, 1], [], []>} : vector<16x4xf32>, vector<4x64xf32>, vector<16x64xf32> -> vector<16x64xf32>
    %485 = arith.addf %460, %484 : vector<16x64xf32>
    %486 = tpu.iota {dimensions = array<i32: 0>} : vector<64x64xi32>
    %487 = tpu.iota {dimensions = array<i32: 1>} : vector<64x64xi32>
    %c7_i32_193 = arith.constant 7 : i32
    %488 = vector.broadcast %c7_i32_193 : i32 to vector<64x64xi32>
    %489 = arith.andi %487, %488 : vector<64x64xi32>
    %c-7_i32 = arith.constant -7 : i32
    %490 = vector.broadcast %c-7_i32 : i32 to vector<64x64xi32>
    %491 = arith.addi %487, %490 : vector<64x64xi32>
    %492 = arith.cmpi eq, %486, %491 : vector<64x64xi32>
    %c1_i32_194 = arith.constant 1 : i32
    %493 = vector.broadcast %c1_i32_194 : i32 to vector<64x64xi32>
    %494 = arith.addi %489, %493 : vector<64x64xi32>
    %c0_i32_195 = arith.constant 0 : i32
    %495 = vector.broadcast %c0_i32_195 : i32 to vector<64x64xi32>
    %496 = arith.cmpi sge, %494, %495 : vector<64x64xi32>
    %497 = arith.andi %492, %496 : vector<64x64xi1>
    %c1_i32_196 = arith.constant 1 : i32
    %498 = vector.broadcast %c1_i32_196 : i32 to vector<64x64xi32>
    %499 = arith.addi %489, %498 : vector<64x64xi32>
    %c8_i32_197 = arith.constant 8 : i32
    %500 = vector.broadcast %c8_i32_197 : i32 to vector<64x64xi32>
    %501 = arith.cmpi slt, %499, %500 : vector<64x64xi32>
    %502 = arith.andi %497, %501 : vector<64x64xi1>
    %cst_198 = arith.constant 1.000000e+00 : f32
    %cst_199 = arith.constant 0.000000e+00 : f32
    %503 = vector.broadcast %cst_198 : f32 to vector<64x64xf32>
    %504 = vector.broadcast %cst_199 : f32 to vector<64x64xf32>
    %505 = arith.select %502, %503, %504 : vector<64x64xi1>, vector<64x64xf32>
    %cst_200 = arith.constant dense<0.000000e+00> : vector<4x64xf32>
    %506 = tpu.matmul %433, %505, %cst_200 {dimension_numbers = #tpu.dot_dimension_numbers<[1], [0], [0], [1], [0, 0, 1, 1], [], []>} : vector<4x64xf32>, vector<64x64xf32>, vector<4x64xf32> -> vector<4x64xf32>
    %c2_201 = arith.constant 2 : index
    %c0_202 = arith.constant 0 : index
    %c0_203 = arith.constant 0 : index
    %507 = vector.load %arg4[%c2_201, %c0_202, %c0_203] : memref<9x16x4xf32, #tpu.memory_space<vmem>>, vector<1x16x4xf32>
    %508 = vector.shape_cast %507 : vector<1x16x4xf32> to vector<16x4xf32>
    %cst_204 = arith.constant dense<0.000000e+00> : vector<16x64xf32>
    %509 = tpu.matmul %508, %506, %cst_204 {dimension_numbers = #tpu.dot_dimension_numbers<[1], [0], [0], [1], [0, 0, 1, 1], [], []>} : vector<16x4xf32>, vector<4x64xf32>, vector<16x64xf32> -> vector<16x64xf32>
    %510 = arith.addf %485, %509 : vector<16x64xf32>
    %511 = tpu.iota {dimensions = array<i32: 0>} : vector<64x64xi32>
    %512 = tpu.iota {dimensions = array<i32: 1>} : vector<64x64xi32>
    %c7_i32_205 = arith.constant 7 : i32
    %513 = vector.broadcast %c7_i32_205 : i32 to vector<64x64xi32>
    %514 = arith.andi %512, %513 : vector<64x64xi32>
    %c-1_i32_206 = arith.constant -1 : i32
    %515 = vector.broadcast %c-1_i32_206 : i32 to vector<64x64xi32>
    %516 = arith.addi %512, %515 : vector<64x64xi32>
    %517 = arith.cmpi eq, %511, %516 : vector<64x64xi32>
    %c-1_i32_207 = arith.constant -1 : i32
    %518 = vector.broadcast %c-1_i32_207 : i32 to vector<64x64xi32>
    %519 = arith.addi %514, %518 : vector<64x64xi32>
    %c0_i32_208 = arith.constant 0 : i32
    %520 = vector.broadcast %c0_i32_208 : i32 to vector<64x64xi32>
    %521 = arith.cmpi sge, %519, %520 : vector<64x64xi32>
    %522 = arith.andi %517, %521 : vector<64x64xi1>
    %c-1_i32_209 = arith.constant -1 : i32
    %523 = vector.broadcast %c-1_i32_209 : i32 to vector<64x64xi32>
    %524 = arith.addi %514, %523 : vector<64x64xi32>
    %c8_i32_210 = arith.constant 8 : i32
    %525 = vector.broadcast %c8_i32_210 : i32 to vector<64x64xi32>
    %526 = arith.cmpi slt, %524, %525 : vector<64x64xi32>
    %527 = arith.andi %522, %526 : vector<64x64xi1>
    %cst_211 = arith.constant 1.000000e+00 : f32
    %cst_212 = arith.constant 0.000000e+00 : f32
    %528 = vector.broadcast %cst_211 : f32 to vector<64x64xf32>
    %529 = vector.broadcast %cst_212 : f32 to vector<64x64xf32>
    %530 = arith.select %527, %528, %529 : vector<64x64xi1>, vector<64x64xf32>
    %cst_213 = arith.constant dense<0.000000e+00> : vector<4x64xf32>
    %531 = tpu.matmul %433, %530, %cst_213 {dimension_numbers = #tpu.dot_dimension_numbers<[1], [0], [0], [1], [0, 0, 1, 1], [], []>} : vector<4x64xf32>, vector<64x64xf32>, vector<4x64xf32> -> vector<4x64xf32>
    %c3_214 = arith.constant 3 : index
    %c0_215 = arith.constant 0 : index
    %c0_216 = arith.constant 0 : index
    %532 = vector.load %arg4[%c3_214, %c0_215, %c0_216] : memref<9x16x4xf32, #tpu.memory_space<vmem>>, vector<1x16x4xf32>
    %533 = vector.shape_cast %532 : vector<1x16x4xf32> to vector<16x4xf32>
    %cst_217 = arith.constant dense<0.000000e+00> : vector<16x64xf32>
    %534 = tpu.matmul %533, %531, %cst_217 {dimension_numbers = #tpu.dot_dimension_numbers<[1], [0], [0], [1], [0, 0, 1, 1], [], []>} : vector<16x4xf32>, vector<4x64xf32>, vector<16x64xf32> -> vector<16x64xf32>
    %535 = arith.addf %510, %534 : vector<16x64xf32>
    %c4_218 = arith.constant 4 : index
    %c0_219 = arith.constant 0 : index
    %c0_220 = arith.constant 0 : index
    %536 = vector.load %arg4[%c4_218, %c0_219, %c0_220] : memref<9x16x4xf32, #tpu.memory_space<vmem>>, vector<1x16x4xf32>
    %537 = vector.shape_cast %536 : vector<1x16x4xf32> to vector<16x4xf32>
    %cst_221 = arith.constant dense<0.000000e+00> : vector<16x64xf32>
    %538 = tpu.matmul %537, %433, %cst_221 {dimension_numbers = #tpu.dot_dimension_numbers<[1], [0], [0], [1], [0, 0, 1, 1], [], []>} : vector<16x4xf32>, vector<4x64xf32>, vector<16x64xf32> -> vector<16x64xf32>
    %539 = arith.addf %535, %538 : vector<16x64xf32>
    %540 = tpu.iota {dimensions = array<i32: 0>} : vector<64x64xi32>
    %541 = tpu.iota {dimensions = array<i32: 1>} : vector<64x64xi32>
    %c7_i32_222 = arith.constant 7 : i32
    %542 = vector.broadcast %c7_i32_222 : i32 to vector<64x64xi32>
    %543 = arith.andi %541, %542 : vector<64x64xi32>
    %c1_i32_223 = arith.constant 1 : i32
    %544 = vector.broadcast %c1_i32_223 : i32 to vector<64x64xi32>
    %545 = arith.addi %541, %544 : vector<64x64xi32>
    %546 = arith.cmpi eq, %540, %545 : vector<64x64xi32>
    %c1_i32_224 = arith.constant 1 : i32
    %547 = vector.broadcast %c1_i32_224 : i32 to vector<64x64xi32>
    %548 = arith.addi %543, %547 : vector<64x64xi32>
    %c0_i32_225 = arith.constant 0 : i32
    %549 = vector.broadcast %c0_i32_225 : i32 to vector<64x64xi32>
    %550 = arith.cmpi sge, %548, %549 : vector<64x64xi32>
    %551 = arith.andi %546, %550 : vector<64x64xi1>
    %c1_i32_226 = arith.constant 1 : i32
    %552 = vector.broadcast %c1_i32_226 : i32 to vector<64x64xi32>
    %553 = arith.addi %543, %552 : vector<64x64xi32>
    %c8_i32_227 = arith.constant 8 : i32
    %554 = vector.broadcast %c8_i32_227 : i32 to vector<64x64xi32>
    %555 = arith.cmpi slt, %553, %554 : vector<64x64xi32>
    %556 = arith.andi %551, %555 : vector<64x64xi1>
    %cst_228 = arith.constant 1.000000e+00 : f32
    %cst_229 = arith.constant 0.000000e+00 : f32
    %557 = vector.broadcast %cst_228 : f32 to vector<64x64xf32>
    %558 = vector.broadcast %cst_229 : f32 to vector<64x64xf32>
    %559 = arith.select %556, %557, %558 : vector<64x64xi1>, vector<64x64xf32>
    %cst_230 = arith.constant dense<0.000000e+00> : vector<4x64xf32>
    %560 = tpu.matmul %433, %559, %cst_230 {dimension_numbers = #tpu.dot_dimension_numbers<[1], [0], [0], [1], [0, 0, 1, 1], [], []>} : vector<4x64xf32>, vector<64x64xf32>, vector<4x64xf32> -> vector<4x64xf32>
    %c5_231 = arith.constant 5 : index
    %c0_232 = arith.constant 0 : index
    %c0_233 = arith.constant 0 : index
    %561 = vector.load %arg4[%c5_231, %c0_232, %c0_233] : memref<9x16x4xf32, #tpu.memory_space<vmem>>, vector<1x16x4xf32>
    %562 = vector.shape_cast %561 : vector<1x16x4xf32> to vector<16x4xf32>
    %cst_234 = arith.constant dense<0.000000e+00> : vector<16x64xf32>
    %563 = tpu.matmul %562, %560, %cst_234 {dimension_numbers = #tpu.dot_dimension_numbers<[1], [0], [0], [1], [0, 0, 1, 1], [], []>} : vector<16x4xf32>, vector<4x64xf32>, vector<16x64xf32> -> vector<16x64xf32>
    %564 = arith.addf %539, %563 : vector<16x64xf32>
    %565 = tpu.iota {dimensions = array<i32: 0>} : vector<64x64xi32>
    %566 = tpu.iota {dimensions = array<i32: 1>} : vector<64x64xi32>
    %c7_i32_235 = arith.constant 7 : i32
    %567 = vector.broadcast %c7_i32_235 : i32 to vector<64x64xi32>
    %568 = arith.andi %566, %567 : vector<64x64xi32>
    %c7_i32_236 = arith.constant 7 : i32
    %569 = vector.broadcast %c7_i32_236 : i32 to vector<64x64xi32>
    %570 = arith.addi %566, %569 : vector<64x64xi32>
    %571 = arith.cmpi eq, %565, %570 : vector<64x64xi32>
    %c-1_i32_237 = arith.constant -1 : i32
    %572 = vector.broadcast %c-1_i32_237 : i32 to vector<64x64xi32>
    %573 = arith.addi %568, %572 : vector<64x64xi32>
    %c0_i32_238 = arith.constant 0 : i32
    %574 = vector.broadcast %c0_i32_238 : i32 to vector<64x64xi32>
    %575 = arith.cmpi sge, %573, %574 : vector<64x64xi32>
    %576 = arith.andi %571, %575 : vector<64x64xi1>
    %c-1_i32_239 = arith.constant -1 : i32
    %577 = vector.broadcast %c-1_i32_239 : i32 to vector<64x64xi32>
    %578 = arith.addi %568, %577 : vector<64x64xi32>
    %c8_i32_240 = arith.constant 8 : i32
    %579 = vector.broadcast %c8_i32_240 : i32 to vector<64x64xi32>
    %580 = arith.cmpi slt, %578, %579 : vector<64x64xi32>
    %581 = arith.andi %576, %580 : vector<64x64xi1>
    %cst_241 = arith.constant 1.000000e+00 : f32
    %cst_242 = arith.constant 0.000000e+00 : f32
    %582 = vector.broadcast %cst_241 : f32 to vector<64x64xf32>
    %583 = vector.broadcast %cst_242 : f32 to vector<64x64xf32>
    %584 = arith.select %581, %582, %583 : vector<64x64xi1>, vector<64x64xf32>
    %cst_243 = arith.constant dense<0.000000e+00> : vector<4x64xf32>
    %585 = tpu.matmul %433, %584, %cst_243 {dimension_numbers = #tpu.dot_dimension_numbers<[1], [0], [0], [1], [0, 0, 1, 1], [], []>} : vector<4x64xf32>, vector<64x64xf32>, vector<4x64xf32> -> vector<4x64xf32>
    %c6_244 = arith.constant 6 : index
    %c0_245 = arith.constant 0 : index
    %c0_246 = arith.constant 0 : index
    %586 = vector.load %arg4[%c6_244, %c0_245, %c0_246] : memref<9x16x4xf32, #tpu.memory_space<vmem>>, vector<1x16x4xf32>
    %587 = vector.shape_cast %586 : vector<1x16x4xf32> to vector<16x4xf32>
    %cst_247 = arith.constant dense<0.000000e+00> : vector<16x64xf32>
    %588 = tpu.matmul %587, %585, %cst_247 {dimension_numbers = #tpu.dot_dimension_numbers<[1], [0], [0], [1], [0, 0, 1, 1], [], []>} : vector<16x4xf32>, vector<4x64xf32>, vector<16x64xf32> -> vector<16x64xf32>
    %589 = arith.addf %564, %588 : vector<16x64xf32>
    %590 = tpu.iota {dimensions = array<i32: 0>} : vector<64x64xi32>
    %591 = tpu.iota {dimensions = array<i32: 1>} : vector<64x64xi32>
    %c7_i32_248 = arith.constant 7 : i32
    %592 = vector.broadcast %c7_i32_248 : i32 to vector<64x64xi32>
    %593 = arith.andi %591, %592 : vector<64x64xi32>
    %c8_i32_249 = arith.constant 8 : i32
    %594 = vector.broadcast %c8_i32_249 : i32 to vector<64x64xi32>
    %595 = arith.addi %591, %594 : vector<64x64xi32>
    %596 = arith.cmpi eq, %590, %595 : vector<64x64xi32>
    %c0_i32_250 = arith.constant 0 : i32
    %597 = vector.broadcast %c0_i32_250 : i32 to vector<64x64xi32>
    %598 = arith.addi %593, %597 : vector<64x64xi32>
    %c0_i32_251 = arith.constant 0 : i32
    %599 = vector.broadcast %c0_i32_251 : i32 to vector<64x64xi32>
    %600 = arith.cmpi sge, %598, %599 : vector<64x64xi32>
    %601 = arith.andi %596, %600 : vector<64x64xi1>
    %c0_i32_252 = arith.constant 0 : i32
    %602 = vector.broadcast %c0_i32_252 : i32 to vector<64x64xi32>
    %603 = arith.addi %593, %602 : vector<64x64xi32>
    %c8_i32_253 = arith.constant 8 : i32
    %604 = vector.broadcast %c8_i32_253 : i32 to vector<64x64xi32>
    %605 = arith.cmpi slt, %603, %604 : vector<64x64xi32>
    %606 = arith.andi %601, %605 : vector<64x64xi1>
    %cst_254 = arith.constant 1.000000e+00 : f32
    %cst_255 = arith.constant 0.000000e+00 : f32
    %607 = vector.broadcast %cst_254 : f32 to vector<64x64xf32>
    %608 = vector.broadcast %cst_255 : f32 to vector<64x64xf32>
    %609 = arith.select %606, %607, %608 : vector<64x64xi1>, vector<64x64xf32>
    %cst_256 = arith.constant dense<0.000000e+00> : vector<4x64xf32>
    %610 = tpu.matmul %433, %609, %cst_256 {dimension_numbers = #tpu.dot_dimension_numbers<[1], [0], [0], [1], [0, 0, 1, 1], [], []>} : vector<4x64xf32>, vector<64x64xf32>, vector<4x64xf32> -> vector<4x64xf32>
    %c7_257 = arith.constant 7 : index
    %c0_258 = arith.constant 0 : index
    %c0_259 = arith.constant 0 : index
    %611 = vector.load %arg4[%c7_257, %c0_258, %c0_259] : memref<9x16x4xf32, #tpu.memory_space<vmem>>, vector<1x16x4xf32>
    %612 = vector.shape_cast %611 : vector<1x16x4xf32> to vector<16x4xf32>
    %cst_260 = arith.constant dense<0.000000e+00> : vector<16x64xf32>
    %613 = tpu.matmul %612, %610, %cst_260 {dimension_numbers = #tpu.dot_dimension_numbers<[1], [0], [0], [1], [0, 0, 1, 1], [], []>} : vector<16x4xf32>, vector<4x64xf32>, vector<16x64xf32> -> vector<16x64xf32>
    %614 = arith.addf %589, %613 : vector<16x64xf32>
    %615 = tpu.iota {dimensions = array<i32: 0>} : vector<64x64xi32>
    %616 = tpu.iota {dimensions = array<i32: 1>} : vector<64x64xi32>
    %c7_i32_261 = arith.constant 7 : i32
    %617 = vector.broadcast %c7_i32_261 : i32 to vector<64x64xi32>
    %618 = arith.andi %616, %617 : vector<64x64xi32>
    %c9_i32 = arith.constant 9 : i32
    %619 = vector.broadcast %c9_i32 : i32 to vector<64x64xi32>
    %620 = arith.addi %616, %619 : vector<64x64xi32>
    %621 = arith.cmpi eq, %615, %620 : vector<64x64xi32>
    %c1_i32_262 = arith.constant 1 : i32
    %622 = vector.broadcast %c1_i32_262 : i32 to vector<64x64xi32>
    %623 = arith.addi %618, %622 : vector<64x64xi32>
    %c0_i32_263 = arith.constant 0 : i32
    %624 = vector.broadcast %c0_i32_263 : i32 to vector<64x64xi32>
    %625 = arith.cmpi sge, %623, %624 : vector<64x64xi32>
    %626 = arith.andi %621, %625 : vector<64x64xi1>
    %c1_i32_264 = arith.constant 1 : i32
    %627 = vector.broadcast %c1_i32_264 : i32 to vector<64x64xi32>
    %628 = arith.addi %618, %627 : vector<64x64xi32>
    %c8_i32_265 = arith.constant 8 : i32
    %629 = vector.broadcast %c8_i32_265 : i32 to vector<64x64xi32>
    %630 = arith.cmpi slt, %628, %629 : vector<64x64xi32>
    %631 = arith.andi %626, %630 : vector<64x64xi1>
    %cst_266 = arith.constant 1.000000e+00 : f32
    %cst_267 = arith.constant 0.000000e+00 : f32
    %632 = vector.broadcast %cst_266 : f32 to vector<64x64xf32>
    %633 = vector.broadcast %cst_267 : f32 to vector<64x64xf32>
    %634 = arith.select %631, %632, %633 : vector<64x64xi1>, vector<64x64xf32>
    %cst_268 = arith.constant dense<0.000000e+00> : vector<4x64xf32>
    %635 = tpu.matmul %433, %634, %cst_268 {dimension_numbers = #tpu.dot_dimension_numbers<[1], [0], [0], [1], [0, 0, 1, 1], [], []>} : vector<4x64xf32>, vector<64x64xf32>, vector<4x64xf32> -> vector<4x64xf32>
    %c8_269 = arith.constant 8 : index
    %c0_270 = arith.constant 0 : index
    %c0_271 = arith.constant 0 : index
    %636 = vector.load %arg4[%c8_269, %c0_270, %c0_271] : memref<9x16x4xf32, #tpu.memory_space<vmem>>, vector<1x16x4xf32>
    %637 = vector.shape_cast %636 : vector<1x16x4xf32> to vector<16x4xf32>
    %cst_272 = arith.constant dense<0.000000e+00> : vector<16x64xf32>
    %638 = tpu.matmul %637, %635, %cst_272 {dimension_numbers = #tpu.dot_dimension_numbers<[1], [0], [0], [1], [0, 0, 1, 1], [], []>} : vector<16x4xf32>, vector<4x64xf32>, vector<16x64xf32> -> vector<16x64xf32>
    %639 = arith.addf %614, %638 : vector<16x64xf32>
    %640 = vector.broadcast %434 : vector<16x1xf32> to vector<16x64xf32>
    %641 = arith.addf %639, %640 : vector<16x64xf32>
    %cst_273 = arith.constant 0.000000e+00 : f32
    %642 = vector.broadcast %cst_273 : f32 to vector<16x64xf32>
    %643 = arith.maximumf %641, %642 : vector<16x64xf32>
    %644 = tpu.iota {dimensions = array<i32: 0>} : vector<64x64xi32>
    %645 = tpu.iota {dimensions = array<i32: 1>} : vector<64x64xi32>
    %c7_i32_274 = arith.constant 7 : i32
    %646 = vector.broadcast %c7_i32_274 : i32 to vector<64x64xi32>
    %647 = arith.andi %645, %646 : vector<64x64xi32>
    %c1_i32_275 = arith.constant 1 : i32
    %648 = vector.broadcast %c1_i32_275 : i32 to vector<64x64xi32>
    %649 = arith.addi %645, %648 : vector<64x64xi32>
    %650 = arith.cmpi eq, %644, %649 : vector<64x64xi32>
    %c1_i32_276 = arith.constant 1 : i32
    %651 = vector.broadcast %c1_i32_276 : i32 to vector<64x64xi32>
    %652 = arith.addi %647, %651 : vector<64x64xi32>
    %c0_i32_277 = arith.constant 0 : i32
    %653 = vector.broadcast %c0_i32_277 : i32 to vector<64x64xi32>
    %654 = arith.cmpi sge, %652, %653 : vector<64x64xi32>
    %655 = arith.andi %650, %654 : vector<64x64xi1>
    %c1_i32_278 = arith.constant 1 : i32
    %656 = vector.broadcast %c1_i32_278 : i32 to vector<64x64xi32>
    %657 = arith.addi %647, %656 : vector<64x64xi32>
    %c8_i32_279 = arith.constant 8 : i32
    %658 = vector.broadcast %c8_i32_279 : i32 to vector<64x64xi32>
    %659 = arith.cmpi slt, %657, %658 : vector<64x64xi32>
    %660 = arith.andi %655, %659 : vector<64x64xi1>
    %cst_280 = arith.constant 1.000000e+00 : f32
    %cst_281 = arith.constant 0.000000e+00 : f32
    %661 = vector.broadcast %cst_280 : f32 to vector<64x64xf32>
    %662 = vector.broadcast %cst_281 : f32 to vector<64x64xf32>
    %663 = arith.select %660, %661, %662 : vector<64x64xi1>, vector<64x64xf32>
    %cst_282 = arith.constant dense<0.000000e+00> : vector<16x64xf32>
    %664 = tpu.matmul %643, %663, %cst_282 {dimension_numbers = #tpu.dot_dimension_numbers<[1], [0], [0], [1], [0, 0, 1, 1], [], []>} : vector<16x64xf32>, vector<64x64xf32>, vector<16x64xf32> -> vector<16x64xf32>
    %665 = arith.maximumf %643, %664 : vector<16x64xf32>
    %666 = tpu.iota {dimensions = array<i32: 0>} : vector<64x64xi32>
    %667 = tpu.iota {dimensions = array<i32: 1>} : vector<64x64xi32>
    %c7_i32_283 = arith.constant 7 : i32
    %668 = vector.broadcast %c7_i32_283 : i32 to vector<64x64xi32>
    %669 = arith.andi %667, %668 : vector<64x64xi32>
    %c8_i32_284 = arith.constant 8 : i32
    %670 = vector.broadcast %c8_i32_284 : i32 to vector<64x64xi32>
    %671 = arith.addi %667, %670 : vector<64x64xi32>
    %672 = arith.cmpi eq, %666, %671 : vector<64x64xi32>
    %c0_i32_285 = arith.constant 0 : i32
    %673 = vector.broadcast %c0_i32_285 : i32 to vector<64x64xi32>
    %674 = arith.addi %669, %673 : vector<64x64xi32>
    %c0_i32_286 = arith.constant 0 : i32
    %675 = vector.broadcast %c0_i32_286 : i32 to vector<64x64xi32>
    %676 = arith.cmpi sge, %674, %675 : vector<64x64xi32>
    %677 = arith.andi %672, %676 : vector<64x64xi1>
    %c0_i32_287 = arith.constant 0 : i32
    %678 = vector.broadcast %c0_i32_287 : i32 to vector<64x64xi32>
    %679 = arith.addi %669, %678 : vector<64x64xi32>
    %c8_i32_288 = arith.constant 8 : i32
    %680 = vector.broadcast %c8_i32_288 : i32 to vector<64x64xi32>
    %681 = arith.cmpi slt, %679, %680 : vector<64x64xi32>
    %682 = arith.andi %677, %681 : vector<64x64xi1>
    %cst_289 = arith.constant 1.000000e+00 : f32
    %cst_290 = arith.constant 0.000000e+00 : f32
    %683 = vector.broadcast %cst_289 : f32 to vector<64x64xf32>
    %684 = vector.broadcast %cst_290 : f32 to vector<64x64xf32>
    %685 = arith.select %682, %683, %684 : vector<64x64xi1>, vector<64x64xf32>
    %cst_291 = arith.constant dense<0.000000e+00> : vector<16x64xf32>
    %686 = tpu.matmul %643, %685, %cst_291 {dimension_numbers = #tpu.dot_dimension_numbers<[1], [0], [0], [1], [0, 0, 1, 1], [], []>} : vector<16x64xf32>, vector<64x64xf32>, vector<16x64xf32> -> vector<16x64xf32>
    %687 = arith.maximumf %665, %686 : vector<16x64xf32>
    %688 = tpu.iota {dimensions = array<i32: 0>} : vector<64x64xi32>
    %689 = tpu.iota {dimensions = array<i32: 1>} : vector<64x64xi32>
    %c7_i32_292 = arith.constant 7 : i32
    %690 = vector.broadcast %c7_i32_292 : i32 to vector<64x64xi32>
    %691 = arith.andi %689, %690 : vector<64x64xi32>
    %c9_i32_293 = arith.constant 9 : i32
    %692 = vector.broadcast %c9_i32_293 : i32 to vector<64x64xi32>
    %693 = arith.addi %689, %692 : vector<64x64xi32>
    %694 = arith.cmpi eq, %688, %693 : vector<64x64xi32>
    %c1_i32_294 = arith.constant 1 : i32
    %695 = vector.broadcast %c1_i32_294 : i32 to vector<64x64xi32>
    %696 = arith.addi %691, %695 : vector<64x64xi32>
    %c0_i32_295 = arith.constant 0 : i32
    %697 = vector.broadcast %c0_i32_295 : i32 to vector<64x64xi32>
    %698 = arith.cmpi sge, %696, %697 : vector<64x64xi32>
    %699 = arith.andi %694, %698 : vector<64x64xi1>
    %c1_i32_296 = arith.constant 1 : i32
    %700 = vector.broadcast %c1_i32_296 : i32 to vector<64x64xi32>
    %701 = arith.addi %691, %700 : vector<64x64xi32>
    %c8_i32_297 = arith.constant 8 : i32
    %702 = vector.broadcast %c8_i32_297 : i32 to vector<64x64xi32>
    %703 = arith.cmpi slt, %701, %702 : vector<64x64xi32>
    %704 = arith.andi %699, %703 : vector<64x64xi1>
    %cst_298 = arith.constant 1.000000e+00 : f32
    %cst_299 = arith.constant 0.000000e+00 : f32
    %705 = vector.broadcast %cst_298 : f32 to vector<64x64xf32>
    %706 = vector.broadcast %cst_299 : f32 to vector<64x64xf32>
    %707 = arith.select %704, %705, %706 : vector<64x64xi1>, vector<64x64xf32>
    %cst_300 = arith.constant dense<0.000000e+00> : vector<16x64xf32>
    %708 = tpu.matmul %643, %707, %cst_300 {dimension_numbers = #tpu.dot_dimension_numbers<[1], [0], [0], [1], [0, 0, 1, 1], [], []>} : vector<16x64xf32>, vector<64x64xf32>, vector<16x64xf32> -> vector<16x64xf32>
    %709 = arith.maximumf %687, %708 : vector<16x64xf32>
    %710 = tpu.iota {dimensions = array<i32: 0>} : vector<64x16xi32>
    %711 = tpu.iota {dimensions = array<i32: 1>} : vector<64x16xi32>
    %c2_i32_301 = arith.constant 2 : i32
    %712 = vector.broadcast %c2_i32_301 : i32 to vector<64x16xi32>
    %713 = arith.shrsi %711, %712 : vector<64x16xi32>
    %c3_i32_302 = arith.constant 3 : i32
    %714 = vector.broadcast %c3_i32_302 : i32 to vector<64x16xi32>
    %715 = arith.andi %711, %714 : vector<64x16xi32>
    %c16_i32_303 = arith.constant 16 : i32
    %716 = vector.broadcast %c16_i32_303 : i32 to vector<64x16xi32>
    %717 = arith.muli %713, %716 : vector<64x16xi32>
    %c2_i32_304 = arith.constant 2 : i32
    %718 = vector.broadcast %c2_i32_304 : i32 to vector<64x16xi32>
    %719 = arith.muli %715, %718 : vector<64x16xi32>
    %720 = arith.addi %717, %719 : vector<64x16xi32>
    %721 = arith.cmpi eq, %710, %720 : vector<64x16xi32>
    %cst_305 = arith.constant 1.000000e+00 : f32
    %cst_306 = arith.constant 0.000000e+00 : f32
    %722 = vector.broadcast %cst_305 : f32 to vector<64x16xf32>
    %723 = vector.broadcast %cst_306 : f32 to vector<64x16xf32>
    %724 = arith.select %721, %722, %723 : vector<64x16xi1>, vector<64x16xf32>
    %cst_307 = arith.constant dense<0.000000e+00> : vector<16x16xf32>
    %725 = tpu.matmul %709, %724, %cst_307 {dimension_numbers = #tpu.dot_dimension_numbers<[1], [0], [0], [1], [0, 0, 1, 1], [], []>} : vector<16x64xf32>, vector<64x16xf32>, vector<16x16xf32> -> vector<16x16xf32>
    %c0_308 = arith.constant 0 : index
    %c0_309 = arith.constant 0 : index
    %726 = vector.load %arg7[%c0_308, %c0_309] : memref<32x1xf32, #tpu.memory_space<vmem>>, vector<32x1xf32>
    %cst_310 = arith.constant 0.000000e+00 : f32
    %727 = vector.broadcast %cst_310 : f32 to vector<32x16xf32>
    %728 = tpu.iota {dimensions = array<i32: 0>} : vector<16x16xi32>
    %729 = tpu.iota {dimensions = array<i32: 1>} : vector<16x16xi32>
    %c3_i32_311 = arith.constant 3 : i32
    %730 = vector.broadcast %c3_i32_311 : i32 to vector<16x16xi32>
    %731 = arith.andi %729, %730 : vector<16x16xi32>
    %c-5_i32 = arith.constant -5 : i32
    %732 = vector.broadcast %c-5_i32 : i32 to vector<16x16xi32>
    %733 = arith.addi %729, %732 : vector<16x16xi32>
    %734 = arith.cmpi eq, %728, %733 : vector<16x16xi32>
    %c-1_i32_312 = arith.constant -1 : i32
    %735 = vector.broadcast %c-1_i32_312 : i32 to vector<16x16xi32>
    %736 = arith.addi %731, %735 : vector<16x16xi32>
    %c0_i32_313 = arith.constant 0 : i32
    %737 = vector.broadcast %c0_i32_313 : i32 to vector<16x16xi32>
    %738 = arith.cmpi sge, %736, %737 : vector<16x16xi32>
    %739 = arith.andi %734, %738 : vector<16x16xi1>
    %c-1_i32_314 = arith.constant -1 : i32
    %740 = vector.broadcast %c-1_i32_314 : i32 to vector<16x16xi32>
    %741 = arith.addi %731, %740 : vector<16x16xi32>
    %c4_i32 = arith.constant 4 : i32
    %742 = vector.broadcast %c4_i32 : i32 to vector<16x16xi32>
    %743 = arith.cmpi slt, %741, %742 : vector<16x16xi32>
    %744 = arith.andi %739, %743 : vector<16x16xi1>
    %cst_315 = arith.constant 1.000000e+00 : f32
    %cst_316 = arith.constant 0.000000e+00 : f32
    %745 = vector.broadcast %cst_315 : f32 to vector<16x16xf32>
    %746 = vector.broadcast %cst_316 : f32 to vector<16x16xf32>
    %747 = arith.select %744, %745, %746 : vector<16x16xi1>, vector<16x16xf32>
    %cst_317 = arith.constant dense<0.000000e+00> : vector<16x16xf32>
    %748 = tpu.matmul %725, %747, %cst_317 {dimension_numbers = #tpu.dot_dimension_numbers<[1], [0], [0], [1], [0, 0, 1, 1], [], []>} : vector<16x16xf32>, vector<16x16xf32>, vector<16x16xf32> -> vector<16x16xf32>
    %c0_318 = arith.constant 0 : index
    %c0_319 = arith.constant 0 : index
    %c0_320 = arith.constant 0 : index
    %749 = vector.load %arg6[%c0_318, %c0_319, %c0_320] : memref<9x32x16xf32, #tpu.memory_space<vmem>>, vector<1x32x16xf32>
    %750 = vector.shape_cast %749 : vector<1x32x16xf32> to vector<32x16xf32>
    %cst_321 = arith.constant dense<0.000000e+00> : vector<32x16xf32>
    %751 = tpu.matmul %750, %748, %cst_321 {dimension_numbers = #tpu.dot_dimension_numbers<[1], [0], [0], [1], [0, 0, 1, 1], [], []>} : vector<32x16xf32>, vector<16x16xf32>, vector<32x16xf32> -> vector<32x16xf32>
    %752 = arith.addf %727, %751 : vector<32x16xf32>
    %753 = tpu.iota {dimensions = array<i32: 0>} : vector<16x16xi32>
    %754 = tpu.iota {dimensions = array<i32: 1>} : vector<16x16xi32>
    %c3_i32_322 = arith.constant 3 : i32
    %755 = vector.broadcast %c3_i32_322 : i32 to vector<16x16xi32>
    %756 = arith.andi %754, %755 : vector<16x16xi32>
    %c-4_i32 = arith.constant -4 : i32
    %757 = vector.broadcast %c-4_i32 : i32 to vector<16x16xi32>
    %758 = arith.addi %754, %757 : vector<16x16xi32>
    %759 = arith.cmpi eq, %753, %758 : vector<16x16xi32>
    %c0_i32_323 = arith.constant 0 : i32
    %760 = vector.broadcast %c0_i32_323 : i32 to vector<16x16xi32>
    %761 = arith.addi %756, %760 : vector<16x16xi32>
    %c0_i32_324 = arith.constant 0 : i32
    %762 = vector.broadcast %c0_i32_324 : i32 to vector<16x16xi32>
    %763 = arith.cmpi sge, %761, %762 : vector<16x16xi32>
    %764 = arith.andi %759, %763 : vector<16x16xi1>
    %c0_i32_325 = arith.constant 0 : i32
    %765 = vector.broadcast %c0_i32_325 : i32 to vector<16x16xi32>
    %766 = arith.addi %756, %765 : vector<16x16xi32>
    %c4_i32_326 = arith.constant 4 : i32
    %767 = vector.broadcast %c4_i32_326 : i32 to vector<16x16xi32>
    %768 = arith.cmpi slt, %766, %767 : vector<16x16xi32>
    %769 = arith.andi %764, %768 : vector<16x16xi1>
    %cst_327 = arith.constant 1.000000e+00 : f32
    %cst_328 = arith.constant 0.000000e+00 : f32
    %770 = vector.broadcast %cst_327 : f32 to vector<16x16xf32>
    %771 = vector.broadcast %cst_328 : f32 to vector<16x16xf32>
    %772 = arith.select %769, %770, %771 : vector<16x16xi1>, vector<16x16xf32>
    %cst_329 = arith.constant dense<0.000000e+00> : vector<16x16xf32>
    %773 = tpu.matmul %725, %772, %cst_329 {dimension_numbers = #tpu.dot_dimension_numbers<[1], [0], [0], [1], [0, 0, 1, 1], [], []>} : vector<16x16xf32>, vector<16x16xf32>, vector<16x16xf32> -> vector<16x16xf32>
    %c1_330 = arith.constant 1 : index
    %c0_331 = arith.constant 0 : index
    %c0_332 = arith.constant 0 : index
    %774 = vector.load %arg6[%c1_330, %c0_331, %c0_332] : memref<9x32x16xf32, #tpu.memory_space<vmem>>, vector<1x32x16xf32>
    %775 = vector.shape_cast %774 : vector<1x32x16xf32> to vector<32x16xf32>
    %cst_333 = arith.constant dense<0.000000e+00> : vector<32x16xf32>
    %776 = tpu.matmul %775, %773, %cst_333 {dimension_numbers = #tpu.dot_dimension_numbers<[1], [0], [0], [1], [0, 0, 1, 1], [], []>} : vector<32x16xf32>, vector<16x16xf32>, vector<32x16xf32> -> vector<32x16xf32>
    %777 = arith.addf %752, %776 : vector<32x16xf32>
    %778 = tpu.iota {dimensions = array<i32: 0>} : vector<16x16xi32>
    %779 = tpu.iota {dimensions = array<i32: 1>} : vector<16x16xi32>
    %c3_i32_334 = arith.constant 3 : i32
    %780 = vector.broadcast %c3_i32_334 : i32 to vector<16x16xi32>
    %781 = arith.andi %779, %780 : vector<16x16xi32>
    %c-3_i32 = arith.constant -3 : i32
    %782 = vector.broadcast %c-3_i32 : i32 to vector<16x16xi32>
    %783 = arith.addi %779, %782 : vector<16x16xi32>
    %784 = arith.cmpi eq, %778, %783 : vector<16x16xi32>
    %c1_i32_335 = arith.constant 1 : i32
    %785 = vector.broadcast %c1_i32_335 : i32 to vector<16x16xi32>
    %786 = arith.addi %781, %785 : vector<16x16xi32>
    %c0_i32_336 = arith.constant 0 : i32
    %787 = vector.broadcast %c0_i32_336 : i32 to vector<16x16xi32>
    %788 = arith.cmpi sge, %786, %787 : vector<16x16xi32>
    %789 = arith.andi %784, %788 : vector<16x16xi1>
    %c1_i32_337 = arith.constant 1 : i32
    %790 = vector.broadcast %c1_i32_337 : i32 to vector<16x16xi32>
    %791 = arith.addi %781, %790 : vector<16x16xi32>
    %c4_i32_338 = arith.constant 4 : i32
    %792 = vector.broadcast %c4_i32_338 : i32 to vector<16x16xi32>
    %793 = arith.cmpi slt, %791, %792 : vector<16x16xi32>
    %794 = arith.andi %789, %793 : vector<16x16xi1>
    %cst_339 = arith.constant 1.000000e+00 : f32
    %cst_340 = arith.constant 0.000000e+00 : f32
    %795 = vector.broadcast %cst_339 : f32 to vector<16x16xf32>
    %796 = vector.broadcast %cst_340 : f32 to vector<16x16xf32>
    %797 = arith.select %794, %795, %796 : vector<16x16xi1>, vector<16x16xf32>
    %cst_341 = arith.constant dense<0.000000e+00> : vector<16x16xf32>
    %798 = tpu.matmul %725, %797, %cst_341 {dimension_numbers = #tpu.dot_dimension_numbers<[1], [0], [0], [1], [0, 0, 1, 1], [], []>} : vector<16x16xf32>, vector<16x16xf32>, vector<16x16xf32> -> vector<16x16xf32>
    %c2_342 = arith.constant 2 : index
    %c0_343 = arith.constant 0 : index
    %c0_344 = arith.constant 0 : index
    %799 = vector.load %arg6[%c2_342, %c0_343, %c0_344] : memref<9x32x16xf32, #tpu.memory_space<vmem>>, vector<1x32x16xf32>
    %800 = vector.shape_cast %799 : vector<1x32x16xf32> to vector<32x16xf32>
    %cst_345 = arith.constant dense<0.000000e+00> : vector<32x16xf32>
    %801 = tpu.matmul %800, %798, %cst_345 {dimension_numbers = #tpu.dot_dimension_numbers<[1], [0], [0], [1], [0, 0, 1, 1], [], []>} : vector<32x16xf32>, vector<16x16xf32>, vector<32x16xf32> -> vector<32x16xf32>
    %802 = arith.addf %777, %801 : vector<32x16xf32>
    %803 = tpu.iota {dimensions = array<i32: 0>} : vector<16x16xi32>
    %804 = tpu.iota {dimensions = array<i32: 1>} : vector<16x16xi32>
    %c3_i32_346 = arith.constant 3 : i32
    %805 = vector.broadcast %c3_i32_346 : i32 to vector<16x16xi32>
    %806 = arith.andi %804, %805 : vector<16x16xi32>
    %c-1_i32_347 = arith.constant -1 : i32
    %807 = vector.broadcast %c-1_i32_347 : i32 to vector<16x16xi32>
    %808 = arith.addi %804, %807 : vector<16x16xi32>
    %809 = arith.cmpi eq, %803, %808 : vector<16x16xi32>
    %c-1_i32_348 = arith.constant -1 : i32
    %810 = vector.broadcast %c-1_i32_348 : i32 to vector<16x16xi32>
    %811 = arith.addi %806, %810 : vector<16x16xi32>
    %c0_i32_349 = arith.constant 0 : i32
    %812 = vector.broadcast %c0_i32_349 : i32 to vector<16x16xi32>
    %813 = arith.cmpi sge, %811, %812 : vector<16x16xi32>
    %814 = arith.andi %809, %813 : vector<16x16xi1>
    %c-1_i32_350 = arith.constant -1 : i32
    %815 = vector.broadcast %c-1_i32_350 : i32 to vector<16x16xi32>
    %816 = arith.addi %806, %815 : vector<16x16xi32>
    %c4_i32_351 = arith.constant 4 : i32
    %817 = vector.broadcast %c4_i32_351 : i32 to vector<16x16xi32>
    %818 = arith.cmpi slt, %816, %817 : vector<16x16xi32>
    %819 = arith.andi %814, %818 : vector<16x16xi1>
    %cst_352 = arith.constant 1.000000e+00 : f32
    %cst_353 = arith.constant 0.000000e+00 : f32
    %820 = vector.broadcast %cst_352 : f32 to vector<16x16xf32>
    %821 = vector.broadcast %cst_353 : f32 to vector<16x16xf32>
    %822 = arith.select %819, %820, %821 : vector<16x16xi1>, vector<16x16xf32>
    %cst_354 = arith.constant dense<0.000000e+00> : vector<16x16xf32>
    %823 = tpu.matmul %725, %822, %cst_354 {dimension_numbers = #tpu.dot_dimension_numbers<[1], [0], [0], [1], [0, 0, 1, 1], [], []>} : vector<16x16xf32>, vector<16x16xf32>, vector<16x16xf32> -> vector<16x16xf32>
    %c3_355 = arith.constant 3 : index
    %c0_356 = arith.constant 0 : index
    %c0_357 = arith.constant 0 : index
    %824 = vector.load %arg6[%c3_355, %c0_356, %c0_357] : memref<9x32x16xf32, #tpu.memory_space<vmem>>, vector<1x32x16xf32>
    %825 = vector.shape_cast %824 : vector<1x32x16xf32> to vector<32x16xf32>
    %cst_358 = arith.constant dense<0.000000e+00> : vector<32x16xf32>
    %826 = tpu.matmul %825, %823, %cst_358 {dimension_numbers = #tpu.dot_dimension_numbers<[1], [0], [0], [1], [0, 0, 1, 1], [], []>} : vector<32x16xf32>, vector<16x16xf32>, vector<32x16xf32> -> vector<32x16xf32>
    %827 = arith.addf %802, %826 : vector<32x16xf32>
    %c4_359 = arith.constant 4 : index
    %c0_360 = arith.constant 0 : index
    %c0_361 = arith.constant 0 : index
    %828 = vector.load %arg6[%c4_359, %c0_360, %c0_361] : memref<9x32x16xf32, #tpu.memory_space<vmem>>, vector<1x32x16xf32>
    %829 = vector.shape_cast %828 : vector<1x32x16xf32> to vector<32x16xf32>
    %cst_362 = arith.constant dense<0.000000e+00> : vector<32x16xf32>
    %830 = tpu.matmul %829, %725, %cst_362 {dimension_numbers = #tpu.dot_dimension_numbers<[1], [0], [0], [1], [0, 0, 1, 1], [], []>} : vector<32x16xf32>, vector<16x16xf32>, vector<32x16xf32> -> vector<32x16xf32>
    %831 = arith.addf %827, %830 : vector<32x16xf32>
    %832 = tpu.iota {dimensions = array<i32: 0>} : vector<16x16xi32>
    %833 = tpu.iota {dimensions = array<i32: 1>} : vector<16x16xi32>
    %c3_i32_363 = arith.constant 3 : i32
    %834 = vector.broadcast %c3_i32_363 : i32 to vector<16x16xi32>
    %835 = arith.andi %833, %834 : vector<16x16xi32>
    %c1_i32_364 = arith.constant 1 : i32
    %836 = vector.broadcast %c1_i32_364 : i32 to vector<16x16xi32>
    %837 = arith.addi %833, %836 : vector<16x16xi32>
    %838 = arith.cmpi eq, %832, %837 : vector<16x16xi32>
    %c1_i32_365 = arith.constant 1 : i32
    %839 = vector.broadcast %c1_i32_365 : i32 to vector<16x16xi32>
    %840 = arith.addi %835, %839 : vector<16x16xi32>
    %c0_i32_366 = arith.constant 0 : i32
    %841 = vector.broadcast %c0_i32_366 : i32 to vector<16x16xi32>
    %842 = arith.cmpi sge, %840, %841 : vector<16x16xi32>
    %843 = arith.andi %838, %842 : vector<16x16xi1>
    %c1_i32_367 = arith.constant 1 : i32
    %844 = vector.broadcast %c1_i32_367 : i32 to vector<16x16xi32>
    %845 = arith.addi %835, %844 : vector<16x16xi32>
    %c4_i32_368 = arith.constant 4 : i32
    %846 = vector.broadcast %c4_i32_368 : i32 to vector<16x16xi32>
    %847 = arith.cmpi slt, %845, %846 : vector<16x16xi32>
    %848 = arith.andi %843, %847 : vector<16x16xi1>
    %cst_369 = arith.constant 1.000000e+00 : f32
    %cst_370 = arith.constant 0.000000e+00 : f32
    %849 = vector.broadcast %cst_369 : f32 to vector<16x16xf32>
    %850 = vector.broadcast %cst_370 : f32 to vector<16x16xf32>
    %851 = arith.select %848, %849, %850 : vector<16x16xi1>, vector<16x16xf32>
    %cst_371 = arith.constant dense<0.000000e+00> : vector<16x16xf32>
    %852 = tpu.matmul %725, %851, %cst_371 {dimension_numbers = #tpu.dot_dimension_numbers<[1], [0], [0], [1], [0, 0, 1, 1], [], []>} : vector<16x16xf32>, vector<16x16xf32>, vector<16x16xf32> -> vector<16x16xf32>
    %c5_372 = arith.constant 5 : index
    %c0_373 = arith.constant 0 : index
    %c0_374 = arith.constant 0 : index
    %853 = vector.load %arg6[%c5_372, %c0_373, %c0_374] : memref<9x32x16xf32, #tpu.memory_space<vmem>>, vector<1x32x16xf32>
    %854 = vector.shape_cast %853 : vector<1x32x16xf32> to vector<32x16xf32>
    %cst_375 = arith.constant dense<0.000000e+00> : vector<32x16xf32>
    %855 = tpu.matmul %854, %852, %cst_375 {dimension_numbers = #tpu.dot_dimension_numbers<[1], [0], [0], [1], [0, 0, 1, 1], [], []>} : vector<32x16xf32>, vector<16x16xf32>, vector<32x16xf32> -> vector<32x16xf32>
    %856 = arith.addf %831, %855 : vector<32x16xf32>
    %857 = tpu.iota {dimensions = array<i32: 0>} : vector<16x16xi32>
    %858 = tpu.iota {dimensions = array<i32: 1>} : vector<16x16xi32>
    %c3_i32_376 = arith.constant 3 : i32
    %859 = vector.broadcast %c3_i32_376 : i32 to vector<16x16xi32>
    %860 = arith.andi %858, %859 : vector<16x16xi32>
    %c3_i32_377 = arith.constant 3 : i32
    %861 = vector.broadcast %c3_i32_377 : i32 to vector<16x16xi32>
    %862 = arith.addi %858, %861 : vector<16x16xi32>
    %863 = arith.cmpi eq, %857, %862 : vector<16x16xi32>
    %c-1_i32_378 = arith.constant -1 : i32
    %864 = vector.broadcast %c-1_i32_378 : i32 to vector<16x16xi32>
    %865 = arith.addi %860, %864 : vector<16x16xi32>
    %c0_i32_379 = arith.constant 0 : i32
    %866 = vector.broadcast %c0_i32_379 : i32 to vector<16x16xi32>
    %867 = arith.cmpi sge, %865, %866 : vector<16x16xi32>
    %868 = arith.andi %863, %867 : vector<16x16xi1>
    %c-1_i32_380 = arith.constant -1 : i32
    %869 = vector.broadcast %c-1_i32_380 : i32 to vector<16x16xi32>
    %870 = arith.addi %860, %869 : vector<16x16xi32>
    %c4_i32_381 = arith.constant 4 : i32
    %871 = vector.broadcast %c4_i32_381 : i32 to vector<16x16xi32>
    %872 = arith.cmpi slt, %870, %871 : vector<16x16xi32>
    %873 = arith.andi %868, %872 : vector<16x16xi1>
    %cst_382 = arith.constant 1.000000e+00 : f32
    %cst_383 = arith.constant 0.000000e+00 : f32
    %874 = vector.broadcast %cst_382 : f32 to vector<16x16xf32>
    %875 = vector.broadcast %cst_383 : f32 to vector<16x16xf32>
    %876 = arith.select %873, %874, %875 : vector<16x16xi1>, vector<16x16xf32>
    %cst_384 = arith.constant dense<0.000000e+00> : vector<16x16xf32>
    %877 = tpu.matmul %725, %876, %cst_384 {dimension_numbers = #tpu.dot_dimension_numbers<[1], [0], [0], [1], [0, 0, 1, 1], [], []>} : vector<16x16xf32>, vector<16x16xf32>, vector<16x16xf32> -> vector<16x16xf32>
    %c6_385 = arith.constant 6 : index
    %c0_386 = arith.constant 0 : index
    %c0_387 = arith.constant 0 : index
    %878 = vector.load %arg6[%c6_385, %c0_386, %c0_387] : memref<9x32x16xf32, #tpu.memory_space<vmem>>, vector<1x32x16xf32>
    %879 = vector.shape_cast %878 : vector<1x32x16xf32> to vector<32x16xf32>
    %cst_388 = arith.constant dense<0.000000e+00> : vector<32x16xf32>
    %880 = tpu.matmul %879, %877, %cst_388 {dimension_numbers = #tpu.dot_dimension_numbers<[1], [0], [0], [1], [0, 0, 1, 1], [], []>} : vector<32x16xf32>, vector<16x16xf32>, vector<32x16xf32> -> vector<32x16xf32>
    %881 = arith.addf %856, %880 : vector<32x16xf32>
    %882 = tpu.iota {dimensions = array<i32: 0>} : vector<16x16xi32>
    %883 = tpu.iota {dimensions = array<i32: 1>} : vector<16x16xi32>
    %c3_i32_389 = arith.constant 3 : i32
    %884 = vector.broadcast %c3_i32_389 : i32 to vector<16x16xi32>
    %885 = arith.andi %883, %884 : vector<16x16xi32>
    %c4_i32_390 = arith.constant 4 : i32
    %886 = vector.broadcast %c4_i32_390 : i32 to vector<16x16xi32>
    %887 = arith.addi %883, %886 : vector<16x16xi32>
    %888 = arith.cmpi eq, %882, %887 : vector<16x16xi32>
    %c0_i32_391 = arith.constant 0 : i32
    %889 = vector.broadcast %c0_i32_391 : i32 to vector<16x16xi32>
    %890 = arith.addi %885, %889 : vector<16x16xi32>
    %c0_i32_392 = arith.constant 0 : i32
    %891 = vector.broadcast %c0_i32_392 : i32 to vector<16x16xi32>
    %892 = arith.cmpi sge, %890, %891 : vector<16x16xi32>
    %893 = arith.andi %888, %892 : vector<16x16xi1>
    %c0_i32_393 = arith.constant 0 : i32
    %894 = vector.broadcast %c0_i32_393 : i32 to vector<16x16xi32>
    %895 = arith.addi %885, %894 : vector<16x16xi32>
    %c4_i32_394 = arith.constant 4 : i32
    %896 = vector.broadcast %c4_i32_394 : i32 to vector<16x16xi32>
    %897 = arith.cmpi slt, %895, %896 : vector<16x16xi32>
    %898 = arith.andi %893, %897 : vector<16x16xi1>
    %cst_395 = arith.constant 1.000000e+00 : f32
    %cst_396 = arith.constant 0.000000e+00 : f32
    %899 = vector.broadcast %cst_395 : f32 to vector<16x16xf32>
    %900 = vector.broadcast %cst_396 : f32 to vector<16x16xf32>
    %901 = arith.select %898, %899, %900 : vector<16x16xi1>, vector<16x16xf32>
    %cst_397 = arith.constant dense<0.000000e+00> : vector<16x16xf32>
    %902 = tpu.matmul %725, %901, %cst_397 {dimension_numbers = #tpu.dot_dimension_numbers<[1], [0], [0], [1], [0, 0, 1, 1], [], []>} : vector<16x16xf32>, vector<16x16xf32>, vector<16x16xf32> -> vector<16x16xf32>
    %c7_398 = arith.constant 7 : index
    %c0_399 = arith.constant 0 : index
    %c0_400 = arith.constant 0 : index
    %903 = vector.load %arg6[%c7_398, %c0_399, %c0_400] : memref<9x32x16xf32, #tpu.memory_space<vmem>>, vector<1x32x16xf32>
    %904 = vector.shape_cast %903 : vector<1x32x16xf32> to vector<32x16xf32>
    %cst_401 = arith.constant dense<0.000000e+00> : vector<32x16xf32>
    %905 = tpu.matmul %904, %902, %cst_401 {dimension_numbers = #tpu.dot_dimension_numbers<[1], [0], [0], [1], [0, 0, 1, 1], [], []>} : vector<32x16xf32>, vector<16x16xf32>, vector<32x16xf32> -> vector<32x16xf32>
    %906 = arith.addf %881, %905 : vector<32x16xf32>
    %907 = tpu.iota {dimensions = array<i32: 0>} : vector<16x16xi32>
    %908 = tpu.iota {dimensions = array<i32: 1>} : vector<16x16xi32>
    %c3_i32_402 = arith.constant 3 : i32
    %909 = vector.broadcast %c3_i32_402 : i32 to vector<16x16xi32>
    %910 = arith.andi %908, %909 : vector<16x16xi32>
    %c5_i32 = arith.constant 5 : i32
    %911 = vector.broadcast %c5_i32 : i32 to vector<16x16xi32>
    %912 = arith.addi %908, %911 : vector<16x16xi32>
    %913 = arith.cmpi eq, %907, %912 : vector<16x16xi32>
    %c1_i32_403 = arith.constant 1 : i32
    %914 = vector.broadcast %c1_i32_403 : i32 to vector<16x16xi32>
    %915 = arith.addi %910, %914 : vector<16x16xi32>
    %c0_i32_404 = arith.constant 0 : i32
    %916 = vector.broadcast %c0_i32_404 : i32 to vector<16x16xi32>
    %917 = arith.cmpi sge, %915, %916 : vector<16x16xi32>
    %918 = arith.andi %913, %917 : vector<16x16xi1>
    %c1_i32_405 = arith.constant 1 : i32
    %919 = vector.broadcast %c1_i32_405 : i32 to vector<16x16xi32>
    %920 = arith.addi %910, %919 : vector<16x16xi32>
    %c4_i32_406 = arith.constant 4 : i32
    %921 = vector.broadcast %c4_i32_406 : i32 to vector<16x16xi32>
    %922 = arith.cmpi slt, %920, %921 : vector<16x16xi32>
    %923 = arith.andi %918, %922 : vector<16x16xi1>
    %cst_407 = arith.constant 1.000000e+00 : f32
    %cst_408 = arith.constant 0.000000e+00 : f32
    %924 = vector.broadcast %cst_407 : f32 to vector<16x16xf32>
    %925 = vector.broadcast %cst_408 : f32 to vector<16x16xf32>
    %926 = arith.select %923, %924, %925 : vector<16x16xi1>, vector<16x16xf32>
    %cst_409 = arith.constant dense<0.000000e+00> : vector<16x16xf32>
    %927 = tpu.matmul %725, %926, %cst_409 {dimension_numbers = #tpu.dot_dimension_numbers<[1], [0], [0], [1], [0, 0, 1, 1], [], []>} : vector<16x16xf32>, vector<16x16xf32>, vector<16x16xf32> -> vector<16x16xf32>
    %c8_410 = arith.constant 8 : index
    %c0_411 = arith.constant 0 : index
    %c0_412 = arith.constant 0 : index
    %928 = vector.load %arg6[%c8_410, %c0_411, %c0_412] : memref<9x32x16xf32, #tpu.memory_space<vmem>>, vector<1x32x16xf32>
    %929 = vector.shape_cast %928 : vector<1x32x16xf32> to vector<32x16xf32>
    %cst_413 = arith.constant dense<0.000000e+00> : vector<32x16xf32>
    %930 = tpu.matmul %929, %927, %cst_413 {dimension_numbers = #tpu.dot_dimension_numbers<[1], [0], [0], [1], [0, 0, 1, 1], [], []>} : vector<32x16xf32>, vector<16x16xf32>, vector<32x16xf32> -> vector<32x16xf32>
    %931 = arith.addf %906, %930 : vector<32x16xf32>
    %932 = vector.broadcast %726 : vector<32x1xf32> to vector<32x16xf32>
    %933 = arith.addf %931, %932 : vector<32x16xf32>
    %cst_414 = arith.constant 0.000000e+00 : f32
    %934 = vector.broadcast %cst_414 : f32 to vector<32x16xf32>
    %935 = arith.maximumf %933, %934 : vector<32x16xf32>
    %936 = tpu.iota {dimensions = array<i32: 0>} : vector<16x16xi32>
    %937 = tpu.iota {dimensions = array<i32: 1>} : vector<16x16xi32>
    %c3_i32_415 = arith.constant 3 : i32
    %938 = vector.broadcast %c3_i32_415 : i32 to vector<16x16xi32>
    %939 = arith.andi %937, %938 : vector<16x16xi32>
    %c1_i32_416 = arith.constant 1 : i32
    %940 = vector.broadcast %c1_i32_416 : i32 to vector<16x16xi32>
    %941 = arith.addi %937, %940 : vector<16x16xi32>
    %942 = arith.cmpi eq, %936, %941 : vector<16x16xi32>
    %c1_i32_417 = arith.constant 1 : i32
    %943 = vector.broadcast %c1_i32_417 : i32 to vector<16x16xi32>
    %944 = arith.addi %939, %943 : vector<16x16xi32>
    %c0_i32_418 = arith.constant 0 : i32
    %945 = vector.broadcast %c0_i32_418 : i32 to vector<16x16xi32>
    %946 = arith.cmpi sge, %944, %945 : vector<16x16xi32>
    %947 = arith.andi %942, %946 : vector<16x16xi1>
    %c1_i32_419 = arith.constant 1 : i32
    %948 = vector.broadcast %c1_i32_419 : i32 to vector<16x16xi32>
    %949 = arith.addi %939, %948 : vector<16x16xi32>
    %c4_i32_420 = arith.constant 4 : i32
    %950 = vector.broadcast %c4_i32_420 : i32 to vector<16x16xi32>
    %951 = arith.cmpi slt, %949, %950 : vector<16x16xi32>
    %952 = arith.andi %947, %951 : vector<16x16xi1>
    %cst_421 = arith.constant 1.000000e+00 : f32
    %cst_422 = arith.constant 0.000000e+00 : f32
    %953 = vector.broadcast %cst_421 : f32 to vector<16x16xf32>
    %954 = vector.broadcast %cst_422 : f32 to vector<16x16xf32>
    %955 = arith.select %952, %953, %954 : vector<16x16xi1>, vector<16x16xf32>
    %cst_423 = arith.constant dense<0.000000e+00> : vector<32x16xf32>
    %956 = tpu.matmul %935, %955, %cst_423 {dimension_numbers = #tpu.dot_dimension_numbers<[1], [0], [0], [1], [0, 0, 1, 1], [], []>} : vector<32x16xf32>, vector<16x16xf32>, vector<32x16xf32> -> vector<32x16xf32>
    %957 = arith.maximumf %935, %956 : vector<32x16xf32>
    %958 = tpu.iota {dimensions = array<i32: 0>} : vector<16x16xi32>
    %959 = tpu.iota {dimensions = array<i32: 1>} : vector<16x16xi32>
    %c3_i32_424 = arith.constant 3 : i32
    %960 = vector.broadcast %c3_i32_424 : i32 to vector<16x16xi32>
    %961 = arith.andi %959, %960 : vector<16x16xi32>
    %c4_i32_425 = arith.constant 4 : i32
    %962 = vector.broadcast %c4_i32_425 : i32 to vector<16x16xi32>
    %963 = arith.addi %959, %962 : vector<16x16xi32>
    %964 = arith.cmpi eq, %958, %963 : vector<16x16xi32>
    %c0_i32_426 = arith.constant 0 : i32
    %965 = vector.broadcast %c0_i32_426 : i32 to vector<16x16xi32>
    %966 = arith.addi %961, %965 : vector<16x16xi32>
    %c0_i32_427 = arith.constant 0 : i32
    %967 = vector.broadcast %c0_i32_427 : i32 to vector<16x16xi32>
    %968 = arith.cmpi sge, %966, %967 : vector<16x16xi32>
    %969 = arith.andi %964, %968 : vector<16x16xi1>
    %c0_i32_428 = arith.constant 0 : i32
    %970 = vector.broadcast %c0_i32_428 : i32 to vector<16x16xi32>
    %971 = arith.addi %961, %970 : vector<16x16xi32>
    %c4_i32_429 = arith.constant 4 : i32
    %972 = vector.broadcast %c4_i32_429 : i32 to vector<16x16xi32>
    %973 = arith.cmpi slt, %971, %972 : vector<16x16xi32>
    %974 = arith.andi %969, %973 : vector<16x16xi1>
    %cst_430 = arith.constant 1.000000e+00 : f32
    %cst_431 = arith.constant 0.000000e+00 : f32
    %975 = vector.broadcast %cst_430 : f32 to vector<16x16xf32>
    %976 = vector.broadcast %cst_431 : f32 to vector<16x16xf32>
    %977 = arith.select %974, %975, %976 : vector<16x16xi1>, vector<16x16xf32>
    %cst_432 = arith.constant dense<0.000000e+00> : vector<32x16xf32>
    %978 = tpu.matmul %935, %977, %cst_432 {dimension_numbers = #tpu.dot_dimension_numbers<[1], [0], [0], [1], [0, 0, 1, 1], [], []>} : vector<32x16xf32>, vector<16x16xf32>, vector<32x16xf32> -> vector<32x16xf32>
    %979 = arith.maximumf %957, %978 : vector<32x16xf32>
    %980 = tpu.iota {dimensions = array<i32: 0>} : vector<16x16xi32>
    %981 = tpu.iota {dimensions = array<i32: 1>} : vector<16x16xi32>
    %c3_i32_433 = arith.constant 3 : i32
    %982 = vector.broadcast %c3_i32_433 : i32 to vector<16x16xi32>
    %983 = arith.andi %981, %982 : vector<16x16xi32>
    %c5_i32_434 = arith.constant 5 : i32
    %984 = vector.broadcast %c5_i32_434 : i32 to vector<16x16xi32>
    %985 = arith.addi %981, %984 : vector<16x16xi32>
    %986 = arith.cmpi eq, %980, %985 : vector<16x16xi32>
    %c1_i32_435 = arith.constant 1 : i32
    %987 = vector.broadcast %c1_i32_435 : i32 to vector<16x16xi32>
    %988 = arith.addi %983, %987 : vector<16x16xi32>
    %c0_i32_436 = arith.constant 0 : i32
    %989 = vector.broadcast %c0_i32_436 : i32 to vector<16x16xi32>
    %990 = arith.cmpi sge, %988, %989 : vector<16x16xi32>
    %991 = arith.andi %986, %990 : vector<16x16xi1>
    %c1_i32_437 = arith.constant 1 : i32
    %992 = vector.broadcast %c1_i32_437 : i32 to vector<16x16xi32>
    %993 = arith.addi %983, %992 : vector<16x16xi32>
    %c4_i32_438 = arith.constant 4 : i32
    %994 = vector.broadcast %c4_i32_438 : i32 to vector<16x16xi32>
    %995 = arith.cmpi slt, %993, %994 : vector<16x16xi32>
    %996 = arith.andi %991, %995 : vector<16x16xi1>
    %cst_439 = arith.constant 1.000000e+00 : f32
    %cst_440 = arith.constant 0.000000e+00 : f32
    %997 = vector.broadcast %cst_439 : f32 to vector<16x16xf32>
    %998 = vector.broadcast %cst_440 : f32 to vector<16x16xf32>
    %999 = arith.select %996, %997, %998 : vector<16x16xi1>, vector<16x16xf32>
    %cst_441 = arith.constant dense<0.000000e+00> : vector<32x16xf32>
    %1000 = tpu.matmul %935, %999, %cst_441 {dimension_numbers = #tpu.dot_dimension_numbers<[1], [0], [0], [1], [0, 0, 1, 1], [], []>} : vector<32x16xf32>, vector<16x16xf32>, vector<32x16xf32> -> vector<32x16xf32>
    %1001 = arith.maximumf %979, %1000 : vector<32x16xf32>
    %1002 = tpu.iota {dimensions = array<i32: 0>} : vector<16x4xi32>
    %1003 = tpu.iota {dimensions = array<i32: 1>} : vector<16x4xi32>
    %c1_i32_442 = arith.constant 1 : i32
    %1004 = vector.broadcast %c1_i32_442 : i32 to vector<16x4xi32>
    %1005 = arith.shrsi %1003, %1004 : vector<16x4xi32>
    %c1_i32_443 = arith.constant 1 : i32
    %1006 = vector.broadcast %c1_i32_443 : i32 to vector<16x4xi32>
    %1007 = arith.andi %1003, %1006 : vector<16x4xi32>
    %c8_i32_444 = arith.constant 8 : i32
    %1008 = vector.broadcast %c8_i32_444 : i32 to vector<16x4xi32>
    %1009 = arith.muli %1005, %1008 : vector<16x4xi32>
    %c2_i32_445 = arith.constant 2 : i32
    %1010 = vector.broadcast %c2_i32_445 : i32 to vector<16x4xi32>
    %1011 = arith.muli %1007, %1010 : vector<16x4xi32>
    %1012 = arith.addi %1009, %1011 : vector<16x4xi32>
    %1013 = arith.cmpi eq, %1002, %1012 : vector<16x4xi32>
    %cst_446 = arith.constant 1.000000e+00 : f32
    %cst_447 = arith.constant 0.000000e+00 : f32
    %1014 = vector.broadcast %cst_446 : f32 to vector<16x4xf32>
    %1015 = vector.broadcast %cst_447 : f32 to vector<16x4xf32>
    %1016 = arith.select %1013, %1014, %1015 : vector<16x4xi1>, vector<16x4xf32>
    %cst_448 = arith.constant dense<0.000000e+00> : vector<32x4xf32>
    %1017 = tpu.matmul %1001, %1016, %cst_448 {dimension_numbers = #tpu.dot_dimension_numbers<[1], [0], [0], [1], [0, 0, 1, 1], [], []>} : vector<32x16xf32>, vector<16x4xf32>, vector<32x4xf32> -> vector<32x4xf32>
    %c0_449 = arith.constant 0 : index
    %c0_450 = arith.constant 0 : index
    %1018 = vector.load %arg9[%c0_449, %c0_450] : memref<64x1xf32, #tpu.memory_space<vmem>>, vector<64x1xf32>
    %cst_451 = arith.constant 0.000000e+00 : f32
    %1019 = vector.broadcast %cst_451 : f32 to vector<64x4xf32>
    %1020 = tpu.iota {dimensions = array<i32: 0>} : vector<4x4xi32>
    %1021 = tpu.iota {dimensions = array<i32: 1>} : vector<4x4xi32>
    %c1_i32_452 = arith.constant 1 : i32
    %1022 = vector.broadcast %c1_i32_452 : i32 to vector<4x4xi32>
    %1023 = arith.andi %1021, %1022 : vector<4x4xi32>
    %c-3_i32_453 = arith.constant -3 : i32
    %1024 = vector.broadcast %c-3_i32_453 : i32 to vector<4x4xi32>
    %1025 = arith.addi %1021, %1024 : vector<4x4xi32>
    %1026 = arith.cmpi eq, %1020, %1025 : vector<4x4xi32>
    %c-1_i32_454 = arith.constant -1 : i32
    %1027 = vector.broadcast %c-1_i32_454 : i32 to vector<4x4xi32>
    %1028 = arith.addi %1023, %1027 : vector<4x4xi32>
    %c0_i32_455 = arith.constant 0 : i32
    %1029 = vector.broadcast %c0_i32_455 : i32 to vector<4x4xi32>
    %1030 = arith.cmpi sge, %1028, %1029 : vector<4x4xi32>
    %1031 = arith.andi %1026, %1030 : vector<4x4xi1>
    %c-1_i32_456 = arith.constant -1 : i32
    %1032 = vector.broadcast %c-1_i32_456 : i32 to vector<4x4xi32>
    %1033 = arith.addi %1023, %1032 : vector<4x4xi32>
    %c2_i32_457 = arith.constant 2 : i32
    %1034 = vector.broadcast %c2_i32_457 : i32 to vector<4x4xi32>
    %1035 = arith.cmpi slt, %1033, %1034 : vector<4x4xi32>
    %1036 = arith.andi %1031, %1035 : vector<4x4xi1>
    %cst_458 = arith.constant 1.000000e+00 : f32
    %cst_459 = arith.constant 0.000000e+00 : f32
    %1037 = vector.broadcast %cst_458 : f32 to vector<4x4xf32>
    %1038 = vector.broadcast %cst_459 : f32 to vector<4x4xf32>
    %1039 = arith.select %1036, %1037, %1038 : vector<4x4xi1>, vector<4x4xf32>
    %cst_460 = arith.constant dense<0.000000e+00> : vector<32x4xf32>
    %1040 = tpu.matmul %1017, %1039, %cst_460 {dimension_numbers = #tpu.dot_dimension_numbers<[1], [0], [0], [1], [0, 0, 1, 1], [], []>} : vector<32x4xf32>, vector<4x4xf32>, vector<32x4xf32> -> vector<32x4xf32>
    %c0_461 = arith.constant 0 : index
    %c0_462 = arith.constant 0 : index
    %c0_463 = arith.constant 0 : index
    %1041 = vector.load %arg8[%c0_461, %c0_462, %c0_463] : memref<9x64x32xf32, #tpu.memory_space<vmem>>, vector<1x64x32xf32>
    %1042 = vector.shape_cast %1041 : vector<1x64x32xf32> to vector<64x32xf32>
    %cst_464 = arith.constant dense<0.000000e+00> : vector<64x4xf32>
    %1043 = tpu.matmul %1042, %1040, %cst_464 {dimension_numbers = #tpu.dot_dimension_numbers<[1], [0], [0], [1], [0, 0, 1, 1], [], []>} : vector<64x32xf32>, vector<32x4xf32>, vector<64x4xf32> -> vector<64x4xf32>
    %1044 = arith.addf %1019, %1043 : vector<64x4xf32>
    %1045 = tpu.iota {dimensions = array<i32: 0>} : vector<4x4xi32>
    %1046 = tpu.iota {dimensions = array<i32: 1>} : vector<4x4xi32>
    %c1_i32_465 = arith.constant 1 : i32
    %1047 = vector.broadcast %c1_i32_465 : i32 to vector<4x4xi32>
    %1048 = arith.andi %1046, %1047 : vector<4x4xi32>
    %c-2_i32 = arith.constant -2 : i32
    %1049 = vector.broadcast %c-2_i32 : i32 to vector<4x4xi32>
    %1050 = arith.addi %1046, %1049 : vector<4x4xi32>
    %1051 = arith.cmpi eq, %1045, %1050 : vector<4x4xi32>
    %c0_i32_466 = arith.constant 0 : i32
    %1052 = vector.broadcast %c0_i32_466 : i32 to vector<4x4xi32>
    %1053 = arith.addi %1048, %1052 : vector<4x4xi32>
    %c0_i32_467 = arith.constant 0 : i32
    %1054 = vector.broadcast %c0_i32_467 : i32 to vector<4x4xi32>
    %1055 = arith.cmpi sge, %1053, %1054 : vector<4x4xi32>
    %1056 = arith.andi %1051, %1055 : vector<4x4xi1>
    %c0_i32_468 = arith.constant 0 : i32
    %1057 = vector.broadcast %c0_i32_468 : i32 to vector<4x4xi32>
    %1058 = arith.addi %1048, %1057 : vector<4x4xi32>
    %c2_i32_469 = arith.constant 2 : i32
    %1059 = vector.broadcast %c2_i32_469 : i32 to vector<4x4xi32>
    %1060 = arith.cmpi slt, %1058, %1059 : vector<4x4xi32>
    %1061 = arith.andi %1056, %1060 : vector<4x4xi1>
    %cst_470 = arith.constant 1.000000e+00 : f32
    %cst_471 = arith.constant 0.000000e+00 : f32
    %1062 = vector.broadcast %cst_470 : f32 to vector<4x4xf32>
    %1063 = vector.broadcast %cst_471 : f32 to vector<4x4xf32>
    %1064 = arith.select %1061, %1062, %1063 : vector<4x4xi1>, vector<4x4xf32>
    %cst_472 = arith.constant dense<0.000000e+00> : vector<32x4xf32>
    %1065 = tpu.matmul %1017, %1064, %cst_472 {dimension_numbers = #tpu.dot_dimension_numbers<[1], [0], [0], [1], [0, 0, 1, 1], [], []>} : vector<32x4xf32>, vector<4x4xf32>, vector<32x4xf32> -> vector<32x4xf32>
    %c1_473 = arith.constant 1 : index
    %c0_474 = arith.constant 0 : index
    %c0_475 = arith.constant 0 : index
    %1066 = vector.load %arg8[%c1_473, %c0_474, %c0_475] : memref<9x64x32xf32, #tpu.memory_space<vmem>>, vector<1x64x32xf32>
    %1067 = vector.shape_cast %1066 : vector<1x64x32xf32> to vector<64x32xf32>
    %cst_476 = arith.constant dense<0.000000e+00> : vector<64x4xf32>
    %1068 = tpu.matmul %1067, %1065, %cst_476 {dimension_numbers = #tpu.dot_dimension_numbers<[1], [0], [0], [1], [0, 0, 1, 1], [], []>} : vector<64x32xf32>, vector<32x4xf32>, vector<64x4xf32> -> vector<64x4xf32>
    %1069 = arith.addf %1044, %1068 : vector<64x4xf32>
    %1070 = tpu.iota {dimensions = array<i32: 0>} : vector<4x4xi32>
    %1071 = tpu.iota {dimensions = array<i32: 1>} : vector<4x4xi32>
    %c1_i32_477 = arith.constant 1 : i32
    %1072 = vector.broadcast %c1_i32_477 : i32 to vector<4x4xi32>
    %1073 = arith.andi %1071, %1072 : vector<4x4xi32>
    %c-1_i32_478 = arith.constant -1 : i32
    %1074 = vector.broadcast %c-1_i32_478 : i32 to vector<4x4xi32>
    %1075 = arith.addi %1071, %1074 : vector<4x4xi32>
    %1076 = arith.cmpi eq, %1070, %1075 : vector<4x4xi32>
    %c1_i32_479 = arith.constant 1 : i32
    %1077 = vector.broadcast %c1_i32_479 : i32 to vector<4x4xi32>
    %1078 = arith.addi %1073, %1077 : vector<4x4xi32>
    %c0_i32_480 = arith.constant 0 : i32
    %1079 = vector.broadcast %c0_i32_480 : i32 to vector<4x4xi32>
    %1080 = arith.cmpi sge, %1078, %1079 : vector<4x4xi32>
    %1081 = arith.andi %1076, %1080 : vector<4x4xi1>
    %c1_i32_481 = arith.constant 1 : i32
    %1082 = vector.broadcast %c1_i32_481 : i32 to vector<4x4xi32>
    %1083 = arith.addi %1073, %1082 : vector<4x4xi32>
    %c2_i32_482 = arith.constant 2 : i32
    %1084 = vector.broadcast %c2_i32_482 : i32 to vector<4x4xi32>
    %1085 = arith.cmpi slt, %1083, %1084 : vector<4x4xi32>
    %1086 = arith.andi %1081, %1085 : vector<4x4xi1>
    %cst_483 = arith.constant 1.000000e+00 : f32
    %cst_484 = arith.constant 0.000000e+00 : f32
    %1087 = vector.broadcast %cst_483 : f32 to vector<4x4xf32>
    %1088 = vector.broadcast %cst_484 : f32 to vector<4x4xf32>
    %1089 = arith.select %1086, %1087, %1088 : vector<4x4xi1>, vector<4x4xf32>
    %cst_485 = arith.constant dense<0.000000e+00> : vector<32x4xf32>
    %1090 = tpu.matmul %1017, %1089, %cst_485 {dimension_numbers = #tpu.dot_dimension_numbers<[1], [0], [0], [1], [0, 0, 1, 1], [], []>} : vector<32x4xf32>, vector<4x4xf32>, vector<32x4xf32> -> vector<32x4xf32>
    %c2_486 = arith.constant 2 : index
    %c0_487 = arith.constant 0 : index
    %c0_488 = arith.constant 0 : index
    %1091 = vector.load %arg8[%c2_486, %c0_487, %c0_488] : memref<9x64x32xf32, #tpu.memory_space<vmem>>, vector<1x64x32xf32>
    %1092 = vector.shape_cast %1091 : vector<1x64x32xf32> to vector<64x32xf32>
    %cst_489 = arith.constant dense<0.000000e+00> : vector<64x4xf32>
    %1093 = tpu.matmul %1092, %1090, %cst_489 {dimension_numbers = #tpu.dot_dimension_numbers<[1], [0], [0], [1], [0, 0, 1, 1], [], []>} : vector<64x32xf32>, vector<32x4xf32>, vector<64x4xf32> -> vector<64x4xf32>
    %1094 = arith.addf %1069, %1093 : vector<64x4xf32>
    %1095 = tpu.iota {dimensions = array<i32: 0>} : vector<4x4xi32>
    %1096 = tpu.iota {dimensions = array<i32: 1>} : vector<4x4xi32>
    %c1_i32_490 = arith.constant 1 : i32
    %1097 = vector.broadcast %c1_i32_490 : i32 to vector<4x4xi32>
    %1098 = arith.andi %1096, %1097 : vector<4x4xi32>
    %c-1_i32_491 = arith.constant -1 : i32
    %1099 = vector.broadcast %c-1_i32_491 : i32 to vector<4x4xi32>
    %1100 = arith.addi %1096, %1099 : vector<4x4xi32>
    %1101 = arith.cmpi eq, %1095, %1100 : vector<4x4xi32>
    %c-1_i32_492 = arith.constant -1 : i32
    %1102 = vector.broadcast %c-1_i32_492 : i32 to vector<4x4xi32>
    %1103 = arith.addi %1098, %1102 : vector<4x4xi32>
    %c0_i32_493 = arith.constant 0 : i32
    %1104 = vector.broadcast %c0_i32_493 : i32 to vector<4x4xi32>
    %1105 = arith.cmpi sge, %1103, %1104 : vector<4x4xi32>
    %1106 = arith.andi %1101, %1105 : vector<4x4xi1>
    %c-1_i32_494 = arith.constant -1 : i32
    %1107 = vector.broadcast %c-1_i32_494 : i32 to vector<4x4xi32>
    %1108 = arith.addi %1098, %1107 : vector<4x4xi32>
    %c2_i32_495 = arith.constant 2 : i32
    %1109 = vector.broadcast %c2_i32_495 : i32 to vector<4x4xi32>
    %1110 = arith.cmpi slt, %1108, %1109 : vector<4x4xi32>
    %1111 = arith.andi %1106, %1110 : vector<4x4xi1>
    %cst_496 = arith.constant 1.000000e+00 : f32
    %cst_497 = arith.constant 0.000000e+00 : f32
    %1112 = vector.broadcast %cst_496 : f32 to vector<4x4xf32>
    %1113 = vector.broadcast %cst_497 : f32 to vector<4x4xf32>
    %1114 = arith.select %1111, %1112, %1113 : vector<4x4xi1>, vector<4x4xf32>
    %cst_498 = arith.constant dense<0.000000e+00> : vector<32x4xf32>
    %1115 = tpu.matmul %1017, %1114, %cst_498 {dimension_numbers = #tpu.dot_dimension_numbers<[1], [0], [0], [1], [0, 0, 1, 1], [], []>} : vector<32x4xf32>, vector<4x4xf32>, vector<32x4xf32> -> vector<32x4xf32>
    %c3_499 = arith.constant 3 : index
    %c0_500 = arith.constant 0 : index
    %c0_501 = arith.constant 0 : index
    %1116 = vector.load %arg8[%c3_499, %c0_500, %c0_501] : memref<9x64x32xf32, #tpu.memory_space<vmem>>, vector<1x64x32xf32>
    %1117 = vector.shape_cast %1116 : vector<1x64x32xf32> to vector<64x32xf32>
    %cst_502 = arith.constant dense<0.000000e+00> : vector<64x4xf32>
    %1118 = tpu.matmul %1117, %1115, %cst_502 {dimension_numbers = #tpu.dot_dimension_numbers<[1], [0], [0], [1], [0, 0, 1, 1], [], []>} : vector<64x32xf32>, vector<32x4xf32>, vector<64x4xf32> -> vector<64x4xf32>
    %1119 = arith.addf %1094, %1118 : vector<64x4xf32>
    %c4_503 = arith.constant 4 : index
    %c0_504 = arith.constant 0 : index
    %c0_505 = arith.constant 0 : index
    %1120 = vector.load %arg8[%c4_503, %c0_504, %c0_505] : memref<9x64x32xf32, #tpu.memory_space<vmem>>, vector<1x64x32xf32>
    %1121 = vector.shape_cast %1120 : vector<1x64x32xf32> to vector<64x32xf32>
    %cst_506 = arith.constant dense<0.000000e+00> : vector<64x4xf32>
    %1122 = tpu.matmul %1121, %1017, %cst_506 {dimension_numbers = #tpu.dot_dimension_numbers<[1], [0], [0], [1], [0, 0, 1, 1], [], []>} : vector<64x32xf32>, vector<32x4xf32>, vector<64x4xf32> -> vector<64x4xf32>
    %1123 = arith.addf %1119, %1122 : vector<64x4xf32>
    %1124 = tpu.iota {dimensions = array<i32: 0>} : vector<4x4xi32>
    %1125 = tpu.iota {dimensions = array<i32: 1>} : vector<4x4xi32>
    %c1_i32_507 = arith.constant 1 : i32
    %1126 = vector.broadcast %c1_i32_507 : i32 to vector<4x4xi32>
    %1127 = arith.andi %1125, %1126 : vector<4x4xi32>
    %c1_i32_508 = arith.constant 1 : i32
    %1128 = vector.broadcast %c1_i32_508 : i32 to vector<4x4xi32>
    %1129 = arith.addi %1125, %1128 : vector<4x4xi32>
    %1130 = arith.cmpi eq, %1124, %1129 : vector<4x4xi32>
    %c1_i32_509 = arith.constant 1 : i32
    %1131 = vector.broadcast %c1_i32_509 : i32 to vector<4x4xi32>
    %1132 = arith.addi %1127, %1131 : vector<4x4xi32>
    %c0_i32_510 = arith.constant 0 : i32
    %1133 = vector.broadcast %c0_i32_510 : i32 to vector<4x4xi32>
    %1134 = arith.cmpi sge, %1132, %1133 : vector<4x4xi32>
    %1135 = arith.andi %1130, %1134 : vector<4x4xi1>
    %c1_i32_511 = arith.constant 1 : i32
    %1136 = vector.broadcast %c1_i32_511 : i32 to vector<4x4xi32>
    %1137 = arith.addi %1127, %1136 : vector<4x4xi32>
    %c2_i32_512 = arith.constant 2 : i32
    %1138 = vector.broadcast %c2_i32_512 : i32 to vector<4x4xi32>
    %1139 = arith.cmpi slt, %1137, %1138 : vector<4x4xi32>
    %1140 = arith.andi %1135, %1139 : vector<4x4xi1>
    %cst_513 = arith.constant 1.000000e+00 : f32
    %cst_514 = arith.constant 0.000000e+00 : f32
    %1141 = vector.broadcast %cst_513 : f32 to vector<4x4xf32>
    %1142 = vector.broadcast %cst_514 : f32 to vector<4x4xf32>
    %1143 = arith.select %1140, %1141, %1142 : vector<4x4xi1>, vector<4x4xf32>
    %cst_515 = arith.constant dense<0.000000e+00> : vector<32x4xf32>
    %1144 = tpu.matmul %1017, %1143, %cst_515 {dimension_numbers = #tpu.dot_dimension_numbers<[1], [0], [0], [1], [0, 0, 1, 1], [], []>} : vector<32x4xf32>, vector<4x4xf32>, vector<32x4xf32> -> vector<32x4xf32>
    %c5_516 = arith.constant 5 : index
    %c0_517 = arith.constant 0 : index
    %c0_518 = arith.constant 0 : index
    %1145 = vector.load %arg8[%c5_516, %c0_517, %c0_518] : memref<9x64x32xf32, #tpu.memory_space<vmem>>, vector<1x64x32xf32>
    %1146 = vector.shape_cast %1145 : vector<1x64x32xf32> to vector<64x32xf32>
    %cst_519 = arith.constant dense<0.000000e+00> : vector<64x4xf32>
    %1147 = tpu.matmul %1146, %1144, %cst_519 {dimension_numbers = #tpu.dot_dimension_numbers<[1], [0], [0], [1], [0, 0, 1, 1], [], []>} : vector<64x32xf32>, vector<32x4xf32>, vector<64x4xf32> -> vector<64x4xf32>
    %1148 = arith.addf %1123, %1147 : vector<64x4xf32>
    %1149 = tpu.iota {dimensions = array<i32: 0>} : vector<4x4xi32>
    %1150 = tpu.iota {dimensions = array<i32: 1>} : vector<4x4xi32>
    %c1_i32_520 = arith.constant 1 : i32
    %1151 = vector.broadcast %c1_i32_520 : i32 to vector<4x4xi32>
    %1152 = arith.andi %1150, %1151 : vector<4x4xi32>
    %c1_i32_521 = arith.constant 1 : i32
    %1153 = vector.broadcast %c1_i32_521 : i32 to vector<4x4xi32>
    %1154 = arith.addi %1150, %1153 : vector<4x4xi32>
    %1155 = arith.cmpi eq, %1149, %1154 : vector<4x4xi32>
    %c-1_i32_522 = arith.constant -1 : i32
    %1156 = vector.broadcast %c-1_i32_522 : i32 to vector<4x4xi32>
    %1157 = arith.addi %1152, %1156 : vector<4x4xi32>
    %c0_i32_523 = arith.constant 0 : i32
    %1158 = vector.broadcast %c0_i32_523 : i32 to vector<4x4xi32>
    %1159 = arith.cmpi sge, %1157, %1158 : vector<4x4xi32>
    %1160 = arith.andi %1155, %1159 : vector<4x4xi1>
    %c-1_i32_524 = arith.constant -1 : i32
    %1161 = vector.broadcast %c-1_i32_524 : i32 to vector<4x4xi32>
    %1162 = arith.addi %1152, %1161 : vector<4x4xi32>
    %c2_i32_525 = arith.constant 2 : i32
    %1163 = vector.broadcast %c2_i32_525 : i32 to vector<4x4xi32>
    %1164 = arith.cmpi slt, %1162, %1163 : vector<4x4xi32>
    %1165 = arith.andi %1160, %1164 : vector<4x4xi1>
    %cst_526 = arith.constant 1.000000e+00 : f32
    %cst_527 = arith.constant 0.000000e+00 : f32
    %1166 = vector.broadcast %cst_526 : f32 to vector<4x4xf32>
    %1167 = vector.broadcast %cst_527 : f32 to vector<4x4xf32>
    %1168 = arith.select %1165, %1166, %1167 : vector<4x4xi1>, vector<4x4xf32>
    %cst_528 = arith.constant dense<0.000000e+00> : vector<32x4xf32>
    %1169 = tpu.matmul %1017, %1168, %cst_528 {dimension_numbers = #tpu.dot_dimension_numbers<[1], [0], [0], [1], [0, 0, 1, 1], [], []>} : vector<32x4xf32>, vector<4x4xf32>, vector<32x4xf32> -> vector<32x4xf32>
    %c6_529 = arith.constant 6 : index
    %c0_530 = arith.constant 0 : index
    %c0_531 = arith.constant 0 : index
    %1170 = vector.load %arg8[%c6_529, %c0_530, %c0_531] : memref<9x64x32xf32, #tpu.memory_space<vmem>>, vector<1x64x32xf32>
    %1171 = vector.shape_cast %1170 : vector<1x64x32xf32> to vector<64x32xf32>
    %cst_532 = arith.constant dense<0.000000e+00> : vector<64x4xf32>
    %1172 = tpu.matmul %1171, %1169, %cst_532 {dimension_numbers = #tpu.dot_dimension_numbers<[1], [0], [0], [1], [0, 0, 1, 1], [], []>} : vector<64x32xf32>, vector<32x4xf32>, vector<64x4xf32> -> vector<64x4xf32>
    %1173 = arith.addf %1148, %1172 : vector<64x4xf32>
    %1174 = tpu.iota {dimensions = array<i32: 0>} : vector<4x4xi32>
    %1175 = tpu.iota {dimensions = array<i32: 1>} : vector<4x4xi32>
    %c1_i32_533 = arith.constant 1 : i32
    %1176 = vector.broadcast %c1_i32_533 : i32 to vector<4x4xi32>
    %1177 = arith.andi %1175, %1176 : vector<4x4xi32>
    %c2_i32_534 = arith.constant 2 : i32
    %1178 = vector.broadcast %c2_i32_534 : i32 to vector<4x4xi32>
    %1179 = arith.addi %1175, %1178 : vector<4x4xi32>
    %1180 = arith.cmpi eq, %1174, %1179 : vector<4x4xi32>
    %c0_i32_535 = arith.constant 0 : i32
    %1181 = vector.broadcast %c0_i32_535 : i32 to vector<4x4xi32>
    %1182 = arith.addi %1177, %1181 : vector<4x4xi32>
    %c0_i32_536 = arith.constant 0 : i32
    %1183 = vector.broadcast %c0_i32_536 : i32 to vector<4x4xi32>
    %1184 = arith.cmpi sge, %1182, %1183 : vector<4x4xi32>
    %1185 = arith.andi %1180, %1184 : vector<4x4xi1>
    %c0_i32_537 = arith.constant 0 : i32
    %1186 = vector.broadcast %c0_i32_537 : i32 to vector<4x4xi32>
    %1187 = arith.addi %1177, %1186 : vector<4x4xi32>
    %c2_i32_538 = arith.constant 2 : i32
    %1188 = vector.broadcast %c2_i32_538 : i32 to vector<4x4xi32>
    %1189 = arith.cmpi slt, %1187, %1188 : vector<4x4xi32>
    %1190 = arith.andi %1185, %1189 : vector<4x4xi1>
    %cst_539 = arith.constant 1.000000e+00 : f32
    %cst_540 = arith.constant 0.000000e+00 : f32
    %1191 = vector.broadcast %cst_539 : f32 to vector<4x4xf32>
    %1192 = vector.broadcast %cst_540 : f32 to vector<4x4xf32>
    %1193 = arith.select %1190, %1191, %1192 : vector<4x4xi1>, vector<4x4xf32>
    %cst_541 = arith.constant dense<0.000000e+00> : vector<32x4xf32>
    %1194 = tpu.matmul %1017, %1193, %cst_541 {dimension_numbers = #tpu.dot_dimension_numbers<[1], [0], [0], [1], [0, 0, 1, 1], [], []>} : vector<32x4xf32>, vector<4x4xf32>, vector<32x4xf32> -> vector<32x4xf32>
    %c7_542 = arith.constant 7 : index
    %c0_543 = arith.constant 0 : index
    %c0_544 = arith.constant 0 : index
    %1195 = vector.load %arg8[%c7_542, %c0_543, %c0_544] : memref<9x64x32xf32, #tpu.memory_space<vmem>>, vector<1x64x32xf32>
    %1196 = vector.shape_cast %1195 : vector<1x64x32xf32> to vector<64x32xf32>
    %cst_545 = arith.constant dense<0.000000e+00> : vector<64x4xf32>
    %1197 = tpu.matmul %1196, %1194, %cst_545 {dimension_numbers = #tpu.dot_dimension_numbers<[1], [0], [0], [1], [0, 0, 1, 1], [], []>} : vector<64x32xf32>, vector<32x4xf32>, vector<64x4xf32> -> vector<64x4xf32>
    %1198 = arith.addf %1173, %1197 : vector<64x4xf32>
    %1199 = tpu.iota {dimensions = array<i32: 0>} : vector<4x4xi32>
    %1200 = tpu.iota {dimensions = array<i32: 1>} : vector<4x4xi32>
    %c1_i32_546 = arith.constant 1 : i32
    %1201 = vector.broadcast %c1_i32_546 : i32 to vector<4x4xi32>
    %1202 = arith.andi %1200, %1201 : vector<4x4xi32>
    %c3_i32_547 = arith.constant 3 : i32
    %1203 = vector.broadcast %c3_i32_547 : i32 to vector<4x4xi32>
    %1204 = arith.addi %1200, %1203 : vector<4x4xi32>
    %1205 = arith.cmpi eq, %1199, %1204 : vector<4x4xi32>
    %c1_i32_548 = arith.constant 1 : i32
    %1206 = vector.broadcast %c1_i32_548 : i32 to vector<4x4xi32>
    %1207 = arith.addi %1202, %1206 : vector<4x4xi32>
    %c0_i32_549 = arith.constant 0 : i32
    %1208 = vector.broadcast %c0_i32_549 : i32 to vector<4x4xi32>
    %1209 = arith.cmpi sge, %1207, %1208 : vector<4x4xi32>
    %1210 = arith.andi %1205, %1209 : vector<4x4xi1>
    %c1_i32_550 = arith.constant 1 : i32
    %1211 = vector.broadcast %c1_i32_550 : i32 to vector<4x4xi32>
    %1212 = arith.addi %1202, %1211 : vector<4x4xi32>
    %c2_i32_551 = arith.constant 2 : i32
    %1213 = vector.broadcast %c2_i32_551 : i32 to vector<4x4xi32>
    %1214 = arith.cmpi slt, %1212, %1213 : vector<4x4xi32>
    %1215 = arith.andi %1210, %1214 : vector<4x4xi1>
    %cst_552 = arith.constant 1.000000e+00 : f32
    %cst_553 = arith.constant 0.000000e+00 : f32
    %1216 = vector.broadcast %cst_552 : f32 to vector<4x4xf32>
    %1217 = vector.broadcast %cst_553 : f32 to vector<4x4xf32>
    %1218 = arith.select %1215, %1216, %1217 : vector<4x4xi1>, vector<4x4xf32>
    %cst_554 = arith.constant dense<0.000000e+00> : vector<32x4xf32>
    %1219 = tpu.matmul %1017, %1218, %cst_554 {dimension_numbers = #tpu.dot_dimension_numbers<[1], [0], [0], [1], [0, 0, 1, 1], [], []>} : vector<32x4xf32>, vector<4x4xf32>, vector<32x4xf32> -> vector<32x4xf32>
    %c8_555 = arith.constant 8 : index
    %c0_556 = arith.constant 0 : index
    %c0_557 = arith.constant 0 : index
    %1220 = vector.load %arg8[%c8_555, %c0_556, %c0_557] : memref<9x64x32xf32, #tpu.memory_space<vmem>>, vector<1x64x32xf32>
    %1221 = vector.shape_cast %1220 : vector<1x64x32xf32> to vector<64x32xf32>
    %cst_558 = arith.constant dense<0.000000e+00> : vector<64x4xf32>
    %1222 = tpu.matmul %1221, %1219, %cst_558 {dimension_numbers = #tpu.dot_dimension_numbers<[1], [0], [0], [1], [0, 0, 1, 1], [], []>} : vector<64x32xf32>, vector<32x4xf32>, vector<64x4xf32> -> vector<64x4xf32>
    %1223 = arith.addf %1198, %1222 : vector<64x4xf32>
    %1224 = vector.broadcast %1018 : vector<64x1xf32> to vector<64x4xf32>
    %1225 = arith.addf %1223, %1224 : vector<64x4xf32>
    %cst_559 = arith.constant 0.000000e+00 : f32
    %1226 = vector.broadcast %cst_559 : f32 to vector<64x4xf32>
    %1227 = arith.maximumf %1225, %1226 : vector<64x4xf32>
    %1228 = tpu.iota {dimensions = array<i32: 0>} : vector<4x4xi32>
    %1229 = tpu.iota {dimensions = array<i32: 1>} : vector<4x4xi32>
    %c1_i32_560 = arith.constant 1 : i32
    %1230 = vector.broadcast %c1_i32_560 : i32 to vector<4x4xi32>
    %1231 = arith.andi %1229, %1230 : vector<4x4xi32>
    %c1_i32_561 = arith.constant 1 : i32
    %1232 = vector.broadcast %c1_i32_561 : i32 to vector<4x4xi32>
    %1233 = arith.addi %1229, %1232 : vector<4x4xi32>
    %1234 = arith.cmpi eq, %1228, %1233 : vector<4x4xi32>
    %c1_i32_562 = arith.constant 1 : i32
    %1235 = vector.broadcast %c1_i32_562 : i32 to vector<4x4xi32>
    %1236 = arith.addi %1231, %1235 : vector<4x4xi32>
    %c0_i32_563 = arith.constant 0 : i32
    %1237 = vector.broadcast %c0_i32_563 : i32 to vector<4x4xi32>
    %1238 = arith.cmpi sge, %1236, %1237 : vector<4x4xi32>
    %1239 = arith.andi %1234, %1238 : vector<4x4xi1>
    %c1_i32_564 = arith.constant 1 : i32
    %1240 = vector.broadcast %c1_i32_564 : i32 to vector<4x4xi32>
    %1241 = arith.addi %1231, %1240 : vector<4x4xi32>
    %c2_i32_565 = arith.constant 2 : i32
    %1242 = vector.broadcast %c2_i32_565 : i32 to vector<4x4xi32>
    %1243 = arith.cmpi slt, %1241, %1242 : vector<4x4xi32>
    %1244 = arith.andi %1239, %1243 : vector<4x4xi1>
    %cst_566 = arith.constant 1.000000e+00 : f32
    %cst_567 = arith.constant 0.000000e+00 : f32
    %1245 = vector.broadcast %cst_566 : f32 to vector<4x4xf32>
    %1246 = vector.broadcast %cst_567 : f32 to vector<4x4xf32>
    %1247 = arith.select %1244, %1245, %1246 : vector<4x4xi1>, vector<4x4xf32>
    %cst_568 = arith.constant dense<0.000000e+00> : vector<64x4xf32>
    %1248 = tpu.matmul %1227, %1247, %cst_568 {dimension_numbers = #tpu.dot_dimension_numbers<[1], [0], [0], [1], [0, 0, 1, 1], [], []>} : vector<64x4xf32>, vector<4x4xf32>, vector<64x4xf32> -> vector<64x4xf32>
    %1249 = arith.maximumf %1227, %1248 : vector<64x4xf32>
    %1250 = tpu.iota {dimensions = array<i32: 0>} : vector<4x4xi32>
    %1251 = tpu.iota {dimensions = array<i32: 1>} : vector<4x4xi32>
    %c1_i32_569 = arith.constant 1 : i32
    %1252 = vector.broadcast %c1_i32_569 : i32 to vector<4x4xi32>
    %1253 = arith.andi %1251, %1252 : vector<4x4xi32>
    %c2_i32_570 = arith.constant 2 : i32
    %1254 = vector.broadcast %c2_i32_570 : i32 to vector<4x4xi32>
    %1255 = arith.addi %1251, %1254 : vector<4x4xi32>
    %1256 = arith.cmpi eq, %1250, %1255 : vector<4x4xi32>
    %c0_i32_571 = arith.constant 0 : i32
    %1257 = vector.broadcast %c0_i32_571 : i32 to vector<4x4xi32>
    %1258 = arith.addi %1253, %1257 : vector<4x4xi32>
    %c0_i32_572 = arith.constant 0 : i32
    %1259 = vector.broadcast %c0_i32_572 : i32 to vector<4x4xi32>
    %1260 = arith.cmpi sge, %1258, %1259 : vector<4x4xi32>
    %1261 = arith.andi %1256, %1260 : vector<4x4xi1>
    %c0_i32_573 = arith.constant 0 : i32
    %1262 = vector.broadcast %c0_i32_573 : i32 to vector<4x4xi32>
    %1263 = arith.addi %1253, %1262 : vector<4x4xi32>
    %c2_i32_574 = arith.constant 2 : i32
    %1264 = vector.broadcast %c2_i32_574 : i32 to vector<4x4xi32>
    %1265 = arith.cmpi slt, %1263, %1264 : vector<4x4xi32>
    %1266 = arith.andi %1261, %1265 : vector<4x4xi1>
    %cst_575 = arith.constant 1.000000e+00 : f32
    %cst_576 = arith.constant 0.000000e+00 : f32
    %1267 = vector.broadcast %cst_575 : f32 to vector<4x4xf32>
    %1268 = vector.broadcast %cst_576 : f32 to vector<4x4xf32>
    %1269 = arith.select %1266, %1267, %1268 : vector<4x4xi1>, vector<4x4xf32>
    %cst_577 = arith.constant dense<0.000000e+00> : vector<64x4xf32>
    %1270 = tpu.matmul %1227, %1269, %cst_577 {dimension_numbers = #tpu.dot_dimension_numbers<[1], [0], [0], [1], [0, 0, 1, 1], [], []>} : vector<64x4xf32>, vector<4x4xf32>, vector<64x4xf32> -> vector<64x4xf32>
    %1271 = arith.maximumf %1249, %1270 : vector<64x4xf32>
    %1272 = tpu.iota {dimensions = array<i32: 0>} : vector<4x4xi32>
    %1273 = tpu.iota {dimensions = array<i32: 1>} : vector<4x4xi32>
    %c1_i32_578 = arith.constant 1 : i32
    %1274 = vector.broadcast %c1_i32_578 : i32 to vector<4x4xi32>
    %1275 = arith.andi %1273, %1274 : vector<4x4xi32>
    %c3_i32_579 = arith.constant 3 : i32
    %1276 = vector.broadcast %c3_i32_579 : i32 to vector<4x4xi32>
    %1277 = arith.addi %1273, %1276 : vector<4x4xi32>
    %1278 = arith.cmpi eq, %1272, %1277 : vector<4x4xi32>
    %c1_i32_580 = arith.constant 1 : i32
    %1279 = vector.broadcast %c1_i32_580 : i32 to vector<4x4xi32>
    %1280 = arith.addi %1275, %1279 : vector<4x4xi32>
    %c0_i32_581 = arith.constant 0 : i32
    %1281 = vector.broadcast %c0_i32_581 : i32 to vector<4x4xi32>
    %1282 = arith.cmpi sge, %1280, %1281 : vector<4x4xi32>
    %1283 = arith.andi %1278, %1282 : vector<4x4xi1>
    %c1_i32_582 = arith.constant 1 : i32
    %1284 = vector.broadcast %c1_i32_582 : i32 to vector<4x4xi32>
    %1285 = arith.addi %1275, %1284 : vector<4x4xi32>
    %c2_i32_583 = arith.constant 2 : i32
    %1286 = vector.broadcast %c2_i32_583 : i32 to vector<4x4xi32>
    %1287 = arith.cmpi slt, %1285, %1286 : vector<4x4xi32>
    %1288 = arith.andi %1283, %1287 : vector<4x4xi1>
    %cst_584 = arith.constant 1.000000e+00 : f32
    %cst_585 = arith.constant 0.000000e+00 : f32
    %1289 = vector.broadcast %cst_584 : f32 to vector<4x4xf32>
    %1290 = vector.broadcast %cst_585 : f32 to vector<4x4xf32>
    %1291 = arith.select %1288, %1289, %1290 : vector<4x4xi1>, vector<4x4xf32>
    %cst_586 = arith.constant dense<0.000000e+00> : vector<64x4xf32>
    %1292 = tpu.matmul %1227, %1291, %cst_586 {dimension_numbers = #tpu.dot_dimension_numbers<[1], [0], [0], [1], [0, 0, 1, 1], [], []>} : vector<64x4xf32>, vector<4x4xf32>, vector<64x4xf32> -> vector<64x4xf32>
    %1293 = arith.maximumf %1271, %1292 : vector<64x4xf32>
    %1294 = vector.extract_strided_slice %1293 {offsets = [0, 0], sizes = [64, 1], strides = [1, 1]} : vector<64x4xf32> to vector<64x1xf32>
    %c0_587 = arith.constant 0 : index
    %c0_588 = arith.constant 0 : index
    %1295 = vector.load %arg11[%c0_587, %c0_588] : memref<32x1xf32, #tpu.memory_space<vmem>>, vector<32x1xf32>
    %1296 = vector.shape_cast %1294 : vector<64x1xf32> to vector<64x1xf32>
    %1297 = vector.broadcast %1296 : vector<64x1xf32> to vector<64x4xf32>
    %cst_589 = arith.constant 0.000000e+00 : f32
    %1298 = vector.broadcast %cst_589 : f32 to vector<32x4xf32>
    %1299 = tpu.iota {dimensions = array<i32: 0>} : vector<4x4xi32>
    %1300 = tpu.iota {dimensions = array<i32: 1>} : vector<4x4xi32>
    %c1_i32_590 = arith.constant 1 : i32
    %1301 = vector.broadcast %c1_i32_590 : i32 to vector<4x4xi32>
    %1302 = arith.andi %1300, %1301 : vector<4x4xi32>
    %c-3_i32_591 = arith.constant -3 : i32
    %1303 = vector.broadcast %c-3_i32_591 : i32 to vector<4x4xi32>
    %1304 = arith.addi %1300, %1303 : vector<4x4xi32>
    %1305 = arith.cmpi eq, %1299, %1304 : vector<4x4xi32>
    %c-1_i32_592 = arith.constant -1 : i32
    %1306 = vector.broadcast %c-1_i32_592 : i32 to vector<4x4xi32>
    %1307 = arith.addi %1302, %1306 : vector<4x4xi32>
    %c0_i32_593 = arith.constant 0 : i32
    %1308 = vector.broadcast %c0_i32_593 : i32 to vector<4x4xi32>
    %1309 = arith.cmpi sge, %1307, %1308 : vector<4x4xi32>
    %1310 = arith.andi %1305, %1309 : vector<4x4xi1>
    %c-1_i32_594 = arith.constant -1 : i32
    %1311 = vector.broadcast %c-1_i32_594 : i32 to vector<4x4xi32>
    %1312 = arith.addi %1302, %1311 : vector<4x4xi32>
    %c2_i32_595 = arith.constant 2 : i32
    %1313 = vector.broadcast %c2_i32_595 : i32 to vector<4x4xi32>
    %1314 = arith.cmpi slt, %1312, %1313 : vector<4x4xi32>
    %1315 = arith.andi %1310, %1314 : vector<4x4xi1>
    %cst_596 = arith.constant 1.000000e+00 : f32
    %cst_597 = arith.constant 0.000000e+00 : f32
    %1316 = vector.broadcast %cst_596 : f32 to vector<4x4xf32>
    %1317 = vector.broadcast %cst_597 : f32 to vector<4x4xf32>
    %1318 = arith.select %1315, %1316, %1317 : vector<4x4xi1>, vector<4x4xf32>
    %cst_598 = arith.constant dense<0.000000e+00> : vector<64x4xf32>
    %1319 = tpu.matmul %1297, %1318, %cst_598 {dimension_numbers = #tpu.dot_dimension_numbers<[1], [0], [0], [1], [0, 0, 1, 1], [], []>} : vector<64x4xf32>, vector<4x4xf32>, vector<64x4xf32> -> vector<64x4xf32>
    %c0_599 = arith.constant 0 : index
    %c0_600 = arith.constant 0 : index
    %c0_601 = arith.constant 0 : index
    %1320 = vector.load %arg10[%c0_599, %c0_600, %c0_601] : memref<9x32x64xf32, #tpu.memory_space<vmem>>, vector<1x32x64xf32>
    %1321 = vector.shape_cast %1320 : vector<1x32x64xf32> to vector<32x64xf32>
    %cst_602 = arith.constant dense<0.000000e+00> : vector<32x4xf32>
    %1322 = tpu.matmul %1321, %1319, %cst_602 {dimension_numbers = #tpu.dot_dimension_numbers<[1], [0], [0], [1], [0, 0, 1, 1], [], []>} : vector<32x64xf32>, vector<64x4xf32>, vector<32x4xf32> -> vector<32x4xf32>
    %1323 = arith.addf %1298, %1322 : vector<32x4xf32>
    %1324 = tpu.iota {dimensions = array<i32: 0>} : vector<4x4xi32>
    %1325 = tpu.iota {dimensions = array<i32: 1>} : vector<4x4xi32>
    %c1_i32_603 = arith.constant 1 : i32
    %1326 = vector.broadcast %c1_i32_603 : i32 to vector<4x4xi32>
    %1327 = arith.andi %1325, %1326 : vector<4x4xi32>
    %c-2_i32_604 = arith.constant -2 : i32
    %1328 = vector.broadcast %c-2_i32_604 : i32 to vector<4x4xi32>
    %1329 = arith.addi %1325, %1328 : vector<4x4xi32>
    %1330 = arith.cmpi eq, %1324, %1329 : vector<4x4xi32>
    %c0_i32_605 = arith.constant 0 : i32
    %1331 = vector.broadcast %c0_i32_605 : i32 to vector<4x4xi32>
    %1332 = arith.addi %1327, %1331 : vector<4x4xi32>
    %c0_i32_606 = arith.constant 0 : i32
    %1333 = vector.broadcast %c0_i32_606 : i32 to vector<4x4xi32>
    %1334 = arith.cmpi sge, %1332, %1333 : vector<4x4xi32>
    %1335 = arith.andi %1330, %1334 : vector<4x4xi1>
    %c0_i32_607 = arith.constant 0 : i32
    %1336 = vector.broadcast %c0_i32_607 : i32 to vector<4x4xi32>
    %1337 = arith.addi %1327, %1336 : vector<4x4xi32>
    %c2_i32_608 = arith.constant 2 : i32
    %1338 = vector.broadcast %c2_i32_608 : i32 to vector<4x4xi32>
    %1339 = arith.cmpi slt, %1337, %1338 : vector<4x4xi32>
    %1340 = arith.andi %1335, %1339 : vector<4x4xi1>
    %cst_609 = arith.constant 1.000000e+00 : f32
    %cst_610 = arith.constant 0.000000e+00 : f32
    %1341 = vector.broadcast %cst_609 : f32 to vector<4x4xf32>
    %1342 = vector.broadcast %cst_610 : f32 to vector<4x4xf32>
    %1343 = arith.select %1340, %1341, %1342 : vector<4x4xi1>, vector<4x4xf32>
    %cst_611 = arith.constant dense<0.000000e+00> : vector<64x4xf32>
    %1344 = tpu.matmul %1297, %1343, %cst_611 {dimension_numbers = #tpu.dot_dimension_numbers<[1], [0], [0], [1], [0, 0, 1, 1], [], []>} : vector<64x4xf32>, vector<4x4xf32>, vector<64x4xf32> -> vector<64x4xf32>
    %c1_612 = arith.constant 1 : index
    %c0_613 = arith.constant 0 : index
    %c0_614 = arith.constant 0 : index
    %1345 = vector.load %arg10[%c1_612, %c0_613, %c0_614] : memref<9x32x64xf32, #tpu.memory_space<vmem>>, vector<1x32x64xf32>
    %1346 = vector.shape_cast %1345 : vector<1x32x64xf32> to vector<32x64xf32>
    %cst_615 = arith.constant dense<0.000000e+00> : vector<32x4xf32>
    %1347 = tpu.matmul %1346, %1344, %cst_615 {dimension_numbers = #tpu.dot_dimension_numbers<[1], [0], [0], [1], [0, 0, 1, 1], [], []>} : vector<32x64xf32>, vector<64x4xf32>, vector<32x4xf32> -> vector<32x4xf32>
    %1348 = arith.addf %1323, %1347 : vector<32x4xf32>
    %1349 = tpu.iota {dimensions = array<i32: 0>} : vector<4x4xi32>
    %1350 = tpu.iota {dimensions = array<i32: 1>} : vector<4x4xi32>
    %c1_i32_616 = arith.constant 1 : i32
    %1351 = vector.broadcast %c1_i32_616 : i32 to vector<4x4xi32>
    %1352 = arith.andi %1350, %1351 : vector<4x4xi32>
    %c-1_i32_617 = arith.constant -1 : i32
    %1353 = vector.broadcast %c-1_i32_617 : i32 to vector<4x4xi32>
    %1354 = arith.addi %1350, %1353 : vector<4x4xi32>
    %1355 = arith.cmpi eq, %1349, %1354 : vector<4x4xi32>
    %c1_i32_618 = arith.constant 1 : i32
    %1356 = vector.broadcast %c1_i32_618 : i32 to vector<4x4xi32>
    %1357 = arith.addi %1352, %1356 : vector<4x4xi32>
    %c0_i32_619 = arith.constant 0 : i32
    %1358 = vector.broadcast %c0_i32_619 : i32 to vector<4x4xi32>
    %1359 = arith.cmpi sge, %1357, %1358 : vector<4x4xi32>
    %1360 = arith.andi %1355, %1359 : vector<4x4xi1>
    %c1_i32_620 = arith.constant 1 : i32
    %1361 = vector.broadcast %c1_i32_620 : i32 to vector<4x4xi32>
    %1362 = arith.addi %1352, %1361 : vector<4x4xi32>
    %c2_i32_621 = arith.constant 2 : i32
    %1363 = vector.broadcast %c2_i32_621 : i32 to vector<4x4xi32>
    %1364 = arith.cmpi slt, %1362, %1363 : vector<4x4xi32>
    %1365 = arith.andi %1360, %1364 : vector<4x4xi1>
    %cst_622 = arith.constant 1.000000e+00 : f32
    %cst_623 = arith.constant 0.000000e+00 : f32
    %1366 = vector.broadcast %cst_622 : f32 to vector<4x4xf32>
    %1367 = vector.broadcast %cst_623 : f32 to vector<4x4xf32>
    %1368 = arith.select %1365, %1366, %1367 : vector<4x4xi1>, vector<4x4xf32>
    %cst_624 = arith.constant dense<0.000000e+00> : vector<64x4xf32>
    %1369 = tpu.matmul %1297, %1368, %cst_624 {dimension_numbers = #tpu.dot_dimension_numbers<[1], [0], [0], [1], [0, 0, 1, 1], [], []>} : vector<64x4xf32>, vector<4x4xf32>, vector<64x4xf32> -> vector<64x4xf32>
    %c2_625 = arith.constant 2 : index
    %c0_626 = arith.constant 0 : index
    %c0_627 = arith.constant 0 : index
    %1370 = vector.load %arg10[%c2_625, %c0_626, %c0_627] : memref<9x32x64xf32, #tpu.memory_space<vmem>>, vector<1x32x64xf32>
    %1371 = vector.shape_cast %1370 : vector<1x32x64xf32> to vector<32x64xf32>
    %cst_628 = arith.constant dense<0.000000e+00> : vector<32x4xf32>
    %1372 = tpu.matmul %1371, %1369, %cst_628 {dimension_numbers = #tpu.dot_dimension_numbers<[1], [0], [0], [1], [0, 0, 1, 1], [], []>} : vector<32x64xf32>, vector<64x4xf32>, vector<32x4xf32> -> vector<32x4xf32>
    %1373 = arith.addf %1348, %1372 : vector<32x4xf32>
    %1374 = tpu.iota {dimensions = array<i32: 0>} : vector<4x4xi32>
    %1375 = tpu.iota {dimensions = array<i32: 1>} : vector<4x4xi32>
    %c1_i32_629 = arith.constant 1 : i32
    %1376 = vector.broadcast %c1_i32_629 : i32 to vector<4x4xi32>
    %1377 = arith.andi %1375, %1376 : vector<4x4xi32>
    %c-1_i32_630 = arith.constant -1 : i32
    %1378 = vector.broadcast %c-1_i32_630 : i32 to vector<4x4xi32>
    %1379 = arith.addi %1375, %1378 : vector<4x4xi32>
    %1380 = arith.cmpi eq, %1374, %1379 : vector<4x4xi32>
    %c-1_i32_631 = arith.constant -1 : i32
    %1381 = vector.broadcast %c-1_i32_631 : i32 to vector<4x4xi32>
    %1382 = arith.addi %1377, %1381 : vector<4x4xi32>
    %c0_i32_632 = arith.constant 0 : i32
    %1383 = vector.broadcast %c0_i32_632 : i32 to vector<4x4xi32>
    %1384 = arith.cmpi sge, %1382, %1383 : vector<4x4xi32>
    %1385 = arith.andi %1380, %1384 : vector<4x4xi1>
    %c-1_i32_633 = arith.constant -1 : i32
    %1386 = vector.broadcast %c-1_i32_633 : i32 to vector<4x4xi32>
    %1387 = arith.addi %1377, %1386 : vector<4x4xi32>
    %c2_i32_634 = arith.constant 2 : i32
    %1388 = vector.broadcast %c2_i32_634 : i32 to vector<4x4xi32>
    %1389 = arith.cmpi slt, %1387, %1388 : vector<4x4xi32>
    %1390 = arith.andi %1385, %1389 : vector<4x4xi1>
    %cst_635 = arith.constant 1.000000e+00 : f32
    %cst_636 = arith.constant 0.000000e+00 : f32
    %1391 = vector.broadcast %cst_635 : f32 to vector<4x4xf32>
    %1392 = vector.broadcast %cst_636 : f32 to vector<4x4xf32>
    %1393 = arith.select %1390, %1391, %1392 : vector<4x4xi1>, vector<4x4xf32>
    %cst_637 = arith.constant dense<0.000000e+00> : vector<64x4xf32>
    %1394 = tpu.matmul %1297, %1393, %cst_637 {dimension_numbers = #tpu.dot_dimension_numbers<[1], [0], [0], [1], [0, 0, 1, 1], [], []>} : vector<64x4xf32>, vector<4x4xf32>, vector<64x4xf32> -> vector<64x4xf32>
    %c3_638 = arith.constant 3 : index
    %c0_639 = arith.constant 0 : index
    %c0_640 = arith.constant 0 : index
    %1395 = vector.load %arg10[%c3_638, %c0_639, %c0_640] : memref<9x32x64xf32, #tpu.memory_space<vmem>>, vector<1x32x64xf32>
    %1396 = vector.shape_cast %1395 : vector<1x32x64xf32> to vector<32x64xf32>
    %cst_641 = arith.constant dense<0.000000e+00> : vector<32x4xf32>
    %1397 = tpu.matmul %1396, %1394, %cst_641 {dimension_numbers = #tpu.dot_dimension_numbers<[1], [0], [0], [1], [0, 0, 1, 1], [], []>} : vector<32x64xf32>, vector<64x4xf32>, vector<32x4xf32> -> vector<32x4xf32>
    %1398 = arith.addf %1373, %1397 : vector<32x4xf32>
    %c4_642 = arith.constant 4 : index
    %c0_643 = arith.constant 0 : index
    %c0_644 = arith.constant 0 : index
    %1399 = vector.load %arg10[%c4_642, %c0_643, %c0_644] : memref<9x32x64xf32, #tpu.memory_space<vmem>>, vector<1x32x64xf32>
    %1400 = vector.shape_cast %1399 : vector<1x32x64xf32> to vector<32x64xf32>
    %cst_645 = arith.constant dense<0.000000e+00> : vector<32x4xf32>
    %1401 = tpu.matmul %1400, %1297, %cst_645 {dimension_numbers = #tpu.dot_dimension_numbers<[1], [0], [0], [1], [0, 0, 1, 1], [], []>} : vector<32x64xf32>, vector<64x4xf32>, vector<32x4xf32> -> vector<32x4xf32>
    %1402 = arith.addf %1398, %1401 : vector<32x4xf32>
    %1403 = tpu.iota {dimensions = array<i32: 0>} : vector<4x4xi32>
    %1404 = tpu.iota {dimensions = array<i32: 1>} : vector<4x4xi32>
    %c1_i32_646 = arith.constant 1 : i32
    %1405 = vector.broadcast %c1_i32_646 : i32 to vector<4x4xi32>
    %1406 = arith.andi %1404, %1405 : vector<4x4xi32>
    %c1_i32_647 = arith.constant 1 : i32
    %1407 = vector.broadcast %c1_i32_647 : i32 to vector<4x4xi32>
    %1408 = arith.addi %1404, %1407 : vector<4x4xi32>
    %1409 = arith.cmpi eq, %1403, %1408 : vector<4x4xi32>
    %c1_i32_648 = arith.constant 1 : i32
    %1410 = vector.broadcast %c1_i32_648 : i32 to vector<4x4xi32>
    %1411 = arith.addi %1406, %1410 : vector<4x4xi32>
    %c0_i32_649 = arith.constant 0 : i32
    %1412 = vector.broadcast %c0_i32_649 : i32 to vector<4x4xi32>
    %1413 = arith.cmpi sge, %1411, %1412 : vector<4x4xi32>
    %1414 = arith.andi %1409, %1413 : vector<4x4xi1>
    %c1_i32_650 = arith.constant 1 : i32
    %1415 = vector.broadcast %c1_i32_650 : i32 to vector<4x4xi32>
    %1416 = arith.addi %1406, %1415 : vector<4x4xi32>
    %c2_i32_651 = arith.constant 2 : i32
    %1417 = vector.broadcast %c2_i32_651 : i32 to vector<4x4xi32>
    %1418 = arith.cmpi slt, %1416, %1417 : vector<4x4xi32>
    %1419 = arith.andi %1414, %1418 : vector<4x4xi1>
    %cst_652 = arith.constant 1.000000e+00 : f32
    %cst_653 = arith.constant 0.000000e+00 : f32
    %1420 = vector.broadcast %cst_652 : f32 to vector<4x4xf32>
    %1421 = vector.broadcast %cst_653 : f32 to vector<4x4xf32>
    %1422 = arith.select %1419, %1420, %1421 : vector<4x4xi1>, vector<4x4xf32>
    %cst_654 = arith.constant dense<0.000000e+00> : vector<64x4xf32>
    %1423 = tpu.matmul %1297, %1422, %cst_654 {dimension_numbers = #tpu.dot_dimension_numbers<[1], [0], [0], [1], [0, 0, 1, 1], [], []>} : vector<64x4xf32>, vector<4x4xf32>, vector<64x4xf32> -> vector<64x4xf32>
    %c5_655 = arith.constant 5 : index
    %c0_656 = arith.constant 0 : index
    %c0_657 = arith.constant 0 : index
    %1424 = vector.load %arg10[%c5_655, %c0_656, %c0_657] : memref<9x32x64xf32, #tpu.memory_space<vmem>>, vector<1x32x64xf32>
    %1425 = vector.shape_cast %1424 : vector<1x32x64xf32> to vector<32x64xf32>
    %cst_658 = arith.constant dense<0.000000e+00> : vector<32x4xf32>
    %1426 = tpu.matmul %1425, %1423, %cst_658 {dimension_numbers = #tpu.dot_dimension_numbers<[1], [0], [0], [1], [0, 0, 1, 1], [], []>} : vector<32x64xf32>, vector<64x4xf32>, vector<32x4xf32> -> vector<32x4xf32>
    %1427 = arith.addf %1402, %1426 : vector<32x4xf32>
    %1428 = tpu.iota {dimensions = array<i32: 0>} : vector<4x4xi32>
    %1429 = tpu.iota {dimensions = array<i32: 1>} : vector<4x4xi32>
    %c1_i32_659 = arith.constant 1 : i32
    %1430 = vector.broadcast %c1_i32_659 : i32 to vector<4x4xi32>
    %1431 = arith.andi %1429, %1430 : vector<4x4xi32>
    %c1_i32_660 = arith.constant 1 : i32
    %1432 = vector.broadcast %c1_i32_660 : i32 to vector<4x4xi32>
    %1433 = arith.addi %1429, %1432 : vector<4x4xi32>
    %1434 = arith.cmpi eq, %1428, %1433 : vector<4x4xi32>
    %c-1_i32_661 = arith.constant -1 : i32
    %1435 = vector.broadcast %c-1_i32_661 : i32 to vector<4x4xi32>
    %1436 = arith.addi %1431, %1435 : vector<4x4xi32>
    %c0_i32_662 = arith.constant 0 : i32
    %1437 = vector.broadcast %c0_i32_662 : i32 to vector<4x4xi32>
    %1438 = arith.cmpi sge, %1436, %1437 : vector<4x4xi32>
    %1439 = arith.andi %1434, %1438 : vector<4x4xi1>
    %c-1_i32_663 = arith.constant -1 : i32
    %1440 = vector.broadcast %c-1_i32_663 : i32 to vector<4x4xi32>
    %1441 = arith.addi %1431, %1440 : vector<4x4xi32>
    %c2_i32_664 = arith.constant 2 : i32
    %1442 = vector.broadcast %c2_i32_664 : i32 to vector<4x4xi32>
    %1443 = arith.cmpi slt, %1441, %1442 : vector<4x4xi32>
    %1444 = arith.andi %1439, %1443 : vector<4x4xi1>
    %cst_665 = arith.constant 1.000000e+00 : f32
    %cst_666 = arith.constant 0.000000e+00 : f32
    %1445 = vector.broadcast %cst_665 : f32 to vector<4x4xf32>
    %1446 = vector.broadcast %cst_666 : f32 to vector<4x4xf32>
    %1447 = arith.select %1444, %1445, %1446 : vector<4x4xi1>, vector<4x4xf32>
    %cst_667 = arith.constant dense<0.000000e+00> : vector<64x4xf32>
    %1448 = tpu.matmul %1297, %1447, %cst_667 {dimension_numbers = #tpu.dot_dimension_numbers<[1], [0], [0], [1], [0, 0, 1, 1], [], []>} : vector<64x4xf32>, vector<4x4xf32>, vector<64x4xf32> -> vector<64x4xf32>
    %c6_668 = arith.constant 6 : index
    %c0_669 = arith.constant 0 : index
    %c0_670 = arith.constant 0 : index
    %1449 = vector.load %arg10[%c6_668, %c0_669, %c0_670] : memref<9x32x64xf32, #tpu.memory_space<vmem>>, vector<1x32x64xf32>
    %1450 = vector.shape_cast %1449 : vector<1x32x64xf32> to vector<32x64xf32>
    %cst_671 = arith.constant dense<0.000000e+00> : vector<32x4xf32>
    %1451 = tpu.matmul %1450, %1448, %cst_671 {dimension_numbers = #tpu.dot_dimension_numbers<[1], [0], [0], [1], [0, 0, 1, 1], [], []>} : vector<32x64xf32>, vector<64x4xf32>, vector<32x4xf32> -> vector<32x4xf32>
    %1452 = arith.addf %1427, %1451 : vector<32x4xf32>
    %1453 = tpu.iota {dimensions = array<i32: 0>} : vector<4x4xi32>
    %1454 = tpu.iota {dimensions = array<i32: 1>} : vector<4x4xi32>
    %c1_i32_672 = arith.constant 1 : i32
    %1455 = vector.broadcast %c1_i32_672 : i32 to vector<4x4xi32>
    %1456 = arith.andi %1454, %1455 : vector<4x4xi32>
    %c2_i32_673 = arith.constant 2 : i32
    %1457 = vector.broadcast %c2_i32_673 : i32 to vector<4x4xi32>
    %1458 = arith.addi %1454, %1457 : vector<4x4xi32>
    %1459 = arith.cmpi eq, %1453, %1458 : vector<4x4xi32>
    %c0_i32_674 = arith.constant 0 : i32
    %1460 = vector.broadcast %c0_i32_674 : i32 to vector<4x4xi32>
    %1461 = arith.addi %1456, %1460 : vector<4x4xi32>
    %c0_i32_675 = arith.constant 0 : i32
    %1462 = vector.broadcast %c0_i32_675 : i32 to vector<4x4xi32>
    %1463 = arith.cmpi sge, %1461, %1462 : vector<4x4xi32>
    %1464 = arith.andi %1459, %1463 : vector<4x4xi1>
    %c0_i32_676 = arith.constant 0 : i32
    %1465 = vector.broadcast %c0_i32_676 : i32 to vector<4x4xi32>
    %1466 = arith.addi %1456, %1465 : vector<4x4xi32>
    %c2_i32_677 = arith.constant 2 : i32
    %1467 = vector.broadcast %c2_i32_677 : i32 to vector<4x4xi32>
    %1468 = arith.cmpi slt, %1466, %1467 : vector<4x4xi32>
    %1469 = arith.andi %1464, %1468 : vector<4x4xi1>
    %cst_678 = arith.constant 1.000000e+00 : f32
    %cst_679 = arith.constant 0.000000e+00 : f32
    %1470 = vector.broadcast %cst_678 : f32 to vector<4x4xf32>
    %1471 = vector.broadcast %cst_679 : f32 to vector<4x4xf32>
    %1472 = arith.select %1469, %1470, %1471 : vector<4x4xi1>, vector<4x4xf32>
    %cst_680 = arith.constant dense<0.000000e+00> : vector<64x4xf32>
    %1473 = tpu.matmul %1297, %1472, %cst_680 {dimension_numbers = #tpu.dot_dimension_numbers<[1], [0], [0], [1], [0, 0, 1, 1], [], []>} : vector<64x4xf32>, vector<4x4xf32>, vector<64x4xf32> -> vector<64x4xf32>
    %c7_681 = arith.constant 7 : index
    %c0_682 = arith.constant 0 : index
    %c0_683 = arith.constant 0 : index
    %1474 = vector.load %arg10[%c7_681, %c0_682, %c0_683] : memref<9x32x64xf32, #tpu.memory_space<vmem>>, vector<1x32x64xf32>
    %1475 = vector.shape_cast %1474 : vector<1x32x64xf32> to vector<32x64xf32>
    %cst_684 = arith.constant dense<0.000000e+00> : vector<32x4xf32>
    %1476 = tpu.matmul %1475, %1473, %cst_684 {dimension_numbers = #tpu.dot_dimension_numbers<[1], [0], [0], [1], [0, 0, 1, 1], [], []>} : vector<32x64xf32>, vector<64x4xf32>, vector<32x4xf32> -> vector<32x4xf32>
    %1477 = arith.addf %1452, %1476 : vector<32x4xf32>
    %1478 = tpu.iota {dimensions = array<i32: 0>} : vector<4x4xi32>
    %1479 = tpu.iota {dimensions = array<i32: 1>} : vector<4x4xi32>
    %c1_i32_685 = arith.constant 1 : i32
    %1480 = vector.broadcast %c1_i32_685 : i32 to vector<4x4xi32>
    %1481 = arith.andi %1479, %1480 : vector<4x4xi32>
    %c3_i32_686 = arith.constant 3 : i32
    %1482 = vector.broadcast %c3_i32_686 : i32 to vector<4x4xi32>
    %1483 = arith.addi %1479, %1482 : vector<4x4xi32>
    %1484 = arith.cmpi eq, %1478, %1483 : vector<4x4xi32>
    %c1_i32_687 = arith.constant 1 : i32
    %1485 = vector.broadcast %c1_i32_687 : i32 to vector<4x4xi32>
    %1486 = arith.addi %1481, %1485 : vector<4x4xi32>
    %c0_i32_688 = arith.constant 0 : i32
    %1487 = vector.broadcast %c0_i32_688 : i32 to vector<4x4xi32>
    %1488 = arith.cmpi sge, %1486, %1487 : vector<4x4xi32>
    %1489 = arith.andi %1484, %1488 : vector<4x4xi1>
    %c1_i32_689 = arith.constant 1 : i32
    %1490 = vector.broadcast %c1_i32_689 : i32 to vector<4x4xi32>
    %1491 = arith.addi %1481, %1490 : vector<4x4xi32>
    %c2_i32_690 = arith.constant 2 : i32
    %1492 = vector.broadcast %c2_i32_690 : i32 to vector<4x4xi32>
    %1493 = arith.cmpi slt, %1491, %1492 : vector<4x4xi32>
    %1494 = arith.andi %1489, %1493 : vector<4x4xi1>
    %cst_691 = arith.constant 1.000000e+00 : f32
    %cst_692 = arith.constant 0.000000e+00 : f32
    %1495 = vector.broadcast %cst_691 : f32 to vector<4x4xf32>
    %1496 = vector.broadcast %cst_692 : f32 to vector<4x4xf32>
    %1497 = arith.select %1494, %1495, %1496 : vector<4x4xi1>, vector<4x4xf32>
    %cst_693 = arith.constant dense<0.000000e+00> : vector<64x4xf32>
    %1498 = tpu.matmul %1297, %1497, %cst_693 {dimension_numbers = #tpu.dot_dimension_numbers<[1], [0], [0], [1], [0, 0, 1, 1], [], []>} : vector<64x4xf32>, vector<4x4xf32>, vector<64x4xf32> -> vector<64x4xf32>
    %c8_694 = arith.constant 8 : index
    %c0_695 = arith.constant 0 : index
    %c0_696 = arith.constant 0 : index
    %1499 = vector.load %arg10[%c8_694, %c0_695, %c0_696] : memref<9x32x64xf32, #tpu.memory_space<vmem>>, vector<1x32x64xf32>
    %1500 = vector.shape_cast %1499 : vector<1x32x64xf32> to vector<32x64xf32>
    %cst_697 = arith.constant dense<0.000000e+00> : vector<32x4xf32>
    %1501 = tpu.matmul %1500, %1498, %cst_697 {dimension_numbers = #tpu.dot_dimension_numbers<[1], [0], [0], [1], [0, 0, 1, 1], [], []>} : vector<32x64xf32>, vector<64x4xf32>, vector<32x4xf32> -> vector<32x4xf32>
    %1502 = arith.addf %1477, %1501 : vector<32x4xf32>
    %1503 = vector.broadcast %1295 : vector<32x1xf32> to vector<32x4xf32>
    %1504 = arith.addf %1502, %1503 : vector<32x4xf32>
    %cst_698 = arith.constant 0.000000e+00 : f32
    %1505 = vector.broadcast %cst_698 : f32 to vector<32x4xf32>
    %1506 = arith.maximumf %1504, %1505 : vector<32x4xf32>
    %c0_699 = arith.constant 0 : index
    %c0_700 = arith.constant 0 : index
    %1507 = vector.load %arg13[%c0_699, %c0_700] : memref<16x1xf32, #tpu.memory_space<vmem>>, vector<16x1xf32>
    %1508 = tpu.iota {dimensions = array<i32: 0>} : vector<4x16xi32>
    %1509 = tpu.iota {dimensions = array<i32: 1>} : vector<4x16xi32>
    %c2_i32_701 = arith.constant 2 : i32
    %1510 = vector.broadcast %c2_i32_701 : i32 to vector<4x16xi32>
    %1511 = arith.shrsi %1509, %1510 : vector<4x16xi32>
    %c3_i32_702 = arith.constant 3 : i32
    %1512 = vector.broadcast %c3_i32_702 : i32 to vector<4x16xi32>
    %1513 = arith.andi %1509, %1512 : vector<4x16xi32>
    %c1_i32_703 = arith.constant 1 : i32
    %1514 = vector.broadcast %c1_i32_703 : i32 to vector<4x16xi32>
    %1515 = arith.shrsi %1511, %1514 : vector<4x16xi32>
    %c2_i32_704 = arith.constant 2 : i32
    %1516 = vector.broadcast %c2_i32_704 : i32 to vector<4x16xi32>
    %1517 = arith.muli %1515, %1516 : vector<4x16xi32>
    %c1_i32_705 = arith.constant 1 : i32
    %1518 = vector.broadcast %c1_i32_705 : i32 to vector<4x16xi32>
    %1519 = arith.shrsi %1513, %1518 : vector<4x16xi32>
    %1520 = arith.addi %1517, %1519 : vector<4x16xi32>
    %1521 = arith.cmpi eq, %1508, %1520 : vector<4x16xi32>
    %cst_706 = arith.constant 1.000000e+00 : f32
    %cst_707 = arith.constant 0.000000e+00 : f32
    %1522 = vector.broadcast %cst_706 : f32 to vector<4x16xf32>
    %1523 = vector.broadcast %cst_707 : f32 to vector<4x16xf32>
    %1524 = arith.select %1521, %1522, %1523 : vector<4x16xi1>, vector<4x16xf32>
    %cst_708 = arith.constant dense<0.000000e+00> : vector<32x16xf32>
    %1525 = tpu.matmul %1506, %1524, %cst_708 {dimension_numbers = #tpu.dot_dimension_numbers<[1], [0], [0], [1], [0, 0, 1, 1], [], []>} : vector<32x4xf32>, vector<4x16xf32>, vector<32x16xf32> -> vector<32x16xf32>
    %cst_709 = arith.constant 0.000000e+00 : f32
    %1526 = vector.broadcast %cst_709 : f32 to vector<16x16xf32>
    %1527 = tpu.iota {dimensions = array<i32: 0>} : vector<16x16xi32>
    %1528 = tpu.iota {dimensions = array<i32: 1>} : vector<16x16xi32>
    %c3_i32_710 = arith.constant 3 : i32
    %1529 = vector.broadcast %c3_i32_710 : i32 to vector<16x16xi32>
    %1530 = arith.andi %1528, %1529 : vector<16x16xi32>
    %c-5_i32_711 = arith.constant -5 : i32
    %1531 = vector.broadcast %c-5_i32_711 : i32 to vector<16x16xi32>
    %1532 = arith.addi %1528, %1531 : vector<16x16xi32>
    %1533 = arith.cmpi eq, %1527, %1532 : vector<16x16xi32>
    %c-1_i32_712 = arith.constant -1 : i32
    %1534 = vector.broadcast %c-1_i32_712 : i32 to vector<16x16xi32>
    %1535 = arith.addi %1530, %1534 : vector<16x16xi32>
    %c0_i32_713 = arith.constant 0 : i32
    %1536 = vector.broadcast %c0_i32_713 : i32 to vector<16x16xi32>
    %1537 = arith.cmpi sge, %1535, %1536 : vector<16x16xi32>
    %1538 = arith.andi %1533, %1537 : vector<16x16xi1>
    %c-1_i32_714 = arith.constant -1 : i32
    %1539 = vector.broadcast %c-1_i32_714 : i32 to vector<16x16xi32>
    %1540 = arith.addi %1530, %1539 : vector<16x16xi32>
    %c4_i32_715 = arith.constant 4 : i32
    %1541 = vector.broadcast %c4_i32_715 : i32 to vector<16x16xi32>
    %1542 = arith.cmpi slt, %1540, %1541 : vector<16x16xi32>
    %1543 = arith.andi %1538, %1542 : vector<16x16xi1>
    %cst_716 = arith.constant 1.000000e+00 : f32
    %cst_717 = arith.constant 0.000000e+00 : f32
    %1544 = vector.broadcast %cst_716 : f32 to vector<16x16xf32>
    %1545 = vector.broadcast %cst_717 : f32 to vector<16x16xf32>
    %1546 = arith.select %1543, %1544, %1545 : vector<16x16xi1>, vector<16x16xf32>
    %cst_718 = arith.constant dense<0.000000e+00> : vector<32x16xf32>
    %1547 = tpu.matmul %1525, %1546, %cst_718 {dimension_numbers = #tpu.dot_dimension_numbers<[1], [0], [0], [1], [0, 0, 1, 1], [], []>} : vector<32x16xf32>, vector<16x16xf32>, vector<32x16xf32> -> vector<32x16xf32>
    %c0_719 = arith.constant 0 : index
    %c0_720 = arith.constant 0 : index
    %c0_721 = arith.constant 0 : index
    %1548 = vector.load %arg12[%c0_719, %c0_720, %c0_721] : memref<9x16x32xf32, #tpu.memory_space<vmem>>, vector<1x16x32xf32>
    %1549 = vector.shape_cast %1548 : vector<1x16x32xf32> to vector<16x32xf32>
    %cst_722 = arith.constant dense<0.000000e+00> : vector<16x16xf32>
    %1550 = tpu.matmul %1549, %1547, %cst_722 {dimension_numbers = #tpu.dot_dimension_numbers<[1], [0], [0], [1], [0, 0, 1, 1], [], []>} : vector<16x32xf32>, vector<32x16xf32>, vector<16x16xf32> -> vector<16x16xf32>
    %1551 = arith.addf %1526, %1550 : vector<16x16xf32>
    %1552 = tpu.iota {dimensions = array<i32: 0>} : vector<16x16xi32>
    %1553 = tpu.iota {dimensions = array<i32: 1>} : vector<16x16xi32>
    %c3_i32_723 = arith.constant 3 : i32
    %1554 = vector.broadcast %c3_i32_723 : i32 to vector<16x16xi32>
    %1555 = arith.andi %1553, %1554 : vector<16x16xi32>
    %c-4_i32_724 = arith.constant -4 : i32
    %1556 = vector.broadcast %c-4_i32_724 : i32 to vector<16x16xi32>
    %1557 = arith.addi %1553, %1556 : vector<16x16xi32>
    %1558 = arith.cmpi eq, %1552, %1557 : vector<16x16xi32>
    %c0_i32_725 = arith.constant 0 : i32
    %1559 = vector.broadcast %c0_i32_725 : i32 to vector<16x16xi32>
    %1560 = arith.addi %1555, %1559 : vector<16x16xi32>
    %c0_i32_726 = arith.constant 0 : i32
    %1561 = vector.broadcast %c0_i32_726 : i32 to vector<16x16xi32>
    %1562 = arith.cmpi sge, %1560, %1561 : vector<16x16xi32>
    %1563 = arith.andi %1558, %1562 : vector<16x16xi1>
    %c0_i32_727 = arith.constant 0 : i32
    %1564 = vector.broadcast %c0_i32_727 : i32 to vector<16x16xi32>
    %1565 = arith.addi %1555, %1564 : vector<16x16xi32>
    %c4_i32_728 = arith.constant 4 : i32
    %1566 = vector.broadcast %c4_i32_728 : i32 to vector<16x16xi32>
    %1567 = arith.cmpi slt, %1565, %1566 : vector<16x16xi32>
    %1568 = arith.andi %1563, %1567 : vector<16x16xi1>
    %cst_729 = arith.constant 1.000000e+00 : f32
    %cst_730 = arith.constant 0.000000e+00 : f32
    %1569 = vector.broadcast %cst_729 : f32 to vector<16x16xf32>
    %1570 = vector.broadcast %cst_730 : f32 to vector<16x16xf32>
    %1571 = arith.select %1568, %1569, %1570 : vector<16x16xi1>, vector<16x16xf32>
    %cst_731 = arith.constant dense<0.000000e+00> : vector<32x16xf32>
    %1572 = tpu.matmul %1525, %1571, %cst_731 {dimension_numbers = #tpu.dot_dimension_numbers<[1], [0], [0], [1], [0, 0, 1, 1], [], []>} : vector<32x16xf32>, vector<16x16xf32>, vector<32x16xf32> -> vector<32x16xf32>
    %c1_732 = arith.constant 1 : index
    %c0_733 = arith.constant 0 : index
    %c0_734 = arith.constant 0 : index
    %1573 = vector.load %arg12[%c1_732, %c0_733, %c0_734] : memref<9x16x32xf32, #tpu.memory_space<vmem>>, vector<1x16x32xf32>
    %1574 = vector.shape_cast %1573 : vector<1x16x32xf32> to vector<16x32xf32>
    %cst_735 = arith.constant dense<0.000000e+00> : vector<16x16xf32>
    %1575 = tpu.matmul %1574, %1572, %cst_735 {dimension_numbers = #tpu.dot_dimension_numbers<[1], [0], [0], [1], [0, 0, 1, 1], [], []>} : vector<16x32xf32>, vector<32x16xf32>, vector<16x16xf32> -> vector<16x16xf32>
    %1576 = arith.addf %1551, %1575 : vector<16x16xf32>
    %1577 = tpu.iota {dimensions = array<i32: 0>} : vector<16x16xi32>
    %1578 = tpu.iota {dimensions = array<i32: 1>} : vector<16x16xi32>
    %c3_i32_736 = arith.constant 3 : i32
    %1579 = vector.broadcast %c3_i32_736 : i32 to vector<16x16xi32>
    %1580 = arith.andi %1578, %1579 : vector<16x16xi32>
    %c-3_i32_737 = arith.constant -3 : i32
    %1581 = vector.broadcast %c-3_i32_737 : i32 to vector<16x16xi32>
    %1582 = arith.addi %1578, %1581 : vector<16x16xi32>
    %1583 = arith.cmpi eq, %1577, %1582 : vector<16x16xi32>
    %c1_i32_738 = arith.constant 1 : i32
    %1584 = vector.broadcast %c1_i32_738 : i32 to vector<16x16xi32>
    %1585 = arith.addi %1580, %1584 : vector<16x16xi32>
    %c0_i32_739 = arith.constant 0 : i32
    %1586 = vector.broadcast %c0_i32_739 : i32 to vector<16x16xi32>
    %1587 = arith.cmpi sge, %1585, %1586 : vector<16x16xi32>
    %1588 = arith.andi %1583, %1587 : vector<16x16xi1>
    %c1_i32_740 = arith.constant 1 : i32
    %1589 = vector.broadcast %c1_i32_740 : i32 to vector<16x16xi32>
    %1590 = arith.addi %1580, %1589 : vector<16x16xi32>
    %c4_i32_741 = arith.constant 4 : i32
    %1591 = vector.broadcast %c4_i32_741 : i32 to vector<16x16xi32>
    %1592 = arith.cmpi slt, %1590, %1591 : vector<16x16xi32>
    %1593 = arith.andi %1588, %1592 : vector<16x16xi1>
    %cst_742 = arith.constant 1.000000e+00 : f32
    %cst_743 = arith.constant 0.000000e+00 : f32
    %1594 = vector.broadcast %cst_742 : f32 to vector<16x16xf32>
    %1595 = vector.broadcast %cst_743 : f32 to vector<16x16xf32>
    %1596 = arith.select %1593, %1594, %1595 : vector<16x16xi1>, vector<16x16xf32>
    %cst_744 = arith.constant dense<0.000000e+00> : vector<32x16xf32>
    %1597 = tpu.matmul %1525, %1596, %cst_744 {dimension_numbers = #tpu.dot_dimension_numbers<[1], [0], [0], [1], [0, 0, 1, 1], [], []>} : vector<32x16xf32>, vector<16x16xf32>, vector<32x16xf32> -> vector<32x16xf32>
    %c2_745 = arith.constant 2 : index
    %c0_746 = arith.constant 0 : index
    %c0_747 = arith.constant 0 : index
    %1598 = vector.load %arg12[%c2_745, %c0_746, %c0_747] : memref<9x16x32xf32, #tpu.memory_space<vmem>>, vector<1x16x32xf32>
    %1599 = vector.shape_cast %1598 : vector<1x16x32xf32> to vector<16x32xf32>
    %cst_748 = arith.constant dense<0.000000e+00> : vector<16x16xf32>
    %1600 = tpu.matmul %1599, %1597, %cst_748 {dimension_numbers = #tpu.dot_dimension_numbers<[1], [0], [0], [1], [0, 0, 1, 1], [], []>} : vector<16x32xf32>, vector<32x16xf32>, vector<16x16xf32> -> vector<16x16xf32>
    %1601 = arith.addf %1576, %1600 : vector<16x16xf32>
    %1602 = tpu.iota {dimensions = array<i32: 0>} : vector<16x16xi32>
    %1603 = tpu.iota {dimensions = array<i32: 1>} : vector<16x16xi32>
    %c3_i32_749 = arith.constant 3 : i32
    %1604 = vector.broadcast %c3_i32_749 : i32 to vector<16x16xi32>
    %1605 = arith.andi %1603, %1604 : vector<16x16xi32>
    %c-1_i32_750 = arith.constant -1 : i32
    %1606 = vector.broadcast %c-1_i32_750 : i32 to vector<16x16xi32>
    %1607 = arith.addi %1603, %1606 : vector<16x16xi32>
    %1608 = arith.cmpi eq, %1602, %1607 : vector<16x16xi32>
    %c-1_i32_751 = arith.constant -1 : i32
    %1609 = vector.broadcast %c-1_i32_751 : i32 to vector<16x16xi32>
    %1610 = arith.addi %1605, %1609 : vector<16x16xi32>
    %c0_i32_752 = arith.constant 0 : i32
    %1611 = vector.broadcast %c0_i32_752 : i32 to vector<16x16xi32>
    %1612 = arith.cmpi sge, %1610, %1611 : vector<16x16xi32>
    %1613 = arith.andi %1608, %1612 : vector<16x16xi1>
    %c-1_i32_753 = arith.constant -1 : i32
    %1614 = vector.broadcast %c-1_i32_753 : i32 to vector<16x16xi32>
    %1615 = arith.addi %1605, %1614 : vector<16x16xi32>
    %c4_i32_754 = arith.constant 4 : i32
    %1616 = vector.broadcast %c4_i32_754 : i32 to vector<16x16xi32>
    %1617 = arith.cmpi slt, %1615, %1616 : vector<16x16xi32>
    %1618 = arith.andi %1613, %1617 : vector<16x16xi1>
    %cst_755 = arith.constant 1.000000e+00 : f32
    %cst_756 = arith.constant 0.000000e+00 : f32
    %1619 = vector.broadcast %cst_755 : f32 to vector<16x16xf32>
    %1620 = vector.broadcast %cst_756 : f32 to vector<16x16xf32>
    %1621 = arith.select %1618, %1619, %1620 : vector<16x16xi1>, vector<16x16xf32>
    %cst_757 = arith.constant dense<0.000000e+00> : vector<32x16xf32>
    %1622 = tpu.matmul %1525, %1621, %cst_757 {dimension_numbers = #tpu.dot_dimension_numbers<[1], [0], [0], [1], [0, 0, 1, 1], [], []>} : vector<32x16xf32>, vector<16x16xf32>, vector<32x16xf32> -> vector<32x16xf32>
    %c3_758 = arith.constant 3 : index
    %c0_759 = arith.constant 0 : index
    %c0_760 = arith.constant 0 : index
    %1623 = vector.load %arg12[%c3_758, %c0_759, %c0_760] : memref<9x16x32xf32, #tpu.memory_space<vmem>>, vector<1x16x32xf32>
    %1624 = vector.shape_cast %1623 : vector<1x16x32xf32> to vector<16x32xf32>
    %cst_761 = arith.constant dense<0.000000e+00> : vector<16x16xf32>
    %1625 = tpu.matmul %1624, %1622, %cst_761 {dimension_numbers = #tpu.dot_dimension_numbers<[1], [0], [0], [1], [0, 0, 1, 1], [], []>} : vector<16x32xf32>, vector<32x16xf32>, vector<16x16xf32> -> vector<16x16xf32>
    %1626 = arith.addf %1601, %1625 : vector<16x16xf32>
    %c4_762 = arith.constant 4 : index
    %c0_763 = arith.constant 0 : index
    %c0_764 = arith.constant 0 : index
    %1627 = vector.load %arg12[%c4_762, %c0_763, %c0_764] : memref<9x16x32xf32, #tpu.memory_space<vmem>>, vector<1x16x32xf32>
    %1628 = vector.shape_cast %1627 : vector<1x16x32xf32> to vector<16x32xf32>
    %cst_765 = arith.constant dense<0.000000e+00> : vector<16x16xf32>
    %1629 = tpu.matmul %1628, %1525, %cst_765 {dimension_numbers = #tpu.dot_dimension_numbers<[1], [0], [0], [1], [0, 0, 1, 1], [], []>} : vector<16x32xf32>, vector<32x16xf32>, vector<16x16xf32> -> vector<16x16xf32>
    %1630 = arith.addf %1626, %1629 : vector<16x16xf32>
    %1631 = tpu.iota {dimensions = array<i32: 0>} : vector<16x16xi32>
    %1632 = tpu.iota {dimensions = array<i32: 1>} : vector<16x16xi32>
    %c3_i32_766 = arith.constant 3 : i32
    %1633 = vector.broadcast %c3_i32_766 : i32 to vector<16x16xi32>
    %1634 = arith.andi %1632, %1633 : vector<16x16xi32>
    %c1_i32_767 = arith.constant 1 : i32
    %1635 = vector.broadcast %c1_i32_767 : i32 to vector<16x16xi32>
    %1636 = arith.addi %1632, %1635 : vector<16x16xi32>
    %1637 = arith.cmpi eq, %1631, %1636 : vector<16x16xi32>
    %c1_i32_768 = arith.constant 1 : i32
    %1638 = vector.broadcast %c1_i32_768 : i32 to vector<16x16xi32>
    %1639 = arith.addi %1634, %1638 : vector<16x16xi32>
    %c0_i32_769 = arith.constant 0 : i32
    %1640 = vector.broadcast %c0_i32_769 : i32 to vector<16x16xi32>
    %1641 = arith.cmpi sge, %1639, %1640 : vector<16x16xi32>
    %1642 = arith.andi %1637, %1641 : vector<16x16xi1>
    %c1_i32_770 = arith.constant 1 : i32
    %1643 = vector.broadcast %c1_i32_770 : i32 to vector<16x16xi32>
    %1644 = arith.addi %1634, %1643 : vector<16x16xi32>
    %c4_i32_771 = arith.constant 4 : i32
    %1645 = vector.broadcast %c4_i32_771 : i32 to vector<16x16xi32>
    %1646 = arith.cmpi slt, %1644, %1645 : vector<16x16xi32>
    %1647 = arith.andi %1642, %1646 : vector<16x16xi1>
    %cst_772 = arith.constant 1.000000e+00 : f32
    %cst_773 = arith.constant 0.000000e+00 : f32
    %1648 = vector.broadcast %cst_772 : f32 to vector<16x16xf32>
    %1649 = vector.broadcast %cst_773 : f32 to vector<16x16xf32>
    %1650 = arith.select %1647, %1648, %1649 : vector<16x16xi1>, vector<16x16xf32>
    %cst_774 = arith.constant dense<0.000000e+00> : vector<32x16xf32>
    %1651 = tpu.matmul %1525, %1650, %cst_774 {dimension_numbers = #tpu.dot_dimension_numbers<[1], [0], [0], [1], [0, 0, 1, 1], [], []>} : vector<32x16xf32>, vector<16x16xf32>, vector<32x16xf32> -> vector<32x16xf32>
    %c5_775 = arith.constant 5 : index
    %c0_776 = arith.constant 0 : index
    %c0_777 = arith.constant 0 : index
    %1652 = vector.load %arg12[%c5_775, %c0_776, %c0_777] : memref<9x16x32xf32, #tpu.memory_space<vmem>>, vector<1x16x32xf32>
    %1653 = vector.shape_cast %1652 : vector<1x16x32xf32> to vector<16x32xf32>
    %cst_778 = arith.constant dense<0.000000e+00> : vector<16x16xf32>
    %1654 = tpu.matmul %1653, %1651, %cst_778 {dimension_numbers = #tpu.dot_dimension_numbers<[1], [0], [0], [1], [0, 0, 1, 1], [], []>} : vector<16x32xf32>, vector<32x16xf32>, vector<16x16xf32> -> vector<16x16xf32>
    %1655 = arith.addf %1630, %1654 : vector<16x16xf32>
    %1656 = tpu.iota {dimensions = array<i32: 0>} : vector<16x16xi32>
    %1657 = tpu.iota {dimensions = array<i32: 1>} : vector<16x16xi32>
    %c3_i32_779 = arith.constant 3 : i32
    %1658 = vector.broadcast %c3_i32_779 : i32 to vector<16x16xi32>
    %1659 = arith.andi %1657, %1658 : vector<16x16xi32>
    %c3_i32_780 = arith.constant 3 : i32
    %1660 = vector.broadcast %c3_i32_780 : i32 to vector<16x16xi32>
    %1661 = arith.addi %1657, %1660 : vector<16x16xi32>
    %1662 = arith.cmpi eq, %1656, %1661 : vector<16x16xi32>
    %c-1_i32_781 = arith.constant -1 : i32
    %1663 = vector.broadcast %c-1_i32_781 : i32 to vector<16x16xi32>
    %1664 = arith.addi %1659, %1663 : vector<16x16xi32>
    %c0_i32_782 = arith.constant 0 : i32
    %1665 = vector.broadcast %c0_i32_782 : i32 to vector<16x16xi32>
    %1666 = arith.cmpi sge, %1664, %1665 : vector<16x16xi32>
    %1667 = arith.andi %1662, %1666 : vector<16x16xi1>
    %c-1_i32_783 = arith.constant -1 : i32
    %1668 = vector.broadcast %c-1_i32_783 : i32 to vector<16x16xi32>
    %1669 = arith.addi %1659, %1668 : vector<16x16xi32>
    %c4_i32_784 = arith.constant 4 : i32
    %1670 = vector.broadcast %c4_i32_784 : i32 to vector<16x16xi32>
    %1671 = arith.cmpi slt, %1669, %1670 : vector<16x16xi32>
    %1672 = arith.andi %1667, %1671 : vector<16x16xi1>
    %cst_785 = arith.constant 1.000000e+00 : f32
    %cst_786 = arith.constant 0.000000e+00 : f32
    %1673 = vector.broadcast %cst_785 : f32 to vector<16x16xf32>
    %1674 = vector.broadcast %cst_786 : f32 to vector<16x16xf32>
    %1675 = arith.select %1672, %1673, %1674 : vector<16x16xi1>, vector<16x16xf32>
    %cst_787 = arith.constant dense<0.000000e+00> : vector<32x16xf32>
    %1676 = tpu.matmul %1525, %1675, %cst_787 {dimension_numbers = #tpu.dot_dimension_numbers<[1], [0], [0], [1], [0, 0, 1, 1], [], []>} : vector<32x16xf32>, vector<16x16xf32>, vector<32x16xf32> -> vector<32x16xf32>
    %c6_788 = arith.constant 6 : index
    %c0_789 = arith.constant 0 : index
    %c0_790 = arith.constant 0 : index
    %1677 = vector.load %arg12[%c6_788, %c0_789, %c0_790] : memref<9x16x32xf32, #tpu.memory_space<vmem>>, vector<1x16x32xf32>
    %1678 = vector.shape_cast %1677 : vector<1x16x32xf32> to vector<16x32xf32>
    %cst_791 = arith.constant dense<0.000000e+00> : vector<16x16xf32>
    %1679 = tpu.matmul %1678, %1676, %cst_791 {dimension_numbers = #tpu.dot_dimension_numbers<[1], [0], [0], [1], [0, 0, 1, 1], [], []>} : vector<16x32xf32>, vector<32x16xf32>, vector<16x16xf32> -> vector<16x16xf32>
    %1680 = arith.addf %1655, %1679 : vector<16x16xf32>
    %1681 = tpu.iota {dimensions = array<i32: 0>} : vector<16x16xi32>
    %1682 = tpu.iota {dimensions = array<i32: 1>} : vector<16x16xi32>
    %c3_i32_792 = arith.constant 3 : i32
    %1683 = vector.broadcast %c3_i32_792 : i32 to vector<16x16xi32>
    %1684 = arith.andi %1682, %1683 : vector<16x16xi32>
    %c4_i32_793 = arith.constant 4 : i32
    %1685 = vector.broadcast %c4_i32_793 : i32 to vector<16x16xi32>
    %1686 = arith.addi %1682, %1685 : vector<16x16xi32>
    %1687 = arith.cmpi eq, %1681, %1686 : vector<16x16xi32>
    %c0_i32_794 = arith.constant 0 : i32
    %1688 = vector.broadcast %c0_i32_794 : i32 to vector<16x16xi32>
    %1689 = arith.addi %1684, %1688 : vector<16x16xi32>
    %c0_i32_795 = arith.constant 0 : i32
    %1690 = vector.broadcast %c0_i32_795 : i32 to vector<16x16xi32>
    %1691 = arith.cmpi sge, %1689, %1690 : vector<16x16xi32>
    %1692 = arith.andi %1687, %1691 : vector<16x16xi1>
    %c0_i32_796 = arith.constant 0 : i32
    %1693 = vector.broadcast %c0_i32_796 : i32 to vector<16x16xi32>
    %1694 = arith.addi %1684, %1693 : vector<16x16xi32>
    %c4_i32_797 = arith.constant 4 : i32
    %1695 = vector.broadcast %c4_i32_797 : i32 to vector<16x16xi32>
    %1696 = arith.cmpi slt, %1694, %1695 : vector<16x16xi32>
    %1697 = arith.andi %1692, %1696 : vector<16x16xi1>
    %cst_798 = arith.constant 1.000000e+00 : f32
    %cst_799 = arith.constant 0.000000e+00 : f32
    %1698 = vector.broadcast %cst_798 : f32 to vector<16x16xf32>
    %1699 = vector.broadcast %cst_799 : f32 to vector<16x16xf32>
    %1700 = arith.select %1697, %1698, %1699 : vector<16x16xi1>, vector<16x16xf32>
    %cst_800 = arith.constant dense<0.000000e+00> : vector<32x16xf32>
    %1701 = tpu.matmul %1525, %1700, %cst_800 {dimension_numbers = #tpu.dot_dimension_numbers<[1], [0], [0], [1], [0, 0, 1, 1], [], []>} : vector<32x16xf32>, vector<16x16xf32>, vector<32x16xf32> -> vector<32x16xf32>
    %c7_801 = arith.constant 7 : index
    %c0_802 = arith.constant 0 : index
    %c0_803 = arith.constant 0 : index
    %1702 = vector.load %arg12[%c7_801, %c0_802, %c0_803] : memref<9x16x32xf32, #tpu.memory_space<vmem>>, vector<1x16x32xf32>
    %1703 = vector.shape_cast %1702 : vector<1x16x32xf32> to vector<16x32xf32>
    %cst_804 = arith.constant dense<0.000000e+00> : vector<16x16xf32>
    %1704 = tpu.matmul %1703, %1701, %cst_804 {dimension_numbers = #tpu.dot_dimension_numbers<[1], [0], [0], [1], [0, 0, 1, 1], [], []>} : vector<16x32xf32>, vector<32x16xf32>, vector<16x16xf32> -> vector<16x16xf32>
    %1705 = arith.addf %1680, %1704 : vector<16x16xf32>
    %1706 = tpu.iota {dimensions = array<i32: 0>} : vector<16x16xi32>
    %1707 = tpu.iota {dimensions = array<i32: 1>} : vector<16x16xi32>
    %c3_i32_805 = arith.constant 3 : i32
    %1708 = vector.broadcast %c3_i32_805 : i32 to vector<16x16xi32>
    %1709 = arith.andi %1707, %1708 : vector<16x16xi32>
    %c5_i32_806 = arith.constant 5 : i32
    %1710 = vector.broadcast %c5_i32_806 : i32 to vector<16x16xi32>
    %1711 = arith.addi %1707, %1710 : vector<16x16xi32>
    %1712 = arith.cmpi eq, %1706, %1711 : vector<16x16xi32>
    %c1_i32_807 = arith.constant 1 : i32
    %1713 = vector.broadcast %c1_i32_807 : i32 to vector<16x16xi32>
    %1714 = arith.addi %1709, %1713 : vector<16x16xi32>
    %c0_i32_808 = arith.constant 0 : i32
    %1715 = vector.broadcast %c0_i32_808 : i32 to vector<16x16xi32>
    %1716 = arith.cmpi sge, %1714, %1715 : vector<16x16xi32>
    %1717 = arith.andi %1712, %1716 : vector<16x16xi1>
    %c1_i32_809 = arith.constant 1 : i32
    %1718 = vector.broadcast %c1_i32_809 : i32 to vector<16x16xi32>
    %1719 = arith.addi %1709, %1718 : vector<16x16xi32>
    %c4_i32_810 = arith.constant 4 : i32
    %1720 = vector.broadcast %c4_i32_810 : i32 to vector<16x16xi32>
    %1721 = arith.cmpi slt, %1719, %1720 : vector<16x16xi32>
    %1722 = arith.andi %1717, %1721 : vector<16x16xi1>
    %cst_811 = arith.constant 1.000000e+00 : f32
    %cst_812 = arith.constant 0.000000e+00 : f32
    %1723 = vector.broadcast %cst_811 : f32 to vector<16x16xf32>
    %1724 = vector.broadcast %cst_812 : f32 to vector<16x16xf32>
    %1725 = arith.select %1722, %1723, %1724 : vector<16x16xi1>, vector<16x16xf32>
    %cst_813 = arith.constant dense<0.000000e+00> : vector<32x16xf32>
    %1726 = tpu.matmul %1525, %1725, %cst_813 {dimension_numbers = #tpu.dot_dimension_numbers<[1], [0], [0], [1], [0, 0, 1, 1], [], []>} : vector<32x16xf32>, vector<16x16xf32>, vector<32x16xf32> -> vector<32x16xf32>
    %c8_814 = arith.constant 8 : index
    %c0_815 = arith.constant 0 : index
    %c0_816 = arith.constant 0 : index
    %1727 = vector.load %arg12[%c8_814, %c0_815, %c0_816] : memref<9x16x32xf32, #tpu.memory_space<vmem>>, vector<1x16x32xf32>
    %1728 = vector.shape_cast %1727 : vector<1x16x32xf32> to vector<16x32xf32>
    %cst_817 = arith.constant dense<0.000000e+00> : vector<16x16xf32>
    %1729 = tpu.matmul %1728, %1726, %cst_817 {dimension_numbers = #tpu.dot_dimension_numbers<[1], [0], [0], [1], [0, 0, 1, 1], [], []>} : vector<16x32xf32>, vector<32x16xf32>, vector<16x16xf32> -> vector<16x16xf32>
    %1730 = arith.addf %1705, %1729 : vector<16x16xf32>
    %1731 = vector.broadcast %1507 : vector<16x1xf32> to vector<16x16xf32>
    %1732 = arith.addf %1730, %1731 : vector<16x16xf32>
    %cst_818 = arith.constant 0.000000e+00 : f32
    %1733 = vector.broadcast %cst_818 : f32 to vector<16x16xf32>
    %1734 = arith.maximumf %1732, %1733 : vector<16x16xf32>
    %c0_819 = arith.constant 0 : index
    %c0_820 = arith.constant 0 : index
    %1735 = vector.load %arg15[%c0_819, %c0_820] : memref<4x1xf32, #tpu.memory_space<vmem>>, vector<4x1xf32>
    %1736 = tpu.iota {dimensions = array<i32: 0>} : vector<16x64xi32>
    %1737 = tpu.iota {dimensions = array<i32: 1>} : vector<16x64xi32>
    %c3_i32_821 = arith.constant 3 : i32
    %1738 = vector.broadcast %c3_i32_821 : i32 to vector<16x64xi32>
    %1739 = arith.shrsi %1737, %1738 : vector<16x64xi32>
    %c7_i32_822 = arith.constant 7 : i32
    %1740 = vector.broadcast %c7_i32_822 : i32 to vector<16x64xi32>
    %1741 = arith.andi %1737, %1740 : vector<16x64xi32>
    %c1_i32_823 = arith.constant 1 : i32
    %1742 = vector.broadcast %c1_i32_823 : i32 to vector<16x64xi32>
    %1743 = arith.shrsi %1739, %1742 : vector<16x64xi32>
    %c4_i32_824 = arith.constant 4 : i32
    %1744 = vector.broadcast %c4_i32_824 : i32 to vector<16x64xi32>
    %1745 = arith.muli %1743, %1744 : vector<16x64xi32>
    %c1_i32_825 = arith.constant 1 : i32
    %1746 = vector.broadcast %c1_i32_825 : i32 to vector<16x64xi32>
    %1747 = arith.shrsi %1741, %1746 : vector<16x64xi32>
    %1748 = arith.addi %1745, %1747 : vector<16x64xi32>
    %1749 = arith.cmpi eq, %1736, %1748 : vector<16x64xi32>
    %cst_826 = arith.constant 1.000000e+00 : f32
    %cst_827 = arith.constant 0.000000e+00 : f32
    %1750 = vector.broadcast %cst_826 : f32 to vector<16x64xf32>
    %1751 = vector.broadcast %cst_827 : f32 to vector<16x64xf32>
    %1752 = arith.select %1749, %1750, %1751 : vector<16x64xi1>, vector<16x64xf32>
    %cst_828 = arith.constant dense<0.000000e+00> : vector<16x64xf32>
    %1753 = tpu.matmul %1734, %1752, %cst_828 {dimension_numbers = #tpu.dot_dimension_numbers<[1], [0], [0], [1], [0, 0, 1, 1], [], []>} : vector<16x16xf32>, vector<16x64xf32>, vector<16x64xf32> -> vector<16x64xf32>
    %cst_829 = arith.constant 0.000000e+00 : f32
    %1754 = vector.broadcast %cst_829 : f32 to vector<4x64xf32>
    %1755 = tpu.iota {dimensions = array<i32: 0>} : vector<64x64xi32>
    %1756 = tpu.iota {dimensions = array<i32: 1>} : vector<64x64xi32>
    %c7_i32_830 = arith.constant 7 : i32
    %1757 = vector.broadcast %c7_i32_830 : i32 to vector<64x64xi32>
    %1758 = arith.andi %1756, %1757 : vector<64x64xi32>
    %c-9_i32_831 = arith.constant -9 : i32
    %1759 = vector.broadcast %c-9_i32_831 : i32 to vector<64x64xi32>
    %1760 = arith.addi %1756, %1759 : vector<64x64xi32>
    %1761 = arith.cmpi eq, %1755, %1760 : vector<64x64xi32>
    %c-1_i32_832 = arith.constant -1 : i32
    %1762 = vector.broadcast %c-1_i32_832 : i32 to vector<64x64xi32>
    %1763 = arith.addi %1758, %1762 : vector<64x64xi32>
    %c0_i32_833 = arith.constant 0 : i32
    %1764 = vector.broadcast %c0_i32_833 : i32 to vector<64x64xi32>
    %1765 = arith.cmpi sge, %1763, %1764 : vector<64x64xi32>
    %1766 = arith.andi %1761, %1765 : vector<64x64xi1>
    %c-1_i32_834 = arith.constant -1 : i32
    %1767 = vector.broadcast %c-1_i32_834 : i32 to vector<64x64xi32>
    %1768 = arith.addi %1758, %1767 : vector<64x64xi32>
    %c8_i32_835 = arith.constant 8 : i32
    %1769 = vector.broadcast %c8_i32_835 : i32 to vector<64x64xi32>
    %1770 = arith.cmpi slt, %1768, %1769 : vector<64x64xi32>
    %1771 = arith.andi %1766, %1770 : vector<64x64xi1>
    %cst_836 = arith.constant 1.000000e+00 : f32
    %cst_837 = arith.constant 0.000000e+00 : f32
    %1772 = vector.broadcast %cst_836 : f32 to vector<64x64xf32>
    %1773 = vector.broadcast %cst_837 : f32 to vector<64x64xf32>
    %1774 = arith.select %1771, %1772, %1773 : vector<64x64xi1>, vector<64x64xf32>
    %cst_838 = arith.constant dense<0.000000e+00> : vector<16x64xf32>
    %1775 = tpu.matmul %1753, %1774, %cst_838 {dimension_numbers = #tpu.dot_dimension_numbers<[1], [0], [0], [1], [0, 0, 1, 1], [], []>} : vector<16x64xf32>, vector<64x64xf32>, vector<16x64xf32> -> vector<16x64xf32>
    %c0_839 = arith.constant 0 : index
    %c0_840 = arith.constant 0 : index
    %c0_841 = arith.constant 0 : index
    %1776 = vector.load %arg14[%c0_839, %c0_840, %c0_841] : memref<9x4x16xf32, #tpu.memory_space<vmem>>, vector<1x4x16xf32>
    %1777 = vector.shape_cast %1776 : vector<1x4x16xf32> to vector<4x16xf32>
    %cst_842 = arith.constant dense<0.000000e+00> : vector<4x64xf32>
    %1778 = tpu.matmul %1777, %1775, %cst_842 {dimension_numbers = #tpu.dot_dimension_numbers<[1], [0], [0], [1], [0, 0, 1, 1], [], []>} : vector<4x16xf32>, vector<16x64xf32>, vector<4x64xf32> -> vector<4x64xf32>
    %1779 = arith.addf %1754, %1778 : vector<4x64xf32>
    %1780 = tpu.iota {dimensions = array<i32: 0>} : vector<64x64xi32>
    %1781 = tpu.iota {dimensions = array<i32: 1>} : vector<64x64xi32>
    %c7_i32_843 = arith.constant 7 : i32
    %1782 = vector.broadcast %c7_i32_843 : i32 to vector<64x64xi32>
    %1783 = arith.andi %1781, %1782 : vector<64x64xi32>
    %c-8_i32_844 = arith.constant -8 : i32
    %1784 = vector.broadcast %c-8_i32_844 : i32 to vector<64x64xi32>
    %1785 = arith.addi %1781, %1784 : vector<64x64xi32>
    %1786 = arith.cmpi eq, %1780, %1785 : vector<64x64xi32>
    %c0_i32_845 = arith.constant 0 : i32
    %1787 = vector.broadcast %c0_i32_845 : i32 to vector<64x64xi32>
    %1788 = arith.addi %1783, %1787 : vector<64x64xi32>
    %c0_i32_846 = arith.constant 0 : i32
    %1789 = vector.broadcast %c0_i32_846 : i32 to vector<64x64xi32>
    %1790 = arith.cmpi sge, %1788, %1789 : vector<64x64xi32>
    %1791 = arith.andi %1786, %1790 : vector<64x64xi1>
    %c0_i32_847 = arith.constant 0 : i32
    %1792 = vector.broadcast %c0_i32_847 : i32 to vector<64x64xi32>
    %1793 = arith.addi %1783, %1792 : vector<64x64xi32>
    %c8_i32_848 = arith.constant 8 : i32
    %1794 = vector.broadcast %c8_i32_848 : i32 to vector<64x64xi32>
    %1795 = arith.cmpi slt, %1793, %1794 : vector<64x64xi32>
    %1796 = arith.andi %1791, %1795 : vector<64x64xi1>
    %cst_849 = arith.constant 1.000000e+00 : f32
    %cst_850 = arith.constant 0.000000e+00 : f32
    %1797 = vector.broadcast %cst_849 : f32 to vector<64x64xf32>
    %1798 = vector.broadcast %cst_850 : f32 to vector<64x64xf32>
    %1799 = arith.select %1796, %1797, %1798 : vector<64x64xi1>, vector<64x64xf32>
    %cst_851 = arith.constant dense<0.000000e+00> : vector<16x64xf32>
    %1800 = tpu.matmul %1753, %1799, %cst_851 {dimension_numbers = #tpu.dot_dimension_numbers<[1], [0], [0], [1], [0, 0, 1, 1], [], []>} : vector<16x64xf32>, vector<64x64xf32>, vector<16x64xf32> -> vector<16x64xf32>
    %c1_852 = arith.constant 1 : index
    %c0_853 = arith.constant 0 : index
    %c0_854 = arith.constant 0 : index
    %1801 = vector.load %arg14[%c1_852, %c0_853, %c0_854] : memref<9x4x16xf32, #tpu.memory_space<vmem>>, vector<1x4x16xf32>
    %1802 = vector.shape_cast %1801 : vector<1x4x16xf32> to vector<4x16xf32>
    %cst_855 = arith.constant dense<0.000000e+00> : vector<4x64xf32>
    %1803 = tpu.matmul %1802, %1800, %cst_855 {dimension_numbers = #tpu.dot_dimension_numbers<[1], [0], [0], [1], [0, 0, 1, 1], [], []>} : vector<4x16xf32>, vector<16x64xf32>, vector<4x64xf32> -> vector<4x64xf32>
    %1804 = arith.addf %1779, %1803 : vector<4x64xf32>
    %1805 = tpu.iota {dimensions = array<i32: 0>} : vector<64x64xi32>
    %1806 = tpu.iota {dimensions = array<i32: 1>} : vector<64x64xi32>
    %c7_i32_856 = arith.constant 7 : i32
    %1807 = vector.broadcast %c7_i32_856 : i32 to vector<64x64xi32>
    %1808 = arith.andi %1806, %1807 : vector<64x64xi32>
    %c-7_i32_857 = arith.constant -7 : i32
    %1809 = vector.broadcast %c-7_i32_857 : i32 to vector<64x64xi32>
    %1810 = arith.addi %1806, %1809 : vector<64x64xi32>
    %1811 = arith.cmpi eq, %1805, %1810 : vector<64x64xi32>
    %c1_i32_858 = arith.constant 1 : i32
    %1812 = vector.broadcast %c1_i32_858 : i32 to vector<64x64xi32>
    %1813 = arith.addi %1808, %1812 : vector<64x64xi32>
    %c0_i32_859 = arith.constant 0 : i32
    %1814 = vector.broadcast %c0_i32_859 : i32 to vector<64x64xi32>
    %1815 = arith.cmpi sge, %1813, %1814 : vector<64x64xi32>
    %1816 = arith.andi %1811, %1815 : vector<64x64xi1>
    %c1_i32_860 = arith.constant 1 : i32
    %1817 = vector.broadcast %c1_i32_860 : i32 to vector<64x64xi32>
    %1818 = arith.addi %1808, %1817 : vector<64x64xi32>
    %c8_i32_861 = arith.constant 8 : i32
    %1819 = vector.broadcast %c8_i32_861 : i32 to vector<64x64xi32>
    %1820 = arith.cmpi slt, %1818, %1819 : vector<64x64xi32>
    %1821 = arith.andi %1816, %1820 : vector<64x64xi1>
    %cst_862 = arith.constant 1.000000e+00 : f32
    %cst_863 = arith.constant 0.000000e+00 : f32
    %1822 = vector.broadcast %cst_862 : f32 to vector<64x64xf32>
    %1823 = vector.broadcast %cst_863 : f32 to vector<64x64xf32>
    %1824 = arith.select %1821, %1822, %1823 : vector<64x64xi1>, vector<64x64xf32>
    %cst_864 = arith.constant dense<0.000000e+00> : vector<16x64xf32>
    %1825 = tpu.matmul %1753, %1824, %cst_864 {dimension_numbers = #tpu.dot_dimension_numbers<[1], [0], [0], [1], [0, 0, 1, 1], [], []>} : vector<16x64xf32>, vector<64x64xf32>, vector<16x64xf32> -> vector<16x64xf32>
    %c2_865 = arith.constant 2 : index
    %c0_866 = arith.constant 0 : index
    %c0_867 = arith.constant 0 : index
    %1826 = vector.load %arg14[%c2_865, %c0_866, %c0_867] : memref<9x4x16xf32, #tpu.memory_space<vmem>>, vector<1x4x16xf32>
    %1827 = vector.shape_cast %1826 : vector<1x4x16xf32> to vector<4x16xf32>
    %cst_868 = arith.constant dense<0.000000e+00> : vector<4x64xf32>
    %1828 = tpu.matmul %1827, %1825, %cst_868 {dimension_numbers = #tpu.dot_dimension_numbers<[1], [0], [0], [1], [0, 0, 1, 1], [], []>} : vector<4x16xf32>, vector<16x64xf32>, vector<4x64xf32> -> vector<4x64xf32>
    %1829 = arith.addf %1804, %1828 : vector<4x64xf32>
    %1830 = tpu.iota {dimensions = array<i32: 0>} : vector<64x64xi32>
    %1831 = tpu.iota {dimensions = array<i32: 1>} : vector<64x64xi32>
    %c7_i32_869 = arith.constant 7 : i32
    %1832 = vector.broadcast %c7_i32_869 : i32 to vector<64x64xi32>
    %1833 = arith.andi %1831, %1832 : vector<64x64xi32>
    %c-1_i32_870 = arith.constant -1 : i32
    %1834 = vector.broadcast %c-1_i32_870 : i32 to vector<64x64xi32>
    %1835 = arith.addi %1831, %1834 : vector<64x64xi32>
    %1836 = arith.cmpi eq, %1830, %1835 : vector<64x64xi32>
    %c-1_i32_871 = arith.constant -1 : i32
    %1837 = vector.broadcast %c-1_i32_871 : i32 to vector<64x64xi32>
    %1838 = arith.addi %1833, %1837 : vector<64x64xi32>
    %c0_i32_872 = arith.constant 0 : i32
    %1839 = vector.broadcast %c0_i32_872 : i32 to vector<64x64xi32>
    %1840 = arith.cmpi sge, %1838, %1839 : vector<64x64xi32>
    %1841 = arith.andi %1836, %1840 : vector<64x64xi1>
    %c-1_i32_873 = arith.constant -1 : i32
    %1842 = vector.broadcast %c-1_i32_873 : i32 to vector<64x64xi32>
    %1843 = arith.addi %1833, %1842 : vector<64x64xi32>
    %c8_i32_874 = arith.constant 8 : i32
    %1844 = vector.broadcast %c8_i32_874 : i32 to vector<64x64xi32>
    %1845 = arith.cmpi slt, %1843, %1844 : vector<64x64xi32>
    %1846 = arith.andi %1841, %1845 : vector<64x64xi1>
    %cst_875 = arith.constant 1.000000e+00 : f32
    %cst_876 = arith.constant 0.000000e+00 : f32
    %1847 = vector.broadcast %cst_875 : f32 to vector<64x64xf32>
    %1848 = vector.broadcast %cst_876 : f32 to vector<64x64xf32>
    %1849 = arith.select %1846, %1847, %1848 : vector<64x64xi1>, vector<64x64xf32>
    %cst_877 = arith.constant dense<0.000000e+00> : vector<16x64xf32>
    %1850 = tpu.matmul %1753, %1849, %cst_877 {dimension_numbers = #tpu.dot_dimension_numbers<[1], [0], [0], [1], [0, 0, 1, 1], [], []>} : vector<16x64xf32>, vector<64x64xf32>, vector<16x64xf32> -> vector<16x64xf32>
    %c3_878 = arith.constant 3 : index
    %c0_879 = arith.constant 0 : index
    %c0_880 = arith.constant 0 : index
    %1851 = vector.load %arg14[%c3_878, %c0_879, %c0_880] : memref<9x4x16xf32, #tpu.memory_space<vmem>>, vector<1x4x16xf32>
    %1852 = vector.shape_cast %1851 : vector<1x4x16xf32> to vector<4x16xf32>
    %cst_881 = arith.constant dense<0.000000e+00> : vector<4x64xf32>
    %1853 = tpu.matmul %1852, %1850, %cst_881 {dimension_numbers = #tpu.dot_dimension_numbers<[1], [0], [0], [1], [0, 0, 1, 1], [], []>} : vector<4x16xf32>, vector<16x64xf32>, vector<4x64xf32> -> vector<4x64xf32>
    %1854 = arith.addf %1829, %1853 : vector<4x64xf32>
    %c4_882 = arith.constant 4 : index
    %c0_883 = arith.constant 0 : index
    %c0_884 = arith.constant 0 : index
    %1855 = vector.load %arg14[%c4_882, %c0_883, %c0_884] : memref<9x4x16xf32, #tpu.memory_space<vmem>>, vector<1x4x16xf32>
    %1856 = vector.shape_cast %1855 : vector<1x4x16xf32> to vector<4x16xf32>
    %cst_885 = arith.constant dense<0.000000e+00> : vector<4x64xf32>
    %1857 = tpu.matmul %1856, %1753, %cst_885 {dimension_numbers = #tpu.dot_dimension_numbers<[1], [0], [0], [1], [0, 0, 1, 1], [], []>} : vector<4x16xf32>, vector<16x64xf32>, vector<4x64xf32> -> vector<4x64xf32>
    %1858 = arith.addf %1854, %1857 : vector<4x64xf32>
    %1859 = tpu.iota {dimensions = array<i32: 0>} : vector<64x64xi32>
    %1860 = tpu.iota {dimensions = array<i32: 1>} : vector<64x64xi32>
    %c7_i32_886 = arith.constant 7 : i32
    %1861 = vector.broadcast %c7_i32_886 : i32 to vector<64x64xi32>
    %1862 = arith.andi %1860, %1861 : vector<64x64xi32>
    %c1_i32_887 = arith.constant 1 : i32
    %1863 = vector.broadcast %c1_i32_887 : i32 to vector<64x64xi32>
    %1864 = arith.addi %1860, %1863 : vector<64x64xi32>
    %1865 = arith.cmpi eq, %1859, %1864 : vector<64x64xi32>
    %c1_i32_888 = arith.constant 1 : i32
    %1866 = vector.broadcast %c1_i32_888 : i32 to vector<64x64xi32>
    %1867 = arith.addi %1862, %1866 : vector<64x64xi32>
    %c0_i32_889 = arith.constant 0 : i32
    %1868 = vector.broadcast %c0_i32_889 : i32 to vector<64x64xi32>
    %1869 = arith.cmpi sge, %1867, %1868 : vector<64x64xi32>
    %1870 = arith.andi %1865, %1869 : vector<64x64xi1>
    %c1_i32_890 = arith.constant 1 : i32
    %1871 = vector.broadcast %c1_i32_890 : i32 to vector<64x64xi32>
    %1872 = arith.addi %1862, %1871 : vector<64x64xi32>
    %c8_i32_891 = arith.constant 8 : i32
    %1873 = vector.broadcast %c8_i32_891 : i32 to vector<64x64xi32>
    %1874 = arith.cmpi slt, %1872, %1873 : vector<64x64xi32>
    %1875 = arith.andi %1870, %1874 : vector<64x64xi1>
    %cst_892 = arith.constant 1.000000e+00 : f32
    %cst_893 = arith.constant 0.000000e+00 : f32
    %1876 = vector.broadcast %cst_892 : f32 to vector<64x64xf32>
    %1877 = vector.broadcast %cst_893 : f32 to vector<64x64xf32>
    %1878 = arith.select %1875, %1876, %1877 : vector<64x64xi1>, vector<64x64xf32>
    %cst_894 = arith.constant dense<0.000000e+00> : vector<16x64xf32>
    %1879 = tpu.matmul %1753, %1878, %cst_894 {dimension_numbers = #tpu.dot_dimension_numbers<[1], [0], [0], [1], [0, 0, 1, 1], [], []>} : vector<16x64xf32>, vector<64x64xf32>, vector<16x64xf32> -> vector<16x64xf32>
    %c5_895 = arith.constant 5 : index
    %c0_896 = arith.constant 0 : index
    %c0_897 = arith.constant 0 : index
    %1880 = vector.load %arg14[%c5_895, %c0_896, %c0_897] : memref<9x4x16xf32, #tpu.memory_space<vmem>>, vector<1x4x16xf32>
    %1881 = vector.shape_cast %1880 : vector<1x4x16xf32> to vector<4x16xf32>
    %cst_898 = arith.constant dense<0.000000e+00> : vector<4x64xf32>
    %1882 = tpu.matmul %1881, %1879, %cst_898 {dimension_numbers = #tpu.dot_dimension_numbers<[1], [0], [0], [1], [0, 0, 1, 1], [], []>} : vector<4x16xf32>, vector<16x64xf32>, vector<4x64xf32> -> vector<4x64xf32>
    %1883 = arith.addf %1858, %1882 : vector<4x64xf32>
    %1884 = tpu.iota {dimensions = array<i32: 0>} : vector<64x64xi32>
    %1885 = tpu.iota {dimensions = array<i32: 1>} : vector<64x64xi32>
    %c7_i32_899 = arith.constant 7 : i32
    %1886 = vector.broadcast %c7_i32_899 : i32 to vector<64x64xi32>
    %1887 = arith.andi %1885, %1886 : vector<64x64xi32>
    %c7_i32_900 = arith.constant 7 : i32
    %1888 = vector.broadcast %c7_i32_900 : i32 to vector<64x64xi32>
    %1889 = arith.addi %1885, %1888 : vector<64x64xi32>
    %1890 = arith.cmpi eq, %1884, %1889 : vector<64x64xi32>
    %c-1_i32_901 = arith.constant -1 : i32
    %1891 = vector.broadcast %c-1_i32_901 : i32 to vector<64x64xi32>
    %1892 = arith.addi %1887, %1891 : vector<64x64xi32>
    %c0_i32_902 = arith.constant 0 : i32
    %1893 = vector.broadcast %c0_i32_902 : i32 to vector<64x64xi32>
    %1894 = arith.cmpi sge, %1892, %1893 : vector<64x64xi32>
    %1895 = arith.andi %1890, %1894 : vector<64x64xi1>
    %c-1_i32_903 = arith.constant -1 : i32
    %1896 = vector.broadcast %c-1_i32_903 : i32 to vector<64x64xi32>
    %1897 = arith.addi %1887, %1896 : vector<64x64xi32>
    %c8_i32_904 = arith.constant 8 : i32
    %1898 = vector.broadcast %c8_i32_904 : i32 to vector<64x64xi32>
    %1899 = arith.cmpi slt, %1897, %1898 : vector<64x64xi32>
    %1900 = arith.andi %1895, %1899 : vector<64x64xi1>
    %cst_905 = arith.constant 1.000000e+00 : f32
    %cst_906 = arith.constant 0.000000e+00 : f32
    %1901 = vector.broadcast %cst_905 : f32 to vector<64x64xf32>
    %1902 = vector.broadcast %cst_906 : f32 to vector<64x64xf32>
    %1903 = arith.select %1900, %1901, %1902 : vector<64x64xi1>, vector<64x64xf32>
    %cst_907 = arith.constant dense<0.000000e+00> : vector<16x64xf32>
    %1904 = tpu.matmul %1753, %1903, %cst_907 {dimension_numbers = #tpu.dot_dimension_numbers<[1], [0], [0], [1], [0, 0, 1, 1], [], []>} : vector<16x64xf32>, vector<64x64xf32>, vector<16x64xf32> -> vector<16x64xf32>
    %c6_908 = arith.constant 6 : index
    %c0_909 = arith.constant 0 : index
    %c0_910 = arith.constant 0 : index
    %1905 = vector.load %arg14[%c6_908, %c0_909, %c0_910] : memref<9x4x16xf32, #tpu.memory_space<vmem>>, vector<1x4x16xf32>
    %1906 = vector.shape_cast %1905 : vector<1x4x16xf32> to vector<4x16xf32>
    %cst_911 = arith.constant dense<0.000000e+00> : vector<4x64xf32>
    %1907 = tpu.matmul %1906, %1904, %cst_911 {dimension_numbers = #tpu.dot_dimension_numbers<[1], [0], [0], [1], [0, 0, 1, 1], [], []>} : vector<4x16xf32>, vector<16x64xf32>, vector<4x64xf32> -> vector<4x64xf32>
    %1908 = arith.addf %1883, %1907 : vector<4x64xf32>
    %1909 = tpu.iota {dimensions = array<i32: 0>} : vector<64x64xi32>
    %1910 = tpu.iota {dimensions = array<i32: 1>} : vector<64x64xi32>
    %c7_i32_912 = arith.constant 7 : i32
    %1911 = vector.broadcast %c7_i32_912 : i32 to vector<64x64xi32>
    %1912 = arith.andi %1910, %1911 : vector<64x64xi32>
    %c8_i32_913 = arith.constant 8 : i32
    %1913 = vector.broadcast %c8_i32_913 : i32 to vector<64x64xi32>
    %1914 = arith.addi %1910, %1913 : vector<64x64xi32>
    %1915 = arith.cmpi eq, %1909, %1914 : vector<64x64xi32>
    %c0_i32_914 = arith.constant 0 : i32
    %1916 = vector.broadcast %c0_i32_914 : i32 to vector<64x64xi32>
    %1917 = arith.addi %1912, %1916 : vector<64x64xi32>
    %c0_i32_915 = arith.constant 0 : i32
    %1918 = vector.broadcast %c0_i32_915 : i32 to vector<64x64xi32>
    %1919 = arith.cmpi sge, %1917, %1918 : vector<64x64xi32>
    %1920 = arith.andi %1915, %1919 : vector<64x64xi1>
    %c0_i32_916 = arith.constant 0 : i32
    %1921 = vector.broadcast %c0_i32_916 : i32 to vector<64x64xi32>
    %1922 = arith.addi %1912, %1921 : vector<64x64xi32>
    %c8_i32_917 = arith.constant 8 : i32
    %1923 = vector.broadcast %c8_i32_917 : i32 to vector<64x64xi32>
    %1924 = arith.cmpi slt, %1922, %1923 : vector<64x64xi32>
    %1925 = arith.andi %1920, %1924 : vector<64x64xi1>
    %cst_918 = arith.constant 1.000000e+00 : f32
    %cst_919 = arith.constant 0.000000e+00 : f32
    %1926 = vector.broadcast %cst_918 : f32 to vector<64x64xf32>
    %1927 = vector.broadcast %cst_919 : f32 to vector<64x64xf32>
    %1928 = arith.select %1925, %1926, %1927 : vector<64x64xi1>, vector<64x64xf32>
    %cst_920 = arith.constant dense<0.000000e+00> : vector<16x64xf32>
    %1929 = tpu.matmul %1753, %1928, %cst_920 {dimension_numbers = #tpu.dot_dimension_numbers<[1], [0], [0], [1], [0, 0, 1, 1], [], []>} : vector<16x64xf32>, vector<64x64xf32>, vector<16x64xf32> -> vector<16x64xf32>
    %c7_921 = arith.constant 7 : index
    %c0_922 = arith.constant 0 : index
    %c0_923 = arith.constant 0 : index
    %1930 = vector.load %arg14[%c7_921, %c0_922, %c0_923] : memref<9x4x16xf32, #tpu.memory_space<vmem>>, vector<1x4x16xf32>
    %1931 = vector.shape_cast %1930 : vector<1x4x16xf32> to vector<4x16xf32>
    %cst_924 = arith.constant dense<0.000000e+00> : vector<4x64xf32>
    %1932 = tpu.matmul %1931, %1929, %cst_924 {dimension_numbers = #tpu.dot_dimension_numbers<[1], [0], [0], [1], [0, 0, 1, 1], [], []>} : vector<4x16xf32>, vector<16x64xf32>, vector<4x64xf32> -> vector<4x64xf32>
    %1933 = arith.addf %1908, %1932 : vector<4x64xf32>
    %1934 = tpu.iota {dimensions = array<i32: 0>} : vector<64x64xi32>
    %1935 = tpu.iota {dimensions = array<i32: 1>} : vector<64x64xi32>
    %c7_i32_925 = arith.constant 7 : i32
    %1936 = vector.broadcast %c7_i32_925 : i32 to vector<64x64xi32>
    %1937 = arith.andi %1935, %1936 : vector<64x64xi32>
    %c9_i32_926 = arith.constant 9 : i32
    %1938 = vector.broadcast %c9_i32_926 : i32 to vector<64x64xi32>
    %1939 = arith.addi %1935, %1938 : vector<64x64xi32>
    %1940 = arith.cmpi eq, %1934, %1939 : vector<64x64xi32>
    %c1_i32_927 = arith.constant 1 : i32
    %1941 = vector.broadcast %c1_i32_927 : i32 to vector<64x64xi32>
    %1942 = arith.addi %1937, %1941 : vector<64x64xi32>
    %c0_i32_928 = arith.constant 0 : i32
    %1943 = vector.broadcast %c0_i32_928 : i32 to vector<64x64xi32>
    %1944 = arith.cmpi sge, %1942, %1943 : vector<64x64xi32>
    %1945 = arith.andi %1940, %1944 : vector<64x64xi1>
    %c1_i32_929 = arith.constant 1 : i32
    %1946 = vector.broadcast %c1_i32_929 : i32 to vector<64x64xi32>
    %1947 = arith.addi %1937, %1946 : vector<64x64xi32>
    %c8_i32_930 = arith.constant 8 : i32
    %1948 = vector.broadcast %c8_i32_930 : i32 to vector<64x64xi32>
    %1949 = arith.cmpi slt, %1947, %1948 : vector<64x64xi32>
    %1950 = arith.andi %1945, %1949 : vector<64x64xi1>
    %cst_931 = arith.constant 1.000000e+00 : f32
    %cst_932 = arith.constant 0.000000e+00 : f32
    %1951 = vector.broadcast %cst_931 : f32 to vector<64x64xf32>
    %1952 = vector.broadcast %cst_932 : f32 to vector<64x64xf32>
    %1953 = arith.select %1950, %1951, %1952 : vector<64x64xi1>, vector<64x64xf32>
    %cst_933 = arith.constant dense<0.000000e+00> : vector<16x64xf32>
    %1954 = tpu.matmul %1753, %1953, %cst_933 {dimension_numbers = #tpu.dot_dimension_numbers<[1], [0], [0], [1], [0, 0, 1, 1], [], []>} : vector<16x64xf32>, vector<64x64xf32>, vector<16x64xf32> -> vector<16x64xf32>
    %c8_934 = arith.constant 8 : index
    %c0_935 = arith.constant 0 : index
    %c0_936 = arith.constant 0 : index
    %1955 = vector.load %arg14[%c8_934, %c0_935, %c0_936] : memref<9x4x16xf32, #tpu.memory_space<vmem>>, vector<1x4x16xf32>
    %1956 = vector.shape_cast %1955 : vector<1x4x16xf32> to vector<4x16xf32>
    %cst_937 = arith.constant dense<0.000000e+00> : vector<4x64xf32>
    %1957 = tpu.matmul %1956, %1954, %cst_937 {dimension_numbers = #tpu.dot_dimension_numbers<[1], [0], [0], [1], [0, 0, 1, 1], [], []>} : vector<4x16xf32>, vector<16x64xf32>, vector<4x64xf32> -> vector<4x64xf32>
    %1958 = arith.addf %1933, %1957 : vector<4x64xf32>
    %1959 = vector.broadcast %1735 : vector<4x1xf32> to vector<4x64xf32>
    %1960 = arith.addf %1958, %1959 : vector<4x64xf32>
    %cst_938 = arith.constant 0.000000e+00 : f32
    %1961 = vector.broadcast %cst_938 : f32 to vector<4x64xf32>
    %1962 = arith.maximumf %1960, %1961 : vector<4x64xf32>
    %c0_939 = arith.constant 0 : index
    %c0_940 = arith.constant 0 : index
    %1963 = vector.load %arg17[%c0_939, %c0_940] : memref<4x1xf32, #tpu.memory_space<vmem>>, vector<4x1xf32>
    %1964 = tpu.iota {dimensions = array<i32: 0>} : vector<64x256xi32>
    %1965 = tpu.iota {dimensions = array<i32: 1>} : vector<64x256xi32>
    %c4_i32_941 = arith.constant 4 : i32
    %1966 = vector.broadcast %c4_i32_941 : i32 to vector<64x256xi32>
    %1967 = arith.shrsi %1965, %1966 : vector<64x256xi32>
    %c15_i32_942 = arith.constant 15 : i32
    %1968 = vector.broadcast %c15_i32_942 : i32 to vector<64x256xi32>
    %1969 = arith.andi %1965, %1968 : vector<64x256xi32>
    %c1_i32_943 = arith.constant 1 : i32
    %1970 = vector.broadcast %c1_i32_943 : i32 to vector<64x256xi32>
    %1971 = arith.shrsi %1967, %1970 : vector<64x256xi32>
    %c8_i32_944 = arith.constant 8 : i32
    %1972 = vector.broadcast %c8_i32_944 : i32 to vector<64x256xi32>
    %1973 = arith.muli %1971, %1972 : vector<64x256xi32>
    %c1_i32_945 = arith.constant 1 : i32
    %1974 = vector.broadcast %c1_i32_945 : i32 to vector<64x256xi32>
    %1975 = arith.shrsi %1969, %1974 : vector<64x256xi32>
    %1976 = arith.addi %1973, %1975 : vector<64x256xi32>
    %1977 = arith.cmpi eq, %1964, %1976 : vector<64x256xi32>
    %cst_946 = arith.constant 1.000000e+00 : f32
    %cst_947 = arith.constant 0.000000e+00 : f32
    %1978 = vector.broadcast %cst_946 : f32 to vector<64x256xf32>
    %1979 = vector.broadcast %cst_947 : f32 to vector<64x256xf32>
    %1980 = arith.select %1977, %1978, %1979 : vector<64x256xi1>, vector<64x256xf32>
    %cst_948 = arith.constant dense<0.000000e+00> : vector<4x256xf32>
    %1981 = tpu.matmul %1962, %1980, %cst_948 {dimension_numbers = #tpu.dot_dimension_numbers<[1], [0], [0], [1], [0, 0, 1, 1], [], []>} : vector<4x64xf32>, vector<64x256xf32>, vector<4x256xf32> -> vector<4x256xf32>
    %cst_949 = arith.constant 0.000000e+00 : f32
    %1982 = vector.broadcast %cst_949 : f32 to vector<4x256xf32>
    %1983 = tpu.iota {dimensions = array<i32: 1>} : vector<1x256xi32>
    %c15_i32_950 = arith.constant 15 : i32
    %1984 = vector.broadcast %c15_i32_950 : i32 to vector<1x256xi32>
    %1985 = arith.andi %1983, %1984 : vector<1x256xi32>
    %c-17_i32_951 = arith.constant -17 : i32
    %1986 = vector.broadcast %c-17_i32_951 : i32 to vector<1x256xi32>
    %1987 = arith.addi %1983, %1986 : vector<1x256xi32>
    %c0_i32_952 = arith.constant 0 : i32
    %1988 = vector.broadcast %c0_i32_952 : i32 to vector<1x256xi32>
    %1989 = arith.cmpi sge, %1987, %1988 : vector<1x256xi32>
    %c256_i32_953 = arith.constant 256 : i32
    %1990 = vector.broadcast %c256_i32_953 : i32 to vector<1x256xi32>
    %1991 = arith.cmpi slt, %1987, %1990 : vector<1x256xi32>
    %1992 = arith.andi %1989, %1991 : vector<1x256xi1>
    %c-1_i32_954 = arith.constant -1 : i32
    %1993 = vector.broadcast %c-1_i32_954 : i32 to vector<1x256xi32>
    %1994 = arith.addi %1985, %1993 : vector<1x256xi32>
    %c0_i32_955 = arith.constant 0 : i32
    %1995 = vector.broadcast %c0_i32_955 : i32 to vector<1x256xi32>
    %1996 = arith.cmpi sge, %1994, %1995 : vector<1x256xi32>
    %1997 = arith.andi %1992, %1996 : vector<1x256xi1>
    %c-1_i32_956 = arith.constant -1 : i32
    %1998 = vector.broadcast %c-1_i32_956 : i32 to vector<1x256xi32>
    %1999 = arith.addi %1985, %1998 : vector<1x256xi32>
    %c16_i32_957 = arith.constant 16 : i32
    %2000 = vector.broadcast %c16_i32_957 : i32 to vector<1x256xi32>
    %2001 = arith.cmpi slt, %1999, %2000 : vector<1x256xi32>
    %2002 = arith.andi %1997, %2001 : vector<1x256xi1>
    %c256_i32_958 = arith.constant 256 : i32
    %2003 = vector.broadcast %c256_i32_958 : i32 to vector<1x256xi32>
    %2004 = arith.addi %1987, %2003 : vector<1x256xi32>
    %c255_i32_959 = arith.constant 255 : i32
    %2005 = vector.broadcast %c255_i32_959 : i32 to vector<1x256xi32>
    %2006 = arith.andi %2004, %2005 : vector<1x256xi32>
    %c17_i32_960 = arith.constant 17 : i32
    %2007 = tpu.dynamic_rotate %1981 by %c17_i32_960 dim 1 : vector<4x256xf32>, i32 -> vector<4x256xf32>
    %c239_i32_961 = arith.constant 239 : i32
    %2008 = tpu.dynamic_rotate %1981 by %c239_i32_961 dim 1 : vector<4x256xf32>, i32 -> vector<4x256xf32>
    %c17_i32_962 = arith.constant 17 : i32
    %2009 = tpu.dynamic_rotate %1983 by %c17_i32_962 dim 1 : vector<1x256xi32>, i32 -> vector<1x256xi32>
    %2010 = arith.cmpi eq, %2009, %2006 : vector<1x256xi32>
    %2011 = vector.shape_cast %2010 : vector<1x256xi1> to vector<1x256xi1>
    %2012 = vector.broadcast %2011 : vector<1x256xi1> to vector<4x256xi1>
    %2013 = arith.select %2012, %2007, %2008 : vector<4x256xi1>, vector<4x256xf32>
    %cst_963 = arith.constant 0.000000e+00 : f32
    %2014 = vector.shape_cast %2002 : vector<1x256xi1> to vector<1x256xi1>
    %2015 = vector.broadcast %2014 : vector<1x256xi1> to vector<4x256xi1>
    %2016 = vector.broadcast %cst_963 : f32 to vector<4x256xf32>
    %2017 = arith.select %2015, %2013, %2016 : vector<4x256xi1>, vector<4x256xf32>
    %c0_964 = arith.constant 0 : index
    %c0_965 = arith.constant 0 : index
    %c0_966 = arith.constant 0 : index
    %2018 = vector.load %arg16[%c0_964, %c0_965, %c0_966] : memref<9x4x4xf32, #tpu.memory_space<vmem>>, vector<1x4x4xf32>
    %2019 = vector.shape_cast %2018 : vector<1x4x4xf32> to vector<4x4xf32>
    %cst_967 = arith.constant dense<0.000000e+00> : vector<4x256xf32>
    %2020 = tpu.matmul %2019, %2017, %cst_967 {dimension_numbers = #tpu.dot_dimension_numbers<[1], [0], [0], [1], [0, 0, 1, 1], [], []>} : vector<4x4xf32>, vector<4x256xf32>, vector<4x256xf32> -> vector<4x256xf32>
    %2021 = arith.addf %1982, %2020 : vector<4x256xf32>
    %2022 = tpu.iota {dimensions = array<i32: 1>} : vector<1x256xi32>
    %c15_i32_968 = arith.constant 15 : i32
    %2023 = vector.broadcast %c15_i32_968 : i32 to vector<1x256xi32>
    %2024 = arith.andi %2022, %2023 : vector<1x256xi32>
    %c-16_i32_969 = arith.constant -16 : i32
    %2025 = vector.broadcast %c-16_i32_969 : i32 to vector<1x256xi32>
    %2026 = arith.addi %2022, %2025 : vector<1x256xi32>
    %c0_i32_970 = arith.constant 0 : i32
    %2027 = vector.broadcast %c0_i32_970 : i32 to vector<1x256xi32>
    %2028 = arith.cmpi sge, %2026, %2027 : vector<1x256xi32>
    %c256_i32_971 = arith.constant 256 : i32
    %2029 = vector.broadcast %c256_i32_971 : i32 to vector<1x256xi32>
    %2030 = arith.cmpi slt, %2026, %2029 : vector<1x256xi32>
    %2031 = arith.andi %2028, %2030 : vector<1x256xi1>
    %c0_i32_972 = arith.constant 0 : i32
    %2032 = vector.broadcast %c0_i32_972 : i32 to vector<1x256xi32>
    %2033 = arith.addi %2024, %2032 : vector<1x256xi32>
    %c0_i32_973 = arith.constant 0 : i32
    %2034 = vector.broadcast %c0_i32_973 : i32 to vector<1x256xi32>
    %2035 = arith.cmpi sge, %2033, %2034 : vector<1x256xi32>
    %2036 = arith.andi %2031, %2035 : vector<1x256xi1>
    %c0_i32_974 = arith.constant 0 : i32
    %2037 = vector.broadcast %c0_i32_974 : i32 to vector<1x256xi32>
    %2038 = arith.addi %2024, %2037 : vector<1x256xi32>
    %c16_i32_975 = arith.constant 16 : i32
    %2039 = vector.broadcast %c16_i32_975 : i32 to vector<1x256xi32>
    %2040 = arith.cmpi slt, %2038, %2039 : vector<1x256xi32>
    %2041 = arith.andi %2036, %2040 : vector<1x256xi1>
    %c256_i32_976 = arith.constant 256 : i32
    %2042 = vector.broadcast %c256_i32_976 : i32 to vector<1x256xi32>
    %2043 = arith.addi %2026, %2042 : vector<1x256xi32>
    %c255_i32_977 = arith.constant 255 : i32
    %2044 = vector.broadcast %c255_i32_977 : i32 to vector<1x256xi32>
    %2045 = arith.andi %2043, %2044 : vector<1x256xi32>
    %c16_i32_978 = arith.constant 16 : i32
    %2046 = tpu.dynamic_rotate %1981 by %c16_i32_978 dim 1 : vector<4x256xf32>, i32 -> vector<4x256xf32>
    %c240_i32_979 = arith.constant 240 : i32
    %2047 = tpu.dynamic_rotate %1981 by %c240_i32_979 dim 1 : vector<4x256xf32>, i32 -> vector<4x256xf32>
    %c16_i32_980 = arith.constant 16 : i32
    %2048 = tpu.dynamic_rotate %2022 by %c16_i32_980 dim 1 : vector<1x256xi32>, i32 -> vector<1x256xi32>
    %2049 = arith.cmpi eq, %2048, %2045 : vector<1x256xi32>
    %2050 = vector.shape_cast %2049 : vector<1x256xi1> to vector<1x256xi1>
    %2051 = vector.broadcast %2050 : vector<1x256xi1> to vector<4x256xi1>
    %2052 = arith.select %2051, %2046, %2047 : vector<4x256xi1>, vector<4x256xf32>
    %cst_981 = arith.constant 0.000000e+00 : f32
    %2053 = vector.shape_cast %2041 : vector<1x256xi1> to vector<1x256xi1>
    %2054 = vector.broadcast %2053 : vector<1x256xi1> to vector<4x256xi1>
    %2055 = vector.broadcast %cst_981 : f32 to vector<4x256xf32>
    %2056 = arith.select %2054, %2052, %2055 : vector<4x256xi1>, vector<4x256xf32>
    %c1_982 = arith.constant 1 : index
    %c0_983 = arith.constant 0 : index
    %c0_984 = arith.constant 0 : index
    %2057 = vector.load %arg16[%c1_982, %c0_983, %c0_984] : memref<9x4x4xf32, #tpu.memory_space<vmem>>, vector<1x4x4xf32>
    %2058 = vector.shape_cast %2057 : vector<1x4x4xf32> to vector<4x4xf32>
    %cst_985 = arith.constant dense<0.000000e+00> : vector<4x256xf32>
    %2059 = tpu.matmul %2058, %2056, %cst_985 {dimension_numbers = #tpu.dot_dimension_numbers<[1], [0], [0], [1], [0, 0, 1, 1], [], []>} : vector<4x4xf32>, vector<4x256xf32>, vector<4x256xf32> -> vector<4x256xf32>
    %2060 = arith.addf %2021, %2059 : vector<4x256xf32>
    %2061 = tpu.iota {dimensions = array<i32: 1>} : vector<1x256xi32>
    %c15_i32_986 = arith.constant 15 : i32
    %2062 = vector.broadcast %c15_i32_986 : i32 to vector<1x256xi32>
    %2063 = arith.andi %2061, %2062 : vector<1x256xi32>
    %c-15_i32_987 = arith.constant -15 : i32
    %2064 = vector.broadcast %c-15_i32_987 : i32 to vector<1x256xi32>
    %2065 = arith.addi %2061, %2064 : vector<1x256xi32>
    %c0_i32_988 = arith.constant 0 : i32
    %2066 = vector.broadcast %c0_i32_988 : i32 to vector<1x256xi32>
    %2067 = arith.cmpi sge, %2065, %2066 : vector<1x256xi32>
    %c256_i32_989 = arith.constant 256 : i32
    %2068 = vector.broadcast %c256_i32_989 : i32 to vector<1x256xi32>
    %2069 = arith.cmpi slt, %2065, %2068 : vector<1x256xi32>
    %2070 = arith.andi %2067, %2069 : vector<1x256xi1>
    %c1_i32_990 = arith.constant 1 : i32
    %2071 = vector.broadcast %c1_i32_990 : i32 to vector<1x256xi32>
    %2072 = arith.addi %2063, %2071 : vector<1x256xi32>
    %c0_i32_991 = arith.constant 0 : i32
    %2073 = vector.broadcast %c0_i32_991 : i32 to vector<1x256xi32>
    %2074 = arith.cmpi sge, %2072, %2073 : vector<1x256xi32>
    %2075 = arith.andi %2070, %2074 : vector<1x256xi1>
    %c1_i32_992 = arith.constant 1 : i32
    %2076 = vector.broadcast %c1_i32_992 : i32 to vector<1x256xi32>
    %2077 = arith.addi %2063, %2076 : vector<1x256xi32>
    %c16_i32_993 = arith.constant 16 : i32
    %2078 = vector.broadcast %c16_i32_993 : i32 to vector<1x256xi32>
    %2079 = arith.cmpi slt, %2077, %2078 : vector<1x256xi32>
    %2080 = arith.andi %2075, %2079 : vector<1x256xi1>
    %c256_i32_994 = arith.constant 256 : i32
    %2081 = vector.broadcast %c256_i32_994 : i32 to vector<1x256xi32>
    %2082 = arith.addi %2065, %2081 : vector<1x256xi32>
    %c255_i32_995 = arith.constant 255 : i32
    %2083 = vector.broadcast %c255_i32_995 : i32 to vector<1x256xi32>
    %2084 = arith.andi %2082, %2083 : vector<1x256xi32>
    %c15_i32_996 = arith.constant 15 : i32
    %2085 = tpu.dynamic_rotate %1981 by %c15_i32_996 dim 1 : vector<4x256xf32>, i32 -> vector<4x256xf32>
    %c241_i32_997 = arith.constant 241 : i32
    %2086 = tpu.dynamic_rotate %1981 by %c241_i32_997 dim 1 : vector<4x256xf32>, i32 -> vector<4x256xf32>
    %c15_i32_998 = arith.constant 15 : i32
    %2087 = tpu.dynamic_rotate %2061 by %c15_i32_998 dim 1 : vector<1x256xi32>, i32 -> vector<1x256xi32>
    %2088 = arith.cmpi eq, %2087, %2084 : vector<1x256xi32>
    %2089 = vector.shape_cast %2088 : vector<1x256xi1> to vector<1x256xi1>
    %2090 = vector.broadcast %2089 : vector<1x256xi1> to vector<4x256xi1>
    %2091 = arith.select %2090, %2085, %2086 : vector<4x256xi1>, vector<4x256xf32>
    %cst_999 = arith.constant 0.000000e+00 : f32
    %2092 = vector.shape_cast %2080 : vector<1x256xi1> to vector<1x256xi1>
    %2093 = vector.broadcast %2092 : vector<1x256xi1> to vector<4x256xi1>
    %2094 = vector.broadcast %cst_999 : f32 to vector<4x256xf32>
    %2095 = arith.select %2093, %2091, %2094 : vector<4x256xi1>, vector<4x256xf32>
    %c2_1000 = arith.constant 2 : index
    %c0_1001 = arith.constant 0 : index
    %c0_1002 = arith.constant 0 : index
    %2096 = vector.load %arg16[%c2_1000, %c0_1001, %c0_1002] : memref<9x4x4xf32, #tpu.memory_space<vmem>>, vector<1x4x4xf32>
    %2097 = vector.shape_cast %2096 : vector<1x4x4xf32> to vector<4x4xf32>
    %cst_1003 = arith.constant dense<0.000000e+00> : vector<4x256xf32>
    %2098 = tpu.matmul %2097, %2095, %cst_1003 {dimension_numbers = #tpu.dot_dimension_numbers<[1], [0], [0], [1], [0, 0, 1, 1], [], []>} : vector<4x4xf32>, vector<4x256xf32>, vector<4x256xf32> -> vector<4x256xf32>
    %2099 = arith.addf %2060, %2098 : vector<4x256xf32>
    %2100 = tpu.iota {dimensions = array<i32: 1>} : vector<1x256xi32>
    %c15_i32_1004 = arith.constant 15 : i32
    %2101 = vector.broadcast %c15_i32_1004 : i32 to vector<1x256xi32>
    %2102 = arith.andi %2100, %2101 : vector<1x256xi32>
    %c-1_i32_1005 = arith.constant -1 : i32
    %2103 = vector.broadcast %c-1_i32_1005 : i32 to vector<1x256xi32>
    %2104 = arith.addi %2100, %2103 : vector<1x256xi32>
    %c0_i32_1006 = arith.constant 0 : i32
    %2105 = vector.broadcast %c0_i32_1006 : i32 to vector<1x256xi32>
    %2106 = arith.cmpi sge, %2104, %2105 : vector<1x256xi32>
    %c256_i32_1007 = arith.constant 256 : i32
    %2107 = vector.broadcast %c256_i32_1007 : i32 to vector<1x256xi32>
    %2108 = arith.cmpi slt, %2104, %2107 : vector<1x256xi32>
    %2109 = arith.andi %2106, %2108 : vector<1x256xi1>
    %c-1_i32_1008 = arith.constant -1 : i32
    %2110 = vector.broadcast %c-1_i32_1008 : i32 to vector<1x256xi32>
    %2111 = arith.addi %2102, %2110 : vector<1x256xi32>
    %c0_i32_1009 = arith.constant 0 : i32
    %2112 = vector.broadcast %c0_i32_1009 : i32 to vector<1x256xi32>
    %2113 = arith.cmpi sge, %2111, %2112 : vector<1x256xi32>
    %2114 = arith.andi %2109, %2113 : vector<1x256xi1>
    %c-1_i32_1010 = arith.constant -1 : i32
    %2115 = vector.broadcast %c-1_i32_1010 : i32 to vector<1x256xi32>
    %2116 = arith.addi %2102, %2115 : vector<1x256xi32>
    %c16_i32_1011 = arith.constant 16 : i32
    %2117 = vector.broadcast %c16_i32_1011 : i32 to vector<1x256xi32>
    %2118 = arith.cmpi slt, %2116, %2117 : vector<1x256xi32>
    %2119 = arith.andi %2114, %2118 : vector<1x256xi1>
    %c256_i32_1012 = arith.constant 256 : i32
    %2120 = vector.broadcast %c256_i32_1012 : i32 to vector<1x256xi32>
    %2121 = arith.addi %2104, %2120 : vector<1x256xi32>
    %c255_i32_1013 = arith.constant 255 : i32
    %2122 = vector.broadcast %c255_i32_1013 : i32 to vector<1x256xi32>
    %2123 = arith.andi %2121, %2122 : vector<1x256xi32>
    %c1_i32_1014 = arith.constant 1 : i32
    %2124 = tpu.dynamic_rotate %1981 by %c1_i32_1014 dim 1 : vector<4x256xf32>, i32 -> vector<4x256xf32>
    %c255_i32_1015 = arith.constant 255 : i32
    %2125 = tpu.dynamic_rotate %1981 by %c255_i32_1015 dim 1 : vector<4x256xf32>, i32 -> vector<4x256xf32>
    %c1_i32_1016 = arith.constant 1 : i32
    %2126 = tpu.dynamic_rotate %2100 by %c1_i32_1016 dim 1 : vector<1x256xi32>, i32 -> vector<1x256xi32>
    %2127 = arith.cmpi eq, %2126, %2123 : vector<1x256xi32>
    %2128 = vector.shape_cast %2127 : vector<1x256xi1> to vector<1x256xi1>
    %2129 = vector.broadcast %2128 : vector<1x256xi1> to vector<4x256xi1>
    %2130 = arith.select %2129, %2124, %2125 : vector<4x256xi1>, vector<4x256xf32>
    %cst_1017 = arith.constant 0.000000e+00 : f32
    %2131 = vector.shape_cast %2119 : vector<1x256xi1> to vector<1x256xi1>
    %2132 = vector.broadcast %2131 : vector<1x256xi1> to vector<4x256xi1>
    %2133 = vector.broadcast %cst_1017 : f32 to vector<4x256xf32>
    %2134 = arith.select %2132, %2130, %2133 : vector<4x256xi1>, vector<4x256xf32>
    %c3_1018 = arith.constant 3 : index
    %c0_1019 = arith.constant 0 : index
    %c0_1020 = arith.constant 0 : index
    %2135 = vector.load %arg16[%c3_1018, %c0_1019, %c0_1020] : memref<9x4x4xf32, #tpu.memory_space<vmem>>, vector<1x4x4xf32>
    %2136 = vector.shape_cast %2135 : vector<1x4x4xf32> to vector<4x4xf32>
    %cst_1021 = arith.constant dense<0.000000e+00> : vector<4x256xf32>
    %2137 = tpu.matmul %2136, %2134, %cst_1021 {dimension_numbers = #tpu.dot_dimension_numbers<[1], [0], [0], [1], [0, 0, 1, 1], [], []>} : vector<4x4xf32>, vector<4x256xf32>, vector<4x256xf32> -> vector<4x256xf32>
    %2138 = arith.addf %2099, %2137 : vector<4x256xf32>
    %c4_1022 = arith.constant 4 : index
    %c0_1023 = arith.constant 0 : index
    %c0_1024 = arith.constant 0 : index
    %2139 = vector.load %arg16[%c4_1022, %c0_1023, %c0_1024] : memref<9x4x4xf32, #tpu.memory_space<vmem>>, vector<1x4x4xf32>
    %2140 = vector.shape_cast %2139 : vector<1x4x4xf32> to vector<4x4xf32>
    %cst_1025 = arith.constant dense<0.000000e+00> : vector<4x256xf32>
    %2141 = tpu.matmul %2140, %1981, %cst_1025 {dimension_numbers = #tpu.dot_dimension_numbers<[1], [0], [0], [1], [0, 0, 1, 1], [], []>} : vector<4x4xf32>, vector<4x256xf32>, vector<4x256xf32> -> vector<4x256xf32>
    %2142 = arith.addf %2138, %2141 : vector<4x256xf32>
    %2143 = tpu.iota {dimensions = array<i32: 1>} : vector<1x256xi32>
    %c15_i32_1026 = arith.constant 15 : i32
    %2144 = vector.broadcast %c15_i32_1026 : i32 to vector<1x256xi32>
    %2145 = arith.andi %2143, %2144 : vector<1x256xi32>
    %c1_i32_1027 = arith.constant 1 : i32
    %2146 = vector.broadcast %c1_i32_1027 : i32 to vector<1x256xi32>
    %2147 = arith.addi %2143, %2146 : vector<1x256xi32>
    %c0_i32_1028 = arith.constant 0 : i32
    %2148 = vector.broadcast %c0_i32_1028 : i32 to vector<1x256xi32>
    %2149 = arith.cmpi sge, %2147, %2148 : vector<1x256xi32>
    %c256_i32_1029 = arith.constant 256 : i32
    %2150 = vector.broadcast %c256_i32_1029 : i32 to vector<1x256xi32>
    %2151 = arith.cmpi slt, %2147, %2150 : vector<1x256xi32>
    %2152 = arith.andi %2149, %2151 : vector<1x256xi1>
    %c1_i32_1030 = arith.constant 1 : i32
    %2153 = vector.broadcast %c1_i32_1030 : i32 to vector<1x256xi32>
    %2154 = arith.addi %2145, %2153 : vector<1x256xi32>
    %c0_i32_1031 = arith.constant 0 : i32
    %2155 = vector.broadcast %c0_i32_1031 : i32 to vector<1x256xi32>
    %2156 = arith.cmpi sge, %2154, %2155 : vector<1x256xi32>
    %2157 = arith.andi %2152, %2156 : vector<1x256xi1>
    %c1_i32_1032 = arith.constant 1 : i32
    %2158 = vector.broadcast %c1_i32_1032 : i32 to vector<1x256xi32>
    %2159 = arith.addi %2145, %2158 : vector<1x256xi32>
    %c16_i32_1033 = arith.constant 16 : i32
    %2160 = vector.broadcast %c16_i32_1033 : i32 to vector<1x256xi32>
    %2161 = arith.cmpi slt, %2159, %2160 : vector<1x256xi32>
    %2162 = arith.andi %2157, %2161 : vector<1x256xi1>
    %c256_i32_1034 = arith.constant 256 : i32
    %2163 = vector.broadcast %c256_i32_1034 : i32 to vector<1x256xi32>
    %2164 = arith.addi %2147, %2163 : vector<1x256xi32>
    %c255_i32_1035 = arith.constant 255 : i32
    %2165 = vector.broadcast %c255_i32_1035 : i32 to vector<1x256xi32>
    %2166 = arith.andi %2164, %2165 : vector<1x256xi32>
    %c255_i32_1036 = arith.constant 255 : i32
    %2167 = tpu.dynamic_rotate %1981 by %c255_i32_1036 dim 1 : vector<4x256xf32>, i32 -> vector<4x256xf32>
    %c1_i32_1037 = arith.constant 1 : i32
    %2168 = tpu.dynamic_rotate %1981 by %c1_i32_1037 dim 1 : vector<4x256xf32>, i32 -> vector<4x256xf32>
    %c255_i32_1038 = arith.constant 255 : i32
    %2169 = tpu.dynamic_rotate %2143 by %c255_i32_1038 dim 1 : vector<1x256xi32>, i32 -> vector<1x256xi32>
    %2170 = arith.cmpi eq, %2169, %2166 : vector<1x256xi32>
    %2171 = vector.shape_cast %2170 : vector<1x256xi1> to vector<1x256xi1>
    %2172 = vector.broadcast %2171 : vector<1x256xi1> to vector<4x256xi1>
    %2173 = arith.select %2172, %2167, %2168 : vector<4x256xi1>, vector<4x256xf32>
    %cst_1039 = arith.constant 0.000000e+00 : f32
    %2174 = vector.shape_cast %2162 : vector<1x256xi1> to vector<1x256xi1>
    %2175 = vector.broadcast %2174 : vector<1x256xi1> to vector<4x256xi1>
    %2176 = vector.broadcast %cst_1039 : f32 to vector<4x256xf32>
    %2177 = arith.select %2175, %2173, %2176 : vector<4x256xi1>, vector<4x256xf32>
    %c5_1040 = arith.constant 5 : index
    %c0_1041 = arith.constant 0 : index
    %c0_1042 = arith.constant 0 : index
    %2178 = vector.load %arg16[%c5_1040, %c0_1041, %c0_1042] : memref<9x4x4xf32, #tpu.memory_space<vmem>>, vector<1x4x4xf32>
    %2179 = vector.shape_cast %2178 : vector<1x4x4xf32> to vector<4x4xf32>
    %cst_1043 = arith.constant dense<0.000000e+00> : vector<4x256xf32>
    %2180 = tpu.matmul %2179, %2177, %cst_1043 {dimension_numbers = #tpu.dot_dimension_numbers<[1], [0], [0], [1], [0, 0, 1, 1], [], []>} : vector<4x4xf32>, vector<4x256xf32>, vector<4x256xf32> -> vector<4x256xf32>
    %2181 = arith.addf %2142, %2180 : vector<4x256xf32>
    %2182 = tpu.iota {dimensions = array<i32: 1>} : vector<1x256xi32>
    %c15_i32_1044 = arith.constant 15 : i32
    %2183 = vector.broadcast %c15_i32_1044 : i32 to vector<1x256xi32>
    %2184 = arith.andi %2182, %2183 : vector<1x256xi32>
    %c15_i32_1045 = arith.constant 15 : i32
    %2185 = vector.broadcast %c15_i32_1045 : i32 to vector<1x256xi32>
    %2186 = arith.addi %2182, %2185 : vector<1x256xi32>
    %c0_i32_1046 = arith.constant 0 : i32
    %2187 = vector.broadcast %c0_i32_1046 : i32 to vector<1x256xi32>
    %2188 = arith.cmpi sge, %2186, %2187 : vector<1x256xi32>
    %c256_i32_1047 = arith.constant 256 : i32
    %2189 = vector.broadcast %c256_i32_1047 : i32 to vector<1x256xi32>
    %2190 = arith.cmpi slt, %2186, %2189 : vector<1x256xi32>
    %2191 = arith.andi %2188, %2190 : vector<1x256xi1>
    %c-1_i32_1048 = arith.constant -1 : i32
    %2192 = vector.broadcast %c-1_i32_1048 : i32 to vector<1x256xi32>
    %2193 = arith.addi %2184, %2192 : vector<1x256xi32>
    %c0_i32_1049 = arith.constant 0 : i32
    %2194 = vector.broadcast %c0_i32_1049 : i32 to vector<1x256xi32>
    %2195 = arith.cmpi sge, %2193, %2194 : vector<1x256xi32>
    %2196 = arith.andi %2191, %2195 : vector<1x256xi1>
    %c-1_i32_1050 = arith.constant -1 : i32
    %2197 = vector.broadcast %c-1_i32_1050 : i32 to vector<1x256xi32>
    %2198 = arith.addi %2184, %2197 : vector<1x256xi32>
    %c16_i32_1051 = arith.constant 16 : i32
    %2199 = vector.broadcast %c16_i32_1051 : i32 to vector<1x256xi32>
    %2200 = arith.cmpi slt, %2198, %2199 : vector<1x256xi32>
    %2201 = arith.andi %2196, %2200 : vector<1x256xi1>
    %c256_i32_1052 = arith.constant 256 : i32
    %2202 = vector.broadcast %c256_i32_1052 : i32 to vector<1x256xi32>
    %2203 = arith.addi %2186, %2202 : vector<1x256xi32>
    %c255_i32_1053 = arith.constant 255 : i32
    %2204 = vector.broadcast %c255_i32_1053 : i32 to vector<1x256xi32>
    %2205 = arith.andi %2203, %2204 : vector<1x256xi32>
    %c241_i32_1054 = arith.constant 241 : i32
    %2206 = tpu.dynamic_rotate %1981 by %c241_i32_1054 dim 1 : vector<4x256xf32>, i32 -> vector<4x256xf32>
    %c15_i32_1055 = arith.constant 15 : i32
    %2207 = tpu.dynamic_rotate %1981 by %c15_i32_1055 dim 1 : vector<4x256xf32>, i32 -> vector<4x256xf32>
    %c241_i32_1056 = arith.constant 241 : i32
    %2208 = tpu.dynamic_rotate %2182 by %c241_i32_1056 dim 1 : vector<1x256xi32>, i32 -> vector<1x256xi32>
    %2209 = arith.cmpi eq, %2208, %2205 : vector<1x256xi32>
    %2210 = vector.shape_cast %2209 : vector<1x256xi1> to vector<1x256xi1>
    %2211 = vector.broadcast %2210 : vector<1x256xi1> to vector<4x256xi1>
    %2212 = arith.select %2211, %2206, %2207 : vector<4x256xi1>, vector<4x256xf32>
    %cst_1057 = arith.constant 0.000000e+00 : f32
    %2213 = vector.shape_cast %2201 : vector<1x256xi1> to vector<1x256xi1>
    %2214 = vector.broadcast %2213 : vector<1x256xi1> to vector<4x256xi1>
    %2215 = vector.broadcast %cst_1057 : f32 to vector<4x256xf32>
    %2216 = arith.select %2214, %2212, %2215 : vector<4x256xi1>, vector<4x256xf32>
    %c6_1058 = arith.constant 6 : index
    %c0_1059 = arith.constant 0 : index
    %c0_1060 = arith.constant 0 : index
    %2217 = vector.load %arg16[%c6_1058, %c0_1059, %c0_1060] : memref<9x4x4xf32, #tpu.memory_space<vmem>>, vector<1x4x4xf32>
    %2218 = vector.shape_cast %2217 : vector<1x4x4xf32> to vector<4x4xf32>
    %cst_1061 = arith.constant dense<0.000000e+00> : vector<4x256xf32>
    %2219 = tpu.matmul %2218, %2216, %cst_1061 {dimension_numbers = #tpu.dot_dimension_numbers<[1], [0], [0], [1], [0, 0, 1, 1], [], []>} : vector<4x4xf32>, vector<4x256xf32>, vector<4x256xf32> -> vector<4x256xf32>
    %2220 = arith.addf %2181, %2219 : vector<4x256xf32>
    %2221 = tpu.iota {dimensions = array<i32: 1>} : vector<1x256xi32>
    %c15_i32_1062 = arith.constant 15 : i32
    %2222 = vector.broadcast %c15_i32_1062 : i32 to vector<1x256xi32>
    %2223 = arith.andi %2221, %2222 : vector<1x256xi32>
    %c16_i32_1063 = arith.constant 16 : i32
    %2224 = vector.broadcast %c16_i32_1063 : i32 to vector<1x256xi32>
    %2225 = arith.addi %2221, %2224 : vector<1x256xi32>
    %c0_i32_1064 = arith.constant 0 : i32
    %2226 = vector.broadcast %c0_i32_1064 : i32 to vector<1x256xi32>
    %2227 = arith.cmpi sge, %2225, %2226 : vector<1x256xi32>
    %c256_i32_1065 = arith.constant 256 : i32
    %2228 = vector.broadcast %c256_i32_1065 : i32 to vector<1x256xi32>
    %2229 = arith.cmpi slt, %2225, %2228 : vector<1x256xi32>
    %2230 = arith.andi %2227, %2229 : vector<1x256xi1>
    %c0_i32_1066 = arith.constant 0 : i32
    %2231 = vector.broadcast %c0_i32_1066 : i32 to vector<1x256xi32>
    %2232 = arith.addi %2223, %2231 : vector<1x256xi32>
    %c0_i32_1067 = arith.constant 0 : i32
    %2233 = vector.broadcast %c0_i32_1067 : i32 to vector<1x256xi32>
    %2234 = arith.cmpi sge, %2232, %2233 : vector<1x256xi32>
    %2235 = arith.andi %2230, %2234 : vector<1x256xi1>
    %c0_i32_1068 = arith.constant 0 : i32
    %2236 = vector.broadcast %c0_i32_1068 : i32 to vector<1x256xi32>
    %2237 = arith.addi %2223, %2236 : vector<1x256xi32>
    %c16_i32_1069 = arith.constant 16 : i32
    %2238 = vector.broadcast %c16_i32_1069 : i32 to vector<1x256xi32>
    %2239 = arith.cmpi slt, %2237, %2238 : vector<1x256xi32>
    %2240 = arith.andi %2235, %2239 : vector<1x256xi1>
    %c256_i32_1070 = arith.constant 256 : i32
    %2241 = vector.broadcast %c256_i32_1070 : i32 to vector<1x256xi32>
    %2242 = arith.addi %2225, %2241 : vector<1x256xi32>
    %c255_i32_1071 = arith.constant 255 : i32
    %2243 = vector.broadcast %c255_i32_1071 : i32 to vector<1x256xi32>
    %2244 = arith.andi %2242, %2243 : vector<1x256xi32>
    %c240_i32_1072 = arith.constant 240 : i32
    %2245 = tpu.dynamic_rotate %1981 by %c240_i32_1072 dim 1 : vector<4x256xf32>, i32 -> vector<4x256xf32>
    %c16_i32_1073 = arith.constant 16 : i32
    %2246 = tpu.dynamic_rotate %1981 by %c16_i32_1073 dim 1 : vector<4x256xf32>, i32 -> vector<4x256xf32>
    %c240_i32_1074 = arith.constant 240 : i32
    %2247 = tpu.dynamic_rotate %2221 by %c240_i32_1074 dim 1 : vector<1x256xi32>, i32 -> vector<1x256xi32>
    %2248 = arith.cmpi eq, %2247, %2244 : vector<1x256xi32>
    %2249 = vector.shape_cast %2248 : vector<1x256xi1> to vector<1x256xi1>
    %2250 = vector.broadcast %2249 : vector<1x256xi1> to vector<4x256xi1>
    %2251 = arith.select %2250, %2245, %2246 : vector<4x256xi1>, vector<4x256xf32>
    %cst_1075 = arith.constant 0.000000e+00 : f32
    %2252 = vector.shape_cast %2240 : vector<1x256xi1> to vector<1x256xi1>
    %2253 = vector.broadcast %2252 : vector<1x256xi1> to vector<4x256xi1>
    %2254 = vector.broadcast %cst_1075 : f32 to vector<4x256xf32>
    %2255 = arith.select %2253, %2251, %2254 : vector<4x256xi1>, vector<4x256xf32>
    %c7_1076 = arith.constant 7 : index
    %c0_1077 = arith.constant 0 : index
    %c0_1078 = arith.constant 0 : index
    %2256 = vector.load %arg16[%c7_1076, %c0_1077, %c0_1078] : memref<9x4x4xf32, #tpu.memory_space<vmem>>, vector<1x4x4xf32>
    %2257 = vector.shape_cast %2256 : vector<1x4x4xf32> to vector<4x4xf32>
    %cst_1079 = arith.constant dense<0.000000e+00> : vector<4x256xf32>
    %2258 = tpu.matmul %2257, %2255, %cst_1079 {dimension_numbers = #tpu.dot_dimension_numbers<[1], [0], [0], [1], [0, 0, 1, 1], [], []>} : vector<4x4xf32>, vector<4x256xf32>, vector<4x256xf32> -> vector<4x256xf32>
    %2259 = arith.addf %2220, %2258 : vector<4x256xf32>
    %2260 = tpu.iota {dimensions = array<i32: 1>} : vector<1x256xi32>
    %c15_i32_1080 = arith.constant 15 : i32
    %2261 = vector.broadcast %c15_i32_1080 : i32 to vector<1x256xi32>
    %2262 = arith.andi %2260, %2261 : vector<1x256xi32>
    %c17_i32_1081 = arith.constant 17 : i32
    %2263 = vector.broadcast %c17_i32_1081 : i32 to vector<1x256xi32>
    %2264 = arith.addi %2260, %2263 : vector<1x256xi32>
    %c0_i32_1082 = arith.constant 0 : i32
    %2265 = vector.broadcast %c0_i32_1082 : i32 to vector<1x256xi32>
    %2266 = arith.cmpi sge, %2264, %2265 : vector<1x256xi32>
    %c256_i32_1083 = arith.constant 256 : i32
    %2267 = vector.broadcast %c256_i32_1083 : i32 to vector<1x256xi32>
    %2268 = arith.cmpi slt, %2264, %2267 : vector<1x256xi32>
    %2269 = arith.andi %2266, %2268 : vector<1x256xi1>
    %c1_i32_1084 = arith.constant 1 : i32
    %2270 = vector.broadcast %c1_i32_1084 : i32 to vector<1x256xi32>
    %2271 = arith.addi %2262, %2270 : vector<1x256xi32>
    %c0_i32_1085 = arith.constant 0 : i32
    %2272 = vector.broadcast %c0_i32_1085 : i32 to vector<1x256xi32>
    %2273 = arith.cmpi sge, %2271, %2272 : vector<1x256xi32>
    %2274 = arith.andi %2269, %2273 : vector<1x256xi1>
    %c1_i32_1086 = arith.constant 1 : i32
    %2275 = vector.broadcast %c1_i32_1086 : i32 to vector<1x256xi32>
    %2276 = arith.addi %2262, %2275 : vector<1x256xi32>
    %c16_i32_1087 = arith.constant 16 : i32
    %2277 = vector.broadcast %c16_i32_1087 : i32 to vector<1x256xi32>
    %2278 = arith.cmpi slt, %2276, %2277 : vector<1x256xi32>
    %2279 = arith.andi %2274, %2278 : vector<1x256xi1>
    %c256_i32_1088 = arith.constant 256 : i32
    %2280 = vector.broadcast %c256_i32_1088 : i32 to vector<1x256xi32>
    %2281 = arith.addi %2264, %2280 : vector<1x256xi32>
    %c255_i32_1089 = arith.constant 255 : i32
    %2282 = vector.broadcast %c255_i32_1089 : i32 to vector<1x256xi32>
    %2283 = arith.andi %2281, %2282 : vector<1x256xi32>
    %c239_i32_1090 = arith.constant 239 : i32
    %2284 = tpu.dynamic_rotate %1981 by %c239_i32_1090 dim 1 : vector<4x256xf32>, i32 -> vector<4x256xf32>
    %c17_i32_1091 = arith.constant 17 : i32
    %2285 = tpu.dynamic_rotate %1981 by %c17_i32_1091 dim 1 : vector<4x256xf32>, i32 -> vector<4x256xf32>
    %c239_i32_1092 = arith.constant 239 : i32
    %2286 = tpu.dynamic_rotate %2260 by %c239_i32_1092 dim 1 : vector<1x256xi32>, i32 -> vector<1x256xi32>
    %2287 = arith.cmpi eq, %2286, %2283 : vector<1x256xi32>
    %2288 = vector.shape_cast %2287 : vector<1x256xi1> to vector<1x256xi1>
    %2289 = vector.broadcast %2288 : vector<1x256xi1> to vector<4x256xi1>
    %2290 = arith.select %2289, %2284, %2285 : vector<4x256xi1>, vector<4x256xf32>
    %cst_1093 = arith.constant 0.000000e+00 : f32
    %2291 = vector.shape_cast %2279 : vector<1x256xi1> to vector<1x256xi1>
    %2292 = vector.broadcast %2291 : vector<1x256xi1> to vector<4x256xi1>
    %2293 = vector.broadcast %cst_1093 : f32 to vector<4x256xf32>
    %2294 = arith.select %2292, %2290, %2293 : vector<4x256xi1>, vector<4x256xf32>
    %c8_1094 = arith.constant 8 : index
    %c0_1095 = arith.constant 0 : index
    %c0_1096 = arith.constant 0 : index
    %2295 = vector.load %arg16[%c8_1094, %c0_1095, %c0_1096] : memref<9x4x4xf32, #tpu.memory_space<vmem>>, vector<1x4x4xf32>
    %2296 = vector.shape_cast %2295 : vector<1x4x4xf32> to vector<4x4xf32>
    %cst_1097 = arith.constant dense<0.000000e+00> : vector<4x256xf32>
    %2297 = tpu.matmul %2296, %2294, %cst_1097 {dimension_numbers = #tpu.dot_dimension_numbers<[1], [0], [0], [1], [0, 0, 1, 1], [], []>} : vector<4x4xf32>, vector<4x256xf32>, vector<4x256xf32> -> vector<4x256xf32>
    %2298 = arith.addf %2259, %2297 : vector<4x256xf32>
    %2299 = vector.broadcast %1963 : vector<4x1xf32> to vector<4x256xf32>
    %2300 = arith.addf %2298, %2299 : vector<4x256xf32>
    %cst_1098 = arith.constant 0.000000e+00 : f32
    %2301 = vector.broadcast %cst_1098 : f32 to vector<4x256xf32>
    %2302 = arith.maximumf %2300, %2301 : vector<4x256xf32>
    %c0_1099 = arith.constant 0 : index
    %c0_1100 = arith.constant 0 : index
    %2303 = vector.load %arg19[%c0_1099, %c0_1100] : memref<1x1xf32, #tpu.memory_space<vmem>>, vector<1x1xf32>
    %c0_1101 = arith.constant 0 : index
    %c0_1102 = arith.constant 0 : index
    %c0_1103 = arith.constant 0 : index
    %2304 = vector.load %arg18[%c0_1101, %c0_1102, %c0_1103] : memref<1x1x4xf32, #tpu.memory_space<vmem>>, vector<1x1x4xf32>
    %2305 = vector.shape_cast %2304 : vector<1x1x4xf32> to vector<1x4xf32>
    %cst_1104 = arith.constant dense<0.000000e+00> : vector<1x256xf32>
    %2306 = tpu.matmul %2305, %2302, %cst_1104 {dimension_numbers = #tpu.dot_dimension_numbers<[1], [0], [0], [1], [0, 0, 1, 1], [], []>} : vector<1x4xf32>, vector<4x256xf32>, vector<1x256xf32> -> vector<1x256xf32>
    %2307 = vector.broadcast %2303 : vector<1x1xf32> to vector<1x256xf32>
    %2308 = arith.addf %2306, %2307 : vector<1x256xf32>
    %2309 = vector.shape_cast %2308 : vector<1x256xf32> to vector<1x1x256xf32>
    %c0_1105 = arith.constant 0 : index
    %c0_1106 = arith.constant 0 : index
    %c0_1107 = arith.constant 0 : index
    %2310 = vector.load %arg20[%c0_1105, %c0_1106, %c0_1107] : memref<1x1x256xf32, #tpu.memory_space<vmem>>, vector<1x1x256xf32>
    tpu.vector_store %arg20[%c0_1105, %c0_1106, %c0_1107], %2309 {strides = array<i32>} : memref<1x1x256xf32, #tpu.memory_space<vmem>>, vector<1x1x256xf32>,
    return
  }
  func.func @transform_0(%arg0: i32) -> (i32, i32, i32) {
    %c0_i32 = arith.constant 0 : i32
    %c0_i32_0 = arith.constant 0 : i32
    %c0_i32_1 = arith.constant 0 : i32
    return %arg0, %c0_i32, %c0_i32_0 : i32, i32, i32
  }
  func.func @transform_1(%arg0: i32) -> (i32, i32, i32) {
    %c0_i32 = arith.constant 0 : i32
    %c0_i32_0 = arith.constant 0 : i32
    %c0_i32_1 = arith.constant 0 : i32
    %c0_i32_2 = arith.constant 0 : i32
    return %c0_i32, %c0_i32_0, %c0_i32_1 : i32, i32, i32
  }
  func.func @transform_2(%arg0: i32) -> (i32, i32) {
    %c0_i32 = arith.constant 0 : i32
    %c0_i32_0 = arith.constant 0 : i32
    %c0_i32_1 = arith.constant 0 : i32
    return %c0_i32, %c0_i32_0 : i32, i32
  }
  func.func @transform_3(%arg0: i32) -> (i32, i32, i32) {
    %c0_i32 = arith.constant 0 : i32
    %c0_i32_0 = arith.constant 0 : i32
    %c0_i32_1 = arith.constant 0 : i32
    %c0_i32_2 = arith.constant 0 : i32
    return %c0_i32, %c0_i32_0, %c0_i32_1 : i32, i32, i32
  }
  func.func @transform_4(%arg0: i32) -> (i32, i32) {
    %c0_i32 = arith.constant 0 : i32
    %c0_i32_0 = arith.constant 0 : i32
    %c0_i32_1 = arith.constant 0 : i32
    return %c0_i32, %c0_i32_0 : i32, i32
  }
  func.func @transform_5(%arg0: i32) -> (i32, i32, i32) {
    %c0_i32 = arith.constant 0 : i32
    %c0_i32_0 = arith.constant 0 : i32
    %c0_i32_1 = arith.constant 0 : i32
    %c0_i32_2 = arith.constant 0 : i32
    return %c0_i32, %c0_i32_0, %c0_i32_1 : i32, i32, i32
  }
  func.func @transform_6(%arg0: i32) -> (i32, i32) {
    %c0_i32 = arith.constant 0 : i32
    %c0_i32_0 = arith.constant 0 : i32
    %c0_i32_1 = arith.constant 0 : i32
    return %c0_i32, %c0_i32_0 : i32, i32
  }
  func.func @transform_7(%arg0: i32) -> (i32, i32, i32) {
    %c0_i32 = arith.constant 0 : i32
    %c0_i32_0 = arith.constant 0 : i32
    %c0_i32_1 = arith.constant 0 : i32
    %c0_i32_2 = arith.constant 0 : i32
    return %c0_i32, %c0_i32_0, %c0_i32_1 : i32, i32, i32
  }
  func.func @transform_8(%arg0: i32) -> (i32, i32) {
    %c0_i32 = arith.constant 0 : i32
    %c0_i32_0 = arith.constant 0 : i32
    %c0_i32_1 = arith.constant 0 : i32
    return %c0_i32, %c0_i32_0 : i32, i32
  }
  func.func @transform_9(%arg0: i32) -> (i32, i32, i32) {
    %c0_i32 = arith.constant 0 : i32
    %c0_i32_0 = arith.constant 0 : i32
    %c0_i32_1 = arith.constant 0 : i32
    %c0_i32_2 = arith.constant 0 : i32
    return %c0_i32, %c0_i32_0, %c0_i32_1 : i32, i32, i32
  }
  func.func @transform_10(%arg0: i32) -> (i32, i32) {
    %c0_i32 = arith.constant 0 : i32
    %c0_i32_0 = arith.constant 0 : i32
    %c0_i32_1 = arith.constant 0 : i32
    return %c0_i32, %c0_i32_0 : i32, i32
  }
  func.func @transform_11(%arg0: i32) -> (i32, i32, i32) {
    %c0_i32 = arith.constant 0 : i32
    %c0_i32_0 = arith.constant 0 : i32
    %c0_i32_1 = arith.constant 0 : i32
    %c0_i32_2 = arith.constant 0 : i32
    return %c0_i32, %c0_i32_0, %c0_i32_1 : i32, i32, i32
  }
  func.func @transform_12(%arg0: i32) -> (i32, i32) {
    %c0_i32 = arith.constant 0 : i32
    %c0_i32_0 = arith.constant 0 : i32
    %c0_i32_1 = arith.constant 0 : i32
    return %c0_i32, %c0_i32_0 : i32, i32
  }
  func.func @transform_13(%arg0: i32) -> (i32, i32, i32) {
    %c0_i32 = arith.constant 0 : i32
    %c0_i32_0 = arith.constant 0 : i32
    %c0_i32_1 = arith.constant 0 : i32
    %c0_i32_2 = arith.constant 0 : i32
    return %c0_i32, %c0_i32_0, %c0_i32_1 : i32, i32, i32
  }
  func.func @transform_14(%arg0: i32) -> (i32, i32) {
    %c0_i32 = arith.constant 0 : i32
    %c0_i32_0 = arith.constant 0 : i32
    %c0_i32_1 = arith.constant 0 : i32
    return %c0_i32, %c0_i32_0 : i32, i32
  }
  func.func @transform_15(%arg0: i32) -> (i32, i32, i32) {
    %c0_i32 = arith.constant 0 : i32
    %c0_i32_0 = arith.constant 0 : i32
    %c0_i32_1 = arith.constant 0 : i32
    %c0_i32_2 = arith.constant 0 : i32
    return %c0_i32, %c0_i32_0, %c0_i32_1 : i32, i32, i32
  }
  func.func @transform_16(%arg0: i32) -> (i32, i32) {
    %c0_i32 = arith.constant 0 : i32
    %c0_i32_0 = arith.constant 0 : i32
    %c0_i32_1 = arith.constant 0 : i32
    return %c0_i32, %c0_i32_0 : i32, i32
  }
  func.func @transform_17(%arg0: i32) -> (i32, i32, i32) {
    %c0_i32 = arith.constant 0 : i32
    %c0_i32_0 = arith.constant 0 : i32
    %c0_i32_1 = arith.constant 0 : i32
    %c0_i32_2 = arith.constant 0 : i32
    return %c0_i32, %c0_i32_0, %c0_i32_1 : i32, i32, i32
  }
  func.func @transform_18(%arg0: i32) -> (i32, i32) {
    %c0_i32 = arith.constant 0 : i32
    %c0_i32_0 = arith.constant 0 : i32
    %c0_i32_1 = arith.constant 0 : i32
    return %c0_i32, %c0_i32_0 : i32, i32
  }
  func.func @transform_19(%arg0: i32) -> (i32, i32, i32) {
    %c0_i32 = arith.constant 0 : i32
    %c0_i32_0 = arith.constant 0 : i32
    %c0_i32_1 = arith.constant 0 : i32
    return %arg0, %c0_i32, %c0_i32_0 : i32, i32, i32
  }
}

</mosaic_0001>

<bundles_post_ra>
// kernel: autoencoder_cab_forward.1
= control target key start
LH: loop header
LB: loop body
LE: loop exit
PB: predicated region body
PF: predicated region fallthrough
CT: control target
= control target key end

     0   :  { %s8172_s20 = smov 0   ;;  %s12126_s0 = inlined_call_operand.vmem [shape: f32[2,1,256], index: 0, kind: input, shape index: {}]   ;;  %s12127_s1 = inlined_call_operand.vmem [shape: f32[9,4,1], index: 1, kind: input, shape index: {}]   ;;  %s12128_s2 = inlined_call_operand.vmem [shape: f32[4,1], index: 2, kind: input, shape index: {}]   ;;  %s12129_s3 = inlined_call_operand.vmem [shape: f32[9,16,4], index: 3, kind: input, shape index: {}]   ;;  %s12130_s4 = inlined_call_operand.vmem [shape: f32[16,1], index: 4, kind: input, shape index: {}]   ;;  %s12131_s5 = inlined_call_operand.vmem [shape: f32[9,32,16], index: 5, kind: input, shape index: {}]   ;;  %s12132_s6 = inlined_call_operand.vmem [shape: f32[32,1], index: 6, kind: input, shape index: {}]   ;;  %s12133_s7 = inlined_call_operand.vmem [shape: f32[9,64,32], index: 7, kind: input, shape index: {}]   ;;  %s12134_s8 = inlined_call_operand.vmem [shape: f32[64,1], index: 8, kind: input, shape index: {}]   ;;  %s12135_s9 = inlined_call_operand.vmem [shape: f32[9,32,64], index: 9, kind: input, shape index: {}]   ;;  %s12136_s10 = inlined_call_operand.vmem [shape: f32[32,1], index: 10, kind: input, shape index: {}]   ;;  %s12137_s11 = inlined_call_operand.vmem [shape: f32[9,16,32], index: 11, kind: input, shape index: {}]   ;;  %s12138_s12 = inlined_call_operand.vmem [shape: f32[16,1], index: 12, kind: input, shape index: {}]   ;;  %s12139_s13 = inlined_call_operand.vmem [shape: f32[9,4,16], index: 13, kind: input, shape index: {}]   ;;  %s12140_s14 = inlined_call_operand.vmem [shape: f32[4,1], index: 14, kind: input, shape index: {}]   ;;  %s12141_s15 = inlined_call_operand.vmem [shape: f32[9,4,4], index: 15, kind: input, shape index: {}]   ;;  %s12142_s16 = inlined_call_operand.vmem [shape: f32[4,1], index: 16, kind: input, shape index: {}]   ;;  %s12143_s17 = inlined_call_operand.vmem [shape: f32[1,1,4], index: 17, kind: input, shape index: {}]   ;;  %s12144_s18 = inlined_call_operand.<no memory space> [shape: f32[1,1], index: 18, kind: input, shape index: {}]   ;;  %s12145_s19 = inlined_call_operand.vmem [shape: f32[2,1,256], index: 19, kind: output, shape index: {}]  }
   0x1   :  { %12422 = sst [smem:[#allocation112_spill]] %s12126_s0  ;;  %v24_v0 = vstv %s12144_s18 }
   0x2   :  { %12423 = sst [smem:[#allocation113_spill]] %s12127_s1  ;;  %25 = vst [vmem:[#allocation2] sm:$0x1] %v24_v0 }
   0x3   :  { %12424 = sst [smem:[#allocation114_spill]] %s12128_s2 }
   0x4   :  { %12425 = sst [smem:[#allocation115_spill]] %s12129_s3 }
   0x5 LB: > { %s7079_s21 = sadd.s32 4294967295, %s8056_s20   ;;  %p7083_p0 = scmp.ge.s32.totalorder %s8056_s20, 1  ;;  %s8056_s20 = sphi %s8172_s20, %s31_s20  }
   0x6   : > { %p538_p1 = scmp.lt.s32.totalorder %s8056_s20, 3 }
   0x8   : > { %p539_p2 = pnand %p7083_p0, %p538_p1 }
   0xa   : > { %542 = sbr.rel (%p539_p2) target bundleno = 6296 (0x1898), region = 96 }
   0xf   : > { %v12164_v1 = vlaneseq  ;;  %p592_p3 = scmp.lt.s32.totalorder %s7079_s21, 1  ;;  %s12151_s18 = smov 16   ;;  %v12162_v7 = vmov 0   ;;  %v12432_v45 = vmov 0  ;;  %v12435_v46 = vmov 0 }
  0x10   : > { %s12153_s1 = smov 17   ;;  %s12427_s24 = sld [smem:[#allocation112_spill]]  ;;  %8018 = vset.pattern.permute.xlu1 %v12162_v7  ;;  %8017 = vset.pattern.permute.xlu0 %v12162_v7  ;;  %v12438_v53 = vmov 0  ;;  %v12441_v54 = vmov 0 }
  0x11   : > { %v8181_v2 = vand.u32 127, %v12164_v1  ;;  %s13367_s21 = smov (!%p592_p3, %s7079_s21), 1  ;;  %s12198_s3 = smov 111   ;;  %8019 = vset.pattern.permute.xlu2 %v12162_v7 }
  0x12   : > { %s12148_s22 = sshll.u32 %s13367_s21, 1  ;;  %s12420_s26 = smov 112  }
  0x13   : > { %12426 = vst [vmem:[#allocation3_spill] sm:$0xff] %v8181_v2  ;;  %706 = vrot.lane.b32.xlu1 %v8181_v2, %s12151_s18  ;;  %648 = vrot.lane.b32.xlu0 %v8181_v2, %s12153_s1  ;;  %v8198_v5 = vadd.s32 128, %v8181_v2  ;;  %s12149_s27 = smov 15   ;;  %s12200_s28 = smov 113   ;;  %vm12157_vm0 = vcmp.lt.s32.totalorder %v8181_v2, 17  ;;  %v607_v25 = vadd.s32 4294967279, %v8181_v2 }
  0x14   : > { %s12196_s29 = smov 1   ;;  %s12194_s0 = smov 127   ;;  %vm12156_vm1 = vcmp.lt.s32.totalorder %v8181_v2, 16  ;;  %v8316_v36 = vadd.s32 4294967280, %v8181_v2  ;;  %vm12158_vm2 = vcmp.lt.s32.totalorder %v8181_v2, 111  ;;  %vm12159_vm5 = vcmp.lt.s32.totalorder %v8181_v2, 112 }
  0x15   : > { %12428 = vst [vmem:[#allocation4_spill] sm:$0xff] %v8198_v5  ;;  %s12429_s23 = sld [smem:[#allocation113_spill]]  ;;  %v608_v26 = vadd.s32 4294967279, %v8198_v5  ;;  %v625_v29 = vadd.s32 256, %v607_v25  ;;  %v673_v37 = vadd.s32 4294967280, %v8198_v5  ;;  %vm609_vm8 = vcmp.ge.s32.totalorder %v607_v25, 0 }
  0x16   : > { %s595_s25 = scalar_lea.vmem %s12427_s24, %s12148_s22  ;;  %s12430_s22 = sld [smem:[#allocation114_spill]]  ;;  %12431 = vst [vmem:[#allocation5_spill] sm:$0xff] %v8316_v36  ;;  %v688_v41 = vadd.s32 256, %v8316_v36  ;;  %vm12155_vm10 = vcmp.ge.s32.totalorder %v8316_v36, 0  ;;  %vm12160_vm13 = vcmp.lt.s32.totalorder %v8181_v2, 15  ;;  %vm12168_vm14 = vcmp.lt.s32.totalorder %v8181_v2, 113 }
  0x17   : > { %v600_v3 = vld [vmem:[%s595_s25] sm:$0x3]  ;;  %v626_v31 = vadd.s32 256, %v608_v26  ;;  %v627_v38 = vand.u32 255, %v625_v29  ;;  %v689_v42 = vadd.s32 256, %v673_v37  ;;  %s12516_s24 = smov 16  }
  0x18   : > { %v8195_v4 = vperm.slane %v600_v3, 0  ;;  %v8206_v6 = vperm.slane %v600_v3, 1  ;;  %v690_v51 = vand.u32 255, %v688_v41  ;;  %s12588_s25 = sld [smem:[#allocation115_spill]]  ;;  %s13229_s30 = smov 15  }
  0x19   : > { %v628_v39 = vand.u32 255, %v626_v31  ;;  %v691_v52 = vand.u32 255, %v689_v42  ;;  %s13230_s2 = smov 111  }
  0x1a   : > { %634 = vrot.lane.b32.xlu2 %v8195_v4, %s12153_s1 }
  0x1b   : > { %708 = vrot.lane.b32.xlu1 %v8198_v5, %s12151_s18  ;;  %650 = vrot.lane.b32.xlu0 %v8198_v5, %s12153_s1  ;;  %v7086_v8 = vld [vmem:[%s12429_s23 + $0x4] sm:$0xf]  ;;  %v660_v9 = vld [vmem:[%s12429_s23] sm:$0xf] }
  0x1c   : > { %v7087_v10 = vld [vmem:[%s12429_s23 + $0x8] sm:$0xf]  ;;  %v7088_v11 = vld [vmem:[%s12429_s23 + $0xc] sm:$0xf]  ;;  %v7089_v12 = vld [vmem:[%s12429_s23 + $0x10] sm:$0xf] }
  0x1d   : > { %v7090_v13 = vld [vmem:[%s12429_s23 + $0x14] sm:$0xf]  ;;  %v7091_v14 = vld [vmem:[%s12429_s23 + $0x18] sm:$0xf]  ;;  %v7092_v16 = vld [vmem:[%s12429_s23 + $0x1c] sm:$0xf] }
  0x1e   : > { %v601_v17 = vld [vmem:[%s12430_s22] sm:$0xf]  ;;  %s13232_s22 = smov 127  }
  0x1f   : > { %v7093_v21 = vld [vmem:[%s12429_s23 + $0x20] sm:$0xf] }
  0x22   : > { %636 = vrot.lane.b32.xlu2 %v8206_v6, %s12153_s1  ;;  %s12515_s1 = smov 17  }
  0x23   : > { %643 = vrot.lane.b32.xlu1 %v8206_v6, %s12198_s3  ;;  %641 = vrot.lane.b32.xlu0 %v8195_v4, %s12198_s3 }
  0x2a   : > { %692 = vrot.lane.b32.xlu2 %v8195_v4, %s12151_s18 }
  0x2b   : > { %699 = vrot.lane.b32.xlu1 %v8195_v4, %s12420_s26  ;;  %694 = vrot.lane.b32.xlu0 %v8206_v6, %s12151_s18 }
  0x32   : > { %701 = vrot.lane.b32.xlu2 %v8206_v6, %s12420_s26 }
  0x33   : > { %769 = vrot.lane.b32.xlu1 %v8198_v5, %s12149_s27  ;;  %767 = vrot.lane.b32.xlu0 %v8181_v2, %s12149_s27 }
  0x3a   : > { %753 = vrot.lane.b32.xlu2 %v8195_v4, %s12149_s27 }
  0x3b   : > { %760 = vrot.lane.b32.xlu1 %v8195_v4, %s12200_s28  ;;  %755 = vrot.lane.b32.xlu0 %v8206_v6, %s12149_s27 }
  0x42   : > { %762 = vrot.lane.b32.xlu2 %v8206_v6, %s12200_s28 }
  0x43   : > { %824 = vrot.lane.b32.xlu1 %v8198_v5, %s12196_s29  ;;  %822 = vrot.lane.b32.xlu0 %v8181_v2, %s12196_s29 }
  0x4a   : > { %808 = vrot.lane.b32.xlu2 %v8195_v4, %s12196_s29 }
  0x4b   : > { %815 = vrot.lane.b32.xlu1 %v8195_v4, %s12194_s0  ;;  %810 = vrot.lane.b32.xlu0 %v8206_v6, %s12196_s29 }
  0x52   : > { %817 = vrot.lane.b32.xlu2 %v8206_v6, %s12194_s0 }
  0x53   : > { %722 = vperm.xlu1 %8018, %v7086_v8   ;;  %663 = vperm.xlu0 %8017, %v660_v9  }
  0x5a   : > { %783 = vperm.xlu2 %8019, %v7087_v10  }
  0x5b   : > { %874 = vrot.lane.b32.xlu1 %v8181_v2, %s12194_s0  ;;  %838 = vperm.xlu0 %8017, %v7088_v11  }
  0x62   : > { %876 = vrot.lane.b32.xlu2 %v8198_v5, %s12194_s0 }
  0x63   : > { %915 = vrot.lane.b32.xlu1 %v8181_v2, %s12200_s28  ;;  %851 = vperm.xlu0 %8017, %v7089_v12   ;;  %v8387_v12 = vand.u32 15, %v8181_v2 }
  0x65   : > { %12444 = vst [vmem:[#allocation10_spill] sm:$0xff] %v8387_v12 }
  0x6a   : > { %917 = vrot.lane.b32.xlu2 %v8198_v5, %s12200_s28  ;;  %s13228_s28 = smov 113  }
  0x6b   : > { %956 = vrot.lane.b32.xlu1 %v8181_v2, %s12420_s26  ;;  %890 = vperm.xlu0 %8017, %v7090_v13  }
  0x72   : > { %958 = vrot.lane.b32.xlu2 %v8198_v5, %s12420_s26 }
  0x73   : > { %997 = vrot.lane.b32.xlu1 %v8181_v2, %s12198_s3  ;;  %931 = vperm.xlu0 %8017, %v7091_v14  }
  0x74   : > { %v635_v15 = vpop.permute.xlu2 %634 }
  0x7a   : > { %999 = vrot.lane.b32.xlu2 %v8198_v5, %s12198_s3 }
  0x7b   : > { %972 = vperm.xlu1 %8018, %v7092_v16   ;;  %1024 = vperm.xlu0 %8017, %v601_v17   ;;  %v8397_v16 = vadd.s32 4294967295, %v8387_v12 }
  0x7c   : > { %v637_v18 = vpop.permute.xlu2 %636 }
  0x7d   : > { %v8295_v19 = vsel %vm12157_vm0, %v635_v15, %v637_v18  ;;  %v8299_v20 = vsel %vm12157_vm0, %v637_v18, %v635_v15  ;;  %v8394_v15 = vand.u32 15, %v8198_v5  ;;  %12446 = vst [vmem:[#allocation12_spill] sm:$0xff] %v8397_v16  ;;  %vm12176_vm9 = vcmp.ge.s32.totalorder %v8397_v16, 0 }
  0x7e   : > { %vm8413_vm12 = vmand %vm609_vm8, %vm12176_vm9 }
  0x7f   : > { %12445 = vst [vmem:[#allocation11_spill] sm:$0xff] %v8394_v15  ;;  %v8400_v17 = vadd.s32 4294967295, %v8394_v15 }
  0x81   : > { %12447 = vst [vmem:[#allocation13_spill] sm:$0xff] %v8400_v17  ;;  %vm12180_vm11 = vcmp.ge.s32.totalorder %v8400_v17, 0 }
  0x82   : > { %1013 = vperm.xlu2 %8019, %v7093_v21  }
  0x84   : > { %v693_v22 = vpop.permute.xlu2 %692 }
  0x85   : > { %v707_v23 = vpop.permute.xlu1 %706  ;;  %v649_v24 = vpop.permute.xlu0 %648 }
  0x8c   : > { %v702_v27 = vpop.permute.xlu2 %701 }
  0x8d   : > { %v709_v28 = vpop.permute.xlu1 %708  ;;  %v651_v30 = vpop.permute.xlu0 %650 }
  0x8e   : > { %v710_v32 = vsel %vm12156_vm1, %v707_v23, %v709_v28  ;;  %v711_v33 = vsel %vm12156_vm1, %v709_v28, %v707_v23  ;;  %v652_v34 = vsel %vm12157_vm0, %v649_v24, %v651_v30  ;;  %v653_v35 = vsel %vm12157_vm0, %v651_v30, %v649_v24 }
  0x8f   : > { %vm8323_vm3 = vcmp.eq.s32.totalorder %v653_v35, %v627_v38  ;;  %vm8327_vm4 = vcmp.eq.s32.totalorder %v652_v34, %v628_v39  ;;  %vm8348_vm6 = vcmp.eq.s32.totalorder %v711_v33, %v690_v51  ;;  %vm8352_vm7 = vcmp.eq.s32.totalorder %v710_v32, %v691_v52 }
  0x90   : > { %v12433_v45 = vsel %vm8323_vm3, 4294967295, %v12432_v45  ;;  %v12436_v46 = vsel %vm8327_vm4, 4294967295, %v12435_v46  ;;  %v12439_v53 = vsel %vm8348_vm6, 4294967295, %v12438_v53  ;;  %v12442_v54 = vsel %vm8352_vm7, 4294967295, %v12441_v54 }
  0x91   : > { %12434 = vst [vmem:[#allocation6_spill] sm:$0xff] %v12433_v45  ;;  %v12448_v23 = vmov 0  ;;  %v731_v24 = vadd.s32 4294967281, %v8181_v2  ;;  %v732_v28 = vadd.s32 4294967281, %v8198_v5  ;;  %v793_v52 = vadd.s32 4294967295, %v8198_v5 }
  0x92   : > { %12437 = vst [vmem:[#allocation7_spill] sm:$0xff] %v12436_v46  ;;  %v12449_v23 = vsel %vm8413_vm12, 4294967295, %v12448_v23 }
  0x93   : > { %12440 = vst [vmem:[#allocation8_spill] sm:$0xff] %v12439_v53  ;;  %v749_v33 = vadd.s32 256, %v731_v24  ;;  %v750_v42 = vadd.s32 256, %v732_v28  ;;  %vm733_vm15 = vcmp.ge.s32.totalorder %v731_v24, 0 }
  0x94   : > { %v8320_v40 = vpop.permute.xlu2 %753  ;;  %12443 = vst [vmem:[#allocation9_spill] sm:$0xff] %v12442_v54 }
  0x95   : > { %v644_v43 = vpop.permute.xlu1 %643  ;;  %v642_v44 = vpop.permute.xlu0 %641  ;;  %12450 = vst [vmem:[#allocation14_spill] sm:$0xff] %v12449_v23 }
  0x96   : > { %v8333_v47 = vsel %vm12158_vm2, %v642_v44, %v644_v43  ;;  %v8337_v48 = vsel %vm12158_vm2, %v644_v43, %v642_v44  ;;  %v8429_v44 = vadd.s32 1, %v8387_v12  ;;  %vm12169_vm2 = vcmp.lt.s32.totalorder %v8181_v2, 1 }
  0x97   : > { %v656_v49 = vsel %vm8323_vm3, %v8299_v20, %v8333_v47  ;;  %v657_v50 = vsel %vm8327_vm4, %v8295_v19, %v8337_v48  ;;  %v12721_v12 = vmov 0 }
  0x98   : > { %v658_v26 = vsel %vm8413_vm12, %v656_v49, 0.0  ;;  %12451 = vst [vmem:[#allocation15_spill] sm:$0xff] %v8429_v44  ;;  %v8432_v49 = vadd.s32 4294967295, %v8181_v2  ;;  %vm12161_vm8 = vcmp.lt.s32.totalorder %v8429_v44, 16  ;;  %vm12492_vm12 = vcmp.lt.s32.totalorder %v8429_v44, 16 }
  0x99   : > { %v666_v31 = vperm.slane %v658_v26, 0  ;;  %vm8486_vm0 = vmand %vm733_vm15, %vm12161_vm8 }
  0x9a   : > { %vm794_vm15 = vcmp.ge.s32.totalorder %v8432_v49, 0 }
  0x9c   : > { %v8356_v57 = vpop.permute.xlu2 %762 }
  0x9d   : > { %v700_v55 = vpop.permute.xlu1 %699  ;;  %v695_v56 = vpop.permute.xlu0 %694 }
  0x9e   : > { %v8360_v58 = vsel %vm12159_vm5, %v700_v55, %v702_v27  ;;  %v8364_v59 = vsel %vm12159_vm5, %v702_v27, %v700_v55  ;;  %v8368_v60 = vsel %vm12156_vm1, %v693_v22, %v695_v56  ;;  %v8372_v61 = vsel %vm12156_vm1, %v695_v56, %v693_v22 }
  0x9f   : > { %v714_v62 = vsel %vm8348_vm6, %v8372_v61, %v8360_v58  ;;  %v715_v63 = vsel %vm8352_vm7, %v8368_v60, %v8364_v59  ;;  %v659_v27 = vsel %vm12180_vm11, %v657_v50, 0.0  ;;  %v751_v55 = vand.u32 255, %v749_v33 }
  0xa0   : > { %v716_v25 = vsel %vm12155_vm10, %v714_v62, 0.0  ;;  %v726_v30 = vperm.slane %v715_v63, 0  ;;  %v667_v32 = vperm.slane %v659_v27, 0  ;;  %v752_v56 = vand.u32 255, %v750_v42 }
  0xa1   : > { %v725_v29 = vperm.slane %v716_v25, 0  ;;  %v8443_v63 = vadd.s32 1, %v8394_v15  ;;  %v804_v27 = vadd.s32 256, %v8432_v49  ;;  %v12453_v33 = vmov 0 }
  0xa2   : > { %v899_v42 = vadd.s32 15, %v8181_v2  ;;  %v12705_v15 = vmov 0 }
  0xa3   : > { %12452 = vst [vmem:[#allocation16_spill] sm:$0xff] %v8443_v63  ;;  %vm12183_vm1 = vcmp.lt.s32.totalorder %v8443_v63, 16 }
  0xa4   : > { %v8382_v8 = vpop.permute.xlu2 %808 }
  0xa5   : > { %v770_v0 = vpop.permute.xlu1 %769  ;;  %v768_v3 = vpop.permute.xlu0 %767 }
  0xa6   : > { %v772_v62 = vsel %vm12160_vm13, %v770_v0, %v768_v3  ;;  %v771_v28 = vsel %vm12160_vm13, %v768_v3, %v770_v0 }
  0xa7   : > { %vm8464_vm10 = vcmp.eq.s32.totalorder %v772_v62, %v751_v55  ;;  %vm8491_vm5 = vcmp.eq.s32.totalorder %v771_v28, %v752_v56 }
  0xa8   : > { %v12454_v33 = vsel %vm8464_vm10, 4294967295, %v12453_v33 }
  0xa9   : > { %12455 = vst [vmem:[#allocation17_spill] sm:$0xff] %v12454_v33  ;;  %v982_v33 = vadd.s32 17, %v8198_v5 }
  0xac   : > { %v8384_v11 = vpop.permute.xlu2 %817 }
  0xad   : > { %v761_v9 = vpop.permute.xlu1 %760  ;;  %v756_v10 = vpop.permute.xlu0 %755 }
  0xae   : > { %v8448_v25 = vsel %vm12168_vm14, %v761_v9, %v8356_v57  ;;  %v8453_v26 = vsel %vm12160_vm13, %v756_v10, %v8320_v40  ;;  %v8476_v0 = vsel %vm12160_vm13, %v8320_v40, %v756_v10  ;;  %v806_v40 = vand.u32 255, %v804_v27 }
  0xaf   : > { %v775_v3 = vsel %vm8464_vm10, %v8453_v26, %v8448_v25  ;;  %vm12178_vm13 = vcmp.lt.s32.totalorder %v8181_v2, 127  ;;  %v8528_v27 = vadd.s32 16, %v8198_v5 }
  0xb1   : > { %12462 = vst [vmem:[#allocation20_spill] sm:$0xff] %v8528_v27 }
  0xb4   : > { %v8403_v18 = vpop.permute.xlu2 %783 }
  0xb5   : > { %v8389_v13 = vpop.permute.xlu1 %824  ;;  %v8391_v14 = vpop.permute.xlu0 %822 }
  0xb6   : > { %v826_v55 = vsel %vm12169_vm2, %v8391_v14, %v8389_v13 }
  0xbc   : > { %v8426_v43 = vpop.permute.xlu2 %876 }
  0xbd   : > { %v8405_v21 = vpop.permute.xlu1 %815  ;;  %v8407_v22 = vpop.permute.xlu0 %810 }
  0xbe   : > { %v820_v56 = vsel %vm12178_vm13, %v8405_v21, %v8384_v11  ;;  %v814_v62 = vsel %vm12169_vm2, %v8407_v22, %v8382_v8  ;;  %v821_v28 = vsel %vm12178_vm13, %v8384_v11, %v8405_v21  ;;  %v12466_v11 = vmov 0 }
  0xbf   : > { %v12469_v21 = vmov 0 }
  0xc5   : > { %v723_v34 = vpop.permute.xlu1 %722  ;;  %v664_v35 = vpop.permute.xlu0 %663 }
  0xc6   : > { %v727_v37 = vmul.f32 %v725_v29, %v723_v34  ;;  %v728_v38 = vmul.f32 %v726_v30, %v723_v34  ;;  %v668_v39 = vmul.f32 %v666_v31, %v664_v35  ;;  %v669_v41 = vmul.f32 %v667_v32, %v664_v35 }
  0xc7   : > { %v805_v29 = vadd.s32 256, %v793_v52  ;;  %v8460_v30 = vadd.s32 1, %v8181_v2  ;;  %v8471_v34 = vsel %vm12168_vm14, %v8356_v57, %v761_v9  ;;  %v12456_v35 = vmov 0 }
  0xc8   : > { %v8434_v50 = vadd.f32 %v727_v37, %v668_v39  ;;  %v8436_v51 = vadd.f32 %v728_v38, %v669_v41  ;;  %v12457_v35 = vsel %vm8486_vm0, 4294967295, %v12456_v35  ;;  %v12459_v57 = vmov 0  ;;  %v918_v37 = vpop.permute.xlu2 %917 }
  0xc9   : > { %12458 = vst [vmem:[#allocation18_spill] sm:$0xff] %v12457_v35  ;;  %v12460_v57 = vsel %vm8491_vm5, 4294967295, %v12459_v57  ;;  %v8497_v9 = vadd.s32 1, %v8198_v5  ;;  %v776_v10 = vsel %vm8491_vm5, %v8476_v0, %v8471_v34  ;;  %v807_v24 = vand.u32 255, %v805_v29 }
  0xca   : > { %12461 = vst [vmem:[#allocation19_spill] sm:$0xff] %v12460_v57  ;;  %v870_v38 = vadd.s32 256, %v8460_v30  ;;  %v777_v39 = vsel %vm8486_vm0, %v775_v3, 0.0  ;;  %v827_v41 = vsel %vm12169_vm2, %v8389_v13, %v8391_v14  ;;  %v8513_v52 = vadd.s32 15, %v8198_v5 }
  0xcb   : > { %v813_v13 = vsel %vm12169_vm2, %v8382_v8, %v8407_v22  ;;  %v871_v14 = vadd.s32 256, %v8497_v9  ;;  %v778_v29 = vsel %vm12183_vm1, %v776_v10, 0.0  ;;  %vm8541_vm8 = vcmp.eq.s32.totalorder %v827_v41, %v806_v40  ;;  %vm8555_vm2 = vmand %vm794_vm15, %vm12176_vm9 }
  0xcc   : > { %v12463_v3 = vmov 0  ;;  %v872_v7 = vand.u32 255, %v870_v38  ;;  %v786_v36 = vperm.slane %v777_v39, 0  ;;  %vm8545_vm14 = vcmp.eq.s32.totalorder %v826_v55, %v807_v24 }
  0xcd   : > { %v875_v31 = vpop.permute.xlu1 %874  ;;  %v8462_v32 = vpop.permute.xlu0 %838  ;;  %v12464_v3 = vsel %vm8541_vm8, 4294967295, %v12463_v3  ;;  %v12467_v11 = vsel %vm8545_vm14, 4294967295, %v12466_v11  ;;  %v830_v8 = vsel %vm8541_vm8, %v814_v62, %v820_v56  ;;  %v12470_v21 = vsel %vm8555_vm2, 4294967295, %v12469_v21 }
  0xce   : > { %12465 = vst [vmem:[#allocation21_spill] sm:$0xff] %v12464_v3  ;;  %v911_v22 = vadd.s32 256, %v899_v42  ;;  %v831_v40 = vsel %vm8545_vm14, %v813_v13, %v821_v28  ;;  %v912_v10 = vadd.s32 256, %v8513_v52  ;;  %v940_v24 = vadd.s32 16, %v8181_v2 }
  0xcf   : > { %12468 = vst [vmem:[#allocation22_spill] sm:$0xff] %v12467_v11  ;;  %v953_v38 = vadd.s32 256, %v8528_v27  ;;  %v873_v39 = vand.u32 255, %v871_v14  ;;  %v878_v41 = vsel %vm12178_vm13, %v875_v31, %v8426_v43  ;;  %v787_v55 = vperm.slane %v778_v29, 0 }
  0xd0   : > { %12471 = vst [vmem:[#allocation23_spill] sm:$0xff] %v12470_v21  ;;  %v879_v42 = vsel %vm12178_vm13, %v8426_v43, %v875_v31  ;;  %v832_v11 = vsel %vm8555_vm2, %v830_v8, 0.0  ;;  %v981_v3 = vadd.s32 17, %v8181_v2  ;;  %v788_v23 = vmul.f32 %v786_v36, %v8403_v18  ;;  %v959_v45 = vpop.permute.xlu2 %958 }
  0xd1   : > { %v833_v14 = vsel %vm12180_vm11, %v831_v40, 0.0  ;;  %v913_v57 = vand.u32 255, %v911_v22  ;;  %vm8578_vm9 = vcmp.eq.s32.totalorder %v878_v41, %v872_v7  ;;  %v914_v46 = vand.u32 255, %v912_v10 }
  0xd2   : > { %v952_v43 = vadd.s32 256, %v940_v24  ;;  %v955_v31 = vand.u32 255, %v953_v38  ;;  %vm8582_vm13 = vcmp.eq.s32.totalorder %v879_v42, %v873_v39  ;;  %v841_v21 = vperm.slane %v832_v11, 0 }
  0xd3   : > { %vm12476_vm15 = vcmp.lt.s32.totalorder %v8181_v2, 113  ;;  %v789_v40 = vmul.f32 %v787_v55, %v8403_v18  ;;  %v842_v7 = vperm.slane %v833_v14, 0  ;;  %v993_v53 = vadd.s32 256, %v981_v3 }
  0xd4   : > { %vm12477_vm11 = vmmov %vm12476_vm15  ;;  %v843_v10 = vmul.f32 %v841_v21, %v8462_v32  ;;  %vm12478_vm2 = vcmp.lt.s32.totalorder %v8181_v2, 112  ;;  %v882_v11 = vsel %vm8578_vm9, %v820_v56, %v814_v62  ;;  %v994_v38 = vadd.s32 256, %v982_v33 }
  0xd5   : > { %v916_v1 = vpop.permute.xlu1 %915  ;;  %v852_v35 = vpop.permute.xlu0 %851  ;;  %v12479_v39 = vmov 0  ;;  %vm12487_vm1 = vcmp.lt.s32.totalorder %v8443_v63, 16  ;;  %v844_v56 = vmul.f32 %v842_v7, %v8462_v32  ;;  %v954_v62 = vand.u32 255, %v952_v43 }
  0xd6   : > { %v919_v36 = vsel %vm12476_vm15, %v916_v1, %v918_v37  ;;  %v920_v22 = vsel %vm12477_vm11, %v918_v37, %v916_v1  ;;  %v12482_v1 = vmov 0  ;;  %v12489_v37 = vmov 0 }
  0xd7   : > { %vm8597_vm15 = vcmp.eq.s32.totalorder %v919_v36, %v913_v57  ;;  %vm8601_vm11 = vcmp.eq.s32.totalorder %v920_v22, %v914_v46  ;;  %v883_v57 = vsel %vm8582_vm13, %v821_v28, %v813_v13  ;;  %v790_v46 = vadd.f32 %v788_v23, %v8434_v50 }
  0xd8   : > { %v12480_v39 = vsel %vm8597_vm15, 4294967295, %v12479_v39  ;;  %v12483_v1 = vsel %vm8601_vm11, 4294967295, %v12482_v1  ;;  %v791_v3 = vadd.f32 %v789_v40, %v8436_v51  ;;  %v854_v21 = vmul.f32 %v852_v35, %v8195_v4  ;;  %v1000_v13 = vpop.permute.xlu2 %999 }
  0xd9   : > { %12481 = vst [vmem:[#allocation24_spill] sm:$0xff] %v12480_v39  ;;  %v855_v28 = vmul.f32 %v852_v35, %v8206_v6  ;;  %v12495_v50 = vmov 0  ;;  %v923_v4 = vsel %vm8597_vm15, %v8448_v25, %v8453_v26  ;;  %v924_v6 = vsel %vm8601_vm11, %v8471_v34, %v8476_v0 }
  0xda   : > { %12484 = vst [vmem:[#allocation25_spill] sm:$0xff] %v12483_v1  ;;  %v995_v51 = vand.u32 255, %v993_v53  ;;  %v996_v32 = vand.u32 255, %v994_v38  ;;  %v846_v35 = vadd.f32 %v844_v56, %v791_v3  ;;  %vm12503_vm15 = vcmp.lt.s32.totalorder %v982_v33, 256 }
  0xdb   : > { %v12691_v1 = vmov 0  ;;  %v12695_v39 = vmov 0 }
  0xdc   : > { %v857_v34 = vadd.f32 %v855_v28, %v846_v35 }
  0xdd   : > { %v957_v41 = vpop.permute.xlu1 %956  ;;  %v891_v54 = vpop.permute.xlu0 %890 }
  0xde   : > { %v961_v24 = vsel %vm12478_vm2, %v959_v45, %v957_v41  ;;  %vm12488_vm2 = vcmp.lt.s32.totalorder %v8497_v9, 256  ;;  %v884_v9 = vsel %vm12492_vm12, %v882_v11, 0.0  ;;  %vm12498_vm12 = vcmp.lt.s32.totalorder %v8181_v2, 112 }
  0xdf   : > { %vm8605_vm0 = vcmp.eq.s32.totalorder %v961_v24, %v955_v31  ;;  %vm8613_vm14 = vmand %vm12488_vm2, %vm12487_vm1  ;;  %vm12493_vm1 = vcmp.ge.s32.totalorder %v8400_v17, 0  ;;  %vm12494_vm2 = vcmp.lt.s32.totalorder %v8513_v52, 256  ;;  %v893_v52 = vperm.slane %v884_v9, 0 }
  0xe0   : > { %v12490_v37 = vsel %vm8613_vm14, 4294967295, %v12489_v37  ;;  %v965_v55 = vsel %vm8605_vm0, %v8364_v59, %v8368_v60  ;;  %v885_v23 = vsel %vm8613_vm14, %v883_v57, 0.0  ;;  %vm8636_vm8 = vmand %vm12494_vm2, %vm12493_vm1  ;;  %v845_v59 = vadd.f32 %v843_v10, %v790_v46 }
  0xe1   : > { %12491 = vst [vmem:[#allocation26_spill] sm:$0xff] %v12490_v37  ;;  %v12496_v50 = vsel %vm8636_vm8, 4294967295, %v12495_v50  ;;  %v960_v60 = vsel %vm12498_vm12, %v957_v41, %v959_v45  ;;  %v894_v14 = vperm.slane %v885_v23, 0  ;;  %vm12499_vm2 = vcmp.ge.s32.totalorder %v8397_v16, 0  ;;  %v7176_v16 = vld [vmem:[%s12588_s25 + $0x38] sm:$0xff] }
  0xe2   : > { %12497 = vst [vmem:[#allocation27_spill] sm:$0xff] %v12496_v50  ;;  %v856_v42 = vadd.f32 %v854_v21, %v845_v59  ;;  %v925_v25 = vsel %vm12499_vm2, %v923_v4, 0.0  ;;  %v926_v26 = vsel %vm8636_vm8, %v924_v6, 0.0  ;;  %vm8655_vm11 = vcmp.eq.s32.totalorder %v960_v60, %v954_v62  ;;  %v1014_v59 = vpop.permute.xlu2 %1013 }
  0xe3   : > { %vm12502_vm12 = vcmp.lt.s32.totalorder %v8443_v63, 16  ;;  %v12504_v45 = vmov 0  ;;  %vm12507_vm1 = vcmp.lt.s32.totalorder %v8181_v2, 111  ;;  %v895_v36 = vmul.f32 %v893_v52, %v891_v54  ;;  %v7162_v63 = vld [vmem:[%s12588_s25 + $0x28] sm:$0xff] }
  0xe4   : > { %vm8662_vm5 = vmand %vm12503_vm15, %vm12502_vm12  ;;  %v896_v22 = vmul.f32 %v894_v14, %v891_v54  ;;  %v934_v54 = vperm.slane %v925_v25, 0  ;;  %v935_v24 = vperm.slane %v926_v26, 0  ;;  %vm12513_vm15 = vcmp.lt.s32.totalorder %v8429_v44, 16  ;;  %v2167_v25 = vld [vmem:[%s12132_s6] sm:$0xff]  ;;  %v1258_v26 = vld [vmem:[%s12130_s4 + $0x8] sm:$0xff] }
  0xe5   : > { %v998_v43 = vpop.permute.xlu1 %997  ;;  %v12505_v45 = vsel %vm8662_vm5, 4294967295, %v12504_v45  ;;  %vm12508_vm2 = vmmov %vm12507_vm1  ;;  %v932_v33 = vpop.permute.xlu0 %931  ;;  %v964_v57 = vsel %vm8655_vm11, %v8360_v58, %v8372_v61  ;;  %v897_v56 = vadd.f32 %v895_v36, %v856_v42  ;;  %v2168_v36 = vld [vmem:[%s12132_s6 + $0x8] sm:$0xff]  ;;  %v12656_v37 = vmov 0 }
  0xe6   : > { %12506 = vst [vmem:[#allocation28_spill] sm:$0xff] %v12505_v45  ;;  %v1001_v53 = vsel %vm12507_vm1, %v998_v43, %v1000_v13  ;;  %v1002_v31 = vsel %vm12508_vm2, %v1000_v13, %v998_v43  ;;  %vm12514_vm1 = vcmp.lt.s32.totalorder %v8528_v27, 256  ;;  %v937_v46 = vmul.f32 %v935_v24, %v932_v33  ;;  %v3069_v24 = vld [vmem:[%s12134_s8 + $0x18] sm:$0xff] }
  0xe7   : > { %vm8670_vm8 = vcmp.eq.s32.totalorder %v1001_v53, %v995_v51  ;;  %vm8674_vm10 = vcmp.eq.s32.totalorder %v1002_v31, %v996_v32  ;;  %v975_v3 = vperm.slane %v964_v57, 0  ;;  %v2170_v53 = vld [vmem:[%s12132_s6 + $0x18] sm:$0xff]  ;;  %v2169_v31 = vld [vmem:[%s12132_s6 + $0x10] sm:$0xff]  ;;  %v12517_v57 = vlaneseq }
  0xe8   : > { %v1005_v41 = vsel %vm8670_vm8, %v8333_v47, %v8299_v20  ;;  %v1006_v10 = vsel %vm8674_vm10, %v8337_v48, %v8295_v19  ;;  %v967_v20 = vsel %vm12514_vm1, %v965_v55, 0.0  ;;  %v936_v47 = vmul.f32 %v934_v54, %v932_v33  ;;  %v3067_v33 = vld [vmem:[%s12134_s8 + $0x8] sm:$0xff]  ;;  %v3070_v54 = vld [vmem:[%s12134_s8 + $0x20] sm:$0xff] }
  0xe9   : > { %v1007_v11 = vsel %vm12513_vm15, %v1005_v41, 0.0  ;;  %v1008_v38 = vsel %vm8662_vm5, %v1006_v10, 0.0  ;;  %v898_v19 = vadd.f32 %v896_v22, %v857_v34  ;;  %v976_v21 = vperm.slane %v967_v20, 0  ;;  %v1257_v34 = vld [vmem:[%s12130_s4] sm:$0xff]  ;;  %v3068_v22 = vld [vmem:[%s12134_s8 + $0x10] sm:$0xff]  ;;  %v3071_v10 = vld [vmem:[%s12134_s8 + $0x28] sm:$0xff] }
  0xea   : > { %v1016_v48 = vperm.slane %v1007_v11, 0  ;;  %v1017_v62 = vperm.slane %v1008_v38, 0  ;;  %v938_v28 = vadd.f32 %v936_v47, %v897_v56  ;;  %v3066_v41 = vld [vmem:[%s12134_s8] sm:$0xff]  ;;  %v3073_v11 = vld [vmem:[%s12134_s8 + $0x38] sm:$0xff]  ;;  %v3072_v38 = vld [vmem:[%s12134_s8 + $0x30] sm:$0xff]  ;;  %v8755_v20 = vshrl.u32 %v12517_v57, 7 }
  0xeb   : > { %v939_v23 = vadd.f32 %v937_v46, %v898_v19  ;;  %v12239_v47 = vshra.s32 %v8181_v2, 3  ;;  %v8759_v46 = vand.u32 7, %v8181_v2  ;;  %v12250_v57 = vmov 0.0  }
  0xec   : > { %v1018_v58 = vmul.f32 %v1016_v48, %v1014_v59  ;;  %v1019_v61 = vmul.f32 %v1017_v62, %v1014_v59  ;;  %12518 = vst [vmem:[#allocation29_spill] sm:$0xff] %v8755_v20  ;;  %v1131_v48 = vadd.s32 120, %v8755_v20  ;;  %v1144_v59 = vadd.s32 224, %v8755_v20 }
  0xed   : > { %v973_v9 = vpop.permute.xlu1 %972  ;;  %v1025_v35 = vpop.permute.xlu0 %1024  ;;  %12519 = vst [vmem:[#allocation30_spill] sm:$0xff] %v8759_v46  ;;  %v1150_v56 = vmul.u32 32, %v12239_v47  ;;  %v1151_v19 = vmul.u32 2, %v8759_v46  ;;  %v7180_v47 = vld [vmem:[%s12588_s25 + $0x40] sm:$0xff]  ;;  %v12688_v50 = vmov 0 }
  0xee   : > { %v977_v4 = vmul.f32 %v975_v3, %v973_v9  ;;  %v978_v6 = vmul.f32 %v976_v21, %v973_v9  ;;  %v1147_v3 = vadd.s32 248, %v8755_v20  ;;  %v1130_v21 = vadd.s32 112, %v8755_v20 }
  0xef   : > { %v8765_v62 = vadd.s32 %v1151_v19, %v1150_v56  ;;  %v1146_v9 = vadd.s32 240, %v8755_v20  ;;  %v1132_v56 = vadd.s32 128, %v8755_v20 }
  0xf0   : > { %v979_v60 = vadd.f32 %v977_v4, %v938_v28  ;;  %v980_v51 = vadd.f32 %v978_v6, %v939_v23  ;;  %v1129_v28 = vadd.s32 104, %v8755_v20  ;;  %v1145_v23 = vadd.s32 232, %v8755_v20 }
  0xf1   : > { %vm1168_vm12 = vcmp.eq.s32.totalorder %v1131_v48, %v8765_v62  ;;  %vm1184_vm2 = vcmp.eq.s32.totalorder %v1147_v3, %v8765_v62  ;;  %v1128_v4 = vadd.s32 96, %v8755_v20  ;;  %v12252_v6 = vmov 1.0  }
  0xf2   : > { %v1020_v32 = vadd.f32 %v1018_v58, %v979_v60  ;;  %v1021_v55 = vadd.f32 %v1019_v61, %v980_v51  ;;  %7094 = vmatpush.msk.msra.mxu0 %vm1168_vm12, %v12252_v6  ;;  %7110 = vmatpush.msk.msra.mxu1 %vm1184_vm2, %v12252_v6  ;;  %vm1167_vm15 = vcmp.eq.s32.totalorder %v1130_v21, %v8765_v62  ;;  %v1127_v60 = vadd.s32 88, %v8755_v20 }
  0xf3   : > { %vm1183_vm1 = vcmp.eq.s32.totalorder %v1146_v9, %v8765_v62  ;;  %vm1166_vm3 = vcmp.eq.s32.totalorder %v1129_v28, %v8765_v62  ;;  %vm1182_vm4 = vcmp.eq.s32.totalorder %v1145_v23, %v8765_v62  ;;  %vm1165_vm7 = vcmp.eq.s32.totalorder %v1128_v4, %v8765_v62 }
  0xf4   : > { %v8696_v52 = vadd.f32 %v1025_v35, %v1020_v32  ;;  %v8698_v13 = vadd.f32 %v1025_v35, %v1021_v55  ;;  %7095 = vmatpush.msk.msra.mxu0 %vm1167_vm15, %v12252_v6  ;;  %7111 = vmatpush.msk.msra.mxu1 %vm1183_vm1, %v12252_v6  ;;  %v1143_v51 = vadd.s32 216, %v8755_v20  ;;  %v1126_v58 = vadd.s32 80, %v8755_v20 }
  0xf5   : > { %v1142_v61 = vadd.s32 208, %v8755_v20  ;;  %v1125_v32 = vadd.s32 72, %v8755_v20  ;;  %vm1181_vm12 = vcmp.eq.s32.totalorder %v1144_v59, %v8765_v62  ;;  %v1141_v55 = vadd.s32 200, %v8755_v20 }
  0xf6   : > { %v1029_v42 = vmax.f32 %v8696_v52, 0.0  ;;  %v1030_v14 = vmax.f32 %v8698_v13, 0.0  ;;  %7096 = vmatpush.msk.msra.mxu0 %vm1166_vm3, %v12252_v6  ;;  %7112 = vmatpush.msk.msra.mxu1 %vm1182_vm4, %v12252_v6  ;;  %vm1164_vm3 = vcmp.eq.s32.totalorder %v1127_v60, %v8765_v62  ;;  %vm1180_vm4 = vcmp.eq.s32.totalorder %v1143_v51, %v8765_v62 }
  0xf7   : > { %vm1163_vm2 = vcmp.eq.s32.totalorder %v1126_v58, %v8765_v62  ;;  %v1124_v35 = vadd.s32 64, %v8755_v20  ;;  %vm1179_vm15 = vcmp.eq.s32.totalorder %v1142_v61, %v8765_v62  ;;  %vm1178_vm1 = vcmp.eq.s32.totalorder %v1141_v55, %v8765_v62 }
  0xf8   : > { %v8030_v43 = vpack.i.bf16 %v1030_v14, %v1029_v42  ;;  %7097 = vmatpush.msk.msra.mxu0 %vm1165_vm7, %v12252_v6  ;;  %7113 = vmatpush.msk.msra.mxu1 %vm1181_vm12, %v12252_v6  ;;  %vm1162_vm7 = vcmp.eq.s32.totalorder %v1125_v32, %v8765_v62  ;;  %v12527_v48 = vmov 0   ;;  %v12528_v58 = vmov 0 }
  0xf9   : > { %vm1161_vm12 = vcmp.eq.s32.totalorder %v1124_v35, %v8765_v62  ;;  %v1043_v3 = vsel %vm8578_vm9, 1, %v12527_v48  ;;  %v1044_v21 = vsel %vm8582_vm13, 1, %v12527_v48  ;;  %v1071_v23 = vsel %vm8655_vm11, 1, %v12527_v48 }
  0xfa   : > { %8031 = vrot.lane.b32.xlu0 %v8030_v43, %s12420_s26  ;;  %8026 = vrot.lane.b32.xlu2 %v8030_v43, %s12196_s29  ;;  %v1045_v9 = vperm.slane %v1043_v3, 0  ;;  %v1046_v28 = vperm.slane %v1044_v21, 0  ;;  %v1099_v4 = vsel %vm8670_vm8, 1, %v12527_v48  ;;  %v1100_v8 = vsel %vm8674_vm10, 1, %v12527_v48  ;;  %s13231_s26 = smov 1  }
  0xfb   : > { %8021 = vrot.lane.b32.xlu1 %v8030_v43, %s12194_s0  ;;  %7098 = vmatpush.msk.msra.mxu0 %vm1164_vm3, %v12252_v6  ;;  %v12531_v32 = vmov 0  ;;  %v1073_v40 = vperm.slane %v1071_v23, 0  ;;  %v1101_v35 = vperm.slane %v1099_v4, 0  ;;  %vm12534_vm13 = vcmp.lt.s32.totalorder %v8181_v2, 1 }
  0xfc   : > { %7114 = vmatpush.msk.msra.mxu1 %vm1180_vm4, %v12252_v6  ;;  %vm8901_vm9 = vcmp.eq.s32.totalorder %v1045_v9, 1  ;;  %vm12535_vm10 = vcmp.lt.s32.totalorder %v8181_v2, 127  ;;  %vm12537_vm11 = vmmov %vm12534_vm13  ;;  %v12538_v3 = vmov 0  ;;  %v12541_v21 = vmov 0 }
  0xfd   : > { %7099 = vmatpush.msk.msra.mxu0 %vm1163_vm2, %v12252_v6  ;;  %v12529_v58 = vsel %vm8901_vm9, 4294967295, %v12528_v58  ;;  %vm12536_vm8 = vmmov %vm12535_vm10  ;;  %v12544_v9 = vmov 0 }
  0xfe   : > { %7115 = vmatpush.msk.msra.mxu1 %vm1179_vm15, %v12252_v6  ;;  %12530 = vst [vmem:[#allocation38_spill] sm:$0xff] %v12529_v58  ;;  %v12666_v58 = vmov 0 }
  0xff   : > { %7100 = vmatpush.msk.msra.mxu0 %vm1162_vm7, %v12252_v6 }
 0x100   : > { %7116 = vmatpush.msk.msra.mxu1 %vm1178_vm1, %v12252_v6 }
 0x101   : > { %7101 = vmatpush.msk.msra.mxu0 %vm1161_vm12, %v12252_v6 }
 0x102   : > { %8046 = vrot.lane.b32.xlu0 %v8030_v43, %s12515_s1  ;;  %8041 = vrot.lane.b32.xlu2 %v8030_v43, %s12198_s3  ;;  %s13227_s3 = smov 112  }
 0x103   : > { %8036 = vrot.lane.b32.xlu1 %v8030_v43, %s12516_s24  ;;  %v1140_v43 = vadd.s32 192, %v8755_v20 }
 0x105   : > { %vm1177_vm3 = vcmp.eq.s32.totalorder %v1140_v43, %v8765_v62  ;;  %v1102_v43 = vperm.slane %v1100_v8, 0 }
 0x106   : > { %7117 = vmatpush.msk.msra.mxu1 %vm1177_vm3, %v12252_v6 }
 0x10a   : > { %2879 = vperm.xlu0 %8017, %v2167_v25   ;;  %2029 = vperm.xlu2 %8019, %v1258_v26   ;;  %v8812_v25 = vadd.s32 56, %v8755_v20  ;;  %v1139_v26 = vadd.s32 184, %v8755_v20 }
 0x10b   : > { %2024 = vperm.xlu1 %8018, %v1257_v34   ;;  %v8821_v34 = vadd.s32 48, %v8755_v20 }
 0x10c   : > { %12520 = vst [vmem:[#allocation31_spill] sm:$0xff] %v8812_v25  ;;  %vm1160_vm4 = vcmp.eq.s32.totalorder %v8812_v25, %v8765_v62  ;;  %vm1176_vm2 = vcmp.eq.s32.totalorder %v1139_v26, %v8765_v62 }
 0x10d   : > { %12521 = vst [vmem:[#allocation32_spill] sm:$0xff] %v8821_v34  ;;  %7102 = vmatpush.msk.msra.mxu0 %vm1160_vm4, %v12252_v6  ;;  %7118 = vmatpush.msk.msra.mxu1 %vm1176_vm2, %v12252_v6  ;;  %vm1159_vm15 = vcmp.eq.s32.totalorder %v8821_v34, %v8765_v62 }
 0x10f   : > { %7103 = vmatpush.msk.msra.mxu0 %vm1159_vm15, %v12252_v6 }
 0x112   : > { %2894 = vperm.xlu0 %8017, %v2170_v53   ;;  %2889 = vperm.xlu2 %8019, %v2169_v31   ;;  %v1138_v53 = vadd.s32 176, %v8755_v20  ;;  %v8827_v31 = vadd.s32 40, %v8755_v20 }
 0x113   : > { %2884 = vperm.xlu1 %8018, %v2168_v36   ;;  %v1137_v36 = vadd.s32 168, %v8755_v20 }
 0x114   : > { %12522 = vst [vmem:[#allocation33_spill] sm:$0xff] %v8827_v31  ;;  %vm1175_vm7 = vcmp.eq.s32.totalorder %v1138_v53, %v8765_v62  ;;  %vm1158_vm1 = vcmp.eq.s32.totalorder %v8827_v31, %v8765_v62 }
 0x115   : > { %vm1174_vm12 = vcmp.eq.s32.totalorder %v1137_v36, %v8765_v62  ;;  %7119 = vmatpush.msk.msra.mxu1 %vm1175_vm7, %v12252_v6  ;;  %7104 = vmatpush.msk.msra.mxu0 %vm1158_vm1, %v12252_v6 }
 0x117   : > { %7120 = vmatpush.msk.msra.mxu1 %vm1174_vm12, %v12252_v6 }
 0x11a   : > { %4112 = vperm.xlu0 %8017, %v3068_v22   ;;  %4107 = vperm.xlu2 %8019, %v3067_v33   ;;  %v8834_v22 = vadd.s32 32, %v8755_v20  ;;  %v1136_v33 = vadd.s32 160, %v8755_v20 }
 0x11b   : > { %4102 = vperm.xlu1 %8018, %v3066_v41   ;;  %v8848_v41 = vadd.s32 24, %v8755_v20 }
 0x11c   : > { %12523 = vst [vmem:[#allocation34_spill] sm:$0xff] %v8834_v22  ;;  %vm1157_vm3 = vcmp.eq.s32.totalorder %v8834_v22, %v8765_v62  ;;  %vm1173_vm4 = vcmp.eq.s32.totalorder %v1136_v33, %v8765_v62 }
 0x11d   : > { %12524 = vst [vmem:[#allocation35_spill] sm:$0xff] %v8848_v41  ;;  %7105 = vmatpush.msk.msra.mxu0 %vm1157_vm3, %v12252_v6  ;;  %7121 = vmatpush.msk.msra.mxu1 %vm1173_vm4, %v12252_v6  ;;  %vm1156_vm2 = vcmp.eq.s32.totalorder %v8848_v41, %v8765_v62  ;;  %vm1153_vm4 = vcmp.eq.s32.totalorder %v8755_v20, %v8765_v62 }
 0x11f   : > { %7106 = vmatpush.msk.msra.mxu0 %vm1156_vm2, %v12252_v6  ;;  %vm1169_vm2 = vcmp.eq.s32.totalorder %v1132_v56, %v8765_v62 }
 0x122   : > { %4127 = vperm.xlu0 %8017, %v3071_v10   ;;  %4122 = vperm.xlu2 %8019, %v3070_v54   ;;  %v1135_v10 = vadd.s32 152, %v8755_v20  ;;  %v8857_v54 = vadd.s32 16, %v8755_v20 }
 0x123   : > { %4117 = vperm.xlu1 %8018, %v3069_v24   ;;  %v1134_v24 = vadd.s32 144, %v8755_v20 }
 0x124   : > { %12525 = vst [vmem:[#allocation36_spill] sm:$0xff] %v8857_v54  ;;  %vm1172_vm15 = vcmp.eq.s32.totalorder %v1135_v10, %v8765_v62  ;;  %vm1155_vm7 = vcmp.eq.s32.totalorder %v8857_v54, %v8765_v62 }
 0x125   : > { %7122 = vmatpush.msk.msra.mxu1 %vm1172_vm15, %v12252_v6  ;;  %7107 = vmatpush.msk.msra.mxu0 %vm1155_vm7, %v12252_v6  ;;  %vm1171_vm1 = vcmp.eq.s32.totalorder %v1134_v24, %v8765_v62  ;;  %vm8921_vm15 = vcmp.eq.s32.totalorder %v1073_v40, 1 }
 0x126   : > { %v12539_v3 = vsel %vm8921_vm15, 4294967295, %v12538_v3 }
 0x127   : > { %7123 = vmatpush.msk.msra.mxu1 %vm1171_vm1, %v12252_v6  ;;  %12540 = vst [vmem:[#allocation40_spill] sm:$0xff] %v12539_v3  ;;  %vm8929_vm1 = vcmp.eq.s32.totalorder %v1101_v35, 1 }
 0x128   : > { %v12545_v9 = vsel %vm8929_vm1, 4294967295, %v12544_v9 }
 0x129   : > { %12546 = vst [vmem:[#allocation42_spill] sm:$0xff] %v12545_v9  ;;  %v12684_v9 = vmov 0 }
 0x12a   : > { %4137 = vperm.xlu2 %8019, %v3073_v11   ;;  %v8863_v11 = vadd.s32 8, %v8755_v20 }
 0x12b   : > { %4132 = vperm.xlu1 %8018, %v3072_v38   ;;  %v1133_v38 = vadd.s32 136, %v8755_v20 }
 0x12c   : > { %12526 = vst [vmem:[#allocation37_spill] sm:$0xff] %v8863_v11  ;;  %vm1154_vm12 = vcmp.eq.s32.totalorder %v8863_v11, %v8765_v62 }
 0x12d   : > { %vm1170_vm3 = vcmp.eq.s32.totalorder %v1133_v38, %v8765_v62  ;;  %7108 = vmatpush.msk.msra.mxu0 %vm1154_vm12, %v12252_v6  ;;  %v1072_v62 = vsel %vm8605_vm0, 1, %v12527_v48  ;;  %vm8905_vm0 = vcmp.eq.s32.totalorder %v1046_v28, 1  ;;  %vm8933_vm12 = vcmp.eq.s32.totalorder %v1102_v43, 1 }
 0x12e   : > { %7124 = vmatpush.msk.msra.mxu1 %vm1170_vm3, %v12252_v6  ;;  %v12532_v32 = vsel %vm8905_vm0, 4294967295, %v12531_v32  ;;  %v1074_v55 = vperm.slane %v1072_v62, 0  ;;  %v12547_v28 = vmov 0  ;;  %vm12550_vm3 = vcmp.lt.s32.totalorder %v8429_v44, 16 }
 0x12f   : > { %7109 = vmatpush.msk.msra.mxu0 %vm1153_vm4, %v12252_v6  ;;  %12533 = vst [vmem:[#allocation39_spill] sm:$0xff] %v12532_v32  ;;  %v12548_v28 = vsel %vm8933_vm12, 4294967295, %v12547_v28  ;;  %vm12551_vm4 = vcmp.lt.s32.totalorder %v8181_v2, 111  ;;  %v12661_v32 = vmov 0  ;;  %v12700_v48 = vmov 0 }
 0x130   : > { %7125 = vmatpush.msk.msra.mxu1 %vm1169_vm2, %v12252_v6  ;;  %vm8925_vm7 = vcmp.eq.s32.totalorder %v1074_v55, 1  ;;  %12549 = vst [vmem:[#allocation43_spill] sm:$0xff] %v12548_v28  ;;  %vm12552_vm2 = vcmp.lt.s32.totalorder %v8181_v2, 112  ;;  %v1752_v28 = vadd.s32 7, %v8181_v2 }
 0x131   : > { %v12542_v21 = vsel %vm8925_vm7, 4294967295, %v12541_v21 }
 0x132   : > { %12543 = vst [vmem:[#allocation41_spill] sm:$0xff] %v12542_v21 }
 0x154   : > { %v8027_v19 = vpop.permute.xlu2 %8026 }
 0x155   : > { %v8029_v29 = vunpack.i.h.bf16 %v8027_v19  ;;  %v8028_v59 = vunpack.i.l.bf16 %v8027_v19 }
 0x157   : > { %v1042_v7 = vsel %vm12534_vm13, %v8029_v29, %v8028_v59  ;;  %v1041_v36 = vsel %vm12537_vm11, %v8028_v59, %v8029_v29  ;;  %vm12553_vm13 = vmmov %vm12551_vm4 }
 0x15c   : > { %v8042_v0 = vpop.permute.xlu2 %8041 }
 0x15d   : > { %v8044_v33 = vunpack.i.h.bf16 %v8042_v0  ;;  %v8043_v10 = vunpack.i.l.bf16 %v8042_v0 }
 0x16c   : > { %v8032_v60 = vpop.permute.xlu0 %8031 }
 0x16d   : > { %v8022_v51 = vpop.permute.xlu1 %8021  ;;  %v8034_v38 = vunpack.i.h.bf16 %v8032_v60  ;;  %v8033_v56 = vunpack.i.l.bf16 %v8032_v60  ;;  %v1091_v60 = vsel %vm12551_vm4, %v8043_v10, %v8044_v33 }
 0x16e   : > { %v8024_v61 = vunpack.i.h.bf16 %v8022_v51  ;;  %v8023_v18 = vunpack.i.l.bf16 %v8022_v51 }
 0x16f   : > { %v1063_v51 = vsel %vm12552_vm2, %v8033_v56, %v8034_v38 }
 0x170   : > { %v1035_v26 = vsel %vm12535_vm10, %v8023_v18, %v8024_v61  ;;  %v1036_v53 = vsel %vm12536_vm8, %v8024_v61, %v8023_v18  ;;  %v1092_v18 = vsel %vm12553_vm13, %v8044_v33, %v8043_v10  ;;  %vm12554_vm10 = vmmov %vm12552_vm2  ;;  %vm12555_vm8 = vcmp.lt.s32.totalorder %v8181_v2, 17 }
 0x171   : > { %v1049_v24 = vsel %vm8901_vm9, %v1035_v26, %v1042_v7  ;;  %v1050_v19 = vsel %vm8905_vm0, %v1036_v53, %v1041_v36  ;;  %v1064_v40 = vsel %vm12554_vm10, %v8034_v38, %v8033_v56  ;;  %vm12556_vm11 = vmmov %vm12555_vm8  ;;  %vm12559_vm2 = vcmp.lt.s32.totalorder %v8429_v44, 16 }
 0x172   : > { %v1055_v62 = vsel %vm12550_vm3, %v1049_v24, 0.0  ;;  %v1056_v8 = vsel %vm8613_vm14, %v1050_v19, 0.0  ;;  %vm12557_vm3 = vcmp.lt.s32.totalorder %v8181_v2, 16  ;;  %vm12560_vm13 = vcmp.lt.s32.totalorder %v8528_v27, 256 }
 0x173   : > { %v1057_v55 = vmax.f32 %v1029_v42, %v1055_v62  ;;  %vm12558_vm4 = vmmov %vm12557_vm3  ;;  %v1058_v36 = vmax.f32 %v1030_v14, %v1056_v8  ;;  %v8977_v62 = vadd.s32 4294967295, %v8759_v46  ;;  %v12572_v8 = vmov 0 }
 0x174   : > { %v8047_v23 = vpop.permute.xlu0 %8046  ;;  %vm1544_vm0 = vcmp.eq.s32.totalorder %v8821_v34, %v8432_v49 }
 0x175   : > { %v8049_v4 = vunpack.i.h.bf16 %v8047_v23  ;;  %v8048_v29 = vunpack.i.l.bf16 %v8047_v23  ;;  %v8037_v59 = vpop.permute.xlu1 %8036  ;;  %v1259_v23 = vadd.s32 4294967287, %v8181_v2  ;;  %vm12592_vm6 = vcmp.ge.s32.totalorder %v8977_v62, 0 }
 0x176   : > { %v8039_v0 = vunpack.i.h.bf16 %v8037_v59  ;;  %v8038_v61 = vunpack.i.l.bf16 %v8037_v59  ;;  %v12565_v59 = vmov 0 }
 0x177   : > { %v1098_v35 = vsel %vm12555_vm8, %v8049_v4, %v8048_v29  ;;  %v1097_v43 = vsel %vm12556_vm11, %v8048_v29, %v8049_v4  ;;  %v8980_v4 = vadd.s32 4294967288, %v8181_v2  ;;  %vm1267_vm10 = vcmp.eq.s32.totalorder %v8812_v25, %v1259_v23 }
 0x178   : > { %v1069_v7 = vsel %vm12557_vm3, %v8038_v61, %v8039_v0  ;;  %v1070_v26 = vsel %vm12558_vm4, %v8039_v0, %v8038_v61  ;;  %v1105_v53 = vsel %vm8929_vm1, %v1091_v60, %v1098_v35  ;;  %v1106_v10 = vsel %vm8933_vm12, %v1092_v18, %v1097_v43 }
 0x179   : > { %v1077_v52 = vsel %vm8921_vm15, %v1063_v51, %v1070_v26  ;;  %v1111_v42 = vsel %vm12559_vm2, %v1105_v53, 0.0  ;;  %v1078_v33 = vsel %vm8925_vm7, %v1064_v40, %v1069_v7  ;;  %v1112_v13 = vsel %vm8662_vm5, %v1106_v10, 0.0  ;;  %12561 = vst [vmem:[#allocation44_spill] sm:$0xff] %v8980_v4  ;;  %v7144_v26 = vld [vmem:[%s12588_s25 + $0x10] sm:$0xff]  ;;  %v1319_v53 = vld [vmem:[%s12588_s25] sm:$0xff] }
 0x17a   : > { %v1085_v24 = vmax.f32 %v1057_v55, %v1077_v52  ;;  %v1084_v38 = vsel %vm12560_vm13, %v1078_v33, 0.0  ;;  %vm12216_vm8 = vcmp.ge.s32.totalorder %v8977_v62, 0  ;;  %vm12206_vm11 = vcmp.eq.s32.totalorder %v8812_v25, %v8980_v4 }
 0x17b   : > { %v1086_v56 = vmax.f32 %v1058_v36, %v1084_v38  ;;  %vm1266_vm3 = vcmp.eq.s32.totalorder %v8821_v34, %v1259_v23  ;;  %vm8989_vm4 = vmand %vm1267_vm10, %vm12216_vm8  ;;  %v12562_v29 = vmov 0  ;;  %7135 = vmatpush.msk.msra.mxu3 %vm12206_vm11, %v12252_v6  ;;  %vm12209_vm2 = vcmp.eq.s32.totalorder %v8821_v34, %v8980_v4 }
 0x17c   : > { %v1113_v19 = vmax.f32 %v1085_v24, %v1111_v42  ;;  %v12563_v29 = vsel %vm8989_vm4, 4294967295, %v12562_v29  ;;  %vm1265_vm13 = vcmp.eq.s32.totalorder %v8827_v31, %v1259_v23  ;;  %7126 = vmatpush.msk.msra.mxu2 %vm8989_vm4, %v12252_v6  ;;  %vm9005_vm10 = vmand %vm1266_vm3, %vm12216_vm8  ;;  %vm1264_vm11 = vcmp.eq.s32.totalorder %v8834_v22, %v1259_v23 }
 0x17d   : > { %v1114_v14 = vmax.f32 %v1086_v56, %v1112_v13  ;;  %12564 = vst [vmem:[#allocation45_spill] sm:$0xff] %v12563_v29  ;;  %v12566_v59 = vsel %vm9005_vm10, 4294967295, %v12565_v59  ;;  %7136 = vmatpush.msk.msra.mxu3 %vm12209_vm2, %v12252_v6  ;;  %vm9018_vm5 = vmand %vm1265_vm13, %vm12216_vm8  ;;  %v12568_v60 = vmov 0  ;;  %vm1263_vm15 = vcmp.eq.s32.totalorder %v8848_v41, %v1259_v23 }
 0x17e   : > { %1233 = vmatmul.f32.vlgmr.msra.gmra.mxu0 %v1113_v19  ;;  %12567 = vst [vmem:[#allocation46_spill] sm:$0xff] %v12566_v59  ;;  %v12569_v60 = vsel %vm9018_vm5, 4294967295, %v12568_v60  ;;  %7127 = vmatpush.msk.msra.mxu2 %vm9005_vm10, %v12252_v6  ;;  %vm12571_vm7 = vcmp.eq.s32.totalorder %v8827_v31, %v8980_v4  ;;  %vm9034_vm13 = vmand %vm1264_vm11, %vm12216_vm8  ;;  %vm12211_vm2 = vcmp.eq.s32.totalorder %v8848_v41, %v8980_v4  ;;  %v12576_v51 = vmov 0 }
 0x17f   : > { %1253 = vmatmul.f32.vlgmr.msra.gmra.mxu1 %v1114_v14  ;;  %12570 = vst [vmem:[#allocation47_spill] sm:$0xff] %v12569_v60  ;;  %7137 = vmatpush.msk.msra.mxu3 %vm12571_vm7, %v12252_v6  ;;  %v12573_v8 = vsel %vm9034_vm13, 4294967295, %v12572_v8  ;;  %vm1262_vm3 = vcmp.eq.s32.totalorder %v8857_v54, %v1259_v23  ;;  %vm12575_vm12 = vcmp.eq.s32.totalorder %v8834_v22, %v8980_v4  ;;  %vm9050_vm7 = vmand %vm1263_vm15, %vm12216_vm8  ;;  %v12579_v0 = vmov 0  ;;  %v7145_v14 = vld [vmem:[%s12588_s25 + $0x18] sm:$0xff] }
 0x180   : > { %12574 = vst [vmem:[#allocation48_spill] sm:$0xff] %v12573_v8  ;;  %7128 = vmatpush.msk.msra.mxu2 %vm9018_vm5, %v12252_v6  ;;  %v12577_v51 = vsel %vm9050_vm7, 4294967295, %v12576_v51  ;;  %vm12212_vm11 = vcmp.eq.s32.totalorder %v8857_v54, %v8980_v4  ;;  %vm1261_vm15 = vcmp.eq.s32.totalorder %v8863_v11, %v1259_v23  ;;  %v12582_v61 = vmov 0 }
 0x181   : > { %7138 = vmatpush.msk.msra.mxu3 %vm12575_vm12, %v12252_v6  ;;  %12578 = vst [vmem:[#allocation49_spill] sm:$0xff] %v12577_v51  ;;  %vm9065_vm12 = vmand %vm1262_vm3, %vm12216_vm8  ;;  %v12585_v18 = vmov 0  ;;  %v1445_v43 = vadd.s32 4294967289, %v8181_v2  ;;  %v9119_v7 = vadd.s32 1, %v8759_v46  ;;  %v12589_v36 = vmov 0 }
 0x182   : > { %7129 = vmatpush.msk.msra.mxu2 %vm9034_vm13, %v12252_v6  ;;  %v12580_v0 = vsel %vm9065_vm12, 4294967295, %v12579_v0  ;;  %vm9082_vm3 = vmand %vm1261_vm15, %vm12216_vm8  ;;  %vm12215_vm15 = vcmp.eq.s32.totalorder %v8755_v20, %v8980_v4  ;;  %v12593_v33 = vmov 0  ;;  %v12598_v10 = vmov 0 }
 0x183   : > { %7139 = vmatpush.msk.msra.mxu3 %vm12211_vm2, %v12252_v6  ;;  %12581 = vst [vmem:[#allocation50_spill] sm:$0xff] %v12580_v0  ;;  %v12583_v61 = vsel %vm9082_vm3, 4294967295, %v12582_v61  ;;  %vm12214_vm2 = vcmp.eq.s32.totalorder %v8863_v11, %v8980_v4  ;;  %vm1452_vm9 = vcmp.eq.s32.totalorder %v8821_v34, %v1445_v43  ;;  %vm12601_vm13 = vcmask 31744  }
 0x184   : > { %7130 = vmatpush.msk.msra.mxu2 %vm9050_vm7, %v12252_v6  ;;  %12584 = vst [vmem:[#allocation51_spill] sm:$0xff] %v12583_v61  ;;  %vm1543_vm7 = vcmp.eq.s32.totalorder %v8827_v31, %v8432_v49  ;;  %v12604_v24 = vmov 0  ;;  %v12607_v38 = vmov 0  ;;  %v12611_v56 = vmov 0 }
 0x185   : > { %7140 = vmatpush.msk.msra.mxu3 %vm12212_vm11, %v12252_v6  ;;  %vm1260_vm11 = vcmp.eq.s32.totalorder %v8755_v20, %v1259_v23  ;;  %v12614_v19 = vmov 0  ;;  %v12617_v13 = vmov 0  ;;  %v1320_v23 = vld [vmem:[%s12588_s25 + $0x8] sm:$0xff]  ;;  %v12739_v46 = vmov 0 }
 0x186   : > { %7131 = vmatpush.msk.msra.mxu2 %vm9065_vm12, %v12252_v6  ;;  %vm9100_vm14 = vmand %vm1260_vm11, %vm12216_vm8  ;;  %vm1453_vm11 = vcmp.eq.s32.totalorder %v8812_v25, %v1445_v43  ;;  %vm1545_vm8 = vcmp.eq.s32.totalorder %v8812_v25, %v8432_v49 }
 0x187   : > { %7141 = vmatpush.msk.msra.mxu3 %vm12214_vm2, %v12252_v6  ;;  %v12586_v18 = vsel %vm9100_vm14, 4294967295, %v12585_v18  ;;  %vm12219_vm2 = vcmask 523264  }
 0x188   : > { %7132 = vmatpush.msk.msra.mxu2 %vm9082_vm3, %v12252_v6  ;;  %12587 = vst [vmem:[#allocation52_spill] sm:$0xff] %v12586_v18  ;;  %vm12596_vm3 = vcmask 1043456  }
 0x189   : > { %7142 = vmatpush.msk.msra.mxu3 %vm12215_vm15, %v12252_v6  ;;  %vm12237_vm15 = vcmp.lt.s32.totalorder %v9119_v7, 8  ;;  %vm12597_vm12 = vmmov %vm12596_vm3 }
 0x18a   : > { %7133 = vmatpush.msk.msra.mxu2 %vm9100_vm14, %v12252_v6  ;;  %vm9134_vm1 = vmand %vm1453_vm11, %vm12237_vm15 }
 0x18b   : > { %v12590_v36 = vsel %vm9134_vm1, 4294967295, %v12589_v36  ;;  %vm9142_vm14 = vmand %vm1545_vm8, %vm12592_vm6  ;;  %vm12603_vm8 = vcmp.ge.s32.totalorder %v8977_v62, 0 }
 0x18c   : > { %12591 = vst [vmem:[#allocation53_spill] sm:$0xff] %v12590_v36  ;;  %v12594_v33 = vsel %vm9142_vm14, 4294967295, %v12593_v33  ;;  %vm9151_vm11 = vmand %vm1452_vm9, %vm12237_vm15 }
 0x18d   : > { %12595 = vst [vmem:[#allocation54_spill] sm:$0xff] %v12594_v33  ;;  %v12599_v10 = vsel %vm9151_vm11, 4294967295, %v12598_v10  ;;  %vm12602_vm6 = vmmov %vm12601_vm13 }
 0x18e   : > { %12600 = vst [vmem:[#allocation55_spill] sm:$0xff] %v12599_v10  ;;  %vm9161_vm5 = vmand %vm1544_vm0, %vm12603_vm8  ;;  %vm1542_vm0 = vcmp.eq.s32.totalorder %v8834_v22, %v8432_v49 }
 0x18f   : > { %v12605_v24 = vsel %vm9161_vm5, 4294967295, %v12604_v24 }
 0x190   : > { %12606 = vst [vmem:[#allocation56_spill] sm:$0xff] %v12605_v24 }
 0x1fb   : > { %v1234_v40 = vpop.f32.mrf.mxu0 }
 0x1fc   : > { %v1254_v55 = vpop.f32.mrf.mxu1 }
 0x1fd   : > { %v9111_v35 = vadd.f32 %v1254_v55, %v1234_v40  ;;  %v12620_v40 = vmov 0  ;;  %v12623_v55 = vmov 0 }
 0x1ff   : > { %7134 = vmatmul.msk.f32.vlgmr.msra.gmra.mxu2 %vm12219_vm2, %v9111_v35  ;;  %7143 = vmatmul.msk.f32.vlgmr.msra.gmra.mxu3 %vm12219_vm2, %v9111_v35  ;;  %vm1451_vm2 = vcmp.eq.s32.totalorder %v8827_v31, %v1445_v43 }
 0x200   : > { %vm9174_vm9 = vmand %vm1451_vm2, %vm12237_vm15 }
 0x201   : > { %v12608_v38 = vsel %vm9174_vm9, 4294967295, %v12607_v38 }
 0x202   : > { %12609 = vst [vmem:[#allocation57_spill] sm:$0xff] %v12608_v38 }
 0x282   : > { %v1316_v52 = vpop.f32.mrf.mxu2  ;;  %v1373_v42 = vpop.f32.mrf.mxu3 }
 0x283   : > { %7146 = vmatpush.msk.msrb.mxu2 %vm12596_vm3, %v1373_v42  ;;  %7149 = vmatpush.msk.msrb.mxu3 %vm12597_vm12, %v1316_v52  ;;  %vm1450_vm12 = vcmp.eq.s32.totalorder %v8834_v22, %v1445_v43  ;;  %v12635_v52 = vmov 0  ;;  %v12642_v42 = vmov 0 }
 0x284   : > { %7147 = vmatmul.msk.f32.vlgmr.msrb.gmra.mxu2 %vm12601_vm13, %v7144_v26  ;;  %7150 = vmatmul.msk.f32.vlgmr.msrb.gmra.mxu3 %vm12602_vm6, %v1319_v53  ;;  %vm12610_vm13 = vmmov %vm12603_vm8  ;;  %vm1449_vm6 = vcmp.eq.s32.totalorder %v8848_v41, %v1445_v43  ;;  %v12626_v26 = vmov 0  ;;  %v12632_v53 = vmov 0 }
 0x285   : > { %7152 = vmatpush.msk.msra.mxu2 %vm9134_vm1, %v12252_v6  ;;  %7166 = vmatpush.msk.msra.mxu3 %vm9142_vm14, %v12252_v6  ;;  %vm9182_vm3 = vmand %vm1543_vm7, %vm12610_vm13  ;;  %vm1541_vm7 = vcmp.eq.s32.totalorder %v8848_v41, %v8432_v49  ;;  %vm1448_vm14 = vcmp.eq.s32.totalorder %v8857_v54, %v1445_v43  ;;  %vm12699_vm1 = vcmp.ge.s32.totalorder %v8977_v62, 0 }
 0x286   : > { %v12612_v56 = vsel %vm9182_vm3, 4294967295, %v12611_v56  ;;  %vm9195_vm2 = vmand %vm1450_vm12, %vm12237_vm15 }
 0x287   : > { %12613 = vst [vmem:[#allocation58_spill] sm:$0xff] %v12612_v56  ;;  %7153 = vmatpush.msk.msra.mxu2 %vm9151_vm11, %v12252_v6  ;;  %7167 = vmatpush.msk.msra.mxu3 %vm9161_vm5, %v12252_v6  ;;  %v12615_v19 = vsel %vm9195_vm2, 4294967295, %v12614_v19  ;;  %vm9203_vm13 = vmand %vm1542_vm0, %vm12603_vm8  ;;  %vm1540_vm0 = vcmp.eq.s32.totalorder %v8857_v54, %v8432_v49  ;;  %vm1447_vm5 = vcmp.eq.s32.totalorder %v8863_v11, %v1445_v43  ;;  %vm12631_vm11 = vcmp.ge.s32.totalorder %v8977_v62, 0 }
 0x288   : > { %12616 = vst [vmem:[#allocation59_spill] sm:$0xff] %v12615_v19  ;;  %v12618_v13 = vsel %vm9203_vm13, 4294967295, %v12617_v13  ;;  %vm9222_vm12 = vmand %vm1449_vm6, %vm12237_vm15 }
 0x289   : > { %12619 = vst [vmem:[#allocation60_spill] sm:$0xff] %v12618_v13  ;;  %7154 = vmatpush.msk.msra.mxu2 %vm9174_vm9, %v12252_v6  ;;  %7168 = vmatpush.msk.msra.mxu3 %vm9182_vm3, %v12252_v6  ;;  %v12621_v40 = vsel %vm9222_vm12, 4294967295, %v12620_v40  ;;  %vm9230_vm3 = vmand %vm1541_vm7, %vm12603_vm8  ;;  %vm12236_vm7 = vcmp.eq.s32.totalorder %v8863_v11, %v8432_v49  ;;  %vm12629_vm8 = vcmask 31744  }
 0x28a   : > { %12622 = vst [vmem:[#allocation61_spill] sm:$0xff] %v12621_v40  ;;  %v12624_v55 = vsel %vm9230_vm3, 4294967295, %v12623_v55  ;;  %vm9243_vm6 = vmand %vm1448_vm14, %vm12237_vm15 }
 0x28b   : > { %12625 = vst [vmem:[#allocation62_spill] sm:$0xff] %v12624_v55  ;;  %7155 = vmatpush.msk.msra.mxu2 %vm9195_vm2, %v12252_v6  ;;  %7169 = vmatpush.msk.msra.mxu3 %vm9203_vm13, %v12252_v6  ;;  %v12627_v26 = vsel %vm9243_vm6, 4294967295, %v12626_v26  ;;  %vm12630_vm9 = vmmov %vm12629_vm8  ;;  %vm1446_vm13 = vcmp.eq.s32.totalorder %v8755_v20, %v1445_v43  ;;  %v12639_v43 = vmov 0 }
 0x28c   : > { %12628 = vst [vmem:[#allocation63_spill] sm:$0xff] %v12627_v26  ;;  %7148 = vmatmul.msk.f32.gmra.mxu2 %vm12629_vm8, %v7145_v14  ;;  %7151 = vmatmul.msk.f32.gmra.mxu3 %vm12630_vm9, %v1320_v23  ;;  %vm9253_vm2 = vmand %vm1540_vm0, %vm12631_vm11  ;;  %vm12235_vm11 = vcmp.eq.s32.totalorder %v8755_v20, %v8432_v49  ;;  %vm12638_vm9 = vcmp.ge.s32.totalorder %v8977_v62, 0  ;;  %v9294_v14 = vadd.s32 8, %v8181_v2  ;;  %v12647_v23 = vmov 0 }
 0x28d   : > { %v12633_v53 = vsel %vm9253_vm2, 4294967295, %v12632_v53  ;;  %7156 = vmatpush.msk.msra.mxu2 %vm9222_vm12, %v12252_v6  ;;  %7170 = vmatpush.msk.msra.mxu3 %vm9230_vm3, %v12252_v6  ;;  %vm9266_vm14 = vmand %vm1447_vm5, %vm12237_vm15 }
 0x28e   : > { %12634 = vst [vmem:[#allocation64_spill] sm:$0xff] %v12633_v53  ;;  %v12636_v52 = vsel %vm9266_vm14, 4294967295, %v12635_v52  ;;  %vm9277_vm0 = vmand %vm12236_vm7, %vm12638_vm9 }
 0x28f   : > { %12637 = vst [vmem:[#allocation65_spill] sm:$0xff] %v12636_v52  ;;  %v12640_v43 = vsel %vm9277_vm0, 4294967295, %v12639_v43  ;;  %7157 = vmatpush.msk.msra.mxu2 %vm9243_vm6, %v12252_v6  ;;  %7171 = vmatpush.msk.msra.mxu3 %vm9253_vm2, %v12252_v6  ;;  %vm9289_vm5 = vmand %vm1446_vm13, %vm12237_vm15  ;;  %vm12256_vm13 = vcmp.eq.s32.totalorder %v8812_v25, %v9294_v14  ;;  %vm12240_vm15 = vcmp.eq.s32.totalorder %v8821_v34, %v9294_v14  ;;  %vm12660_vm2 = vcmp.lt.s32.totalorder %v9119_v7, 8 }
 0x290   : > { %12641 = vst [vmem:[#allocation66_spill] sm:$0xff] %v12640_v43  ;;  %v12643_v42 = vsel %vm9289_vm5, 4294967295, %v12642_v42  ;;  %vm12646_vm8 = vmmov %vm12638_vm9 }
 0x291   : > { %12644 = vst [vmem:[#allocation67_spill] sm:$0xff] %v12643_v42  ;;  %vm9301_vm9 = vmand %vm12235_vm11, %vm12646_vm8  ;;  %7158 = vmatpush.msk.msra.mxu2 %vm9266_vm14, %v12252_v6  ;;  %7172 = vmatpush.msk.msra.mxu3 %vm9277_vm0, %v12252_v6  ;;  %vm12650_vm8 = vcmask 1043456   ;;  %vm12651_vm11 = vcmask 523264   ;;  %vm12659_vm0 = vcmask 1043456   ;;  %v7370_v42 = vld [vmem:[%s12131_s5 + $0x108] sm:$0xff] }
 0x292   : > { %12645 = vst [vmem:[#allocation68_spill] sm:$0xff] %v9294_v14  ;;  %v12648_v23 = vsel %vm9301_vm9, 4294967295, %v12647_v23  ;;  %vm12652_vm7 = vmmov %vm12651_vm11 }
 0x293   : > { %12649 = vst [vmem:[#allocation69_spill] sm:$0xff] %v12648_v23  ;;  %7159 = vmatpush.msk.msra.mxu2 %vm9289_vm5, %v12252_v6  ;;  %7173 = vmatpush.msk.msra.mxu3 %vm9301_vm9, %v12252_v6  ;;  %vm12241_vm9 = vcmp.eq.s32.totalorder %v8827_v31, %v9294_v14  ;;  %vm1758_vm5 = vcmp.eq.s32.totalorder %v8827_v31, %v1752_v28  ;;  %vm12664_vm14 = vmmov %vm12659_vm0  ;;  %v12746_v23 = vmov 0 }
 0x294   : > { %7174 = vmatmul.msk.f32.vlgmr.msra.gmra.mxu3 %vm12651_vm11, %v9111_v35  ;;  %7160 = vmatmul.msk.f32.vlgmr.msra.gmra.mxu2 %vm12652_vm7, %v9111_v35  ;;  %vm12254_vm11 = vcmp.eq.s32.totalorder %v8834_v22, %v9294_v14  ;;  %vm12242_vm7 = vcmp.eq.s32.totalorder %v8848_v41, %v9294_v14 }
 0x295   : > { %7182 = vmatpush.msk.msrb.mxu2 %vm12650_vm8, %v9111_v35  ;;  %vm12653_vm8 = vcmask 31744  }
 0x297   : > { %7213 = vmatpush.msk.msra.mxu2 %vm12256_vm13, %v12252_v6  ;;  %vm1669_vm13 = vcmp.eq.s32.totalorder %v8821_v34, %v8460_v30 }
 0x299   : > { %7214 = vmatpush.msk.msra.mxu2 %vm12240_vm15, %v12252_v6  ;;  %vm12249_vm15 = vcmp.eq.s32.totalorder %v8857_v54, %v9294_v14 }
 0x29b   : > { %7215 = vmatpush.msk.msra.mxu2 %vm12241_vm9, %v12252_v6  ;;  %vm12248_vm9 = vcmp.eq.s32.totalorder %v8863_v11, %v9294_v14 }
 0x29c   : > { %7183 = vmatmul.msk.f32.vlgmr.msrb.gmra.mxu2 %vm12653_vm8, %v7180_v47  ;;  %v7181_v47 = vld [vmem:[%s12588_s25 + $0x48] sm:$0xff] }
 0x29d   : > { %7216 = vmatpush.msk.msra.mxu2 %vm12254_vm11, %v12252_v6 }
 0x29f   : > { %7217 = vmatpush.msk.msra.mxu2 %vm12242_vm7, %v12252_v6  ;;  %vm12654_vm7 = vcmask 523264  }
 0x2a1   : > { %7218 = vmatpush.msk.msra.mxu2 %vm12249_vm15, %v12252_v6  ;;  %vm1670_vm15 = vcmp.eq.s32.totalorder %v8812_v25, %v8460_v30 }
 0x2a2   : > { %vm9406_vm3 = vmand %vm1670_vm15, %vm12660_vm2 }
 0x2a3   : > { %7219 = vmatpush.msk.msra.mxu2 %vm12248_vm9, %v12252_v6  ;;  %vm1760_vm9 = vcmp.eq.s32.totalorder %v8812_v25, %v1752_v28  ;;  %v7161_v6 = vld [vmem:[%s12588_s25 + $0x20] sm:$0xff]  ;;  %v12662_v32 = vsel %vm9406_vm3, 4294967295, %v12661_v32  ;;  %vm12671_vm15 = vmmov %vm12660_vm2 }
 0x2a4   : > { %7184 = vmatmul.msk.f32.gmra.mxu2 %vm12653_vm8, %v7181_v47  ;;  %v7175_v47 = vld [vmem:[%s12588_s25 + $0x30] sm:$0xff]  ;;  %vm12655_vm8 = vcmp.ge.s32.totalorder %v8977_v62, 0  ;;  %12663 = vst [vmem:[#allocation71_spill] sm:$0xff] %v12662_v32  ;;  %vm9427_vm2 = vmand %vm1669_vm13, %vm12671_vm15 }
 0x2a5   : > { %1890 = vmatpush.msra.mxu2 %v12250_v57  ;;  %vm9397_vm11 = vmand %vm1760_vm9, %vm12655_vm8  ;;  %vm12665_vm9 = vcmask 31744  }
 0x2a6   : > { %v12657_v37 = vsel %vm9397_vm11, 4294967295, %v12656_v37  ;;  %vm12669_vm12 = vmmov %vm12665_vm9 }
 0x2a7   : > { %12658 = vst [vmem:[#allocation70_spill] sm:$0xff] %v12657_v37  ;;  %vm12679_vm13 = vmmov %vm12671_vm15  ;;  %vm1756_vm15 = vcmp.eq.s32.totalorder %v8848_v41, %v1752_v28  ;;  %v7194_v37 = vld [vmem:[%s12588_s25 + $0x50] sm:$0xff] }
 0x2ac   : > { %7220 = vmatmul.msk.f32.vlgmr.msra.gmra.mxu2 %vm12654_vm7, %v9111_v35  ;;  %vm1759_vm7 = vcmp.eq.s32.totalorder %v8821_v34, %v1752_v28 }
 0x2ad   : > { %vm9415_vm6 = vmand %vm1759_vm7, %vm12655_vm8 }
 0x2ae   : > { %v12667_v58 = vsel %vm9415_vm6, 4294967295, %v12666_v58  ;;  %vm12675_vm7 = vmmov %vm12655_vm8 }
 0x2af   : > { %12668 = vst [vmem:[#allocation72_spill] sm:$0xff] %v12667_v58 }
 0x307   : > { %v9376_v27 = vpop.f32.mrf.mxu2  ;;  %v9378_v3 = vpop.f32.mrf.mxu3 }
 0x30f   : > { %v9380_v45 = vpop.f32.mrf.mxu2  ;;  %v9382_v21 = vpop.f32.mrf.mxu3 }
 0x317   : > { %v1587_v57 = vpop.f32.mrf.mxu3  ;;  %v1498_v44 = vpop.f32.mrf.mxu2 }
 0x318   : > { %7177 = vmatpush.msk.msrb.mxu1 %vm12659_vm0, %v1587_v57  ;;  %7163 = vmatpush.msk.msrb.mxu0 %vm12664_vm14, %v1498_v44  ;;  %vm1668_vm0 = vcmp.eq.s32.totalorder %v8827_v31, %v8460_v30  ;;  %v12670_v57 = vmov 1.0   ;;  %v12672_v44 = vmov 0  ;;  %vm1757_vm14 = vcmp.eq.s32.totalorder %v8834_v22, %v1752_v28 }
 0x319   : > { %7178 = vmatmul.msk.f32.vlgmr.msrb.gmra.mxu1 %vm12665_vm9, %v7175_v47  ;;  %7164 = vmatmul.msk.f32.vlgmr.msrb.gmra.mxu0 %vm12669_vm12, %v7161_v6  ;;  %v12673_v44 = vsel %vm9427_vm2, 4294967295, %v12672_v44  ;;  %vm9437_vm9 = vmand %vm1758_vm5, %vm12675_vm7  ;;  %v12676_v6 = vmov 0  ;;  %vm1667_vm12 = vcmp.eq.s32.totalorder %v8834_v22, %v8460_v30  ;;  %v12680_v47 = vmov 0 }
 0x31a   : > { %7199 = vmatpush.msk.msra.mxu1 %vm9397_vm11, %v12670_v57  ;;  %12674 = vst [vmem:[#allocation73_spill] sm:$0xff] %v12673_v44  ;;  %7185 = vmatpush.msk.msra.mxu0 %vm9406_vm3, %v12670_v57  ;;  %v12677_v6 = vsel %vm9437_vm9, 4294967295, %v12676_v6  ;;  %vm9448_vm8 = vmand %vm1668_vm0, %vm12679_vm13  ;;  %v12757_v44 = vmov 0 }
 0x31b   : > { %12678 = vst [vmem:[#allocation74_spill] sm:$0xff] %v12677_v6  ;;  %v12681_v47 = vsel %vm9448_vm8, 4294967295, %v12680_v47  ;;  %vm12683_vm5 = vmmov %vm12675_vm7  ;;  %v1932_v6 = vadd.s32 9, %v8181_v2 }
 0x31c   : > { %7200 = vmatpush.msk.msra.mxu1 %vm9415_vm6, %v12670_v57  ;;  %12682 = vst [vmem:[#allocation75_spill] sm:$0xff] %v12681_v47  ;;  %7186 = vmatpush.msk.msra.mxu0 %vm9427_vm2, %v12670_v57  ;;  %vm9458_vm7 = vmand %vm1757_vm14, %vm12683_vm5  ;;  %vm1666_vm6 = vcmp.eq.s32.totalorder %v8848_v41, %v8460_v30  ;;  %vm1755_vm14 = vcmp.eq.s32.totalorder %v8857_v54, %v1752_v28  ;;  %v12763_v47 = vmov 0 }
 0x31d   : > { %v12685_v9 = vsel %vm9458_vm7, 4294967295, %v12684_v9  ;;  %vm12687_vm0 = vmmov %vm12679_vm13 }
 0x31e   : > { %12686 = vst [vmem:[#allocation76_spill] sm:$0xff] %v12685_v9  ;;  %7201 = vmatpush.msk.msra.mxu1 %vm9437_vm9, %v12670_v57  ;;  %vm9469_vm13 = vmand %vm1667_vm12, %vm12687_vm0  ;;  %7187 = vmatpush.msk.msra.mxu0 %vm9448_vm8, %v12670_v57  ;;  %vm1665_vm0 = vcmp.eq.s32.totalorder %v8857_v54, %v8460_v30  ;;  %vm12694_vm9 = vcmp.lt.s32.totalorder %v9119_v7, 8 }
 0x31f   : > { %v12689_v50 = vsel %vm9469_vm13, 4294967295, %v12688_v50  ;;  %vm9485_vm12 = vmand %vm1756_vm15, %vm12683_vm5  ;;  %v9491_v17 = vpop.f32.mrf.mxu2  ;;  %vm1754_vm15 = vcmp.eq.s32.totalorder %v8863_v11, %v1752_v28  ;;  %vm12698_vm5 = vcmask 31744  }
 0x320   : > { %12690 = vst [vmem:[#allocation77_spill] sm:$0xff] %v12689_v50  ;;  %v12692_v1 = vsel %vm9485_vm12, 4294967295, %v12691_v1  ;;  %7202 = vmatpush.msk.msra.mxu1 %vm9458_vm7, %v12670_v57  ;;  %vm9498_vm11 = vmand %vm1666_vm6, %vm12694_vm9  ;;  %7188 = vmatpush.msk.msra.mxu0 %vm9469_vm13, %v12670_v57  ;;  %vm12285_vm6 = vcmp.eq.s32.totalorder %v8863_v11, %v8460_v30  ;;  %vm12704_vm7 = vcmp.lt.s32.totalorder %v9119_v7, 8  ;;  %v7323_v50 = vld [vmem:[%s12131_s5 + $0x90] sm:$0xff] }
 0x321   : > { %12693 = vst [vmem:[#allocation78_spill] sm:$0xff] %v12692_v1  ;;  %v12696_v39 = vsel %vm9498_vm11, 4294967295, %v12695_v39  ;;  %7179 = vmatmul.msk.f32.gmra.mxu1 %vm12698_vm5, %v7176_v16  ;;  %vm9509_vm10 = vmand %vm1755_vm14, %vm12699_vm1  ;;  %vm1753_vm1 = vcmp.eq.s32.totalorder %v8755_v20, %v1752_v28  ;;  %vm12708_vm14 = vcmp.ge.s32.totalorder %v8977_v62, 0  ;;  %v12709_v16 = vmov 0  ;;  %v7222_v1 = vld [vmem:[%s12588_s25 + $0x78] sm:$0xff] }
 0x322   : > { %12697 = vst [vmem:[#allocation79_spill] sm:$0xff] %v12696_v39  ;;  %v12701_v48 = vsel %vm9509_vm10, 4294967295, %v12700_v48  ;;  %vm12703_vm9 = vmmov %vm12698_vm5  ;;  %7203 = vmatpush.msk.msra.mxu1 %vm9485_vm12, %v12670_v57  ;;  %7189 = vmatpush.msk.msra.mxu0 %vm9498_vm11, %v12670_v57  ;;  %v12716_v28 = vmov 0  ;;  %vm12743_vm12 = vcmask 31744  }
 0x323   : > { %12702 = vst [vmem:[#allocation80_spill] sm:$0xff] %v12701_v48  ;;  %7165 = vmatmul.msk.f32.gmra.mxu0 %vm12703_vm9, %v7162_v63  ;;  %vm9521_vm4 = vmand %vm1665_vm0, %vm12704_vm7  ;;  %v12712_v63 = vmov 0 }
 0x324   : > { %v12706_v15 = vsel %vm9521_vm4, 4294967295, %v12705_v15  ;;  %vm9531_vm5 = vmand %vm1754_vm15, %vm12708_vm14  ;;  %7204 = vmatpush.msk.msra.mxu1 %vm9509_vm10, %v12670_v57  ;;  %7190 = vmatpush.msk.msra.mxu0 %vm9521_vm4, %v12670_v57  ;;  %vm1938_vm10 = vcmp.eq.s32.totalorder %v8827_v31, %v1932_v6 }
 0x325   : > { %12707 = vst [vmem:[#allocation81_spill] sm:$0xff] %v12706_v15  ;;  %v12710_v16 = vsel %vm9531_vm5, 4294967295, %v12709_v16  ;;  %vm9545_vm0 = vmand %vm12285_vm6, %vm12704_vm7 }
 0x326   : > { %12711 = vst [vmem:[#allocation82_spill] sm:$0xff] %v12710_v16  ;;  %v12713_v63 = vsel %vm9545_vm0, 4294967295, %v12712_v63  ;;  %vm12715_vm15 = vmmov %vm12708_vm14  ;;  %7205 = vmatpush.msk.msra.mxu1 %vm9531_vm5, %v12670_v57  ;;  %7191 = vmatpush.msk.msra.mxu0 %vm9545_vm0, %v12670_v57 }
 0x327   : > { %12714 = vst [vmem:[#allocation83_spill] sm:$0xff] %v12713_v63  ;;  %vm9554_vm14 = vmand %vm1753_vm1, %vm12715_vm15  ;;  %v9573_v62 = vpop.f32.mrf.mxu2  ;;  %vm12724_vm1 = vcmask 523264   ;;  %vm12726_vm15 = vcmask 1043456  }
 0x328   : > { %v12717_v28 = vsel %vm9554_vm14, 4294967295, %v12716_v28  ;;  %vm12719_vm9 = vmmov %vm12704_vm7  ;;  %vm12720_vm7 = vcmp.eq.s32.totalorder %v8755_v20, %v8460_v30  ;;  %7206 = vmatpush.msk.msra.mxu1 %vm9554_vm14, %v12670_v57  ;;  %vm12728_vm14 = vcmp.eq.s32.totalorder %v8821_v34, %v9294_v14 }
 0x329   : > { %12718 = vst [vmem:[#allocation84_spill] sm:$0xff] %v12717_v28  ;;  %vm9566_vm6 = vmand %vm12720_vm7, %vm12719_vm9  ;;  %7207 = vmatmul.msk.f32.vlgmr.msra.gmra.mxu1 %vm12724_vm1, %v9111_v35  ;;  %vm12727_vm7 = vcmp.eq.s32.totalorder %v8812_v25, %v9294_v14  ;;  %v7221_v28 = vld [vmem:[%s12588_s25 + $0x70] sm:$0xff] }
 0x32a   : > { %v12722_v12 = vsel %vm9566_vm6, 4294967295, %v12721_v12  ;;  %7192 = vmatpush.msk.msra.mxu0 %vm9566_vm6, %v12670_v57  ;;  %vm12725_vm9 = vmmov %vm12724_vm1  ;;  %vm12729_vm1 = vcmp.eq.s32.totalorder %v8827_v31, %v9294_v14 }
 0x32b   : > { %12723 = vst [vmem:[#allocation85_spill] sm:$0xff] %v12722_v12  ;;  %7193 = vmatmul.msk.f32.vlgmr.msra.gmra.mxu0 %vm12725_vm9, %v9111_v35  ;;  %vm12730_vm9 = vcmp.eq.s32.totalorder %v8834_v22, %v9294_v14  ;;  %vm12744_vm6 = vmmov %vm12743_vm12 }
 0x32f   : > { %v1892_v5 = vpop.f32.mrf.mxu2 }
 0x330   : > { %7223 = vmatpush.msk.msrb.mxu1 %vm12726_vm15, %v1892_v5  ;;  %vm12731_vm15 = vcmp.eq.s32.totalorder %v8848_v41, %v9294_v14  ;;  %v12734_v5 = vmov 0.0  }
 0x332   : > { %7249 = vmatpush.msk.msra.mxu1 %vm12727_vm7, %v12670_v57  ;;  %vm12732_vm7 = vcmp.eq.s32.totalorder %v8857_v54, %v9294_v14 }
 0x334   : > { %7250 = vmatpush.msk.msra.mxu1 %vm12728_vm14, %v12670_v57  ;;  %vm12733_vm14 = vcmp.eq.s32.totalorder %v8863_v11, %v9294_v14 }
 0x336   : > { %7251 = vmatpush.msk.msra.mxu1 %vm12729_vm1, %v12670_v57  ;;  %vm12735_vm1 = vcmask 31744  }
 0x337   : > { %7224 = vmatmul.msk.f32.vlgmr.msrb.gmra.mxu1 %vm12735_vm1, %v7221_v28  ;;  %v7208_v28 = vld [vmem:[%s12588_s25 + $0x60] sm:$0xff] }
 0x338   : > { %7252 = vmatpush.msk.msra.mxu1 %vm12730_vm9, %v12670_v57  ;;  %vm12736_vm9 = vmmov %vm12735_vm1  ;;  %vm12738_vm1 = vcmp.lt.s32.totalorder %v9119_v7, 8 }
 0x339   : > { %vm12745_vm0 = vmmov %vm12738_vm1 }
 0x33a   : > { %7253 = vmatpush.msk.msra.mxu1 %vm12731_vm15, %v12670_v57  ;;  %vm1940_vm15 = vcmp.eq.s32.totalorder %v8812_v25, %v1932_v6 }
 0x33c   : > { %7254 = vmatpush.msk.msra.mxu1 %vm12732_vm7, %v12670_v57  ;;  %vm1939_vm7 = vcmp.eq.s32.totalorder %v8821_v34, %v1932_v6 }
 0x33d   : > { %vm9653_vm4 = vmand %vm1939_vm7, %vm12745_vm0 }
 0x33e   : > { %7255 = vmatpush.msk.msra.mxu1 %vm12733_vm14, %v12670_v57  ;;  %vm12737_vm14 = vcmask 1043456   ;;  %v12747_v23 = vsel %vm9653_vm4, 4294967295, %v12746_v23 }
 0x33f   : > { %7225 = vmatmul.msk.f32.gmra.mxu1 %vm12736_vm9, %v7222_v1  ;;  %vm9643_vm9 = vmand %vm1940_vm15, %vm12738_vm1  ;;  %12748 = vst [vmem:[#allocation87_spill] sm:$0xff] %v12747_v23 }
 0x340   : > { %2082 = vmatpush.msra.mxu1 %v12734_v5  ;;  %v12740_v46 = vsel %vm9643_vm9, 4294967295, %v12739_v46  ;;  %vm12742_vm5 = vmmov %vm12737_vm14 }
 0x341   : > { %12741 = vst [vmem:[#allocation86_spill] sm:$0xff] %v12740_v46 }
 0x396   : > { %v9619_v16 = vpop.f32.mrf.mxu1  ;;  %v9621_v48 = vpop.f32.mrf.mxu0 }
 0x39e   : > { %v9627_v14 = vpop.f32.mrf.mxu1 }
 0x3a0   : > { %v9629_v9 = vpop.f32.mrf.mxu0 }
 0x3a6   : > { %v1802_v58 = vpop.f32.mrf.mxu1 }
 0x3a7   : > { %7210 = vmatpush.msk.msrb.mxu0 %vm12737_vm14, %v1802_v58  ;;  %v12753_v58 = vmov 0  ;;  %vm12756_vm14 = vmmov %vm12745_vm0 }
 0x3a8   : > { %v1712_v1 = vpop.f32.mrf.mxu0  ;;  %7211 = vmatmul.msk.f32.vlgmr.msrb.gmra.mxu0 %vm12743_vm12, %v7208_v28  ;;  %vm12749_vm12 = vmmov %vm12745_vm0  ;;  %v7209_v28 = vld [vmem:[%s12588_s25 + $0x68] sm:$0xff] }
 0x3a9   : > { %7196 = vmatpush.msk.msrb.mxu3 %vm12742_vm5, %v1712_v1  ;;  %7239 = vmatpush.msk.msra.mxu0 %vm9406_vm3, %v12670_v57  ;;  %vm1937_vm5 = vcmp.eq.s32.totalorder %v8834_v22, %v1932_v6  ;;  %vm9666_vm15 = vmand %vm1938_vm10, %vm12749_vm12  ;;  %v7195_v1 = vld [vmem:[%s12588_s25 + $0x58] sm:$0xff]  ;;  %vm1935_vm10 = vcmp.eq.s32.totalorder %v8857_v54, %v1932_v6  ;;  %vm12760_vm12 = vcmask 31744  }
 0x3aa   : > { %7197 = vmatmul.msk.f32.vlgmr.msrb.gmra.mxu3 %vm12744_vm6, %v7194_v37  ;;  %v12750_v37 = vmov 0  ;;  %vm1936_vm6 = vcmp.eq.s32.totalorder %v8848_v41, %v1932_v6  ;;  %vm9679_vm7 = vmand %vm1937_vm5, %vm12745_vm0  ;;  %vm1934_vm5 = vcmp.eq.s32.totalorder %v8863_v11, %v1932_v6  ;;  %v12767_v6 = vmov 0 }
 0x3ab   : > { %7226 = vmatpush.msk.msra.mxu3 %vm9643_vm9, %v12670_v57  ;;  %v12751_v37 = vsel %vm9666_vm15, 4294967295, %v12750_v37  ;;  %7240 = vmatpush.msk.msra.mxu0 %vm9427_vm2, %v12670_v57  ;;  %v12754_v58 = vsel %vm9679_vm7, 4294967295, %v12753_v58  ;;  %vm9698_vm1 = vmand %vm1936_vm6, %vm12756_vm14 }
 0x3ac   : > { %12752 = vst [vmem:[#allocation88_spill] sm:$0xff] %v12751_v37  ;;  %v12758_v44 = vsel %vm9698_vm1, 4294967295, %v12757_v44  ;;  %vm12761_vm0 = vmmov %vm12760_vm12 }
 0x3ad   : > { %7227 = vmatpush.msk.msra.mxu3 %vm9653_vm4, %v12670_v57  ;;  %12755 = vst [vmem:[#allocation89_spill] sm:$0xff] %v12754_v58  ;;  %7241 = vmatpush.msk.msra.mxu0 %vm9448_vm8, %v12670_v57  ;;  %vm12762_vm8 = vmmov %vm12756_vm14 }
 0x3ae   : > { %12759 = vst [vmem:[#allocation90_spill] sm:$0xff] %v12758_v44  ;;  %vm9713_vm6 = vmand %vm1935_vm10, %vm12762_vm8  ;;  %vm12771_vm10 = vnez %v12713_v63  ;;  %v9780_v44 = vand.u32 3, %v8181_v2 }
 0x3af   : > { %7228 = vmatpush.msk.msra.mxu3 %vm9666_vm15, %v12670_v57  ;;  %7242 = vmatpush.msk.msra.mxu0 %vm9469_vm13, %v12670_v57  ;;  %v12764_v47 = vsel %vm9713_vm6, 4294967295, %v12763_v47  ;;  %vm12766_vm14 = vmmov %vm12762_vm8  ;;  %vm12770_vm8 = vnez %v12706_v15  ;;  %v2025_v15 = vpop.permute.xlu1 %2024 }
 0x3b0   : > { %7212 = vmatmul.msk.f32.gmra.mxu0 %vm12760_vm12, %v7209_v28  ;;  %12765 = vst [vmem:[#allocation91_spill] sm:$0xff] %v12764_v47  ;;  %vm9725_vm13 = vmand %vm1934_vm5, %vm12766_vm14  ;;  %vm12772_vm5 = vnez %v12722_v12  ;;  %vm12773_vm12 = vcmask 523264   ;;  %v7234_v28 = vld [vmem:[%s12588_s25 + $0x80] sm:$0xff]  ;;  %vm12775_vm14 = vcmask 31744   ;;  %v7235_v47 = vld [vmem:[%s12588_s25 + $0x88] sm:$0xff]  ;;  %v2120_v37 = vmul.u32 2, %v9780_v44 }
 0x3b1   : > { %7229 = vmatpush.msk.msra.mxu3 %vm9679_vm7, %v12670_v57  ;;  %7243 = vmatpush.msk.msra.mxu0 %vm9498_vm11, %v12670_v57  ;;  %v12768_v6 = vsel %vm9725_vm13, 4294967295, %v12767_v6  ;;  %12777 = vst [vmem:[#allocation93_spill] sm:$0xff] %v9780_v44 }
 0x3b2   : > { %7198 = vmatmul.msk.f32.gmra.mxu3 %vm12761_vm0, %v7195_v1  ;;  %12769 = vst [vmem:[#allocation92_spill] sm:$0xff] %v12768_v6  ;;  %vm12774_vm0 = vcmask 1043456   ;;  %v12320_v6 = vshra.s32 %v8181_v2, 2 }
 0x3b3   : > { %7230 = vmatpush.msk.msra.mxu3 %vm9698_vm1, %v12670_v57  ;;  %7244 = vmatpush.msk.msra.mxu0 %vm12770_vm8, %v12670_v57 }
 0x3b4   : > { %v2119_v58 = vmul.u32 16, %v12320_v6  ;;  %v1443_v6 = vadd.f32 %v9382_v21, %v9380_v45 }
 0x3b5   : > { %7231 = vmatpush.msk.msra.mxu3 %vm9713_vm6, %v12670_v57  ;;  %7245 = vmatpush.msk.msra.mxu0 %vm12771_vm10, %v12670_v57  ;;  %vm12815_vm10 = vcmp.eq.s32.totalorder %v8755_v20, %v8460_v30 }
 0x3b7   : > { %7232 = vmatpush.msk.msra.mxu3 %vm9725_vm13, %v12670_v57  ;;  %7246 = vmatpush.msk.msra.mxu0 %vm12772_vm5, %v12670_v57 }
 0x3b9   : > { %1980 = vmatpush.msra.mxu3 %v12734_v5 }
 0x3ba   : > { %7233 = vmatmul.msk.f32.vlgmr.msra.gmra.mxu3 %vm12773_vm12, %v9111_v35  ;;  %vm12776_vm12 = vmmov %vm12775_vm14 }
 0x3bb   : > { %7258 = vmatpush.msk.msrb.mxu3 %vm9643_vm9, %v12670_v57 }
 0x3bd   : > { %7259 = vmatpush.msk.msrb.mxu3 %vm9653_vm4, %v12670_v57  ;;  %vm12800_vm4 = vcmp.eq.s32.totalorder %v8863_v11, %v8432_v49 }
 0x3bf   : > { %7260 = vmatpush.msk.msrb.mxu3 %vm9666_vm15, %v12670_v57 }
 0x3c1   : > { %7261 = vmatpush.msk.msrb.mxu3 %vm9679_vm7, %v12670_v57 }
 0x3c3   : > { %7262 = vmatpush.msk.msrb.mxu3 %vm9698_vm1, %v12670_v57 }
 0x3c5   : > { %7263 = vmatpush.msk.msrb.mxu3 %vm9713_vm6, %v12670_v57 }
 0x3c7   : > { %7264 = vmatpush.msk.msrb.mxu3 %vm9725_vm13, %v12670_v57 }
 0x3c9   : > { %2107 = vmatpush.msrb.mxu3 %v12734_v5 }
 0x42d   : > { %v1744_v35 = vpop.f32.mrf.mxu3 }
 0x435   : > { %v1747_v7 = vpop.f32.mrf.mxu3 }
 0x43d   : > { %v1982_v1 = vpop.f32.mrf.mxu3 }
 0x43e   : > { %7236 = vmatpush.msk.msrb.mxu2 %vm12774_vm0, %v1982_v1  ;;  %v1440_v1 = vadd.f32 %v9378_v3, %v9376_v27  ;;  %v1537_v27 = vadd.f32 %v9629_v9, %v1443_v6 }
 0x43f   : > { %7237 = vmatmul.msk.f32.vlgmr.msrb.gmra.mxu2 %vm12775_vm14, %v7234_v28  ;;  %v2121_v28 = vadd.s32 %v2120_v37, %v2119_v58 }
 0x440   : > { %v1536_v23 = vadd.f32 %v9621_v48, %v1440_v1  ;;  %v1834_v48 = vpop.f32.mrf.mxu0  ;;  %v1626_v58 = vadd.f32 %v9627_v14, %v1537_v27 }
 0x441   : > { %vm2129_vm0 = vcmp.eq.s32.totalorder %v8812_v25, %v2121_v28  ;;  %vm2128_vm14 = vcmp.eq.s32.totalorder %v8821_v34, %v2121_v28  ;;  %vm2126_vm7 = vcmp.eq.s32.totalorder %v8834_v22, %v2121_v28 }
 0x442   : > { %7267 = vmatpush.msk.msra.mxu2 %vm2129_vm0, %v12670_v57  ;;  %v1662_v1 = vadd.f32 %v9573_v62, %v1626_v58  ;;  %vm12778_vm0 = vcmask 523264   ;;  %v2030_v62 = vpop.permute.xlu2 %2029 }
 0x443   : > { %vm12781_vm13 = vmmov %vm12778_vm0 }
 0x444   : > { %7268 = vmatpush.msk.msra.mxu2 %vm2128_vm14, %v12670_v57  ;;  %v1751_v12 = vadd.f32 %v1747_v7, %v1662_v1  ;;  %vm12779_vm14 = vmmov %vm12778_vm0 }
 0x445   : > { %vm12782_vm6 = vmmov %vm12778_vm0 }
 0x446   : > { %vm12783_vm1 = vmmov %vm12778_vm0 }
 0x447   : > { %7238 = vmatmul.msk.f32.gmra.mxu2 %vm12776_vm12, %v7235_v47  ;;  %v1625_v47 = vadd.f32 %v9619_v16, %v1536_v23  ;;  %vm2127_vm12 = vcmp.eq.s32.totalorder %v8827_v31, %v2121_v28  ;;  %v1924_v23 = vpop.f32.mrf.mxu1 }
 0x448   : > { %7269 = vmatpush.msk.msra.mxu2 %vm2127_vm12, %v12670_v57  ;;  %v1837_v63 = vpop.f32.mrf.mxu0  ;;  %vm12780_vm12 = vmmov %vm12778_vm0 }
 0x449   : > { %v1661_v3 = vadd.f32 %v9491_v17, %v1625_v47  ;;  %v1841_v39 = vadd.f32 %v1837_v63, %v1751_v12  ;;  %v2174_v12 = vadd.s32 4294967295, %v9780_v44 }
 0x44a   : > { %7270 = vmatpush.msk.msra.mxu2 %vm2126_vm7, %v12670_v57 }
 0x44b   : > { %v1750_v37 = vadd.f32 %v1744_v35, %v1661_v3  ;;  %vm12799_vm15 = vcmp.ge.s32.totalorder %v2174_v12, 0 }
 0x44c   : > { %vm9890_vm9 = vmand %vm12800_vm4, %vm12799_vm15 }
 0x44d   : > { %v1840_v16 = vadd.f32 %v1834_v48, %v1750_v37 }
 0x44f   : > { %v1930_v46 = vadd.f32 %v1924_v23, %v1840_v16  ;;  %v1927_v6 = vpop.f32.mrf.mxu1 }
 0x450   : > { %v1931_v47 = vadd.f32 %v1927_v6, %v1841_v39  ;;  %v9820_v39 = vadd.s32 4294967292, %v8181_v2  ;;  %v12790_v6 = vmov 0 }
 0x452   : > { %12784 = vst [vmem:[#allocation94_spill] sm:$0xff] %v9820_v39 }
 0x4c2   : > { %v2014_v45 = vpop.f32.mrf.mxu2 }
 0x4c3   : > { %v2020_v21 = vadd.f32 %v2014_v45, %v1930_v46  ;;  %v12785_v46 = vmov 0 }
 0x4c5   : > { %v2032_v9 = vadd.f32 %v2025_v15, %v2020_v21  ;;  %v2171_v15 = vadd.s32 4294967291, %v8181_v2 }
 0x4c7   : > { %v2034_v17 = vmax.f32 %v2032_v9, 0.0  ;;  %vm2173_vm7 = vcmp.eq.s32.totalorder %v8863_v11, %v2171_v15 }
 0x4c9   : > { %7247 = vmatmul.msk.f32.vlgmr.msra.gmra.mxu0 %vm12778_vm0, %v2034_v17  ;;  %7256 = vmatmul.msk.f32.vlgmr.msra.gmra.mxu1 %vm12779_vm14, %v2034_v17  ;;  %vm2125_vm0 = vcmp.eq.s32.totalorder %v8848_v41, %v2121_v28  ;;  %vm2124_vm14 = vcmp.eq.s32.totalorder %v8857_v54, %v2121_v28  ;;  %v7357_v41 = vld [vmem:[%s12131_s5 + $0xe0] sm:$0xff] }
 0x4ca   : > { %7265 = vmatmul.msk.f32.vlgmr.msrb.gmra.mxu3 %vm12780_vm12, %v2034_v17  ;;  %v2017_v14 = vpop.f32.mrf.mxu2  ;;  %7271 = vmatpush.msk.msra.mxu2 %vm2125_vm0, %v12670_v57  ;;  %vm2123_vm12 = vcmp.eq.s32.totalorder %v8863_v11, %v2121_v28 }
 0x4cb   : > { %v2021_v35 = vadd.f32 %v2017_v14, %v1931_v47  ;;  %v9859_v47 = vadd.s32 4294967293, %v8181_v2  ;;  %v12793_v14 = vmov 0 }
 0x4cc   : > { %7272 = vmatpush.msk.msra.mxu2 %vm2124_vm14, %v12670_v57  ;;  %vm12788_vm14 = vcmask 523264  }
 0x4cd   : > { %v2033_v27 = vadd.f32 %v2030_v62, %v2021_v35  ;;  %v12796_v35 = vmov 0  ;;  %v12801_v62 = vmov 0 }
 0x4ce   : > { %7273 = vmatpush.msk.msra.mxu2 %vm2123_vm12, %v12670_v57  ;;  %vm12789_vm12 = vmmov %vm12788_vm14  ;;  %v12802_v62 = vsel %vm9890_vm9, 4294967295, %v12801_v62 }
 0x4cf   : > { %v2035_v7 = vmax.f32 %v2033_v27, 0.0  ;;  %12803 = vst [vmem:[#allocation99_spill] sm:$0xff] %v12802_v62  ;;  %v7568_v62 = vld [vmem:[%s12133_s7 + $0x238] sm:$0xff] }
 0x4d1   : > { %7248 = vmatmul.msk.f32.gmra.mxu0 %vm12781_vm13, %v2035_v7  ;;  %7257 = vmatmul.msk.f32.gmra.mxu1 %vm12782_vm6, %v2035_v7  ;;  %vm2122_vm13 = vcmp.eq.s32.totalorder %v8755_v20, %v2121_v28  ;;  %vm12330_vm6 = vcmp.eq.s32.totalorder %v8863_v11, %v9820_v39 }
 0x4d2   : > { %7266 = vmatmul.msk.f32.gmra.mxu3 %vm12783_vm1, %v2035_v7  ;;  %7274 = vmatpush.msk.msra.mxu2 %vm2122_vm13, %v12670_v57  ;;  %vm12331_vm1 = vcmp.ge.s32.totalorder %v2174_v12, 0  ;;  %vm2172_vm13 = vcmp.eq.s32.totalorder %v8755_v20, %v2171_v15 }
 0x4d3   : > { %vm9826_vm0 = vmand %vm2173_vm7, %vm12331_vm1  ;;  %7281 = vmatpush.msk.msrb.mxu1 %vm12330_vm6, %v12670_v57  ;;  %vm12332_vm6 = vcmp.eq.s32.totalorder %v8755_v20, %v9820_v39 }
 0x4d4   : > { %v12786_v46 = vsel %vm9826_vm0, 4294967295, %v12785_v46  ;;  %7277 = vmatpush.msk.msrb.mxu0 %vm9826_vm0, %v12670_v57  ;;  %vm9841_vm7 = vmand %vm2172_vm13, %vm12331_vm1  ;;  %vm12336_vm13 = vcmp.eq.s32.totalorder %v8755_v20, %v9859_v47 }
 0x4d5   : > { %12787 = vst [vmem:[#allocation95_spill] sm:$0xff] %v12786_v46  ;;  %v12791_v6 = vsel %vm9841_vm7, 4294967295, %v12790_v6  ;;  %7282 = vmatpush.msk.msrb.mxu1 %vm12332_vm6, %v12670_v57 }
 0x4d6   : > { %12792 = vst [vmem:[#allocation96_spill] sm:$0xff] %v12791_v6  ;;  %7278 = vmatpush.msk.msrb.mxu0 %vm9841_vm7, %v12670_v57 }
 0x546   : > { %v2059_v63 = vpop.f32.mrf.mxu0  ;;  %v2084_v3 = vpop.f32.mrf.mxu1 }
 0x547   : > { %v2065_v28 = vmax.f32 %v2034_v17, %v2059_v63  ;;  %v9855_v17 = vadd.s32 1, %v9780_v44  ;;  %v12811_v63 = vmov 0 }
 0x549   : > { %v2090_v48 = vmax.f32 %v2065_v28, %v2084_v3  ;;  %vm12809_vm4 = vcmp.lt.s32.totalorder %v9855_v17, 4  ;;  %v12816_v28 = vmov 0  ;;  %v9949_v3 = vadd.s32 3, %v8181_v2 }
 0x54d   : > { %v2109_v37 = vpop.f32.mrf.mxu3 }
 0x54e   : > { %v2115_v58 = vmax.f32 %v2090_v48, %v2109_v37  ;;  %v2062_v23 = vpop.f32.mrf.mxu0  ;;  %v2087_v1 = vpop.f32.mrf.mxu1  ;;  %v12820_v48 = vmov 0  ;;  %v12824_v37 = vmov 0 }
 0x54f   : > { %v2066_v16 = vmax.f32 %v2035_v7, %v2062_v23  ;;  %v12806_v7 = vmov 0 }
 0x550   : > { %7275 = vmatmul.msk.f32.vlgmr.msra.gmra.mxu2 %vm12788_vm14, %v2115_v58  ;;  %vm12337_vm14 = vcmp.lt.s32.totalorder %v9855_v17, 4 }
 0x551   : > { %v2091_v45 = vmax.f32 %v2066_v16, %v2087_v1  ;;  %vm9879_vm6 = vmand %vm12336_vm13, %vm12337_vm14  ;;  %v7285_v1 = vld [vmem:[%s12131_s5 + $0x20] sm:$0xff] }
 0x552   : > { %v12797_v35 = vsel %vm9879_vm6, 4294967295, %v12796_v35  ;;  %vm12804_vm13 = vmmov %vm12799_vm15  ;;  %vm12810_vm15 = vcmp.eq.s32.totalorder %v8863_v11, %v8460_v30 }
 0x553   : > { %12798 = vst [vmem:[#allocation98_spill] sm:$0xff] %v12797_v35 }
 0x555   : > { %v2112_v21 = vpop.f32.mrf.mxu3 }
 0x556   : > { %v2116_v9 = vmax.f32 %v2091_v45, %v2112_v21  ;;  %v2213_v45 = vld [vmem:[%s12131_s5] sm:$0xff] }
 0x558   : > { %7276 = vmatmul.msk.f32.gmra.mxu2 %vm12789_vm12, %v2116_v9  ;;  %vm2340_vm12 = vcmp.eq.s32.totalorder %v8863_v11, %v9859_v47  ;;  %v7286_v9 = vld [vmem:[%s12131_s5 + $0x28] sm:$0xff] }
 0x559   : > { %vm9867_vm1 = vmand %vm2340_vm12, %vm12337_vm14  ;;  %vm12389_vm12 = vcmask 130048   ;;  %vm12805_vm14 = vcmp.eq.s32.totalorder %v8755_v20, %v8432_v49 }
 0x55a   : > { %v12794_v14 = vsel %vm9867_vm1, 4294967295, %v12793_v14  ;;  %7297 = vmatpush.msk.msra.mxu0 %vm9867_vm1, %v12670_v57  ;;  %vm9904_vm5 = vmand %vm12805_vm14, %vm12804_vm13 }
 0x55b   : > { %12795 = vst [vmem:[#allocation97_spill] sm:$0xff] %v12794_v14  ;;  %v12807_v7 = vsel %vm9904_vm5, 4294967295, %v12806_v7  ;;  %vm9925_vm14 = vmand %vm12810_vm15, %vm12809_vm4  ;;  %vm12819_vm15 = vcmp.ge.s32.totalorder %v2174_v12, 0 }
 0x55c   : > { %7298 = vmatpush.msk.msra.mxu0 %vm9879_vm6, %v12670_v57  ;;  %12808 = vst [vmem:[#allocation100_spill] sm:$0xff] %v12807_v7  ;;  %v12812_v63 = vsel %vm9925_vm14, 4294967295, %v12811_v63  ;;  %vm12814_vm13 = vmmov %vm12809_vm4  ;;  %vm12341_vm4 = vcmp.eq.s32.totalorder %v8755_v20, %v9949_v3 }
 0x55d   : > { %12813 = vst [vmem:[#allocation101_spill] sm:$0xff] %v12812_v63  ;;  %vm9936_vm8 = vmand %vm12815_vm10, %vm12814_vm13  ;;  %vm2633_vm10 = vcmp.eq.s32.totalorder %v8863_v11, %v9949_v3  ;;  %v7543_v63 = vld [vmem:[%s12133_s7 + $0x1d8] sm:$0xff] }
 0x55e   : > { %v12817_v28 = vsel %vm9936_vm8, 4294967295, %v12816_v28  ;;  %vm9956_vm13 = vmand %vm2633_vm10, %vm12819_vm15 }
 0x55f   : > { %12818 = vst [vmem:[#allocation102_spill] sm:$0xff] %v12817_v28  ;;  %v12821_v48 = vsel %vm9956_vm13, 4294967295, %v12820_v48  ;;  %vm12823_vm11 = vmmov %vm12819_vm15 }
 0x560   : > { %12822 = vst [vmem:[#allocation103_spill] sm:$0xff] %v12821_v48  ;;  %vm9966_vm2 = vmand %vm12341_vm4, %vm12823_vm11 }
 0x561   : > { %v12825_v37 = vsel %vm9966_vm2, 4294967295, %v12824_v37 }
 0x562   : > { %12826 = vst [vmem:[#allocation104_spill] sm:$0xff] %v12825_v37 }
 0x5d3   : > { %v9894_v27 = vpop.f32.mrf.mxu2 }
 0x5d4   : > { %7279 = vmatmul.msk.f32.vlgmr.msrb.gmra.mxu0 %vm12389_vm12, %v9894_v27  ;;  %7283 = vmatmul.msk.f32.vlgmr.msrb.gmra.mxu1 %vm12389_vm12, %v9894_v27 }
 0x5d5   : > { %7309 = vmatpush.msk.msrb.mxu0 %vm9890_vm9, %v12670_v57 }
 0x5d7   : > { %7310 = vmatpush.msk.msrb.mxu0 %vm9904_vm5, %v12670_v57 }
 0x5db   : > { %v9914_v15 = vpop.f32.mrf.mxu2 }
 0x5dc   : > { %7280 = vmatmul.msk.f32.gmra.mxu0 %vm12389_vm12, %v9914_v15  ;;  %7284 = vmatmul.msk.f32.gmra.mxu1 %vm12389_vm12, %v9914_v15 }
 0x5e4   : > { %7299 = vmatmul.msk.f32.vlgmr.msra.gmra.mxu0 %vm12389_vm12, %v9894_v27 }
 0x5e5   : > { %7329 = vmatpush.msk.msra.mxu0 %vm9925_vm14, %v12670_v57 }
 0x5e7   : > { %7330 = vmatpush.msk.msra.mxu0 %vm9936_vm8, %v12670_v57 }
 0x5ec   : > { %7300 = vmatmul.msk.f32.gmra.mxu0 %vm12389_vm12, %v9914_v15 }
 0x5f4   : > { %7311 = vmatmul.msk.f32.vlgmr.msrb.gmra.mxu0 %vm12389_vm12, %v9894_v27 }
 0x5f5   : > { %7341 = vmatpush.msk.msrb.mxu0 %vm9956_vm13, %v12670_v57 }
 0x5f7   : > { %7342 = vmatpush.msk.msrb.mxu0 %vm9966_vm2, %v12670_v57 }
 0x5fc   : > { %7312 = vmatmul.msk.f32.gmra.mxu0 %vm12389_vm12, %v9914_v15 }
 0x604   : > { %7331 = vmatmul.msk.f32.vlgmr.msra.gmra.mxu0 %vm12389_vm12, %v9894_v27 }
 0x60c   : > { %7332 = vmatmul.msk.f32.gmra.mxu0 %vm12389_vm12, %v9914_v15 }
 0x614   : > { %7343 = vmatmul.msk.f32.vlgmr.msrb.gmra.mxu0 %vm12389_vm12, %v9894_v27 }
 0x61c   : > { %7344 = vmatmul.msk.f32.gmra.mxu0 %vm12389_vm12, %v9914_v15 }
 0x651   : > { %v2207_v12 = vpop.f32.mrf.mxu0  ;;  %v2245_v58 = vpop.f32.mrf.mxu1 }
 0x659   : > { %v2210_v23 = vpop.f32.mrf.mxu0  ;;  %v2248_v16 = vpop.f32.mrf.mxu1 }
 0x65a   : > { %2282 = vmatpush.msra.mxu3 %v2248_v16  ;;  %2323 = vmatpush.msrb.mxu2 %v2210_v23  ;;  %v2214_v23 = vld [vmem:[%s12131_s5 + $0x8] sm:$0xff]  ;;  %v2215_v16 = vld [vmem:[%s12131_s5 + $0x10] sm:$0xff] }
 0x65c   : > { %2283 = vmatpush.msra.mxu3 %v2245_v58  ;;  %2324 = vmatpush.msrb.mxu2 %v2207_v12  ;;  %v7287_v58 = vld [vmem:[%s12131_s5 + $0x30] sm:$0xff] }
 0x65d   : > { %7289 = vmatmul.msk.f32.vlgmr.msra.gmra.mxu3 %vm12389_vm12, %v7285_v1  ;;  %7293 = vmatmul.msk.f32.vlgmr.msrb.gmra.mxu2 %vm12389_vm12, %v2213_v45  ;;  %v7301_v1 = vld [vmem:[%s12131_s5 + $0x40] sm:$0xff] }
 0x65e   : > { %2533 = vmatpush.msra.mxu2 %v9914_v15 }
 0x660   : > { %2534 = vmatpush.msra.mxu2 %v9894_v27 }
 0x661   : > { %v2367_v21 = vpop.f32.mrf.mxu0 }
 0x665   : > { %7290 = vmatmul.msk.f32.gmra.mxu3 %vm12389_vm12, %v7286_v9  ;;  %7294 = vmatmul.msk.f32.gmra.mxu2 %vm12389_vm12, %v2214_v23  ;;  %v7288_v9 = vld [vmem:[%s12131_s5 + $0x38] sm:$0xff] }
 0x666   : > { %v2216_v23 = vld [vmem:[%s12131_s5 + $0x18] sm:$0xff] }
 0x669   : > { %v2370_v12 = vpop.f32.mrf.mxu0 }
 0x66a   : > { %2404 = vmatpush.msra.mxu1 %v2370_v12  ;;  %v7302_v12 = vld [vmem:[%s12131_s5 + $0x48] sm:$0xff] }
 0x66c   : > { %2405 = vmatpush.msra.mxu1 %v2367_v21  ;;  %v10029_v21 = vadd.s32 4, %v8181_v2 }
 0x66d   : > { %7291 = vmatmul.msk.f32.gmra.mxu3 %vm12389_vm12, %v7287_v58  ;;  %7295 = vmatmul.msk.f32.gmra.mxu2 %vm12389_vm12, %v2215_v16  ;;  %v7313_v16 = vld [vmem:[%s12131_s5 + $0x60] sm:$0xff] }
 0x66e   : > { %7305 = vmatmul.msk.f32.vlgmr.msra.gmra.mxu1 %vm12389_vm12, %v7301_v1  ;;  %12827 = vst [vmem:[#allocation105_spill] sm:$0xff] %v10029_v21  ;;  %v7321_v1 = vld [vmem:[%s12131_s5 + $0x80] sm:$0xff]  ;;  %vm12343_vm11 = vcmp.eq.s32.totalorder %v8863_v11, %v10029_v21  ;;  %vm12342_vm10 = vcmp.eq.s32.totalorder %v8755_v20, %v10029_v21 }
 0x66f   : > { %7353 = vmatpush.msk.msrb.mxu2 %vm12343_vm11, %v12670_v57 }
 0x671   : > { %v2446_v45 = vpop.f32.mrf.mxu0  ;;  %7354 = vmatpush.msk.msrb.mxu2 %vm12342_vm10, %v12670_v57  ;;  %vm12828_vm10 = vcmp.lt.s32.totalorder %v9855_v17, 4  ;;  %v7324_v17 = vld [vmem:[%s12131_s5 + $0x98] sm:$0xff] }
 0x672   : > { %vm12832_vm3 = vmmov %vm12828_vm10 }
 0x675   : > { %7292 = vmatmul.msk.f32.gmra.mxu3 %vm12389_vm12, %v7288_v9  ;;  %7296 = vmatmul.msk.f32.gmra.mxu2 %vm12389_vm12, %v2216_v23  ;;  %v7303_v9 = vld [vmem:[%s12131_s5 + $0x50] sm:$0xff] }
 0x676   : > { %7306 = vmatmul.msk.f32.gmra.mxu1 %vm12389_vm12, %v7302_v12  ;;  %v7314_v12 = vld [vmem:[%s12131_s5 + $0x68] sm:$0xff] }
 0x679   : > { %v2449_v58 = vpop.f32.mrf.mxu0 }
 0x67a   : > { %2483 = vmatpush.msrb.mxu3 %v2449_v58  ;;  %v7304_v58 = vld [vmem:[%s12131_s5 + $0x58] sm:$0xff] }
 0x67c   : > { %2484 = vmatpush.msrb.mxu3 %v2446_v45  ;;  %v7322_v45 = vld [vmem:[%s12131_s5 + $0x88] sm:$0xff] }
 0x67d   : > { %7317 = vmatmul.msk.f32.vlgmr.msrb.gmra.mxu3 %vm12389_vm12, %v7313_v16  ;;  %7325 = vmatmul.msk.f32.vlgmr.msra.gmra.mxu2 %vm12389_vm12, %v7321_v1  ;;  %v2795_v16 = vadd.s32 5, %v8181_v2 }
 0x67e   : > { %7307 = vmatmul.msk.f32.gmra.mxu1 %vm12389_vm12, %v7303_v9  ;;  %v7315_v9 = vld [vmem:[%s12131_s5 + $0x70] sm:$0xff] }
 0x67f   : > { %vm2797_vm15 = vcmp.eq.s32.totalorder %v8863_v11, %v2795_v16  ;;  %vm2796_vm4 = vcmp.eq.s32.totalorder %v8755_v20, %v2795_v16  ;;  %v7334_v16 = vld [vmem:[%s12131_s5 + $0xa8] sm:$0xff] }
 0x680   : > { %vm10081_vm11 = vmand %vm2797_vm15, %vm12828_vm10 }
 0x681   : > { %v2575_v23 = vpop.f32.mrf.mxu0  ;;  %vm10090_vm2 = vmand %vm2796_vm4, %vm12832_vm3  ;;  %vm12836_vm3 = vcmp.eq.s32.totalorder %v8863_v11, %v10029_v21  ;;  %vm12837_vm4 = vcmp.eq.s32.totalorder %v8755_v20, %v10029_v21 }
 0x685   : > { %7318 = vmatmul.msk.f32.gmra.mxu3 %vm12389_vm12, %v7314_v12  ;;  %7326 = vmatmul.msk.f32.gmra.mxu2 %vm12389_vm12, %v7322_v45  ;;  %v7333_v12 = vld [vmem:[%s12131_s5 + $0xa0] sm:$0xff]  ;;  %v12829_v45 = vmov 0 }
 0x686   : > { %7308 = vmatmul.msk.f32.gmra.mxu1 %vm12389_vm12, %v7304_v58  ;;  %v12830_v45 = vsel %vm10081_vm11, 4294967295, %v12829_v45  ;;  %v12833_v58 = vmov 0 }
 0x687   : > { %12831 = vst [vmem:[#allocation106_spill] sm:$0xff] %v12830_v45  ;;  %v12834_v58 = vsel %vm10090_vm2, 4294967295, %v12833_v58  ;;  %v2880_v45 = vpop.permute.xlu0 %2879 }
 0x688   : > { %12835 = vst [vmem:[#allocation107_spill] sm:$0xff] %v12834_v58 }
 0x689   : > { %v2578_v1 = vpop.f32.mrf.mxu0 }
 0x68a   : > { %2612 = vmatpush.msrb.mxu1 %v2578_v1 }
 0x68c   : > { %2613 = vmatpush.msrb.mxu1 %v2575_v23 }
 0x68d   : > { %7319 = vmatmul.msk.f32.gmra.mxu3 %vm12389_vm12, %v7315_v9  ;;  %7327 = vmatmul.msk.f32.gmra.mxu2 %vm12389_vm12, %v7323_v50  ;;  %v7316_v50 = vld [vmem:[%s12131_s5 + $0x78] sm:$0xff]  ;;  %v7345_v9 = vld [vmem:[%s12131_s5 + $0xc0] sm:$0xff] }
 0x68e   : > { %7337 = vmatmul.msk.f32.vlgmr.msrb.gmra.mxu1 %vm12389_vm12, %v7333_v12  ;;  %v7335_v12 = vld [vmem:[%s12131_s5 + $0xb0] sm:$0xff] }
 0x68f   : > { %7365 = vmatpush.msk.msra.mxu1 %vm10081_vm11, %v12670_v57 }
 0x691   : > { %v2657_v23 = vpop.f32.mrf.mxu0  ;;  %7366 = vmatpush.msk.msra.mxu1 %vm10090_vm2, %v12670_v57 }
 0x693   : > { %7377 = vmatpush.msk.msrb.mxu1 %vm9925_vm14, %v12670_v57 }
 0x695   : > { %7378 = vmatpush.msk.msrb.mxu1 %vm9936_vm8, %v12670_v57  ;;  %7320 = vmatmul.msk.f32.gmra.mxu3 %vm12389_vm12, %v7316_v50  ;;  %v7336_v50 = vld [vmem:[%s12131_s5 + $0xb8] sm:$0xff] }
 0x696   : > { %7328 = vmatmul.msk.f32.gmra.mxu2 %vm12389_vm12, %v7324_v17  ;;  %7338 = vmatmul.msk.f32.gmra.mxu1 %vm12389_vm12, %v7334_v16  ;;  %v7347_v17 = vld [vmem:[%s12131_s5 + $0xd0] sm:$0xff]  ;;  %v7348_v16 = vld [vmem:[%s12131_s5 + $0xd8] sm:$0xff] }
 0x699   : > { %v2660_v1 = vpop.f32.mrf.mxu0 }
 0x69a   : > { %2694 = vmatpush.msra.mxu3 %v2660_v1 }
 0x69c   : > { %2695 = vmatpush.msra.mxu3 %v2657_v23  ;;  %v7346_v23 = vld [vmem:[%s12131_s5 + $0xc8] sm:$0xff] }
 0x69d   : > { %7349 = vmatmul.msk.f32.vlgmr.msra.gmra.mxu3 %vm12389_vm12, %v7345_v9 }
 0x69e   : > { %7355 = vmatmul.msk.f32.vlgmr.msrb.gmra.mxu2 %vm12389_vm12, %v9894_v27  ;;  %7339 = vmatmul.msk.f32.gmra.mxu1 %vm12389_vm12, %v7335_v12 }
 0x69f   : > { %7383 = vmatpush.msk.msrb.mxu3 %vm12836_vm3, %v12670_v57 }
 0x6a1   : > { %7384 = vmatpush.msk.msrb.mxu3 %vm12837_vm4, %v12670_v57  ;;  %vm12838_vm4 = vcmp.eq.s32.totalorder %v8755_v20, %v9859_v47 }
 0x6a5   : > { %7350 = vmatmul.msk.f32.gmra.mxu3 %vm12389_vm12, %v7346_v23 }
 0x6a6   : > { %7356 = vmatmul.msk.f32.gmra.mxu2 %vm12389_vm12, %v9914_v15  ;;  %7340 = vmatmul.msk.f32.gmra.mxu1 %vm12389_vm12, %v7336_v50 }
 0x6ad   : > { %7351 = vmatmul.msk.f32.gmra.mxu3 %vm12389_vm12, %v7347_v17 }
 0x6ae   : > { %7367 = vmatmul.msk.f32.vlgmr.msra.gmra.mxu1 %vm12389_vm12, %v9894_v27 }
 0x6b5   : > { %7352 = vmatmul.msk.f32.gmra.mxu3 %vm12389_vm12, %v7348_v16 }
 0x6b6   : > { %7368 = vmatmul.msk.f32.gmra.mxu1 %vm12389_vm12, %v9914_v15 }
 0x6e0   : > { %v2326_v1 = vpop.f32.mrf.mxu2 }
 0x6e8   : > { %v2329_v9 = vpop.f32.mrf.mxu2 }
 0x6eb   : > { %v2407_v12 = vpop.f32.mrf.mxu1 }
 0x6f0   : > { %v2332_v23 = vpop.f32.mrf.mxu2 }
 0x6f3   : > { %v2410_v50 = vpop.f32.mrf.mxu1 }
 0x6f8   : > { %v10158_v32 = vpop.f32.mrf.mxu2 }
 0x6fb   : > { %v10160_v17 = vpop.f32.mrf.mxu1 }
 0x700   : > { %v2536_v43 = vpop.f32.mrf.mxu2 }
 0x703   : > { %v10162_v27 = vpop.f32.mrf.mxu1 }
 0x708   : > { %v2539_v53 = vpop.f32.mrf.mxu2 }
 0x70b   : > { %v2615_v55 = vpop.f32.mrf.mxu1 }
 0x710   : > { %v10164_v13 = vpop.f32.mrf.mxu2 }
 0x713   : > { %v2618_v16 = vpop.f32.mrf.mxu1 }
 0x719   : > { %v10166_v56 = vpop.f32.mrf.mxu2 }
 0x71b   : > { %v10168_v15 = vpop.f32.mrf.mxu1 }
 0x721   : > { %v2739_v24 = vpop.f32.mrf.mxu2 }
 0x723   : > { %v10170_v33 = vpop.f32.mrf.mxu1 }
 0x729   : > { %v2742_v54 = vpop.f32.mrf.mxu2 }
 0x72a   : > { %2776 = vmatpush.msra.mxu0 %v2742_v54  ;;  %v7358_v54 = vld [vmem:[%s12131_s5 + $0xe8] sm:$0xff] }
 0x72b   : > { %v2821_v22 = vpop.f32.mrf.mxu1 }
 0x72c   : > { %2777 = vmatpush.msra.mxu0 %v2739_v24  ;;  %v7359_v24 = vld [vmem:[%s12131_s5 + $0xf0] sm:$0xff] }
 0x72d   : > { %7361 = vmatmul.msk.f32.vlgmr.msra.gmra.mxu0 %vm12389_vm12, %v7357_v41  ;;  %v7369_v41 = vld [vmem:[%s12131_s5 + $0x100] sm:$0xff] }
 0x72e   : > { %7389 = vmatpush.msk.msrb.mxu0 %vm10081_vm11, %v12670_v57 }
 0x730   : > { %7390 = vmatpush.msk.msrb.mxu0 %vm10090_vm2, %v12670_v57  ;;  %vm12839_vm2 = vcmask 1043456  }
 0x733   : > { %v2824_v31 = vpop.f32.mrf.mxu1 }
 0x734   : > { %2858 = vmatpush.msra.mxu2 %v2824_v31  ;;  %v7360_v31 = vld [vmem:[%s12131_s5 + $0xf8] sm:$0xff] }
 0x735   : > { %7362 = vmatmul.msk.f32.gmra.mxu0 %vm12389_vm12, %v7358_v54  ;;  %v7372_v54 = vld [vmem:[%s12131_s5 + $0x118] sm:$0xff] }
 0x736   : > { %2859 = vmatpush.msra.mxu2 %v2821_v22  ;;  %v7371_v22 = vld [vmem:[%s12131_s5 + $0x110] sm:$0xff] }
 0x737   : > { %7373 = vmatmul.msk.f32.vlgmr.msra.gmra.mxu2 %vm12389_vm12, %v7369_v41  ;;  %v2285_v41 = vpop.f32.mrf.mxu3 }
 0x738   : > { %v2327_v26 = vadd.f32 %v2326_v1, %v2285_v41 }
 0x73a   : > { %v2419_v40 = vadd.f32 %v2407_v12, %v2327_v26 }
 0x73d   : > { %7363 = vmatmul.msk.f32.gmra.mxu0 %vm12389_vm12, %v7359_v24 }
 0x73f   : > { %7374 = vmatmul.msk.f32.gmra.mxu2 %vm12389_vm12, %v7370_v42  ;;  %v2288_v42 = vpop.f32.mrf.mxu3 }
 0x745   : > { %7364 = vmatmul.msk.f32.gmra.mxu0 %vm12389_vm12, %v7360_v31 }
 0x747   : > { %7375 = vmatmul.msk.f32.gmra.mxu2 %vm12389_vm12, %v7371_v22  ;;  %v2291_v24 = vpop.f32.mrf.mxu3  ;;  %v2330_v22 = vadd.f32 %v2329_v9, %v2288_v42  ;;  %v3016_v42 = vshra.s32 %v8181_v2, 1 }
 0x748   : > { %v2333_v8 = vadd.f32 %v2332_v23, %v2291_v24 }
 0x749   : > { %v2420_v18 = vadd.f32 %v2410_v50, %v2330_v22  ;;  %v3018_v24 = vmul.u32 8, %v3016_v42 }
 0x74a   : > { %v2421_v1 = vadd.f32 %v10160_v17, %v2333_v8  ;;  %v2885_v8 = vpop.permute.xlu1 %2884 }
 0x74f   : > { %7376 = vmatmul.msk.f32.gmra.mxu2 %vm12389_vm12, %v7372_v54  ;;  %v2294_v34 = vpop.f32.mrf.mxu3 }
 0x757   : > { %v2486_v52 = vpop.f32.mrf.mxu3 }
 0x758   : > { %v2498_v38 = vadd.f32 %v2486_v52, %v2419_v40 }
 0x75a   : > { %v2548_v36 = vadd.f32 %v2536_v43, %v2498_v38  ;;  %v2336_v38 = vadd.f32 %v10158_v32, %v2294_v34 }
 0x75c   : > { %v2627_v61 = vadd.f32 %v2615_v55, %v2548_v36 }
 0x75f   : > { %v2489_v4 = vpop.f32.mrf.mxu3 }
 0x760   : > { %v2499_v0 = vadd.f32 %v2489_v4, %v2420_v18 }
 0x762   : > { %v2549_v21 = vadd.f32 %v2539_v53, %v2499_v0  ;;  %v2890_v53 = vpop.permute.xlu2 %2889 }
 0x764   : > { %v2628_v26 = vadd.f32 %v2618_v16, %v2549_v21 }
 0x767   : > { %v2492_v25 = vpop.f32.mrf.mxu3 }
 0x768   : > { %v2500_v40 = vadd.f32 %v2492_v25, %v2421_v1  ;;  %v2422_v25 = vadd.f32 %v10162_v27, %v2336_v38 }
 0x76f   : > { %v2495_v31 = vpop.f32.mrf.mxu3 }
 0x770   : > { %v2501_v34 = vadd.f32 %v2495_v31, %v2422_v25 }
 0x777   : > { %v2697_v19 = vpop.f32.mrf.mxu3 }
 0x778   : > { %v2709_v51 = vadd.f32 %v2697_v19, %v2627_v61 }
 0x77f   : > { %v2700_v54 = vpop.f32.mrf.mxu3 }
 0x780   : > { %v2710_v52 = vadd.f32 %v2700_v54, %v2628_v26 }
 0x787   : > { %v2703_v4 = vpop.f32.mrf.mxu3 }
 0x78f   : > { %v2706_v43 = vpop.f32.mrf.mxu3 }
 0x7aa   : > { %v2779_v10 = vpop.f32.mrf.mxu0 }
 0x7ab   : > { %v2791_v60 = vadd.f32 %v2779_v10, %v2709_v51 }
 0x7b2   : > { %v2782_v59 = vpop.f32.mrf.mxu0 }
 0x7b3   : > { %v2792_v36 = vadd.f32 %v2782_v59, %v2710_v52 }
 0x7ba   : > { %v2861_v29 = vpop.f32.mrf.mxu2  ;;  %v2785_v0 = vpop.f32.mrf.mxu0 }
 0x7bb   : > { %v2873_v58 = vadd.f32 %v2861_v29, %v2791_v60  ;;  %v2550_v29 = vadd.f32 %v10164_v13, %v2500_v40  ;;  %v2551_v13 = vadd.f32 %v10166_v56, %v2501_v34 }
 0x7bd   : > { %v2897_v12 = vadd.f32 %v2880_v45, %v2873_v58  ;;  %v2629_v61 = vadd.f32 %v10168_v15, %v2550_v29  ;;  %v2630_v21 = vadd.f32 %v10170_v33, %v2551_v13  ;;  %v2895_v15 = vpop.permute.xlu0 %2894  ;;  %v3017_v33 = vand.u32 1, %v8181_v2 }
 0x7bf   : > { %v2901_v9 = vmax.f32 %v2897_v12, 0.0  ;;  %v2711_v32 = vadd.f32 %v2703_v4, %v2629_v61  ;;  %v2712_v23 = vadd.f32 %v2706_v43, %v2630_v21  ;;  %v3019_v31 = vmul.u32 2, %v3017_v33 }
 0x7c1   : > { %7379 = vmatmul.msk.f32.vlgmr.msrb.gmra.mxu1 %vm12389_vm12, %v2901_v9  ;;  %7385 = vmatmul.msk.f32.vlgmr.msrb.gmra.mxu3 %vm12389_vm12, %v2901_v9  ;;  %v2793_v10 = vadd.f32 %v2785_v0, %v2711_v32  ;;  %v3020_v22 = vadd.s32 %v3019_v31, %v3018_v24  ;;  %v3124_v31 = vld [vmem:[%s12133_s7] sm:$0xff] }
 0x7c2   : > { %7391 = vmatmul.msk.f32.vlgmr.msrb.gmra.mxu0 %vm12389_vm12, %v2901_v9  ;;  %v2864_v51 = vpop.f32.mrf.mxu2  ;;  %v2788_v58 = vpop.f32.mrf.mxu0 }
 0x7c3   : > { %v2874_v60 = vadd.f32 %v2864_v51, %v2792_v36  ;;  %v2794_v17 = vadd.f32 %v2788_v58, %v2712_v23  ;;  %vm3022_vm10 = vcmp.eq.s32.totalorder %v8863_v11, %v3020_v22  ;;  %vm3021_vm15 = vcmp.eq.s32.totalorder %v8755_v20, %v3020_v22 }
 0x7c4   : > { %7395 = vmatpush.msk.msrb.mxu2 %vm3022_vm10, %v12670_v57 }
 0x7c5   : > { %v2898_v18 = vadd.f32 %v2885_v8, %v2874_v60 }
 0x7c6   : > { %7396 = vmatpush.msk.msrb.mxu2 %vm3021_vm15, %v12670_v57 }
 0x7c7   : > { %v2902_v59 = vmax.f32 %v2898_v18, 0.0 }
 0x7c9   : > { %7380 = vmatmul.msk.f32.gmra.mxu1 %vm12389_vm12, %v2902_v59  ;;  %7386 = vmatmul.msk.f32.gmra.mxu3 %vm12389_vm12, %v2902_v59 }
 0x7ca   : > { %7392 = vmatmul.msk.f32.gmra.mxu0 %vm12389_vm12, %v2902_v59  ;;  %v2867_v19 = vpop.f32.mrf.mxu2 }
 0x7cb   : > { %v2875_v55 = vadd.f32 %v2867_v19, %v2793_v10 }
 0x7cd   : > { %v2899_v45 = vadd.f32 %v2890_v53, %v2875_v55  ;;  %v3132_v53 = vadd.s32 4294967294, %v8181_v2 }
 0x7cf   : > { %v2903_v50 = vmax.f32 %v2899_v45, 0.0  ;;  %vm3133_vm15 = vcmp.eq.s32.totalorder %v8755_v20, %v3132_v53  ;;  %v10255_v45 = vadd.s32 1, %v3017_v33 }
 0x7d0   : > { %v10249_v21 = vsel %vm3133_vm15, 1.0, %v12734_v5  ;;  %vm12842_vm15 = vmmov %vm12839_vm2 }
 0x7d1   : > { %7381 = vmatmul.msk.f32.gmra.mxu1 %vm12389_vm12, %v2903_v50  ;;  %7387 = vmatmul.msk.f32.gmra.mxu3 %vm12389_vm12, %v2903_v50 }
 0x7d2   : > { %7393 = vmatmul.msk.f32.gmra.mxu0 %vm12389_vm12, %v2903_v50  ;;  %v2870_v27 = vpop.f32.mrf.mxu2 }
 0x7d3   : > { %v2876_v16 = vadd.f32 %v2870_v27, %v2794_v17 }
 0x7d5   : > { %v2900_v56 = vadd.f32 %v2895_v15, %v2876_v16 }
 0x7d7   : > { %v2904_v41 = vmax.f32 %v2900_v56, 0.0 }
 0x7d9   : > { %7382 = vmatmul.msk.f32.gmra.mxu1 %vm12389_vm12, %v2904_v41  ;;  %7388 = vmatmul.msk.f32.gmra.mxu3 %vm12389_vm12, %v2904_v41 }
 0x7da   : > { %7394 = vmatmul.msk.f32.gmra.mxu0 %vm12389_vm12, %v2904_v41 }
 0x83e   : > { %v2934_v54 = vpop.f32.mrf.mxu1 }
 0x83f   : > { %v3000_v1 = vpop.f32.mrf.mxu0  ;;  %v2946_v26 = vmax.f32 %v2901_v9, %v2934_v54 }
 0x844   : > { %v2967_v12 = vpop.f32.mrf.mxu3 }
 0x845   : > { %v2979_v40 = vmax.f32 %v2946_v26, %v2967_v12  ;;  %v3125_v26 = vld [vmem:[%s12133_s7 + $0x8] sm:$0xff] }
 0x846   : > { %v2937_v52 = vpop.f32.mrf.mxu1 }
 0x847   : > { %v3012_v38 = vmax.f32 %v2979_v40, %v3000_v1  ;;  %v3003_v36 = vpop.f32.mrf.mxu0  ;;  %v2947_v4 = vmax.f32 %v2902_v59, %v2937_v52  ;;  %v3074_v59 = vadd.s32 4294967295, %v3017_v33  ;;  %v7411_v1 = vld [vmem:[%s12133_s7 + $0x40] sm:$0xff]  ;;  %v7412_v40 = vld [vmem:[%s12133_s7 + $0x48] sm:$0xff]  ;;  %v3126_v52 = vld [vmem:[%s12133_s7 + $0x10] sm:$0xff] }
 0x849   : > { %7397 = vmatmul.msk.f32.vlgmr.msrb.gmra.mxu2 %vm12389_vm12, %v3012_v38  ;;  %vm12390_vm3 = vcmp.ge.s32.totalorder %v3074_v59, 0  ;;  %vm12862_vm14 = vcmp.ge.s32.totalorder %v3074_v59, 0 }
 0x84a   : > { %vm3076_vm10 = vmand %vm12838_vm4, %vm12390_vm3  ;;  %vm12392_vm4 = vcmp.lt.s32.totalorder %v10255_v45, 2  ;;  %vm12841_vm3 = vcmp.eq.s32.totalorder %v8755_v20, %v8432_v49 }
 0x84b   : > { %v10246_v43 = vsel %vm3076_vm10, 1.0, %v12734_v5  ;;  %vm3315_vm10 = vmand %vm12841_vm3, %vm12392_vm4 }
 0x84c   : > { %v2970_v51 = vpop.f32.mrf.mxu3  ;;  %7401 = vmatpush.msk.msra.mxu1 %vm12839_vm2, %v10246_v43  ;;  %v10264_v47 = vsel %vm3315_vm10, 1.0, %v12734_v5 }
 0x84d   : > { %v2980_v29 = vmax.f32 %v2947_v4, %v2970_v51  ;;  %v3127_v4 = vld [vmem:[%s12133_s7 + $0x18] sm:$0xff] }
 0x84e   : > { %v2940_v60 = vpop.f32.mrf.mxu1  ;;  %7435 = vmatpush.msk.msrb.mxu1 %vm12842_vm15, %v10264_v47 }
 0x84f   : > { %v3013_v8 = vmax.f32 %v2980_v29, %v3003_v36  ;;  %v2948_v0 = vmax.f32 %v2903_v50, %v2940_v60  ;;  %v3006_v25 = vpop.f32.mrf.mxu0  ;;  %v7413_v36 = vld [vmem:[%s12133_s7 + $0x50] sm:$0xff]  ;;  %v7414_v29 = vld [vmem:[%s12133_s7 + $0x58] sm:$0xff]  ;;  %v3128_v60 = vld [vmem:[%s12133_s7 + $0x20] sm:$0xff] }
 0x851   : > { %7398 = vmatmul.msk.f32.gmra.mxu2 %vm12389_vm12, %v3013_v8  ;;  %v7440_v8 = vld [vmem:[%s12133_s7 + $0x80] sm:$0xff] }
 0x854   : > { %v2973_v61 = vpop.f32.mrf.mxu3 }
 0x855   : > { %v2981_v18 = vmax.f32 %v2948_v0, %v2973_v61  ;;  %v3129_v61 = vld [vmem:[%s12133_s7 + $0x28] sm:$0xff] }
 0x856   : > { %v2943_v9 = vpop.f32.mrf.mxu1 }
 0x857   : > { %v3014_v34 = vmax.f32 %v2981_v18, %v3006_v25  ;;  %v2949_v32 = vmax.f32 %v2904_v41, %v2943_v9  ;;  %v3009_v13 = vpop.f32.mrf.mxu0  ;;  %v7415_v25 = vld [vmem:[%s12133_s7 + $0x60] sm:$0xff]  ;;  %v7441_v18 = vld [vmem:[%s12133_s7 + $0x88] sm:$0xff] }
 0x858   : > { %v7416_v9 = vld [vmem:[%s12133_s7 + $0x68] sm:$0xff] }
 0x859   : > { %7399 = vmatmul.msk.f32.gmra.mxu2 %vm12389_vm12, %v3014_v34 }
 0x85c   : > { %v2976_v10 = vpop.f32.mrf.mxu3 }
 0x85d   : > { %v2982_v19 = vmax.f32 %v2949_v32, %v2976_v10  ;;  %v3130_v32 = vld [vmem:[%s12133_s7 + $0x30] sm:$0xff] }
 0x85e   : > { %v7442_v10 = vld [vmem:[%s12133_s7 + $0x90] sm:$0xff] }
 0x85f   : > { %v3015_v55 = vmax.f32 %v2982_v19, %v3009_v13  ;;  %v7417_v13 = vld [vmem:[%s12133_s7 + $0x70] sm:$0xff] }
 0x861   : > { %7400 = vmatmul.msk.f32.gmra.mxu2 %vm12389_vm12, %v3015_v55  ;;  %vm12840_vm12 = vmmov %vm12839_vm2  ;;  %vm12843_vm2 = vcmask 31744   ;;  %v3131_v55 = vld [vmem:[%s12133_s7 + $0x38] sm:$0xff] }
 0x862   : > { %7406 = vmatpush.msk.msra.mxu3 %vm12840_vm12, %v10249_v21  ;;  %vm12844_vm12 = vmmov %vm12843_vm2 }
 0x863   : > { %vm12845_vm11 = vmmov %vm12843_vm2 }
 0x864   : > { %vm12846_vm3 = vmmov %vm12843_vm2 }
 0x865   : > { %vm12847_vm10 = vmmov %vm12843_vm2 }
 0x866   : > { %vm12848_vm15 = vmmov %vm12843_vm2 }
 0x867   : > { %vm12854_vm8 = vmmov %vm12843_vm2 }
 0x8cc   : > { %v10268_v58 = vpop.f32.mrf.mxu2 }
 0x8cd   : > { %7402 = vmatmul.msk.f32.vlgmr.msra.gmra.mxu1 %vm12843_vm2, %v10268_v58  ;;  %7407 = vmatmul.msk.f32.vlgmr.msra.gmra.mxu3 %vm12844_vm12, %v10268_v58  ;;  %vm12849_vm12 = vmmov %vm12843_vm2 }
 0x8d4   : > { %v10274_v23 = vpop.f32.mrf.mxu2 }
 0x8d5   : > { %7403 = vmatmul.msk.f32.gmra.mxu1 %vm12845_vm11, %v10274_v23  ;;  %7408 = vmatmul.msk.f32.gmra.mxu3 %vm12846_vm3, %v10274_v23  ;;  %vm12850_vm11 = vcmp.ge.s32.totalorder %v3074_v59, 0  ;;  %vm12851_vm3 = vcmp.eq.s32.totalorder %v8755_v20, %v8432_v49  ;;  %v7443_v59 = vld [vmem:[%s12133_s7 + $0x98] sm:$0xff] }
 0x8d6   : > { %vm3431_vm4 = vmand %vm12851_vm3, %vm12850_vm11  ;;  %vm12856_vm11 = vcmp.lt.s32.totalorder %v10255_v45, 2 }
 0x8d7   : > { %v10297_v27 = vsel %vm3431_vm4, 1.0, %v12734_v5  ;;  %vm12857_vm4 = vcmp.eq.s32.totalorder %v8755_v20, %v8460_v30 }
 0x8d8   : > { %vm3631_vm3 = vmand %vm12857_vm4, %vm12856_vm11 }
 0x8d9   : > { %v10315_v49 = vsel %vm3631_vm3, 1.0, %v12734_v5  ;;  %vm12863_vm11 = vmmov %vm12857_vm4 }
 0x8da   : > { %12858 = vst [vmem:[#allocation108_spill] sm:$0xff] %v10315_v49  ;;  %vm3747_vm4 = vmand %vm12863_vm11, %vm12862_vm14 }
 0x8db   : > { %v10332_v16 = vsel %vm3747_vm4, 1.0, %v12734_v5  ;;  %vm12869_vm14 = vmmov %vm12843_vm2 }
 0x8dc   : > { %v10280_v50 = vpop.f32.mrf.mxu2  ;;  %12864 = vst [vmem:[#allocation109_spill] sm:$0xff] %v10332_v16  ;;  %vm12871_vm11 = vmmov %vm12843_vm2 }
 0x8dd   : > { %7404 = vmatmul.msk.f32.gmra.mxu1 %vm12847_vm10, %v10280_v50  ;;  %7409 = vmatmul.msk.f32.gmra.mxu3 %vm12848_vm15, %v10280_v50  ;;  %vm12852_vm10 = vcmask 1043456   ;;  %vm12853_vm15 = vmmov %vm12843_vm2 }
 0x8de   : > { %7456 = vmatpush.msk.msra.mxu1 %vm12852_vm10, %v10297_v27  ;;  %vm12865_vm3 = vmmov %vm12852_vm10 }
 0x8df   : > { %vm12872_vm4 = vmmov %vm12843_vm2 }
 0x8e4   : > { %v10286_v17 = vpop.f32.mrf.mxu2 }
 0x8e5   : > { %7405 = vmatmul.msk.f32.gmra.mxu1 %vm12843_vm2, %v10286_v17  ;;  %7410 = vmatmul.msk.f32.gmra.mxu3 %vm12849_vm12, %v10286_v17  ;;  %vm12855_vm12 = vmmov %vm12843_vm2 }
 0x8ed   : > { %7436 = vmatmul.msk.f32.vlgmr.msrb.gmra.mxu1 %vm12853_vm15, %v10268_v58  ;;  %vm12860_vm15 = vmmov %vm12843_vm2 }
 0x8ee   : > { %7493 = vmatpush.msk.msrb.mxu1 %vm12852_vm10, %v10315_v49  ;;  %vm12866_vm10 = vmmov %vm12843_vm2 }
 0x8f5   : > { %7437 = vmatmul.msk.f32.gmra.mxu1 %vm12854_vm8, %v10274_v23  ;;  %vm12859_vm8 = vmmov %vm12843_vm2 }
 0x8fd   : > { %7438 = vmatmul.msk.f32.gmra.mxu1 %vm12843_vm2, %v10280_v50 }
 0x905   : > { %7439 = vmatmul.msk.f32.gmra.mxu1 %vm12855_vm12, %v10286_v17  ;;  %vm12861_vm12 = vmmov %vm12843_vm2 }
 0x90d   : > { %7457 = vmatmul.msk.f32.vlgmr.msra.gmra.mxu1 %vm12859_vm8, %v10268_v58  ;;  %vm12867_vm8 = vmmov %vm12843_vm2 }
 0x90e   : > { %7514 = vmatpush.msk.msra.mxu1 %vm12865_vm3, %v10332_v16  ;;  %vm3180_vm3 = vcmask 261120  }
 0x915   : > { %7458 = vmatmul.msk.f32.gmra.mxu1 %vm12860_vm15, %v10274_v23  ;;  %vm12868_vm15 = vmmov %vm12843_vm2 }
 0x91d   : > { %7459 = vmatmul.msk.f32.gmra.mxu1 %vm12843_vm2, %v10280_v50 }
 0x925   : > { %7460 = vmatmul.msk.f32.gmra.mxu1 %vm12861_vm12, %v10286_v17  ;;  %vm12870_vm12 = vmmov %vm12843_vm2 }
 0x92d   : > { %7494 = vmatmul.msk.f32.vlgmr.msrb.gmra.mxu1 %vm12866_vm10, %v10268_v58 }
 0x935   : > { %7495 = vmatmul.msk.f32.gmra.mxu1 %vm12867_vm8, %v10274_v23  ;;  %vm12874_vm8 = vcmask 1043456  }
 0x93d   : > { %7496 = vmatmul.msk.f32.gmra.mxu1 %vm12868_vm15, %v10280_v50  ;;  %vm12875_vm15 = vcmp.lt.s32.totalorder %v10255_v45, 2 }
 0x945   : > { %7497 = vmatmul.msk.f32.gmra.mxu1 %vm12843_vm2, %v10286_v17  ;;  %vm12876_vm2 = vcmp.eq.s32.totalorder %v8755_v20, %v9949_v3  ;;  %v7468_v3 = vld [vmem:[%s12133_s7 + $0xf8] sm:$0xff] }
 0x94a   : > { %v3112_v30 = vpop.f32.mrf.mxu1 }
 0x94d   : > { %7515 = vmatmul.msk.f32.vlgmr.msra.gmra.mxu1 %vm12869_vm14, %v10268_v58  ;;  %vm3984_vm14 = vmand %vm12876_vm2, %vm12875_vm15 }
 0x94e   : > { %v10541_v45 = vsel %vm3984_vm14, 1.0, %v12734_v5  ;;  %vm12882_vm15 = vmmov %vm12872_vm4 }
 0x94f   : > { %12877 = vst [vmem:[#allocation111_spill] sm:$0xff] %v10541_v45  ;;  %vm12883_vm2 = vmmov %vm12872_vm4 }
 0x950   : > { %v3159_v15 = vpop.f32.mrf.mxu3  ;;  %vm12884_vm14 = vmmov %vm12883_vm2 }
 0x952   : > { %v3115_v56 = vpop.f32.mrf.mxu1 }
 0x955   : > { %7516 = vmatmul.msk.f32.gmra.mxu1 %vm12870_vm12, %v10274_v23  ;;  %vm12878_vm12 = vmmov %vm12874_vm8 }
 0x958   : > { %v3162_v41 = vpop.f32.mrf.mxu3 }
 0x95a   : > { %v3118_v33 = vpop.f32.mrf.mxu1 }
 0x95d   : > { %7517 = vmatmul.msk.f32.gmra.mxu1 %vm12871_vm11, %v10280_v50  ;;  %vm12879_vm11 = vmmov %vm12874_vm8 }
 0x960   : > { %v3165_v42 = vpop.f32.mrf.mxu3 }
 0x962   : > { %v3121_v24 = vpop.f32.mrf.mxu1 }
 0x963   : > { %3282 = vmatpush.msra.mxu2 %v3121_v24  ;;  %v7478_v24 = vld [vmem:[%s12133_s7 + $0x108] sm:$0xff] }
 0x965   : > { %3283 = vmatpush.msra.mxu2 %v3118_v33  ;;  %7518 = vmatmul.msk.f32.gmra.mxu1 %vm12872_vm4, %v10286_v17  ;;  %v7461_v33 = vld [vmem:[%s12133_s7 + $0xc0] sm:$0xff] }
 0x967   : > { %3284 = vmatpush.msra.mxu2 %v3115_v56  ;;  %v7477_v56 = vld [vmem:[%s12133_s7 + $0x100] sm:$0xff] }
 0x968   : > { %v3168_v22 = vpop.f32.mrf.mxu3 }
 0x969   : > { %3217 = vmatpush.msra.mxu0 %v3168_v22  ;;  %3285 = vmatpush.msra.mxu2 %v3112_v30  ;;  %v7418_v30 = vld [vmem:[%s12133_s7 + $0x78] sm:$0xff]  ;;  %v7462_v22 = vld [vmem:[%s12133_s7 + $0xc8] sm:$0xff] }
 0x96a   : > { %7427 = vmatmul.msk.f32.vlgmr.msra.gmra.mxu2 %vm3180_vm3, %v3124_v31  ;;  %v3337_v54 = vpop.f32.mrf.mxu1 }
 0x96b   : > { %3593 = vmatpush.msrb.mxu2 %v10286_v17  ;;  %3218 = vmatpush.msra.mxu0 %v3165_v42  ;;  %v7445_v42 = vld [vmem:[%s12133_s7 + $0xa8] sm:$0xff] }
 0x96d   : > { %3594 = vmatpush.msrb.mxu2 %v10280_v50  ;;  %3219 = vmatpush.msra.mxu0 %v3162_v41 }
 0x96f   : > { %3595 = vmatpush.msrb.mxu2 %v10274_v23  ;;  %3220 = vmatpush.msra.mxu0 %v3159_v15  ;;  %v7444_v15 = vld [vmem:[%s12133_s7 + $0xa0] sm:$0xff] }
 0x970   : > { %7419 = vmatmul.msk.f32.vlgmr.msra.gmra.mxu0 %vm3180_vm3, %v7411_v1  ;;  %v7479_v1 = vld [vmem:[%s12133_s7 + $0x110] sm:$0xff] }
 0x971   : > { %3596 = vmatpush.msrb.mxu2 %v10268_v58 }
 0x972   : > { %7428 = vmatmul.msk.f32.gmra.mxu2 %vm3180_vm3, %v3125_v26  ;;  %v3340_v12 = vpop.f32.mrf.mxu1 }
 0x978   : > { %7420 = vmatmul.msk.f32.gmra.mxu0 %vm3180_vm3, %v7412_v40  ;;  %v7447_v40 = vld [vmem:[%s12133_s7 + $0xb8] sm:$0xff] }
 0x97a   : > { %7429 = vmatmul.msk.f32.gmra.mxu2 %vm3180_vm3, %v3126_v52  ;;  %v3343_v38 = vpop.f32.mrf.mxu1  ;;  %v7480_v52 = vld [vmem:[%s12133_s7 + $0x118] sm:$0xff] }
 0x980   : > { %7421 = vmatmul.msk.f32.gmra.mxu0 %vm3180_vm3, %v7413_v36  ;;  %v7464_v36 = vld [vmem:[%s12133_s7 + $0xd8] sm:$0xff] }
 0x982   : > { %7430 = vmatmul.msk.f32.gmra.mxu2 %vm3180_vm3, %v3127_v4  ;;  %v3346_v51 = vpop.f32.mrf.mxu1  ;;  %v3864_v4 = vadd.s32 2, %v8181_v2 }
 0x983   : > { %3394 = vmatpush.msrb.mxu3 %v3346_v51  ;;  %v7481_v51 = vld [vmem:[%s12133_s7 + $0x120] sm:$0xff] }
 0x984   : > { %vm3865_vm10 = vcmp.eq.s32.totalorder %v8755_v20, %v3864_v4 }
 0x985   : > { %3395 = vmatpush.msrb.mxu3 %v3343_v38 }
 0x987   : > { %3396 = vmatpush.msrb.mxu3 %v3340_v12  ;;  %v7463_v12 = vld [vmem:[%s12133_s7 + $0xd0] sm:$0xff] }
 0x988   : > { %7422 = vmatmul.msk.f32.gmra.mxu0 %vm3180_vm3, %v7414_v29  ;;  %v7498_v29 = vld [vmem:[%s12133_s7 + $0x140] sm:$0xff] }
 0x989   : > { %3397 = vmatpush.msrb.mxu3 %v3337_v54  ;;  %v7446_v54 = vld [vmem:[%s12133_s7 + $0xb0] sm:$0xff] }
 0x98a   : > { %7431 = vmatmul.msk.f32.gmra.mxu2 %vm3180_vm3, %v3128_v60  ;;  %7448 = vmatmul.msk.f32.vlgmr.msrb.gmra.mxu3 %vm3180_vm3, %v7440_v8  ;;  %v3454_v0 = vpop.f32.mrf.mxu1  ;;  %v10493_v60 = vsel %vm3865_vm10, 1.0, %v12734_v5  ;;  %vm12880_vm10 = vmmov %vm12874_vm8 }
 0x98b   : > { %12873 = vst [vmem:[#allocation110_spill] sm:$0xff] %v10493_v60  ;;  %7535 = vmatpush.msk.msra.mxu2 %vm12874_vm8, %v10493_v60  ;;  %vm12881_vm8 = vmmov %vm12872_vm4 }
 0x990   : > { %7423 = vmatmul.msk.f32.gmra.mxu0 %vm3180_vm3, %v7415_v25  ;;  %v7482_v25 = vld [vmem:[%s12133_s7 + $0x128] sm:$0xff] }
 0x992   : > { %7432 = vmatmul.msk.f32.gmra.mxu2 %vm3180_vm3, %v3129_v61  ;;  %7449 = vmatmul.msk.f32.gmra.mxu3 %vm3180_vm3, %v7441_v18  ;;  %v3457_v34 = vpop.f32.mrf.mxu1  ;;  %v7499_v61 = vld [vmem:[%s12133_s7 + $0x148] sm:$0xff] }
 0x998   : > { %7424 = vmatmul.msk.f32.gmra.mxu0 %vm3180_vm3, %v7416_v9  ;;  %v7483_v9 = vld [vmem:[%s12133_s7 + $0x130] sm:$0xff] }
 0x99a   : > { %7433 = vmatmul.msk.f32.gmra.mxu2 %vm3180_vm3, %v3130_v32  ;;  %7450 = vmatmul.msk.f32.gmra.mxu3 %vm3180_vm3, %v7442_v10  ;;  %v3460_v19 = vpop.f32.mrf.mxu1  ;;  %v7500_v32 = vld [vmem:[%s12133_s7 + $0x150] sm:$0xff] }
 0x9a0   : > { %7425 = vmatmul.msk.f32.gmra.mxu0 %vm3180_vm3, %v7417_v13  ;;  %v7484_v13 = vld [vmem:[%s12133_s7 + $0x138] sm:$0xff] }
 0x9a2   : > { %7434 = vmatmul.msk.f32.gmra.mxu2 %vm3180_vm3, %v3131_v55  ;;  %7451 = vmatmul.msk.f32.gmra.mxu3 %vm3180_vm3, %v7443_v59  ;;  %v3463_v53 = vpop.f32.mrf.mxu1  ;;  %v7501_v55 = vld [vmem:[%s12133_s7 + $0x158] sm:$0xff] }
 0x9a3   : > { %3511 = vmatpush.msrb.mxu0 %v3463_v53  ;;  %v7502_v53 = vld [vmem:[%s12133_s7 + $0x160] sm:$0xff] }
 0x9a5   : > { %3512 = vmatpush.msrb.mxu0 %v3460_v19  ;;  %v7467_v19 = vld [vmem:[%s12133_s7 + $0xf0] sm:$0xff] }
 0x9a7   : > { %3513 = vmatpush.msrb.mxu0 %v3457_v34  ;;  %v7466_v34 = vld [vmem:[%s12133_s7 + $0xe8] sm:$0xff] }
 0x9a8   : > { %7426 = vmatmul.msk.f32.gmra.mxu0 %vm3180_vm3, %v7418_v30 }
 0x9a9   : > { %3514 = vmatpush.msrb.mxu0 %v3454_v0  ;;  %v7465_v0 = vld [vmem:[%s12133_s7 + $0xe0] sm:$0xff] }
 0x9aa   : > { %7452 = vmatmul.msk.f32.gmra.mxu3 %vm3180_vm3, %v7444_v15  ;;  %7485 = vmatmul.msk.f32.vlgmr.msrb.gmra.mxu2 %vm3180_vm3, %v7477_v56  ;;  %v3653_v41 = vpop.f32.mrf.mxu1  ;;  %v7519_v15 = vld [vmem:[%s12133_s7 + $0x180] sm:$0xff]  ;;  %v7503_v56 = vld [vmem:[%s12133_s7 + $0x168] sm:$0xff] }
 0x9b0   : > { %7469 = vmatmul.msk.f32.vlgmr.msrb.gmra.mxu0 %vm3180_vm3, %v7461_v33  ;;  %v7520_v33 = vld [vmem:[%s12133_s7 + $0x188] sm:$0xff] }
 0x9b2   : > { %7453 = vmatmul.msk.f32.gmra.mxu3 %vm3180_vm3, %v7445_v42  ;;  %7486 = vmatmul.msk.f32.gmra.mxu2 %vm3180_vm3, %v7478_v24  ;;  %v3656_v31 = vpop.f32.mrf.mxu1  ;;  %v7504_v42 = vld [vmem:[%s12133_s7 + $0x170] sm:$0xff] }
 0x9b8   : > { %7470 = vmatmul.msk.f32.gmra.mxu0 %vm3180_vm3, %v7462_v22  ;;  %v7505_v22 = vld [vmem:[%s12133_s7 + $0x178] sm:$0xff] }
 0x9ba   : > { %7454 = vmatmul.msk.f32.gmra.mxu3 %vm3180_vm3, %v7446_v54  ;;  %7487 = vmatmul.msk.f32.gmra.mxu2 %vm3180_vm3, %v7479_v1  ;;  %v3659_v26 = vpop.f32.mrf.mxu1  ;;  %v7522_v1 = vld [vmem:[%s12133_s7 + $0x198] sm:$0xff] }
 0x9c0   : > { %7471 = vmatmul.msk.f32.gmra.mxu0 %vm3180_vm3, %v7463_v12  ;;  %v7523_v12 = vld [vmem:[%s12133_s7 + $0x1a0] sm:$0xff] }
 0x9c2   : > { %7455 = vmatmul.msk.f32.gmra.mxu3 %vm3180_vm3, %v7447_v40  ;;  %7488 = vmatmul.msk.f32.gmra.mxu2 %vm3180_vm3, %v7480_v52  ;;  %v3662_v38 = vpop.f32.mrf.mxu1 }
 0x9c3   : > { %3710 = vmatpush.msra.mxu3 %v3662_v38 }
 0x9c5   : > { %3711 = vmatpush.msra.mxu3 %v3659_v26 }
 0x9c7   : > { %3712 = vmatpush.msra.mxu3 %v3656_v31  ;;  %v7521_v31 = vld [vmem:[%s12133_s7 + $0x190] sm:$0xff] }
 0x9c8   : > { %7472 = vmatmul.msk.f32.gmra.mxu0 %vm3180_vm3, %v7464_v36  ;;  %v7525_v36 = vld [vmem:[%s12133_s7 + $0x1b0] sm:$0xff] }
 0x9c9   : > { %3713 = vmatpush.msra.mxu3 %v3653_v41 }
 0x9ca   : > { %7489 = vmatmul.msk.f32.gmra.mxu2 %vm3180_vm3, %v7481_v51  ;;  %7506 = vmatmul.msk.f32.vlgmr.msra.gmra.mxu3 %vm3180_vm3, %v7498_v29  ;;  %v3770_v8 = vpop.f32.mrf.mxu1  ;;  %v7526_v51 = vld [vmem:[%s12133_s7 + $0x1b8] sm:$0xff] }
 0x9cb   : > { %7556 = vmatpush.msk.msrb.mxu3 %vm12878_vm12, %v10541_v45  ;;  %vm12885_vm12 = vmmov %vm12880_vm10 }
 0x9cd   : > { %7577 = vmatpush.msk.msra.mxu3 %vm12879_vm11, %v10315_v49  ;;  %vm12886_vm11 = vmmov %vm12883_vm2 }
 0x9d0   : > { %7473 = vmatmul.msk.f32.gmra.mxu0 %vm3180_vm3, %v7465_v0 }
 0x9d2   : > { %7490 = vmatmul.msk.f32.gmra.mxu2 %vm3180_vm3, %v7482_v25  ;;  %7507 = vmatmul.msk.f32.gmra.mxu3 %vm3180_vm3, %v7499_v61  ;;  %v3773_v18 = vpop.f32.mrf.mxu1 }
 0x9d8   : > { %7474 = vmatmul.msk.f32.gmra.mxu0 %vm3180_vm3, %v7466_v34 }
 0x9da   : > { %7491 = vmatmul.msk.f32.gmra.mxu2 %vm3180_vm3, %v7483_v9  ;;  %7508 = vmatmul.msk.f32.gmra.mxu3 %vm3180_vm3, %v7500_v32  ;;  %v3776_v10 = vpop.f32.mrf.mxu1 }
 0x9e0   : > { %7475 = vmatmul.msk.f32.gmra.mxu0 %vm3180_vm3, %v7467_v19 }
 0x9e2   : > { %7492 = vmatmul.msk.f32.gmra.mxu2 %vm3180_vm3, %v7484_v13  ;;  %7509 = vmatmul.msk.f32.gmra.mxu3 %vm3180_vm3, %v7501_v55  ;;  %v3779_v59 = vpop.f32.mrf.mxu1 }
 0x9e3   : > { %3827 = vmatpush.msra.mxu0 %v3779_v59 }
 0x9e5   : > { %3828 = vmatpush.msra.mxu0 %v3776_v10 }
 0x9e7   : > { %3829 = vmatpush.msra.mxu0 %v3773_v18 }
 0x9e8   : > { %7476 = vmatmul.msk.f32.gmra.mxu0 %vm3180_vm3, %v7468_v3 }
 0x9e9   : > { %3830 = vmatpush.msra.mxu0 %v3770_v8 }
 0x9ea   : > { %7510 = vmatmul.msk.f32.gmra.mxu3 %vm3180_vm3, %v7502_v53  ;;  %7536 = vmatmul.msk.f32.vlgmr.msra.gmra.mxu2 %vm12872_vm4, %v10268_v58  ;;  %vm12887_vm4 = vmmov %vm12883_vm2 }
 0x9eb   : > { %7586 = vmatpush.msk.msrb.mxu0 %vm12880_vm10, %v10493_v60  ;;  %vm12888_vm10 = vmmov %vm12883_vm2 }
 0x9ed   : > { %v10559_v30 = vpop.f32.mrf.mxu2 }
 0x9f0   : > { %7527 = vmatmul.msk.f32.vlgmr.msra.gmra.mxu0 %vm3180_vm3, %v7519_v15 }
 0x9f2   : > { %7511 = vmatmul.msk.f32.gmra.mxu3 %vm3180_vm3, %v7503_v56  ;;  %7537 = vmatmul.msk.f32.gmra.mxu2 %vm12881_vm8, %v10274_v23  ;;  %vm12889_vm8 = vmmov %vm12885_vm12 }
 0x9f5   : > { %v10571_v41 = vpop.f32.mrf.mxu2 }
 0x9f8   : > { %7528 = vmatmul.msk.f32.gmra.mxu0 %vm3180_vm3, %v7520_v33 }
 0x9fa   : > { %7512 = vmatmul.msk.f32.gmra.mxu3 %vm3180_vm3, %v7504_v42  ;;  %7538 = vmatmul.msk.f32.gmra.mxu2 %vm12882_vm15, %v10280_v50  ;;  %v10679_v42 = vpop.f32.mrf.mxu0  ;;  %vm12890_vm15 = vmmov %vm12889_vm8 }
 0x9fd   : > { %v10583_v24 = vpop.f32.mrf.mxu2 }
 0xa00   : > { %7529 = vmatmul.msk.f32.gmra.mxu0 %vm3180_vm3, %v7521_v31 }
 0xa02   : > { %7513 = vmatmul.msk.f32.gmra.mxu3 %vm3180_vm3, %v7505_v22  ;;  %7539 = vmatmul.msk.f32.gmra.mxu2 %vm12883_vm2, %v10286_v17 }
 0xa05   : > { %v10595_v54 = vpop.f32.mrf.mxu2 }
 0xa08   : > { %7530 = vmatmul.msk.f32.gmra.mxu0 %vm3180_vm3, %v7522_v1 }
 0xa0a   : > { %7557 = vmatmul.msk.f32.vlgmr.msrb.gmra.mxu3 %vm12884_vm14, %v10268_v58  ;;  %v7524_v58 = vld [vmem:[%s12133_s7 + $0x1a8] sm:$0xff]  ;;  %vm12891_vm14 = vmmov %vm12883_vm2 }
 0xa0b   : > { %7613 = vmatpush.msk.msrb.mxu3 %vm12885_vm12, %v10249_v21  ;;  %vm12892_vm12 = vmmov %vm12883_vm2 }
 0xa0d   : > { %v10605_v26 = vpop.f32.mrf.mxu2  ;;  %v10610_v40 = vpop.f32.mrf.mxu3 }
 0xa10   : > { %7531 = vmatmul.msk.f32.gmra.mxu0 %vm3180_vm3, %v7523_v12 }
 0xa12   : > { %7558 = vmatmul.msk.f32.gmra.mxu3 %vm12886_vm11, %v10274_v23  ;;  %vm12893_vm11 = vmmov %vm12883_vm2 }
 0xa15   : > { %v10615_v52 = vpop.f32.mrf.mxu2  ;;  %v10620_v21 = vpop.f32.mrf.mxu3 }
 0xa18   : > { %7532 = vmatmul.msk.f32.gmra.mxu0 %vm3180_vm3, %v7524_v58  ;;  %v10685_v58 = vpop.f32.mrf.mxu0 }
 0xa1a   : > { %7559 = vmatmul.msk.f32.gmra.mxu3 %vm12887_vm4, %v10280_v50  ;;  %vm12894_vm4 = vmmov %vm12883_vm2 }
 0xa1d   : > { %v10625_v38 = vpop.f32.mrf.mxu2  ;;  %v10630_v23 = vpop.f32.mrf.mxu3 }
 0xa20   : > { %7533 = vmatmul.msk.f32.gmra.mxu0 %vm3180_vm3, %v7525_v36  ;;  %v7540_v36 = vld [vmem:[%s12133_s7 + $0x1c0] sm:$0xff]  ;;  %v10693_v28 = vpop.f32.mrf.mxu0 }
 0xa21   : > { %v3294_v49 = vadd.f32 %v10583_v24, %v10693_v28 }
 0xa22   : > { %7560 = vmatmul.msk.f32.gmra.mxu3 %vm12888_vm10, %v10286_v17  ;;  %vm12895_vm10 = vmmov %vm12883_vm2 }
 0xa25   : > { %v10635_v4 = vpop.f32.mrf.mxu2  ;;  %v10640_v50 = vpop.f32.mrf.mxu3 }
 0xa28   : > { %7534 = vmatmul.msk.f32.gmra.mxu0 %vm3180_vm3, %v7526_v51 }
 0xa2d   : > { %v10643_v29 = vpop.f32.mrf.mxu2  ;;  %v10645_v8 = vpop.f32.mrf.mxu3 }
 0xa35   : > { %v10647_v0 = vpop.f32.mrf.mxu2  ;;  %v10649_v25 = vpop.f32.mrf.mxu3 }
 0xa3d   : > { %v10651_v61 = vpop.f32.mrf.mxu2  ;;  %v10653_v17 = vpop.f32.mrf.mxu3 }
 0xa45   : > { %v10655_v18 = vpop.f32.mrf.mxu2  ;;  %v10657_v34 = vpop.f32.mrf.mxu3 }
 0xa4d   : > { %v10659_v9 = vpop.f32.mrf.mxu2  ;;  %v10661_v32 = vpop.f32.mrf.mxu3 }
 0xa55   : > { %v10663_v10 = vpop.f32.mrf.mxu2  ;;  %v10665_v19 = vpop.f32.mrf.mxu3 }
 0xa5d   : > { %v10667_v13 = vpop.f32.mrf.mxu2  ;;  %v10669_v55 = vpop.f32.mrf.mxu3 }
 0xa65   : > { %v10671_v59 = vpop.f32.mrf.mxu2  ;;  %v10673_v3 = vpop.f32.mrf.mxu3 }
 0xa6d   : > { %v3889_v53 = vpop.f32.mrf.mxu2  ;;  %v10675_v15 = vpop.f32.mrf.mxu3 }
 0xa75   : > { %v3892_v56 = vpop.f32.mrf.mxu2  ;;  %v10677_v33 = vpop.f32.mrf.mxu3 }
 0xa7d   : > { %v3895_v31 = vpop.f32.mrf.mxu2  ;;  %v10681_v22 = vpop.f32.mrf.mxu3 }
 0xa85   : > { %v3898_v1 = vpop.f32.mrf.mxu2  ;;  %v10683_v12 = vpop.f32.mrf.mxu3 }
 0xa86   : > { %3946 = vmatpush.msrb.mxu1 %v3898_v1  ;;  %v7541_v1 = vld [vmem:[%s12133_s7 + $0x1c8] sm:$0xff] }
 0xa88   : > { %3947 = vmatpush.msrb.mxu1 %v3895_v31  ;;  %v7542_v31 = vld [vmem:[%s12133_s7 + $0x1d0] sm:$0xff] }
 0xa8a   : > { %3948 = vmatpush.msrb.mxu1 %v3892_v56 }
 0xa8c   : > { %3949 = vmatpush.msrb.mxu1 %v3889_v53  ;;  %v10702_v53 = vpop.f32.mrf.mxu0 }
 0xa8d   : > { %7548 = vmatmul.msk.f32.vlgmr.msrb.gmra.mxu1 %vm3180_vm3, %v7540_v36  ;;  %v4006_v51 = vpop.f32.mrf.mxu3 }
 0xa8e   : > { %7595 = vmatpush.msk.msra.mxu1 %vm12889_vm8, %v10541_v45  ;;  %vm12896_vm8 = vmmov %vm12883_vm2 }
 0xa94   : > { %v10708_v37 = vpop.f32.mrf.mxu0 }
 0xa95   : > { %7549 = vmatmul.msk.f32.gmra.mxu1 %vm3180_vm3, %v7541_v1  ;;  %v4009_v56 = vpop.f32.mrf.mxu3  ;;  %v7544_v1 = vld [vmem:[%s12133_s7 + $0x1e0] sm:$0xff] }
 0xa9c   : > { %v10719_v7 = vpop.f32.mrf.mxu0 }
 0xa9d   : > { %7550 = vmatmul.msk.f32.gmra.mxu1 %vm3180_vm3, %v7542_v31  ;;  %v4012_v36 = vpop.f32.mrf.mxu3  ;;  %v7561_v31 = vld [vmem:[%s12133_s7 + $0x200] sm:$0xff] }
 0xaa5   : > { %7551 = vmatmul.msk.f32.gmra.mxu1 %vm3180_vm3, %v7543_v63  ;;  %v4015_v48 = vpop.f32.mrf.mxu3  ;;  %v7545_v63 = vld [vmem:[%s12133_s7 + $0x1e8] sm:$0xff] }
 0xaa6   : > { %4063 = vmatpush.msrb.mxu2 %v4015_v48  ;;  %v7562_v48 = vld [vmem:[%s12133_s7 + $0x208] sm:$0xff] }
 0xaa8   : > { %4064 = vmatpush.msrb.mxu2 %v4012_v36  ;;  %v7547_v36 = vld [vmem:[%s12133_s7 + $0x1f8] sm:$0xff] }
 0xaaa   : > { %4065 = vmatpush.msrb.mxu2 %v4009_v56  ;;  %v7546_v56 = vld [vmem:[%s12133_s7 + $0x1f0] sm:$0xff] }
 0xaac   : > { %4066 = vmatpush.msrb.mxu2 %v4006_v51  ;;  %v10731_v51 = vpop.f32.mrf.mxu0 }
 0xaad   : > { %7552 = vmatmul.msk.f32.gmra.mxu1 %vm3180_vm3, %v7544_v1  ;;  %7569 = vmatmul.msk.f32.vlgmr.msrb.gmra.mxu2 %vm3180_vm3, %v7561_v31  ;;  %v7564_v31 = vld [vmem:[%s12133_s7 + $0x218] sm:$0xff] }
 0xaae   : > { %7604 = vmatpush.msk.msra.mxu2 %vm12890_vm15, %v10246_v43  ;;  %v7563_v43 = vld [vmem:[%s12133_s7 + $0x210] sm:$0xff]  ;;  %vm12897_vm15 = vmmov %vm12883_vm2 }
 0xab4   : > { %v10744_v1 = vpop.f32.mrf.mxu0 }
 0xab5   : > { %7553 = vmatmul.msk.f32.gmra.mxu1 %vm3180_vm3, %v7545_v63  ;;  %7570 = vmatmul.msk.f32.gmra.mxu2 %vm3180_vm3, %v7562_v48  ;;  %v7565_v63 = vld [vmem:[%s12133_s7 + $0x220] sm:$0xff] }
 0xabc   : > { %v3516_v48 = vpop.f32.mrf.mxu0 }
 0xabd   : > { %7554 = vmatmul.msk.f32.gmra.mxu1 %vm3180_vm3, %v7546_v56  ;;  %7571 = vmatmul.msk.f32.gmra.mxu2 %vm3180_vm3, %v7563_v43  ;;  %v7566_v56 = vld [vmem:[%s12133_s7 + $0x228] sm:$0xff] }
 0xac4   : > { %v3519_v43 = vpop.f32.mrf.mxu0 }
 0xac5   : > { %7555 = vmatmul.msk.f32.gmra.mxu1 %vm3180_vm3, %v7547_v36  ;;  %7572 = vmatmul.msk.f32.gmra.mxu2 %vm3180_vm3, %v7564_v31  ;;  %v7567_v36 = vld [vmem:[%s12133_s7 + $0x230] sm:$0xff] }
 0xacc   : > { %v3522_v31 = vpop.f32.mrf.mxu0 }
 0xacd   : > { %7573 = vmatmul.msk.f32.gmra.mxu2 %vm3180_vm3, %v7565_v63 }
 0xad4   : > { %v3525_v63 = vpop.f32.mrf.mxu0 }
 0xad5   : > { %7574 = vmatmul.msk.f32.gmra.mxu2 %vm3180_vm3, %v7566_v56 }
 0xadc   : > { %v3528_v5 = vpop.f32.mrf.mxu0 }
 0xadd   : > { %7575 = vmatmul.msk.f32.gmra.mxu2 %vm3180_vm3, %v7567_v36  ;;  %v3288_v36 = vadd.f32 %v10559_v30, %v10679_v42 }
 0xadf   : > { %v3423_v11 = vadd.f32 %v10610_v40, %v3288_v36  ;;  %v4103_v36 = vpop.permute.xlu1 %4102 }
 0xae1   : > { %v3540_v35 = vadd.f32 %v3516_v48, %v3423_v11 }
 0xae3   : > { %v3622_v46 = vadd.f32 %v10643_v29, %v3540_v35 }
 0xae4   : > { %v10767_v44 = vpop.f32.mrf.mxu0 }
 0xae5   : > { %7576 = vmatmul.msk.f32.gmra.mxu2 %vm3180_vm3, %v7568_v62  ;;  %v3291_v62 = vadd.f32 %v10571_v41, %v10685_v58  ;;  %v3739_v60 = vadd.f32 %v10661_v32, %v3622_v46  ;;  %v3425_v58 = vadd.f32 %v10630_v23, %v3294_v49 }
 0xae7   : > { %v3424_v57 = vadd.f32 %v10620_v21, %v3291_v62  ;;  %v3542_v29 = vadd.f32 %v3522_v31, %v3425_v58 }
 0xae9   : > { %v3541_v16 = vadd.f32 %v3519_v43, %v3424_v57  ;;  %v3624_v49 = vadd.f32 %v10651_v61, %v3542_v29  ;;  %v4113_v43 = vpop.permute.xlu0 %4112  ;;  %v3306_v29 = vadd.f32 %v10625_v38, %v10731_v51 }
 0xaeb   : > { %v3623_v11 = vadd.f32 %v10647_v0, %v3541_v16  ;;  %v3741_v24 = vadd.f32 %v10669_v55, %v3624_v49 }
 0xaec   : > { %v10769_v2 = vpop.f32.mrf.mxu0 }
 0xaed   : > { %v3740_v35 = vadd.f32 %v10665_v19, %v3623_v11  ;;  %v3300_v19 = vadd.f32 %v10605_v26, %v10708_v37  ;;  %v3303_v11 = vadd.f32 %v10615_v52, %v10719_v7 }
 0xaef   : > { %v3427_v31 = vadd.f32 %v10645_v8, %v3300_v19 }
 0xaf1   : > { %v3544_v62 = vadd.f32 %v3528_v5, %v3427_v31 }
 0xaf3   : > { %v3626_v5 = vadd.f32 %v10659_v9, %v3544_v62 }
 0xaf4   : > { %v10771_v56 = vpop.f32.mrf.mxu0 }
 0xafc   : > { %v3832_v20 = vpop.f32.mrf.mxu0 }
 0xafd   : > { %v3856_v45 = vadd.f32 %v3832_v20, %v3739_v60  ;;  %v3297_v20 = vadd.f32 %v10595_v54, %v10702_v53 }
 0xb04   : > { %v3835_v14 = vpop.f32.mrf.mxu0 }
 0xb05   : > { %v3857_v46 = vadd.f32 %v3835_v14, %v3740_v35  ;;  %v4108_v14 = vpop.permute.xlu2 %4107 }
 0xb0a   : > { %v3951_v39 = vpop.f32.mrf.mxu1 }
 0xb0b   : > { %v3975_v30 = vadd.f32 %v3951_v39, %v3856_v45  ;;  %v3426_v45 = vadd.f32 %v10640_v50, %v3297_v20 }
 0xb0c   : > { %v3838_v42 = vpop.f32.mrf.mxu0 }
 0xb0d   : > { %v3543_v23 = vadd.f32 %v3525_v63, %v3426_v45  ;;  %v3858_v0 = vadd.f32 %v3838_v42, %v3741_v24  ;;  %v4123_v20 = vpop.permute.xlu2 %4122  ;;  %v4128_v45 = vpop.permute.xlu0 %4127 }
 0xb0f   : > { %v3625_v61 = vadd.f32 %v10655_v18, %v3543_v23 }
 0xb11   : > { %v3742_v63 = vadd.f32 %v10673_v3, %v3625_v61  ;;  %v4118_v3 = vpop.permute.xlu1 %4117 }
 0xb12   : > { %v3954_v6 = vpop.f32.mrf.mxu1 }
 0xb13   : > { %v3976_v39 = vadd.f32 %v3954_v6, %v3857_v46 }
 0xb14   : > { %v3841_v60 = vpop.f32.mrf.mxu0 }
 0xb15   : > { %v4138_v62 = vpop.permute.xlu2 %4137 }
 0xb1a   : > { %v3957_v41 = vpop.f32.mrf.mxu1 }
 0xb1b   : > { %v3977_v53 = vadd.f32 %v3957_v41, %v3858_v0  ;;  %v3743_v41 = vadd.f32 %v10675_v15, %v3626_v5 }
 0xb1c   : > { %v3844_v26 = vpop.f32.mrf.mxu0 }
 0xb1d   : > { %v3860_v58 = vadd.f32 %v3844_v26, %v3743_v41 }
 0xb22   : > { %v3960_v54 = vpop.f32.mrf.mxu1 }
 0xb30   : > { %v4068_v40 = vpop.f32.mrf.mxu2 }
 0xb31   : > { %v4092_v48 = vadd.f32 %v4068_v40, %v3975_v30  ;;  %v3859_v30 = vadd.f32 %v3841_v60, %v3742_v63  ;;  %v3963_v40 = vpop.f32.mrf.mxu1 }
 0xb32   : > { %v3979_v46 = vadd.f32 %v3963_v40, %v3860_v58 }
 0xb33   : > { %v4140_v21 = vadd.f32 %v4103_v36, %v4092_v48  ;;  %v3978_v48 = vadd.f32 %v3960_v54, %v3859_v30  ;;  %v3428_v36 = vadd.f32 %v10649_v25, %v3303_v11 }
 0xb35   : > { %v10786_v57 = vmax.f32 %v4140_v21, 0.0  ;;  %v3545_v52 = vadd.f32 %v10767_v44, %v3428_v36  ;;  %v3847_v21 = vpop.f32.mrf.mxu0 }
 0xb37   : > { %7578 = vmatmul.msk.f32.vlgmr.msra.gmra.mxu3 %vm12883_vm2, %v10786_v57  ;;  %7587 = vmatmul.msk.f32.vlgmr.msrb.gmra.mxu0 %vm12891_vm14, %v10786_v57  ;;  %vm12898_vm14 = vmmov %vm12883_vm2  ;;  %v3627_v44 = vadd.f32 %v10663_v10, %v3545_v52 }
 0xb38   : > { %7596 = vmatmul.msk.f32.vlgmr.msra.gmra.mxu1 %vm12892_vm12, %v10786_v57  ;;  %v4071_v28 = vpop.f32.mrf.mxu2  ;;  %vm12899_vm12 = vmmov %vm12883_vm2 }
 0xb39   : > { %v4093_v16 = vadd.f32 %v4071_v28, %v3976_v39  ;;  %v3966_v25 = vpop.f32.mrf.mxu1  ;;  %v3429_v39 = vadd.f32 %v10653_v17, %v3306_v29  ;;  %v3744_v38 = vadd.f32 %v10677_v33, %v3627_v44 }
 0xb3b   : > { %v4141_v6 = vadd.f32 %v4108_v14, %v4093_v16  ;;  %v3546_v28 = vadd.f32 %v10769_v2, %v3429_v39  ;;  %v3861_v49 = vadd.f32 %v3847_v21, %v3744_v38  ;;  %v3309_v14 = vadd.f32 %v10635_v4, %v10744_v1 }
 0xb3d   : > { %v10799_v32 = vmax.f32 %v4141_v6, 0.0  ;;  %v3980_v60 = vadd.f32 %v3966_v25, %v3861_v49  ;;  %v3850_v10 = vpop.f32.mrf.mxu0  ;;  %v3628_v2 = vadd.f32 %v10667_v13, %v3546_v28  ;;  %v3430_v6 = vadd.f32 %v10657_v34, %v3309_v14 }
 0xb3f   : > { %7579 = vmatmul.msk.f32.gmra.mxu3 %vm12893_vm11, %v10799_v32  ;;  %7588 = vmatmul.msk.f32.gmra.mxu0 %vm12894_vm4, %v10799_v32  ;;  %vm12900_vm11 = vmmov %vm12883_vm2  ;;  %v3745_v4 = vadd.f32 %v10681_v22, %v3628_v2  ;;  %v3547_v54 = vadd.f32 %v10771_v56, %v3430_v6 }
 0xb40   : > { %7597 = vmatmul.msk.f32.gmra.mxu1 %vm12895_vm10, %v10799_v32  ;;  %v4074_v50 = vpop.f32.mrf.mxu2  ;;  %vm12901_vm4 = vmmov %vm12883_vm2 }
 0xb41   : > { %v4094_v55 = vadd.f32 %v4074_v50, %v3977_v53  ;;  %vm12902_vm10 = vmmov %vm12883_vm2  ;;  %v3969_v24 = vpop.f32.mrf.mxu1  ;;  %v3862_v23 = vadd.f32 %v3850_v10, %v3745_v4  ;;  %v3629_v34 = vadd.f32 %v10671_v59, %v3547_v54  ;;  %v4133_v53 = vpop.permute.xlu1 %4132 }
 0xb43   : > { %v4142_v37 = vadd.f32 %v4113_v43, %v4094_v55  ;;  %v3981_v19 = vadd.f32 %v3969_v24, %v3862_v23  ;;  %v3746_v56 = vadd.f32 %v10683_v12, %v3629_v34 }
 0xb45   : > { %v10812_v42 = vmax.f32 %v4142_v37, 0.0  ;;  %v3853_v50 = vpop.f32.mrf.mxu0 }
 0xb46   : > { %v3863_v43 = vadd.f32 %v3853_v50, %v3746_v56  ;;  %v5795_v56 = vld [vmem:[%s12140_s14] sm:$0xf] }
 0xb47   : > { %7580 = vmatmul.msk.f32.gmra.mxu3 %vm12896_vm8, %v10812_v42  ;;  %7589 = vmatmul.msk.f32.gmra.mxu0 %vm12897_vm15, %v10812_v42  ;;  %vm12903_vm8 = vmmov %vm12883_vm2 }
 0xb48   : > { %7598 = vmatmul.msk.f32.gmra.mxu1 %vm12883_vm2, %v10812_v42  ;;  %v4077_v8 = vpop.f32.mrf.mxu2  ;;  %vm12904_vm15 = vmmov %vm12883_vm2 }
 0xb49   : > { %v4095_v18 = vadd.f32 %v4077_v8, %v3978_v48  ;;  %v3972_v55 = vpop.f32.mrf.mxu1 }
 0xb4a   : > { %v3982_v63 = vadd.f32 %v3972_v55, %v3863_v43  ;;  %v4329_v55 = vld [vmem:[%s12136_s10 + $0x10] sm:$0xff]  ;;  %v5185_v43 = vld [vmem:[%s12138_s12 + $0x8] sm:$0xff] }
 0xb4b   : > { %v4143_v7 = vadd.f32 %v4118_v3, %v4095_v18 }
 0xb4d   : > { %v10826_v35 = vmax.f32 %v4143_v7, 0.0 }
 0xb4f   : > { %7581 = vmatmul.msk.f32.gmra.mxu3 %vm12898_vm14, %v10826_v35  ;;  %7590 = vmatmul.msk.f32.gmra.mxu0 %vm12899_vm12, %v10826_v35  ;;  %vm12905_vm14 = vmmov %vm12883_vm2 }
 0xb50   : > { %7599 = vmatmul.msk.f32.gmra.mxu1 %vm12900_vm11, %v10826_v35  ;;  %v4080_v9 = vpop.f32.mrf.mxu2  ;;  %vm12906_vm12 = vmmov %vm12883_vm2 }
 0xb51   : > { %v4096_v15 = vadd.f32 %v4080_v9, %v3979_v46  ;;  %vm12907_vm11 = vmmov %vm12883_vm2 }
 0xb53   : > { %v4144_v51 = vadd.f32 %v4123_v20, %v4096_v15 }
 0xb55   : > { %v10840_v16 = vmax.f32 %v4144_v51, 0.0 }
 0xb57   : > { %7582 = vmatmul.msk.f32.gmra.mxu3 %vm12901_vm4, %v10840_v16  ;;  %7591 = vmatmul.msk.f32.gmra.mxu0 %vm12902_vm10, %v10840_v16  ;;  %vm12908_vm4 = vmmov %vm12883_vm2 }
 0xb58   : > { %7600 = vmatmul.msk.f32.gmra.mxu1 %vm12903_vm8, %v10840_v16  ;;  %v4083_v17 = vpop.f32.mrf.mxu2  ;;  %vm12909_vm10 = vmmov %vm12883_vm2 }
 0xb59   : > { %v4097_v33 = vadd.f32 %v4083_v17, %v3980_v60  ;;  %vm12910_vm8 = vmmov %vm12883_vm2 }
 0xb5b   : > { %v4145_v1 = vadd.f32 %v4128_v45, %v4097_v33 }
 0xb5d   : > { %v10854_v0 = vmax.f32 %v4145_v1, 0.0 }
 0xb5f   : > { %7583 = vmatmul.msk.f32.gmra.mxu3 %vm12904_vm15, %v10854_v0  ;;  %7592 = vmatmul.msk.f32.gmra.mxu0 %vm12883_vm2, %v10854_v0  ;;  %vm12911_vm15 = vmmov %vm12883_vm2 }
 0xb60   : > { %7601 = vmatmul.msk.f32.gmra.mxu1 %vm12905_vm14, %v10854_v0  ;;  %v4086_v13 = vpop.f32.mrf.mxu2  ;;  %vm12912_vm14 = vmmov %vm12883_vm2 }
 0xb61   : > { %v4098_v22 = vadd.f32 %v4086_v13, %v3981_v19 }
 0xb63   : > { %v4146_v61 = vadd.f32 %v4133_v53, %v4098_v22  ;;  %v4330_v22 = vld [vmem:[%s12136_s10 + $0x18] sm:$0xff]  ;;  %v4328_v53 = vld [vmem:[%s12136_s10 + $0x8] sm:$0xff] }
 0xb65   : > { %v4154_v31 = vmax.f32 %v4146_v61, 0.0  ;;  %v5184_v61 = vld [vmem:[%s12138_s12] sm:$0xff] }
 0xb67   : > { %7584 = vmatmul.msk.f32.gmra.mxu3 %vm12906_vm12, %v4154_v31  ;;  %7593 = vmatmul.msk.f32.gmra.mxu0 %vm12907_vm11, %v4154_v31  ;;  %vm12913_vm12 = vmmov %vm12883_vm2 }
 0xb68   : > { %7602 = vmatmul.msk.f32.gmra.mxu1 %vm12908_vm4, %v4154_v31  ;;  %v4089_v37 = vpop.f32.mrf.mxu2  ;;  %vm12914_vm11 = vmmov %vm12883_vm2 }
 0xb69   : > { %v4099_v26 = vadd.f32 %v4089_v37, %v3982_v63  ;;  %vm12915_vm4 = vmmov %vm12883_vm2 }
 0xb6b   : > { %v4147_v59 = vadd.f32 %v4138_v62, %v4099_v26 }
 0xb6d   : > { %v4155_v30 = vmax.f32 %v4147_v59, 0.0 }
 0xb6f   : > { %7585 = vmatmul.msk.f32.gmra.mxu3 %vm12909_vm10, %v4155_v30  ;;  %7594 = vmatmul.msk.f32.gmra.mxu0 %vm12910_vm8, %v4155_v30  ;;  %vm12916_vm10 = vmmov %vm12883_vm2 }
 0xb70   : > { %7603 = vmatmul.msk.f32.gmra.mxu1 %vm12911_vm15, %v4155_v30  ;;  %vm12917_vm8 = vmmov %vm12883_vm2 }
 0xb71   : > { %vm12918_vm15 = vmmov %vm12883_vm2 }
 0xbb4   : > { %v4246_v12 = vpop.f32.mrf.mxu0 }
 0xbb5   : > { %v4295_v40 = vpop.f32.mrf.mxu1 }
 0xbba   : > { %v4197_v11 = vpop.f32.mrf.mxu3 }
 0xbbb   : > { %v4221_v48 = vmax.f32 %v10786_v57, %v4197_v11 }
 0xbbc   : > { %v4249_v8 = vpop.f32.mrf.mxu0 }
 0xbbd   : > { %v4270_v5 = vmax.f32 %v4221_v48, %v4246_v12  ;;  %v4298_v18 = vpop.f32.mrf.mxu1 }
 0xbbf   : > { %v4319_v3 = vmax.f32 %v4270_v5, %v4295_v40 }
 0xbc1   : > { %4333 = vperm.xlu0 %8017, %v4319_v3  }
 0xbc2   : > { %v4200_v36 = vpop.f32.mrf.mxu3 }
 0xbc3   : > { %v4222_v41 = vmax.f32 %v10799_v32, %v4200_v36 }
 0xbc4   : > { %v4252_v7 = vpop.f32.mrf.mxu0 }
 0xbc5   : > { %v4271_v52 = vmax.f32 %v4222_v41, %v4249_v8  ;;  %v4301_v58 = vpop.f32.mrf.mxu1 }
 0xbc7   : > { %v4320_v21 = vmax.f32 %v4271_v52, %v4298_v18 }
 0xbc9   : > { %4338 = vperm.xlu1 %8018, %v4320_v21  }
 0xbca   : > { %v4203_v29 = vpop.f32.mrf.mxu3 }
 0xbcb   : > { %v4223_v46 = vmax.f32 %v10812_v42, %v4203_v29 }
 0xbcc   : > { %v4255_v25 = vpop.f32.mrf.mxu0 }
 0xbcd   : > { %v4272_v9 = vmax.f32 %v4223_v46, %v4252_v7  ;;  %v4304_v44 = vpop.f32.mrf.mxu1 }
 0xbcf   : > { %v4321_v57 = vmax.f32 %v4272_v9, %v4301_v58  ;;  %v7622_v9 = vld [vmem:[%s12135_s9 + $0x20] sm:$0xff] }
 0xbd1   : > { %4343 = vperm.xlu2 %8019, %v4321_v57   ;;  %v7623_v57 = vld [vmem:[%s12135_s9 + $0x28] sm:$0xff] }
 0xbd2   : > { %v4206_v15 = vpop.f32.mrf.mxu3 }
 0xbd3   : > { %v4224_v20 = vmax.f32 %v10826_v35, %v4206_v15  ;;  %v4429_v15 = vld [vmem:[%s12135_s9 + $0x8] sm:$0xff] }
 0xbd4   : > { %v4258_v38 = vpop.f32.mrf.mxu0 }
 0xbd5   : > { %v4273_v39 = vmax.f32 %v4224_v20, %v4255_v25  ;;  %v4307_v32 = vpop.f32.mrf.mxu1  ;;  %v7624_v20 = vld [vmem:[%s12135_s9 + $0x30] sm:$0xff] }
 0xbd7   : > { %v4322_v51 = vmax.f32 %v4273_v39, %v4304_v44  ;;  %v4428_v44 = vld [vmem:[%s12135_s9] sm:$0xff]  ;;  %v4431_v39 = vld [vmem:[%s12135_s9 + $0x18] sm:$0xff] }
 0xbd9   : > { %4348 = vperm.xlu0 %8017, %v4322_v51  }
 0xbda   : > { %v4209_v28 = vpop.f32.mrf.mxu3 }
 0xbdb   : > { %v4225_v49 = vmax.f32 %v10840_v16, %v4209_v28  ;;  %v4327_v16 = vld [vmem:[%s12136_s10] sm:$0xff] }
 0xbdc   : > { %v4261_v10 = vpop.f32.mrf.mxu0 }
 0xbdd   : > { %v4274_v14 = vmax.f32 %v4225_v49, %v4258_v38  ;;  %v4310_v42 = vpop.f32.mrf.mxu1 }
 0xbdf   : > { %v4323_v60 = vmax.f32 %v4274_v14, %v4307_v32 }
 0xbe1   : > { %4353 = vperm.xlu1 %8018, %v4323_v60  }
 0xbe2   : > { %v4212_v17 = vpop.f32.mrf.mxu3 }
 0xbe3   : > { %v4226_v2 = vmax.f32 %v10854_v0, %v4212_v17 }
 0xbe4   : > { %v4264_v35 = vpop.f32.mrf.mxu0 }
 0xbe5   : > { %v4275_v33 = vmax.f32 %v4226_v2, %v4261_v10  ;;  %v4313_v4 = vpop.f32.mrf.mxu1 }
 0xbe7   : > { %v4324_v45 = vmax.f32 %v4275_v33, %v4310_v42 }
 0xbe9   : > { %4358 = vperm.xlu2 %8019, %v4324_v45  }
 0xbea   : > { %v4215_v24 = vpop.f32.mrf.mxu3 }
 0xbeb   : > { %v4227_v6 = vmax.f32 %v4154_v31, %v4215_v24 }
 0xbec   : > { %v4267_v13 = vpop.f32.mrf.mxu0 }
 0xbed   : > { %v4276_v1 = vmax.f32 %v4227_v6, %v4264_v35  ;;  %v4316_v0 = vpop.f32.mrf.mxu1 }
 0xbef   : > { %v4325_v54 = vmax.f32 %v4276_v1, %v4313_v4 }
 0xbf1   : > { %5158 = vperm.xlu2 %8019, %v4327_v16   ;;  %4363 = vperm.xlu0 %8017, %v4325_v54  }
 0xbf2   : > { %v4218_v23 = vpop.f32.mrf.mxu3 }
 0xbf3   : > { %v4228_v19 = vmax.f32 %v4155_v30, %v4218_v23 }
 0xbf5   : > { %v4277_v34 = vmax.f32 %v4228_v19, %v4267_v13 }
 0xbf7   : > { %v4326_v50 = vmax.f32 %v4277_v34, %v4316_v0  ;;  %v7643_v0 = vld [vmem:[%s12135_s9 + $0x40] sm:$0xff] }
 0xbf9   : > { %5173 = vperm.xlu2 %8019, %v4330_v22   ;;  %5163 = vperm.xlu0 %8017, %v4328_v53   ;;  %v7660_v22 = vld [vmem:[%s12135_s9 + $0x60] sm:$0xff]  ;;  %v12952_v53 = vld [vmem:[#allocation108_spill] sm:$0xff] }
 0xbfa   : > { %4368 = vperm.xlu1 %8018, %v4326_v50   ;;  %v12954_v50 = vld [vmem:[#allocation111_spill] sm:$0xff] }
 0xc01   : > { %6256 = vperm.xlu2 %8019, %v5795_v56   ;;  %5783 = vperm.xlu0 %8017, %v5184_v61   ;;  %v7644_v56 = vld [vmem:[%s12135_s9 + $0x48] sm:$0xff] }
 0xc02   : > { %5168 = vperm.xlu1 %8018, %v4329_v55   ;;  %v7661_v61 = vld [vmem:[%s12135_s9 + $0x68] sm:$0xff]  ;;  %v7645_v55 = vld [vmem:[%s12135_s9 + $0x50] sm:$0xff] }
 0xc0a   : > { %5788 = vperm.xlu1 %8018, %v5185_v43   ;;  %v7662_v43 = vld [vmem:[%s12135_s9 + $0x70] sm:$0xff] }
 0xc2b   : > { %v10909_v37 = vpop.permute.xlu2 %4343 }
 0xc33   : > { %v10897_v31 = vpop.permute.xlu0 %4333 }
 0xc34   : > { %7605 = vmatmul.msk.f32.vlgmr.msra.gmra.mxu2 %vm12883_vm2, %v10897_v31  ;;  %7614 = vmatmul.msk.f32.vlgmr.msrb.gmra.mxu3 %vm12912_vm14, %v10897_v31  ;;  %vm12919_vm14 = vmmov %vm12883_vm2 }
 0xc3b   : > { %v10903_v63 = vpop.permute.xlu1 %4338 }
 0xc3c   : > { %7606 = vmatmul.msk.f32.gmra.mxu2 %vm12913_vm12, %v10903_v63  ;;  %7615 = vmatmul.msk.f32.gmra.mxu3 %vm12914_vm11, %v10903_v63  ;;  %vm12920_vm12 = vmmov %vm12883_vm2 }
 0xc3d   : > { %vm12921_vm11 = vmmov %vm12883_vm2 }
 0xc43   : > { %v10927_v59 = vpop.permute.xlu2 %4358 }
 0xc44   : > { %7607 = vmatmul.msk.f32.gmra.mxu2 %vm12915_vm4, %v10909_v37  ;;  %7616 = vmatmul.msk.f32.gmra.mxu3 %vm12916_vm10, %v10909_v37  ;;  %vm12922_vm4 = vmmov %vm12883_vm2 }
 0xc45   : > { %vm12923_vm10 = vmmov %vm12883_vm2 }
 0xc4b   : > { %v10915_v26 = vpop.permute.xlu0 %4348 }
 0xc4c   : > { %7608 = vmatmul.msk.f32.gmra.mxu2 %vm12917_vm8, %v10915_v26  ;;  %7617 = vmatmul.msk.f32.gmra.mxu3 %vm12918_vm15, %v10915_v26  ;;  %vm12924_vm8 = vmmov %vm12883_vm2 }
 0xc4d   : > { %vm12925_vm15 = vmmov %vm12883_vm2 }
 0xc53   : > { %v10921_v62 = vpop.permute.xlu1 %4353 }
 0xc54   : > { %7609 = vmatmul.msk.f32.gmra.mxu2 %vm12883_vm2, %v10921_v62  ;;  %7618 = vmatmul.msk.f32.gmra.mxu3 %vm12919_vm14, %v10921_v62  ;;  %vm12926_vm2 = vcmask 523264  }
 0xc55   : > { %vm12927_vm14 = vmmov %vm12926_vm2 }
 0xc5c   : > { %7610 = vmatmul.msk.f32.gmra.mxu2 %vm12920_vm12, %v10927_v59  ;;  %7619 = vmatmul.msk.f32.gmra.mxu3 %vm12921_vm11, %v10927_v59  ;;  %vm12928_vm12 = vcmask 1043456  }
 0xc5d   : > { %vm12929_vm11 = vmmov %vm12928_vm12 }
 0xc63   : > { %v10933_v30 = vpop.permute.xlu0 %4363 }
 0xc64   : > { %7611 = vmatmul.msk.f32.gmra.mxu2 %vm12922_vm4, %v10933_v30  ;;  %7620 = vmatmul.msk.f32.gmra.mxu3 %vm12923_vm10, %v10933_v30  ;;  %vm12930_vm4 = vmmov %vm12926_vm2 }
 0xc65   : > { %vm12931_vm10 = vmmov %vm12926_vm2 }
 0xc6c   : > { %v10939_v12 = vpop.permute.xlu1 %4368 }
 0xc6d   : > { %7612 = vmatmul.msk.f32.gmra.mxu2 %vm12924_vm8, %v10939_v12  ;;  %7621 = vmatmul.msk.f32.gmra.mxu3 %vm12925_vm15, %v10939_v12  ;;  %vm12932_vm8 = vmmov %vm12926_vm2 }
 0xc6e   : > { %vm12933_vm15 = vmmov %vm12926_vm2 }
 0xcb7   : > { %v4404_v40 = vpop.f32.mrf.mxu2  ;;  %v4449_v11 = vpop.f32.mrf.mxu3 }
 0xcbf   : > { %v4407_v48 = vpop.f32.mrf.mxu2  ;;  %v4452_v8 = vpop.f32.mrf.mxu3 }
 0xcc7   : > { %v4410_v5 = vpop.f32.mrf.mxu2  ;;  %v4455_v18 = vpop.f32.mrf.mxu3 }
 0xccf   : > { %v4413_v3 = vpop.f32.mrf.mxu2  ;;  %v4458_v36 = vpop.f32.mrf.mxu3 }
 0xcd7   : > { %v4416_v41 = vpop.f32.mrf.mxu2  ;;  %v4461_v7 = vpop.f32.mrf.mxu3 }
 0xcdf   : > { %v4419_v52 = vpop.f32.mrf.mxu2  ;;  %v4464_v58 = vpop.f32.mrf.mxu3 }
 0xce7   : > { %v4422_v21 = vpop.f32.mrf.mxu2  ;;  %v4467_v29 = vpop.f32.mrf.mxu3 }
 0xcf0   : > { %v4425_v46 = vpop.f32.mrf.mxu2  ;;  %v4470_v25 = vpop.f32.mrf.mxu3 }
 0xcf1   : > { %4498 = vmatpush.msra.mxu0 %v4470_v25  ;;  %4539 = vmatpush.msrb.mxu1 %v4425_v46 }
 0xcf3   : > { %4499 = vmatpush.msra.mxu0 %v4467_v29  ;;  %4540 = vmatpush.msrb.mxu1 %v4422_v21 }
 0xcf5   : > { %4500 = vmatpush.msra.mxu0 %v4464_v58  ;;  %4541 = vmatpush.msrb.mxu1 %v4419_v52 }
 0xcf7   : > { %4501 = vmatpush.msra.mxu0 %v4461_v7  ;;  %4542 = vmatpush.msrb.mxu1 %v4416_v41 }
 0xcf9   : > { %4502 = vmatpush.msra.mxu0 %v4458_v36  ;;  %4543 = vmatpush.msrb.mxu1 %v4413_v3  ;;  %v7671_v3 = vld [vmem:[%s12135_s9 + $0x98] sm:$0xff] }
 0xcfb   : > { %4503 = vmatpush.msra.mxu0 %v4455_v18  ;;  %4544 = vmatpush.msrb.mxu1 %v4410_v5  ;;  %v7669_v5 = vld [vmem:[%s12135_s9 + $0x88] sm:$0xff]  ;;  %v7670_v18 = vld [vmem:[%s12135_s9 + $0x90] sm:$0xff] }
 0xcfd   : > { %4504 = vmatpush.msra.mxu0 %v4452_v8  ;;  %4545 = vmatpush.msrb.mxu1 %v4407_v48  ;;  %v7663_v48 = vld [vmem:[%s12135_s9 + $0x78] sm:$0xff]  ;;  %v7668_v8 = vld [vmem:[%s12135_s9 + $0x80] sm:$0xff] }
 0xcff   : > { %4505 = vmatpush.msra.mxu0 %v4449_v11  ;;  %4546 = vmatpush.msrb.mxu1 %v4404_v40  ;;  %v12960_v40 = vld [vmem:[#allocation109_spill] sm:$0xff] }
 0xd00   : > { %7626 = vmatmul.msk.f32.vlgmr.msra.gmra.mxu0 %vm12926_vm2, %v7622_v9  ;;  %7630 = vmatmul.msk.f32.vlgmr.msrb.gmra.mxu1 %vm12927_vm14, %v4428_v44  ;;  %vm12934_vm14 = vmmov %vm12926_vm2  ;;  %v7646_v11 = vld [vmem:[%s12135_s9 + $0x58] sm:$0xff] }
 0xd01   : > { %7634 = vmatpush.msk.msrb.mxu0 %vm12928_vm12, %v10264_v47  ;;  %7651 = vmatpush.msk.msra.mxu1 %vm12929_vm11, %v10297_v27  ;;  %v4430_v47 = vld [vmem:[%s12135_s9 + $0x10] sm:$0xff]  ;;  %v7625_v27 = vld [vmem:[%s12135_s9 + $0x38] sm:$0xff]  ;;  %vm12935_vm12 = vcmask 31744  }
 0xd02   : > { %vm12936_vm11 = vmmov %vm12935_vm12 }
 0xd08   : > { %7627 = vmatmul.msk.f32.gmra.mxu0 %vm12930_vm4, %v7623_v57  ;;  %7631 = vmatmul.msk.f32.gmra.mxu1 %vm12931_vm10, %v4429_v15  ;;  %vm12937_vm4 = vmmov %vm12936_vm11 }
 0xd09   : > { %vm12938_vm10 = vmmov %vm12937_vm4 }
 0xd10   : > { %7628 = vmatmul.msk.f32.gmra.mxu0 %vm12932_vm8, %v7624_v20  ;;  %7632 = vmatmul.msk.f32.gmra.mxu1 %vm12933_vm15, %v4430_v47  ;;  %vm12939_vm8 = vmmov %vm12937_vm4 }
 0xd11   : > { %vm12940_vm15 = vmmov %vm12937_vm4 }
 0xd18   : > { %7629 = vmatmul.msk.f32.gmra.mxu0 %vm12926_vm2, %v7625_v27  ;;  %7633 = vmatmul.msk.f32.gmra.mxu1 %vm12934_vm14, %v4431_v39  ;;  %vm12941_vm2 = vmmov %vm12937_vm4 }
 0xd19   : > { %vm12942_vm14 = vmmov %vm12941_vm2 }
 0xd20   : > { %7635 = vmatmul.msk.f32.vlgmr.msrb.gmra.mxu0 %vm12935_vm12, %v10897_v31  ;;  %7652 = vmatmul.msk.f32.vlgmr.msra.gmra.mxu1 %vm12936_vm11, %v10897_v31  ;;  %vm12943_vm12 = vmmov %vm12941_vm2 }
 0xd21   : > { %vm12944_vm11 = vmmov %vm12941_vm2 }
 0xd28   : > { %7636 = vmatmul.msk.f32.gmra.mxu0 %vm12937_vm4, %v10903_v63  ;;  %7653 = vmatmul.msk.f32.gmra.mxu1 %vm12938_vm10, %v10903_v63  ;;  %vm12945_vm4 = vmmov %vm12941_vm2 }
 0xd29   : > { %vm12946_vm10 = vmmov %vm12941_vm2 }
 0xd30   : > { %7637 = vmatmul.msk.f32.gmra.mxu0 %vm12939_vm8, %v10909_v37  ;;  %7654 = vmatmul.msk.f32.gmra.mxu1 %vm12940_vm15, %v10909_v37  ;;  %vm12947_vm8 = vmmov %vm12941_vm2 }
 0xd31   : > { %vm12948_vm15 = vmmov %vm12941_vm2 }
 0xd38   : > { %7638 = vmatmul.msk.f32.gmra.mxu0 %vm12941_vm2, %v10915_v26  ;;  %7655 = vmatmul.msk.f32.gmra.mxu1 %vm12942_vm14, %v10915_v26  ;;  %vm12949_vm14 = vmmov %vm12941_vm2 }
 0xd40   : > { %7639 = vmatmul.msk.f32.gmra.mxu0 %vm12943_vm12, %v10921_v62  ;;  %7656 = vmatmul.msk.f32.gmra.mxu1 %vm12944_vm11, %v10921_v62  ;;  %vm12950_vm12 = vcmask 523264  }
 0xd41   : > { %vm12951_vm11 = vmmov %vm12950_vm12 }
 0xd48   : > { %7640 = vmatmul.msk.f32.gmra.mxu0 %vm12945_vm4, %v10927_v59  ;;  %7657 = vmatmul.msk.f32.gmra.mxu1 %vm12946_vm10, %v10927_v59  ;;  %vm12953_vm4 = vcmask 1043456  }
 0xd49   : > { %vm12955_vm10 = vmmov %vm12953_vm4 }
 0xd50   : > { %7641 = vmatmul.msk.f32.gmra.mxu0 %vm12947_vm8, %v10933_v30  ;;  %7658 = vmatmul.msk.f32.gmra.mxu1 %vm12948_vm15, %v10933_v30  ;;  %vm12956_vm8 = vmmov %vm12951_vm11 }
 0xd51   : > { %vm12957_vm15 = vmmov %vm12956_vm8 }
 0xd58   : > { %7642 = vmatmul.msk.f32.gmra.mxu0 %vm12941_vm2, %v10939_v12  ;;  %7659 = vmatmul.msk.f32.gmra.mxu1 %vm12949_vm14, %v10939_v12  ;;  %vm12958_vm2 = vmmov %vm12956_vm8 }
 0xd59   : > { %vm12959_vm14 = vmmov %vm12958_vm2 }
 0xd7d   : > { %v11013_v38 = vpop.f32.mrf.mxu0  ;;  %v11015_v51 = vpop.f32.mrf.mxu1 }
 0xd85   : > { %v11017_v32 = vpop.f32.mrf.mxu0  ;;  %v11019_v28 = vpop.f32.mrf.mxu1 }
 0xd8d   : > { %v11021_v49 = vpop.f32.mrf.mxu0  ;;  %v11023_v14 = vpop.f32.mrf.mxu1 }
 0xd95   : > { %v11025_v60 = vpop.f32.mrf.mxu0  ;;  %v11027_v10 = vpop.f32.mrf.mxu1 }
 0xd9d   : > { %v4577_v42 = vpop.f32.mrf.mxu0  ;;  %v4668_v17 = vpop.f32.mrf.mxu1 }
 0xda5   : > { %v4580_v2 = vpop.f32.mrf.mxu0  ;;  %v4671_v33 = vpop.f32.mrf.mxu1 }
 0xdad   : > { %v4583_v45 = vpop.f32.mrf.mxu0  ;;  %v4674_v35 = vpop.f32.mrf.mxu1 }
 0xdb5   : > { %v4586_v24 = vpop.f32.mrf.mxu0  ;;  %v4677_v6 = vpop.f32.mrf.mxu1 }
 0xdbd   : > { %v4589_v4 = vpop.f32.mrf.mxu0  ;;  %v4680_v1 = vpop.f32.mrf.mxu1 }
 0xdc5   : > { %v4592_v16 = vpop.f32.mrf.mxu0  ;;  %v4683_v54 = vpop.f32.mrf.mxu1 }
 0xdcd   : > { %v4595_v23 = vpop.f32.mrf.mxu0  ;;  %v4686_v19 = vpop.f32.mrf.mxu1 }
 0xdd5   : > { %v4598_v13 = vpop.f32.mrf.mxu0  ;;  %v4689_v34 = vpop.f32.mrf.mxu1 }
 0xdd6   : > { %4626 = vmatpush.msrb.mxu2 %v4598_v13  ;;  %4717 = vmatpush.msra.mxu3 %v4689_v34  ;;  %v13024_v13 = vld [vmem:[#allocation3_spill] sm:$0xff] }
 0xdd7   : > { %v13025_v34 = vshra.s32 %v13024_v13, 2 }
 0xdd8   : > { %4627 = vmatpush.msrb.mxu2 %v4595_v23  ;;  %4718 = vmatpush.msra.mxu3 %v4686_v19  ;;  %v12990_v23 = vld [vmem:[#allocation110_spill] sm:$0xff]  ;;  %v12992_v19 = vmov 1.0  }
 0xdda   : > { %4628 = vmatpush.msrb.mxu2 %v4592_v16  ;;  %4719 = vmatpush.msra.mxu3 %v4683_v54 }
 0xddc   : > { %4629 = vmatpush.msrb.mxu2 %v4589_v4  ;;  %4720 = vmatpush.msra.mxu3 %v4680_v1  ;;  %v7685_v1 = vld [vmem:[%s12135_s9 + $0xa0] sm:$0xff] }
 0xdde   : > { %4630 = vmatpush.msrb.mxu2 %v4586_v24  ;;  %4721 = vmatpush.msra.mxu3 %v4677_v6 }
 0xde0   : > { %4631 = vmatpush.msrb.mxu2 %v4583_v45  ;;  %4722 = vmatpush.msra.mxu3 %v4674_v35 }
 0xde2   : > { %4632 = vmatpush.msrb.mxu2 %v4580_v2  ;;  %4723 = vmatpush.msra.mxu3 %v4671_v33 }
 0xde4   : > { %4633 = vmatpush.msrb.mxu2 %v4577_v42  ;;  %4724 = vmatpush.msra.mxu3 %v4668_v17 }
 0xde5   : > { %7647 = vmatmul.msk.f32.vlgmr.msrb.gmra.mxu2 %vm12950_vm12, %v7643_v0  ;;  %7664 = vmatmul.msk.f32.vlgmr.msra.gmra.mxu3 %vm12951_vm11, %v7660_v22  ;;  %vm12961_vm12 = vmmov %vm12953_vm4  ;;  %v7686_v0 = vld [vmem:[%s12135_s9 + $0xa8] sm:$0xff] }
 0xde6   : > { %4767 = vmatpush.msra.mxu2 %v10939_v12  ;;  %7676 = vmatpush.msk.msrb.mxu3 %vm12953_vm4, %v12952_v53  ;;  %vm12962_vm11 = vmmov %vm12958_vm2 }
 0xde7   : > { %vm12963_vm4 = vmmov %vm12958_vm2 }
 0xde8   : > { %7727 = vmatpush.msk.msra.mxu3 %vm12955_vm10, %v12954_v50  ;;  %4768 = vmatpush.msra.mxu2 %v10933_v30  ;;  %vm12964_vm10 = vmmov %vm12958_vm2  ;;  %v7687_v50 = vld [vmem:[%s12135_s9 + $0xb0] sm:$0xff] }
 0xdea   : > { %4769 = vmatpush.msra.mxu2 %v10927_v59 }
 0xdec   : > { %4770 = vmatpush.msra.mxu2 %v10921_v62 }
 0xded   : > { %7648 = vmatmul.msk.f32.gmra.mxu2 %vm12956_vm8, %v7644_v56  ;;  %7665 = vmatmul.msk.f32.gmra.mxu3 %vm12957_vm15, %v7661_v61  ;;  %vm12965_vm8 = vcmask 31744   ;;  %vm12966_vm15 = vmmov %vm12958_vm2 }
 0xdee   : > { %4771 = vmatpush.msra.mxu2 %v10915_v26 }
 0xdf0   : > { %4772 = vmatpush.msra.mxu2 %v10909_v37 }
 0xdf2   : > { %4773 = vmatpush.msra.mxu2 %v10903_v63 }
 0xdf4   : > { %4774 = vmatpush.msra.mxu2 %v10897_v31 }
 0xdf5   : > { %7649 = vmatmul.msk.f32.gmra.mxu2 %vm12958_vm2, %v7645_v55  ;;  %7666 = vmatmul.msk.f32.gmra.mxu3 %vm12959_vm14, %v7662_v43  ;;  %vm12967_vm2 = vmmov %vm12965_vm8  ;;  %v7688_v55 = vld [vmem:[%s12135_s9 + $0xb8] sm:$0xff] }
 0xdf6   : > { %7693 = vmatpush.msk.msrb.mxu2 %vm12961_vm12, %v12960_v40  ;;  %vm12968_vm14 = vmmov %vm12963_vm4  ;;  %v7702_v40 = vld [vmem:[%s12135_s9 + $0xc0] sm:$0xff] }
 0xdf7   : > { %vm12969_vm12 = vmmov %vm12967_vm2 }
 0xdfd   : > { %7650 = vmatmul.msk.f32.gmra.mxu2 %vm12962_vm11, %v7646_v11  ;;  %7667 = vmatmul.msk.f32.gmra.mxu3 %vm12963_vm4, %v7663_v48  ;;  %vm12970_vm11 = vmmov %vm12963_vm4 }
 0xdfe   : > { %vm12971_vm4 = vmmov %vm12967_vm2 }
 0xe05   : > { %7672 = vmatmul.msk.f32.vlgmr.msra.gmra.mxu2 %vm12964_vm10, %v7668_v8  ;;  %7677 = vmatmul.msk.f32.vlgmr.msrb.gmra.mxu3 %vm12965_vm8, %v10897_v31  ;;  %vm12972_vm10 = vmmov %vm12967_vm2 }
 0xe06   : > { %vm12973_vm8 = vmmov %vm12967_vm2 }
 0xe0d   : > { %7673 = vmatmul.msk.f32.gmra.mxu2 %vm12966_vm15, %v7669_v5  ;;  %7678 = vmatmul.msk.f32.gmra.mxu3 %vm12967_vm2, %v10903_v63  ;;  %vm12974_vm15 = vmmov %vm12967_vm2  ;;  %v7703_v5 = vld [vmem:[%s12135_s9 + $0xc8] sm:$0xff] }
 0xe15   : > { %7674 = vmatmul.msk.f32.gmra.mxu2 %vm12968_vm14, %v7670_v18  ;;  %7679 = vmatmul.msk.f32.gmra.mxu3 %vm12969_vm12, %v10909_v37  ;;  %vm12975_vm14 = vmmov %vm12967_vm2 }
 0xe16   : > { %vm12976_vm12 = vmmov %vm12967_vm2 }
 0xe1d   : > { %7675 = vmatmul.msk.f32.gmra.mxu2 %vm12970_vm11, %v7671_v3  ;;  %7680 = vmatmul.msk.f32.gmra.mxu3 %vm12971_vm4, %v10915_v26  ;;  %vm12977_vm11 = vmmov %vm12967_vm2 }
 0xe1e   : > { %vm12978_vm4 = vmmov %vm12967_vm2 }
 0xe25   : > { %7681 = vmatmul.msk.f32.gmra.mxu3 %vm12972_vm10, %v10921_v62  ;;  %7694 = vmatmul.msk.f32.vlgmr.msrb.gmra.mxu2 %vm12973_vm8, %v10897_v31  ;;  %vm12979_vm10 = vmmov %vm12967_vm2 }
 0xe26   : > { %vm12980_vm8 = vmmov %vm12967_vm2 }
 0xe2d   : > { %7682 = vmatmul.msk.f32.gmra.mxu3 %vm12974_vm15, %v10927_v59  ;;  %7695 = vmatmul.msk.f32.gmra.mxu2 %vm12967_vm2, %v10903_v63  ;;  %vm12981_vm15 = vmmov %vm12967_vm2 }
 0xe35   : > { %7683 = vmatmul.msk.f32.gmra.mxu3 %vm12975_vm14, %v10933_v30  ;;  %7696 = vmatmul.msk.f32.gmra.mxu2 %vm12976_vm12, %v10909_v37  ;;  %vm12982_vm14 = vmmov %vm12967_vm2 }
 0xe36   : > { %vm12983_vm12 = vmmov %vm12967_vm2 }
 0xe3d   : > { %7684 = vmatmul.msk.f32.gmra.mxu3 %vm12977_vm11, %v10939_v12  ;;  %7697 = vmatmul.msk.f32.gmra.mxu2 %vm12978_vm4, %v10915_v26  ;;  %vm12984_vm11 = vmmov %vm12967_vm2 }
 0xe3e   : > { %vm12985_vm4 = vmmov %vm12967_vm2 }
 0xe45   : > { %7698 = vmatmul.msk.f32.gmra.mxu2 %vm12979_vm10, %v10921_v62  ;;  %7728 = vmatmul.msk.f32.vlgmr.msra.gmra.mxu3 %vm12980_vm8, %v10897_v31  ;;  %vm12986_vm10 = vmmov %vm12967_vm2 }
 0xe46   : > { %vm12987_vm8 = vmmov %vm12967_vm2 }
 0xe4d   : > { %7699 = vmatmul.msk.f32.gmra.mxu2 %vm12981_vm15, %v10927_v59  ;;  %7729 = vmatmul.msk.f32.gmra.mxu3 %vm12967_vm2, %v10903_v63  ;;  %vm12988_vm15 = vmmov %vm12967_vm2 }
 0xe55   : > { %7700 = vmatmul.msk.f32.gmra.mxu2 %vm12982_vm14, %v10933_v30  ;;  %7730 = vmatmul.msk.f32.gmra.mxu3 %vm12983_vm12, %v10909_v37  ;;  %vm12989_vm14 = vcmask 523264   ;;  %vm12991_vm12 = vcmask 1043456  }
 0xe5d   : > { %7701 = vmatmul.msk.f32.gmra.mxu2 %vm12984_vm11, %v10939_v12  ;;  %7731 = vmatmul.msk.f32.gmra.mxu3 %vm12985_vm4, %v10915_v26  ;;  %vm12995_vm11 = vmmov %vm12989_vm14 }
 0xe5e   : > { %vm12996_vm4 = vmmov %vm12995_vm11 }
 0xe65   : > { %7732 = vmatmul.msk.f32.gmra.mxu3 %vm12986_vm10, %v10921_v62  ;;  %vm12999_vm10 = vmmov %vm12967_vm2 }
 0xe68   : > { %v11133_v36 = vpop.f32.mrf.mxu2  ;;  %v11135_v41 = vpop.f32.mrf.mxu3 }
 0xe6d   : > { %7733 = vmatmul.msk.f32.gmra.mxu3 %vm12987_vm8, %v10927_v59 }
 0xe70   : > { %v11139_v7 = vpop.f32.mrf.mxu2  ;;  %v11141_v52 = vpop.f32.mrf.mxu3 }
 0xe75   : > { %7734 = vmatmul.msk.f32.gmra.mxu3 %vm12988_vm15, %v10933_v30  ;;  %vm13003_vm15 = vmmov %vm12967_vm2 }
 0xe78   : > { %v11145_v58 = vpop.f32.mrf.mxu2  ;;  %v11147_v21 = vpop.f32.mrf.mxu3 }
 0xe7d   : > { %7735 = vmatmul.msk.f32.gmra.mxu3 %vm12967_vm2, %v10939_v12 }
 0xe80   : > { %v11151_v29 = vpop.f32.mrf.mxu2  ;;  %v11153_v46 = vpop.f32.mrf.mxu3 }
 0xe88   : > { %v11155_v25 = vpop.f32.mrf.mxu2  ;;  %v4809_v9 = vpop.f32.mrf.mxu3 }
 0xe90   : > { %v11157_v44 = vpop.f32.mrf.mxu2  ;;  %v4812_v57 = vpop.f32.mrf.mxu3 }
 0xe98   : > { %v11159_v15 = vpop.f32.mrf.mxu2  ;;  %v4815_v20 = vpop.f32.mrf.mxu3 }
 0xea0   : > { %v11161_v47 = vpop.f32.mrf.mxu2  ;;  %v4818_v27 = vpop.f32.mrf.mxu3 }
 0xea8   : > { %v4821_v39 = vpop.f32.mrf.mxu3  ;;  %v4900_v42 = vpop.f32.mrf.mxu2 }
 0xeb0   : > { %v4824_v17 = vpop.f32.mrf.mxu3  ;;  %v4903_v2 = vpop.f32.mrf.mxu2 }
 0xeb8   : > { %v4827_v33 = vpop.f32.mrf.mxu3  ;;  %v4906_v45 = vpop.f32.mrf.mxu2 }
 0xec0   : > { %v4830_v35 = vpop.f32.mrf.mxu3  ;;  %v4909_v24 = vpop.f32.mrf.mxu2 }
 0xec1   : > { %4858 = vmatpush.msra.mxu0 %v4830_v35  ;;  %v7738_v35 = vld [vmem:[%s12135_s9 + $0x110] sm:$0xff] }
 0xec3   : > { %4859 = vmatpush.msra.mxu0 %v4827_v33 }
 0xec5   : > { %4860 = vmatpush.msra.mxu0 %v4824_v17 }
 0xec7   : > { %4861 = vmatpush.msra.mxu0 %v4821_v39 }
 0xec8   : > { %v4912_v6 = vpop.f32.mrf.mxu2  ;;  %v5082_v4 = vpop.f32.mrf.mxu3 }
 0xec9   : > { %4862 = vmatpush.msra.mxu0 %v4818_v27 }
 0xecb   : > { %4863 = vmatpush.msra.mxu0 %v4815_v20 }
 0xecd   : > { %4864 = vmatpush.msra.mxu0 %v4812_v57  ;;  %v13012_v57 = vld [vmem:[#allocation29_spill] sm:$0xff] }
 0xecf   : > { %4865 = vmatpush.msra.mxu0 %v4809_v9  ;;  %v7705_v9 = vld [vmem:[%s12135_s9 + $0xd8] sm:$0xff] }
 0xed0   : > { %7689 = vmatmul.msk.f32.vlgmr.msra.gmra.mxu0 %vm12989_vm14, %v7685_v1  ;;  %v4915_v16 = vpop.f32.mrf.mxu2  ;;  %v5085_v54 = vpop.f32.mrf.mxu3  ;;  %v7720_v1 = vld [vmem:[%s12135_s9 + $0xe8] sm:$0xff] }
 0xed1   : > { %7710 = vmatpush.msk.msrb.mxu0 %vm12991_vm12, %v12990_v23 }
 0xed3   : > { %7749 = vmatpush.msk.msra.mxu0 %vm9826_vm0, %v12992_v19  ;;  %vm12997_vm0 = vmmov %vm12996_vm4 }
 0xed4   : > { %vm13002_vm8 = vmmov %vm12997_vm0 }
 0xed5   : > { %7750 = vmatpush.msk.msra.mxu0 %vm9841_vm7, %v12992_v19  ;;  %vm12998_vm7 = vmmov %vm12997_vm0 }
 0xed6   : > { %vm13004_vm2 = vmmov %vm12997_vm0 }
 0xed8   : > { %7690 = vmatmul.msk.f32.gmra.mxu0 %vm12995_vm11, %v7686_v0  ;;  %v4918_v22 = vpop.f32.mrf.mxu2  ;;  %v5088_v53 = vpop.f32.mrf.mxu3  ;;  %v5186_v0 = vshra.s32 %v13025_v34, 1 }
 0xee0   : > { %7691 = vmatmul.msk.f32.gmra.mxu0 %vm12996_vm4, %v7687_v50  ;;  %v4921_v56 = vpop.f32.mrf.mxu2  ;;  %v5091_v61 = vpop.f32.mrf.mxu3 }
 0xee1   : > { %4949 = vmatpush.msrb.mxu1 %v4921_v56 }
 0xee3   : > { %4950 = vmatpush.msrb.mxu1 %v4918_v22  ;;  %v5187_v22 = vmul.u32 2, %v5186_v0 }
 0xee5   : > { %4951 = vmatpush.msrb.mxu1 %v4915_v16  ;;  %v7721_v16 = vld [vmem:[%s12135_s9 + $0xf0] sm:$0xff] }
 0xee7   : > { %4952 = vmatpush.msrb.mxu1 %v4912_v6  ;;  %v7739_v6 = vld [vmem:[%s12135_s9 + $0x118] sm:$0xff] }
 0xee8   : > { %7692 = vmatmul.msk.f32.gmra.mxu0 %vm12997_vm0, %v7688_v55  ;;  %v5094_v43 = vpop.f32.mrf.mxu3  ;;  %v13027_v55 = vmov 0.0  }
 0xee9   : > { %4953 = vmatpush.msrb.mxu1 %v4909_v24 }
 0xeeb   : > { %4954 = vmatpush.msrb.mxu1 %v4906_v45 }
 0xeed   : > { %4955 = vmatpush.msrb.mxu1 %v4903_v2 }
 0xeef   : > { %4956 = vmatpush.msrb.mxu1 %v4900_v42 }
 0xef0   : > { %7706 = vmatmul.msk.f32.vlgmr.msrb.gmra.mxu1 %vm12998_vm7, %v7702_v40  ;;  %7711 = vmatmul.msk.f32.vlgmr.msrb.gmra.mxu0 %vm12999_vm10, %v10897_v31  ;;  %v5097_v11 = vpop.f32.mrf.mxu3  ;;  %v7704_v31 = vld [vmem:[%s12135_s9 + $0xd0] sm:$0xff] }
 0xef1   : > { %7767 = vmatpush.msk.msrb.mxu0 %vm9867_vm1, %v12992_v19  ;;  %vm13005_vm1 = vmmov %vm12999_vm10 }
 0xef2   : > { %vm13007_vm14 = vmmov %vm13005_vm1 }
 0xef3   : > { %7768 = vmatpush.msk.msrb.mxu0 %vm9879_vm6, %v12992_v19  ;;  %vm13006_vm6 = vmmov %vm12997_vm0 }
 0xef4   : > { %vm13008_vm12 = vmmov %vm13005_vm1 }
 0xef5   : > { %vm13014_vm0 = vmmov %vm13005_vm1 }
 0xef6   : > { %vm13015_vm7 = vmmov %vm13014_vm0 }
 0xef7   : > { %vm13016_vm10 = vmmov %vm13014_vm0 }
 0xef8   : > { %7707 = vmatmul.msk.f32.gmra.mxu1 %vm13002_vm8, %v7703_v5  ;;  %7712 = vmatmul.msk.f32.gmra.mxu0 %vm13003_vm15, %v10903_v63  ;;  %v5100_v18 = vpop.f32.mrf.mxu3  ;;  %v13009_v63 = vld [vmem:[#allocation37_spill] sm:$0xff]  ;;  %vm13017_vm8 = vmmov %vm13004_vm2 }
 0xef9   : > { %vm13018_vm15 = vmmov %vm13004_vm2 }
 0xf00   : > { %7708 = vmatmul.msk.f32.gmra.mxu1 %vm13004_vm2, %v7704_v31  ;;  %7713 = vmatmul.msk.f32.gmra.mxu0 %vm13005_vm1, %v10909_v37  ;;  %v5103_v3 = vpop.f32.mrf.mxu3  ;;  %v13010_v37 = vld [vmem:[#allocation94_spill] sm:$0xff]  ;;  %vm13019_vm1 = vmmov %vm13004_vm2  ;;  %v4552_v31 = vadd.f32 %v11019_v28, %v11017_v32 }
 0xf01   : > { %5131 = vmatpush.msra.mxu2 %v5103_v3  ;;  %vm13011_vm11 = vcmp.eq.s32.totalorder %v13009_v63, %v13010_v37  ;;  %vm13013_vm4 = vcmp.eq.s32.totalorder %v13012_v57, %v13010_v37 }
 0xf03   : > { %5132 = vmatpush.msra.mxu2 %v5100_v18 }
 0xf05   : > { %5133 = vmatpush.msra.mxu2 %v5097_v11  ;;  %v4549_v11 = vadd.f32 %v11015_v51, %v11013_v38  ;;  %v4555_v38 = vadd.f32 %v11023_v14, %v11021_v49  ;;  %v4558_v49 = vadd.f32 %v11027_v10, %v11025_v60 }
 0xf07   : > { %5134 = vmatpush.msra.mxu2 %v5094_v43  ;;  %v4647_v48 = vadd.f32 %v11133_v36, %v4549_v11  ;;  %v4649_v32 = vadd.f32 %v11145_v58, %v4555_v38  ;;  %v4650_v58 = vadd.f32 %v11151_v29, %v4558_v49  ;;  %v7762_v38 = vld [vmem:[%s12137_s11 + $0x18] sm:$0xff] }
 0xf08   : > { %7709 = vmatmul.msk.f32.gmra.mxu1 %vm13006_vm6, %v7705_v9  ;;  %7714 = vmatmul.msk.f32.gmra.mxu0 %vm13007_vm14, %v10915_v26  ;;  %vm13020_vm6 = vmmov %vm13019_vm1  ;;  %v4648_v9 = vadd.f32 %v11139_v7, %v4552_v31  ;;  %v5277_v31 = vld [vmem:[%s12137_s11] sm:$0xff] }
 0xf09   : > { %5135 = vmatpush.msra.mxu2 %v5091_v61  ;;  %vm13021_vm14 = vmmov %vm13019_vm1  ;;  %v4738_v5 = vadd.f32 %v11135_v41, %v4647_v48  ;;  %v5159_v41 = vpop.permute.xlu2 %5158 }
 0xf0b   : > { %5136 = vmatpush.msra.mxu2 %v5088_v53  ;;  %v13026_v53 = vld [vmem:[#allocation93_spill] sm:$0xff]  ;;  %v4788_v3 = vadd.f32 %v11155_v25, %v4738_v5 }
 0xf0c   : > { %v5188_v50 = vshra.s32 %v13026_v53, 1 }
 0xf0d   : > { %5137 = vmatpush.msra.mxu2 %v5085_v54  ;;  %v7722_v54 = vld [vmem:[%s12135_s9 + $0xf8] sm:$0xff] }
 0xf0e   : > { %v5189_v61 = vadd.s32 %v5188_v50, %v5187_v22 }
 0xf0f   : > { %5138 = vmatpush.msra.mxu2 %v5082_v4  ;;  %v7719_v4 = vld [vmem:[%s12135_s9 + $0xe0] sm:$0xff] }
 0xf10   : > { %7715 = vmatmul.msk.f32.gmra.mxu0 %vm13008_vm12, %v10921_v62  ;;  %vm13022_vm12 = vmmov %vm13019_vm1 }
 0xf11   : > { %7755 = vmatpush.msk.msrb.mxu2 %vm13011_vm11, %v12992_v19  ;;  %vm13023_vm11 = vmmov %vm13019_vm1  ;;  %v5174_v53 = vpop.permute.xlu2 %5173 }
 0xf13   : > { %7756 = vmatpush.msk.msrb.mxu2 %vm13013_vm4, %v12992_v19  ;;  %vm5190_vm4 = vcmp.eq.s32.totalorder %v13012_v57, %v5189_v61 }
 0xf14   : > { %v5191_v43 = vsel %vm5190_vm4, 1.0, %v13027_v55 }
 0xf18   : > { %7716 = vmatmul.msk.f32.gmra.mxu0 %vm13014_vm0, %v10927_v59  ;;  %v7736_v59 = vld [vmem:[%s12135_s9 + $0x100] sm:$0xff]  ;;  %vm13028_vm0 = vcmask 1043456  }
 0xf19   : > { %7740 = vmatmul.msk.f32.vlgmr.msra.gmra.mxu2 %vm13017_vm8, %v7736_v59  ;;  %vm13030_vm8 = vmmov %vm13015_vm7 }
 0xf20   : > { %7717 = vmatmul.msk.f32.gmra.mxu0 %vm13015_vm7, %v10933_v30 }
 0xf28   : > { %7718 = vmatmul.msk.f32.gmra.mxu0 %vm13016_vm10, %v10939_v12  ;;  %v7737_v12 = vld [vmem:[%s12135_s9 + $0x108] sm:$0xff]  ;;  %vm13029_vm10 = vmmov %vm13015_vm7 }
 0xf29   : > { %7741 = vmatmul.msk.f32.gmra.mxu2 %vm13018_vm15, %v7737_v12  ;;  %v5164_v12 = vpop.permute.xlu0 %5163  ;;  %vm13031_vm15 = vmmov %vm13015_vm7 }
 0xf31   : > { %7742 = vmatmul.msk.f32.gmra.mxu2 %vm13004_vm2, %v7738_v35  ;;  %vm13032_vm2 = vcmask 130048  }
 0xf39   : > { %7743 = vmatmul.msk.f32.gmra.mxu2 %vm13019_vm1, %v7739_v6  ;;  %vm13033_vm1 = vmmov %vm13032_vm2 }
 0xf3a   : > { %vm13038_vm4 = vmmov %vm13033_vm1 }
 0xf4d   : > { %v4867_v26 = vpop.f32.mrf.mxu0 }
 0xf4e   : > { %v4879_v37 = vadd.f32 %v4867_v26, %v4788_v3 }
 0xf55   : > { %v11233_v62 = vpop.f32.mrf.mxu0 }
 0xf5d   : > { %v11235_v20 = vpop.f32.mrf.mxu0 }
 0xf65   : > { %v11237_v27 = vpop.f32.mrf.mxu0 }
 0xf6d   : > { %v4991_v39 = vpop.f32.mrf.mxu0  ;;  %v4958_v23 = vpop.f32.mrf.mxu1 }
 0xf75   : > { %v4994_v42 = vpop.f32.mrf.mxu0  ;;  %v4961_v56 = vpop.f32.mrf.mxu1 }
 0xf7d   : > { %v4997_v17 = vpop.f32.mrf.mxu0  ;;  %v4964_v40 = vpop.f32.mrf.mxu1 }
 0xf85   : > { %v5000_v2 = vpop.f32.mrf.mxu0  ;;  %v4967_v8 = vpop.f32.mrf.mxu1 }
 0xf8d   : > { %v5003_v33 = vpop.f32.mrf.mxu0 }
 0xf95   : > { %v5006_v30 = vpop.f32.mrf.mxu0 }
 0xf9c   : > { %v5140_v18 = vpop.f32.mrf.mxu2 }
 0xf9d   : > { %v5009_v45 = vpop.f32.mrf.mxu0 }
 0xfa5   : > { %v5012_v24 = vpop.f32.mrf.mxu0 }
 0xfa6   : > { %5040 = vmatpush.msra.mxu1 %v5012_v24 }
 0xfa8   : > { %5041 = vmatpush.msra.mxu1 %v5009_v45 }
 0xfaa   : > { %5042 = vmatpush.msra.mxu1 %v5006_v30  ;;  %v4740_v30 = vadd.f32 %v11147_v21, %v4649_v32  ;;  %v4741_v21 = vadd.f32 %v11153_v46, %v4650_v58  ;;  %v13094_v32 = vld [vmem:[#allocation55_spill] sm:$0xff] }
 0xfac   : > { %5043 = vmatpush.msra.mxu1 %v5003_v33  ;;  %v5143_v33 = vpop.f32.mrf.mxu2  ;;  %v4790_v14 = vadd.f32 %v11159_v15, %v4740_v30  ;;  %v4791_v60 = vadd.f32 %v11161_v47, %v4741_v21  ;;  %v5169_v15 = vpop.permute.xlu1 %5168  ;;  %v7783_v21 = vld [vmem:[%s12137_s11 + $0x30] sm:$0xff] }
 0xfae   : > { %5044 = vmatpush.msra.mxu1 %v5000_v2 }
 0xfb0   : > { %5045 = vmatpush.msra.mxu1 %v4997_v17  ;;  %v4739_v17 = vadd.f32 %v11141_v52, %v4648_v9 }
 0xfb2   : > { %5046 = vmatpush.msra.mxu1 %v4994_v42  ;;  %v4789_v51 = vadd.f32 %v11157_v44, %v4739_v17  ;;  %v5278_v17 = vld [vmem:[%s12137_s11 + $0x8] sm:$0xff] }
 0xfb4   : > { %5047 = vmatpush.msra.mxu1 %v4991_v39  ;;  %v4970_v39 = vadd.f32 %v4958_v23, %v4879_v37  ;;  %v4880_v28 = vadd.f32 %v11233_v62, %v4789_v51  ;;  %v4881_v62 = vadd.f32 %v11235_v20, %v4790_v14  ;;  %v5146_v35 = vpop.f32.mrf.mxu2  ;;  %v13077_v37 = vld [vmem:[#allocation46_spill] sm:$0xff] }
 0xfb5   : > { %7723 = vmatmul.msk.f32.vlgmr.msra.gmra.mxu1 %vm13020_vm6, %v7719_v4  ;;  %vm13034_vm6 = vmmov %vm13033_vm1 }
 0xfb6   : > { %7744 = vmatpush.msk.msrb.mxu1 %vm13028_vm0, %v5191_v43  ;;  %v4971_v7 = vadd.f32 %v4961_v56, %v4880_v28  ;;  %v4972_v24 = vadd.f32 %v4964_v40, %v4881_v62  ;;  %vm13039_vm0 = vmmov %vm13033_vm1  ;;  %v13051_v28 = vld [vmem:[#allocation104_spill] sm:$0xff] }
 0xfbc   : > { %v5149_v34 = vpop.f32.mrf.mxu2 }
 0xfbd   : > { %7724 = vmatmul.msk.f32.gmra.mxu1 %vm13021_vm14, %v7720_v1  ;;  %vm13035_vm14 = vmmov %vm13033_vm1 }
 0xfc5   : > { %7725 = vmatmul.msk.f32.gmra.mxu1 %vm13022_vm12, %v7721_v16  ;;  %v4882_v16 = vadd.f32 %v11237_v27, %v4791_v60  ;;  %vm13036_vm12 = vmmov %vm13033_vm1 }
 0xfc7   : > { %v4973_v29 = vadd.f32 %v4967_v8, %v4882_v16  ;;  %v7784_v16 = vld [vmem:[%s12137_s11 + $0x38] sm:$0xff] }
 0xfcd   : > { %7726 = vmatmul.msk.f32.gmra.mxu1 %vm13023_vm11, %v7722_v54  ;;  %vm13037_vm11 = vmmov %vm13033_vm1 }
0x1032   : > { %v5049_v42 = vpop.f32.mrf.mxu1 }
0x1033   : > { %v5061_v2 = vadd.f32 %v5049_v42, %v4970_v39  ;;  %v7761_v42 = vld [vmem:[%s12137_s11 + $0x10] sm:$0xff] }
0x1035   : > { %v5152_v36 = vadd.f32 %v5140_v18, %v5061_v2 }
0x1037   : > { %v5176_v25 = vadd.f32 %v5159_v41, %v5152_v36  ;;  %v7773_v41 = vld [vmem:[%s12137_s11 + $0x20] sm:$0xff] }
0x1039   : > { %v5180_v26 = vmax.f32 %v5176_v25, 0.0  ;;  %v7787_v25 = vld [vmem:[%s12137_s11 + $0x40] sm:$0xff] }
0x103a   : > { %v5052_v59 = vpop.f32.mrf.mxu1 }
0x103b   : > { %v5062_v52 = vadd.f32 %v5052_v59, %v4971_v7  ;;  %7745 = vmatmul.msk.f32.vlgmr.msrb.gmra.mxu1 %vm13015_vm7, %v5180_v26  ;;  %vm13040_vm7 = vmmov %vm13039_vm0  ;;  %v7788_v7 = vld [vmem:[%s12137_s11 + $0x48] sm:$0xff] }
0x103d   : > { %v5153_v44 = vadd.f32 %v5143_v33, %v5062_v52  ;;  %v7774_v33 = vld [vmem:[%s12137_s11 + $0x28] sm:$0xff] }
0x103f   : > { %v5177_v45 = vadd.f32 %v5164_v12, %v5153_v44 }
0x1041   : > { %v5181_v6 = vmax.f32 %v5177_v45, 0.0 }
0x1042   : > { %v5055_v4 = vpop.f32.mrf.mxu1 }
0x1043   : > { %v5063_v1 = vadd.f32 %v5055_v4, %v4972_v24  ;;  %7746 = vmatmul.msk.f32.gmra.mxu1 %vm13029_vm10, %v5181_v6  ;;  %vm13041_vm10 = vmmov %vm13039_vm0 }
0x1045   : > { %v5154_v10 = vadd.f32 %v5146_v35, %v5063_v1  ;;  %v13057_v1 = vld [vmem:[#allocation101_spill] sm:$0xff] }
0x1047   : > { %v5178_v54 = vadd.f32 %v5169_v15, %v5154_v10  ;;  %v13059_v10 = vld [vmem:[#allocation102_spill] sm:$0xff] }
0x1048   : > { %v13061_v15 = vld [vmem:[#allocation106_spill] sm:$0xff] }
0x1049   : > { %v5182_v23 = vmax.f32 %v5178_v54, 0.0  ;;  %v13063_v54 = vld [vmem:[#allocation107_spill] sm:$0xff] }
0x104a   : > { %v5058_v20 = vpop.f32.mrf.mxu1 }
0x104b   : > { %v5064_v0 = vadd.f32 %v5058_v20, %v4973_v29  ;;  %7747 = vmatmul.msk.f32.gmra.mxu1 %vm13030_vm8, %v5182_v23  ;;  %vm13042_vm8 = vmmov %vm13039_vm0 }
0x104d   : > { %v5155_v22 = vadd.f32 %v5149_v34, %v5064_v0 }
0x104f   : > { %v5179_v46 = vadd.f32 %v5174_v53, %v5155_v22 }
0x1051   : > { %v5183_v50 = vmax.f32 %v5179_v46, 0.0 }
0x1053   : > { %7748 = vmatmul.msk.f32.gmra.mxu1 %vm13031_vm15, %v5183_v50  ;;  %vm13043_vm15 = vmmov %vm13039_vm0  ;;  %v7807_v50 = vld [vmem:[%s12137_s11 + $0x60] sm:$0xff] }
0x10b8   : > { %v11304_v56 = vpop.f32.mrf.mxu1 }
0x10b9   : > { %7751 = vmatmul.msk.f32.vlgmr.msra.gmra.mxu0 %vm13032_vm2, %v11304_v56  ;;  %7757 = vmatmul.msk.f32.vlgmr.msrb.gmra.mxu2 %vm13033_vm1, %v11304_v56  ;;  %vm13048_vm2 = vmmov %vm13039_vm0 }
0x10ba   : > { %vm13049_vm1 = vmmov %vm13039_vm0 }
0x10c0   : > { %v11310_v47 = vpop.f32.mrf.mxu1 }
0x10c1   : > { %7752 = vmatmul.msk.f32.gmra.mxu0 %vm13034_vm6, %v11310_v47  ;;  %7758 = vmatmul.msk.f32.gmra.mxu2 %vm13035_vm14, %v11310_v47  ;;  %vm13052_vm6 = vnez %v13051_v28  ;;  %vm13053_vm14 = vmmov %vm13039_vm0  ;;  %v13096_v28 = vld [vmem:[#allocation57_spill] sm:$0xff] }
0x10c8   : > { %v11316_v27 = vpop.f32.mrf.mxu1 }
0x10c9   : > { %7753 = vmatmul.msk.f32.gmra.mxu0 %vm13036_vm12, %v11316_v27  ;;  %7759 = vmatmul.msk.f32.gmra.mxu2 %vm13037_vm11, %v11316_v27  ;;  %vm13055_vm12 = vmmov %vm13039_vm0 }
0x10ca   : > { %vm13056_vm11 = vmmov %vm13039_vm0 }
0x10d0   : > { %v11322_v61 = vpop.f32.mrf.mxu1 }
0x10d1   : > { %7754 = vmatmul.msk.f32.gmra.mxu0 %vm13038_vm4, %v11322_v61  ;;  %7760 = vmatmul.msk.f32.gmra.mxu2 %vm13039_vm0, %v11322_v61  ;;  %vm13058_vm4 = vnez %v13057_v1  ;;  %v7827_v1 = vld [vmem:[%s12137_s11 + $0x80] sm:$0xff] }
0x10d9   : > { %7769 = vmatmul.msk.f32.vlgmr.msrb.gmra.mxu0 %vm13040_vm7, %v11304_v56  ;;  %vm13062_vm7 = vnez %v13061_v15  ;;  %v13129_v15 = vld [vmem:[#allocation58_spill] sm:$0xff] }
0x10e1   : > { %7770 = vmatmul.msk.f32.gmra.mxu0 %vm13041_vm10, %v11310_v47  ;;  %vm13064_vm10 = vnez %v13063_v54  ;;  %v13131_v54 = vld [vmem:[#allocation60_spill] sm:$0xff] }
0x10e9   : > { %7771 = vmatmul.msk.f32.gmra.mxu0 %vm13042_vm8, %v11316_v27  ;;  %vm13065_vm8 = vmmov %vm13049_vm1 }
0x10f1   : > { %7772 = vmatmul.msk.f32.gmra.mxu0 %vm13043_vm15, %v11322_v61  ;;  %vm13066_vm15 = vmmov %vm13049_vm1 }
0x1136   : > { %v5265_v43 = vpop.f32.mrf.mxu0 }
0x113c   : > { %v5296_v40 = vpop.f32.mrf.mxu2 }
0x113e   : > { %v5268_v11 = vpop.f32.mrf.mxu0 }
0x1144   : > { %v5299_v48 = vpop.f32.mrf.mxu2 }
0x1146   : > { %v5271_v8 = vpop.f32.mrf.mxu0 }
0x114c   : > { %v5302_v5 = vpop.f32.mrf.mxu2 }
0x114e   : > { %v5274_v18 = vpop.f32.mrf.mxu0 }
0x114f   : > { %5358 = vmatpush.msrb.mxu3 %v5274_v18 }
0x1151   : > { %5359 = vmatpush.msrb.mxu3 %v5271_v8 }
0x1153   : > { %5360 = vmatpush.msrb.mxu3 %v5268_v11 }
0x1154   : > { %v5305_v3 = vpop.f32.mrf.mxu2 }
0x1155   : > { %5329 = vmatpush.msra.mxu1 %v5305_v3  ;;  %5361 = vmatpush.msrb.mxu3 %v5265_v43  ;;  %v13075_v3 = vld [vmem:[#allocation45_spill] sm:$0xff] }
0x1156   : > { %7765 = vmatmul.msk.f32.vlgmr.msrb.gmra.mxu3 %vm3180_vm3, %v5277_v31  ;;  %v5386_v9 = vpop.f32.mrf.mxu0  ;;  %v13072_v31 = vld [vmem:[#allocation105_spill] sm:$0xff] }
0x1157   : > { %5330 = vmatpush.msra.mxu1 %v5302_v5  ;;  %7777 = vmatpush.msk.msra.mxu3 %vm9890_vm9, %v12992_v19  ;;  %vm13046_vm9 = vmmov %vm13039_vm0  ;;  %v7797_v5 = vld [vmem:[%s12137_s11 + $0x50] sm:$0xff] }
0x1159   : > { %5331 = vmatpush.msra.mxu1 %v5299_v48  ;;  %7778 = vmatpush.msk.msra.mxu3 %vm9904_vm5, %v12992_v19  ;;  %vm13047_vm5 = vmmov %vm13039_vm0 }
0x115b   : > { %5332 = vmatpush.msra.mxu1 %v5296_v40  ;;  %v7808_v40 = vld [vmem:[%s12137_s11 + $0x68] sm:$0xff] }
0x115c   : > { %7763 = vmatmul.msk.f32.vlgmr.msra.gmra.mxu1 %vm3180_vm3, %v7761_v42  ;;  %v13079_v42 = vld [vmem:[#allocation47_spill] sm:$0xff] }
0x115e   : > { %7766 = vmatmul.msk.f32.gmra.mxu3 %vm3180_vm3, %v5278_v17  ;;  %v5389_v2 = vpop.f32.mrf.mxu0  ;;  %v13081_v17 = vld [vmem:[#allocation48_spill] sm:$0xff] }
0x1164   : > { %7764 = vmatmul.msk.f32.gmra.mxu1 %vm3180_vm3, %v7762_v38  ;;  %v13085_v38 = vld [vmem:[#allocation50_spill] sm:$0xff] }
0x1166   : > { %v5392_v51 = vpop.f32.mrf.mxu0  ;;  %7779 = vmatmul.msk.f32.vlgmr.msra.gmra.mxu3 %vm13046_vm9, %v11304_v56  ;;  %vm13067_vm9 = vmmov %vm13049_vm1 }
0x116e   : > { %v5395_v36 = vpop.f32.mrf.mxu0  ;;  %7780 = vmatmul.msk.f32.gmra.mxu3 %vm13047_vm5, %v11310_v47  ;;  %vm13068_vm5 = vmmov %vm13049_vm1 }
0x116f   : > { %5419 = vmatpush.msrb.mxu1 %v5395_v36  ;;  %v13088_v36 = vld [vmem:[#allocation51_spill] sm:$0xff] }
0x1171   : > { %5420 = vmatpush.msrb.mxu1 %v5392_v51 }
0x1173   : > { %5421 = vmatpush.msrb.mxu1 %v5389_v2  ;;  %v13083_v2 = vld [vmem:[#allocation49_spill] sm:$0xff] }
0x1175   : > { %5422 = vmatpush.msrb.mxu1 %v5386_v9  ;;  %v7798_v9 = vld [vmem:[%s12137_s11 + $0x58] sm:$0xff] }
0x1176   : > { %7775 = vmatmul.msk.f32.vlgmr.msrb.gmra.mxu1 %vm3180_vm3, %v7773_v41  ;;  %7781 = vmatmul.msk.f32.gmra.mxu3 %vm13048_vm2, %v11316_v27  ;;  %vm13069_vm2 = vmmov %vm13049_vm1  ;;  %v13090_v41 = vld [vmem:[#allocation52_spill] sm:$0xff] }
0x1177   : > { %5516 = vmatpush.msra.mxu1 %v11322_v61 }
0x1179   : > { %5517 = vmatpush.msra.mxu1 %v11316_v27 }
0x117b   : > { %5518 = vmatpush.msra.mxu1 %v11310_v47 }
0x117d   : > { %5519 = vmatpush.msra.mxu1 %v11304_v56 }
0x117e   : > { %7776 = vmatmul.msk.f32.gmra.mxu1 %vm3180_vm3, %v7774_v33  ;;  %7782 = vmatmul.msk.f32.gmra.mxu3 %vm13049_vm1, %v11322_v61  ;;  %v13092_v33 = vld [vmem:[#allocation53_spill] sm:$0xff] }
0x117f   : > { %7801 = vmatpush.msk.msrb.mxu1 %vm9956_vm13, %v12992_v19  ;;  %vm13054_vm13 = vmmov %vm13039_vm0  ;;  %vm13060_vm0 = vnez %v13059_v10  ;;  %v13125_v10 = vld [vmem:[#allocation54_spill] sm:$0xff] }
0x1181   : > { %7802 = vmatpush.msk.msrb.mxu1 %vm13052_vm6, %v12992_v19  ;;  %vm13070_vm6 = vmmov %vm13049_vm1 }
0x1186   : > { %7789 = vmatmul.msk.f32.vlgmr.msra.gmra.mxu1 %vm3180_vm3, %v7787_v25  ;;  %v13098_v25 = vld [vmem:[#allocation59_spill] sm:$0xff] }
0x118e   : > { %7790 = vmatmul.msk.f32.gmra.mxu1 %vm3180_vm3, %v7788_v7  ;;  %v13100_v7 = vld [vmem:[#allocation61_spill] sm:$0xff] }
0x1196   : > { %7803 = vmatmul.msk.f32.vlgmr.msrb.gmra.mxu1 %vm13053_vm14, %v11304_v56  ;;  %vm13071_vm14 = vmmov %vm13049_vm1 }
0x119e   : > { %7804 = vmatmul.msk.f32.gmra.mxu1 %vm13054_vm13, %v11310_v47  ;;  %vm13073_vm13 = vcmp.eq.s32.totalorder %v13009_v63, %v13072_v31 }
0x11a6   : > { %7805 = vmatmul.msk.f32.gmra.mxu1 %vm13055_vm12, %v11316_v27  ;;  %vm13074_vm12 = vcmp.eq.s32.totalorder %v13012_v57, %v13072_v31 }
0x11ae   : > { %7806 = vmatmul.msk.f32.gmra.mxu1 %vm13056_vm11, %v11322_v61  ;;  %vm13076_vm11 = vnez %v13075_v3 }
0x11d9   : > { %v5363_v26 = vpop.f32.mrf.mxu3  ;;  %v5334_v59 = vpop.f32.mrf.mxu1 }
0x11da   : > { %v5364_v30 = vadd.f32 %v5363_v26, %v5334_v59  ;;  %v13102_v26 = vld [vmem:[#allocation63_spill] sm:$0xff]  ;;  %v13106_v59 = vld [vmem:[#allocation44_spill] sm:$0xff] }
0x11e1   : > { %v5366_v52 = vpop.f32.mrf.mxu3  ;;  %v5337_v49 = vpop.f32.mrf.mxu1 }
0x11e2   : > { %v5367_v14 = vadd.f32 %v5366_v52, %v5337_v49  ;;  %v13110_v52 = vld [vmem:[#allocation32_spill] sm:$0xff]  ;;  %v13112_v49 = vld [vmem:[#allocation67_spill] sm:$0xff] }
0x11e9   : > { %v5449_v44 = vpop.f32.mrf.mxu3 }
0x11f1   : > { %v5452_v12 = vpop.f32.mrf.mxu3 }
0x11f3   : > { %v5424_v58 = vpop.f32.mrf.mxu1 }
0x11f4   : > { %v5430_v62 = vadd.f32 %v5424_v58, %v5364_v30  ;;  %v13108_v30 = vld [vmem:[#allocation65_spill] sm:$0xff] }
0x11f9   : > { %v5455_v45 = vpop.f32.mrf.mxu3 }
0x11fb   : > { %v5427_v35 = vpop.f32.mrf.mxu1 }
0x11fc   : > { %v5431_v24 = vadd.f32 %v5427_v35, %v5367_v14  ;;  %v13116_v14 = vld [vmem:[#allocation34_spill] sm:$0xff] }
0x1201   : > { %v5458_v6 = vpop.f32.mrf.mxu3 }
0x1202   : > { %5482 = vmatpush.msra.mxu2 %v5458_v6 }
0x1203   : > { %v11400_v4 = vpop.f32.mrf.mxu1 }
0x1204   : > { %5483 = vmatpush.msra.mxu2 %v5455_v45 }
0x1206   : > { %5484 = vmatpush.msra.mxu2 %v5452_v12  ;;  %v13121_v12 = vld [vmem:[#allocation36_spill] sm:$0xff] }
0x1208   : > { %5485 = vmatpush.msra.mxu2 %v5449_v44  ;;  %v13119_v44 = vld [vmem:[#allocation35_spill] sm:$0xff] }
0x1209   : > { %7785 = vmatmul.msk.f32.vlgmr.msra.gmra.mxu2 %vm3180_vm3, %v7783_v21 }
0x120a   : > { %7791 = vmatpush.msk.msrb.mxu2 %vm13058_vm4, %v12992_v19  ;;  %vm13078_vm4 = vnez %v13077_v37 }
0x120b   : > { %v11409_v60 = vpop.f32.mrf.mxu1 }
0x120c   : > { %7792 = vmatpush.msk.msrb.mxu2 %vm13060_vm0, %v12992_v19  ;;  %vm13080_vm0 = vnez %v13079_v42 }
0x120e   : > { %7821 = vmatpush.msk.msra.mxu2 %vm13062_vm7, %v12992_v19  ;;  %vm13082_vm7 = vnez %v13081_v17 }
0x1210   : > { %7822 = vmatpush.msk.msra.mxu2 %vm13064_vm10, %v12992_v19  ;;  %vm13084_vm10 = vnez %v13083_v2 }
0x1211   : > { %7786 = vmatmul.msk.f32.gmra.mxu2 %vm3180_vm3, %v7784_v16 }
0x1213   : > { %v5609_v29 = vpop.f32.mrf.mxu1 }
0x1219   : > { %7793 = vmatmul.msk.f32.vlgmr.msrb.gmra.mxu2 %vm13065_vm8, %v11304_v56  ;;  %vm13086_vm8 = vnez %v13085_v38 }
0x121b   : > { %v5612_v23 = vpop.f32.mrf.mxu1 }
0x1221   : > { %7794 = vmatmul.msk.f32.gmra.mxu2 %vm13066_vm15, %v11310_v47  ;;  %vm13087_vm15 = vmmov %vm13049_vm1 }
0x1223   : > { %v5615_v20 = vpop.f32.mrf.mxu1 }
0x1229   : > { %7795 = vmatmul.msk.f32.gmra.mxu2 %vm13067_vm9, %v11316_v27  ;;  %vm13089_vm9 = vnez %v13088_v36 }
0x122b   : > { %v5618_v34 = vpop.f32.mrf.mxu1 }
0x122c   : > { %5642 = vmatpush.msrb.mxu3 %v5618_v34 }
0x122e   : > { %5643 = vmatpush.msrb.mxu3 %v5615_v20  ;;  %v13137_v20 = vld [vmem:[#allocation66_spill] sm:$0xff] }
0x1230   : > { %5644 = vmatpush.msrb.mxu3 %v5612_v23  ;;  %v13135_v23 = vld [vmem:[#allocation64_spill] sm:$0xff] }
0x1231   : > { %7796 = vmatmul.msk.f32.gmra.mxu2 %vm13068_vm5, %v11322_v61  ;;  %vm13091_vm5 = vnez %v13090_v41 }
0x1232   : > { %5645 = vmatpush.msrb.mxu3 %v5609_v29  ;;  %v13133_v29 = vld [vmem:[#allocation62_spill] sm:$0xff] }
0x1233   : > { %7809 = vmatmul.msk.f32.vlgmr.msrb.gmra.mxu3 %vm3180_vm3, %v7807_v50 }
0x1239   : > { %7823 = vmatmul.msk.f32.vlgmr.msra.gmra.mxu2 %vm13069_vm2, %v11304_v56  ;;  %vm13093_vm2 = vnez %v13092_v33  ;;  %v5789_v33 = vpop.permute.xlu1 %5788 }
0x123b   : > { %7810 = vmatmul.msk.f32.gmra.mxu3 %vm3180_vm3, %v7808_v40  ;;  %v13142_v40 = vld [vmem:[#allocation30_spill] sm:$0xff] }
0x1241   : > { %7824 = vmatmul.msk.f32.gmra.mxu2 %vm13049_vm1, %v11310_v47  ;;  %vm13095_vm1 = vnez %v13094_v32 }
0x1249   : > { %7825 = vmatmul.msk.f32.gmra.mxu2 %vm13070_vm6, %v11316_v27 }
0x1251   : > { %7826 = vmatmul.msk.f32.gmra.mxu2 %vm13071_vm14, %v11322_v61  ;;  %vm13097_vm14 = vnez %v13096_v28 }
0x128c   : > { %v5487_v0 = vpop.f32.mrf.mxu2 }
0x128d   : > { %v5493_v22 = vadd.f32 %v5487_v0, %v5430_v62  ;;  %v13139_v0 = vld [vmem:[#allocation69_spill] sm:$0xff] }
0x1294   : > { %v5490_v53 = vpop.f32.mrf.mxu2 }
0x1295   : > { %v5494_v46 = vadd.f32 %v5490_v53, %v5431_v24  ;;  %v7818_v53 = vld [vmem:[%s12137_s11 + $0x78] sm:$0xff] }
0x1297   : > { %v5528_v45 = vadd.f32 %v11409_v60, %v5494_v46  ;;  %v7828_v60 = vld [vmem:[%s12137_s11 + $0x88] sm:$0xff]  ;;  %v13141_v46 = vshra.s32 %v13024_v13, 3 }
0x1299   : > { %v5796_v50 = vshra.s32 %v13141_v46, 1  ;;  %v7855_v46 = vld [vmem:[%s12139_s13 + $0x4] sm:$0xf] }
0x129c   : > { %v5546_v43 = vpop.f32.mrf.mxu2 }
0x12a4   : > { %v5549_v11 = vpop.f32.mrf.mxu2 }
0x12ac   : > { %v5552_v48 = vpop.f32.mrf.mxu2 }
0x12b4   : > { %v5555_v8 = vpop.f32.mrf.mxu2 }
0x12b5   : > { %5579 = vmatpush.msra.mxu0 %v5555_v8 }
0x12b6   : > { %v5647_v8 = vpop.f32.mrf.mxu3 }
0x12b7   : > { %5580 = vmatpush.msra.mxu0 %v5552_v48 }
0x12b9   : > { %5581 = vmatpush.msra.mxu0 %v5549_v11  ;;  %v5798_v11 = vshra.s32 %v13142_v40, 1 }
0x12bb   : > { %5582 = vmatpush.msra.mxu0 %v5546_v43  ;;  %v5797_v43 = vmul.u32 4, %v5796_v50  ;;  %v5862_v50 = vld [vmem:[%s12139_s13] sm:$0xf] }
0x12bc   : > { %7799 = vmatmul.msk.f32.vlgmr.msra.gmra.mxu0 %vm3180_vm3, %v7797_v5  ;;  %v5735_v18 = vpop.f32.mrf.mxu2 }
0x12bd   : > { %7811 = vmatpush.msk.msrb.mxu0 %vm13073_vm13, %v12992_v19  ;;  %vm13099_vm13 = vnez %v13098_v25  ;;  %v5799_v48 = vadd.s32 %v5798_v11, %v5797_v43  ;;  %v13147_v25 = vld [vmem:[#allocation71_spill] sm:$0xff] }
0x12be   : > { %v5650_v5 = vpop.f32.mrf.mxu3 }
0x12bf   : > { %7812 = vmatpush.msk.msrb.mxu0 %vm13074_vm12, %v12992_v19  ;;  %vm13101_vm12 = vnez %v13100_v7  ;;  %v13149_v7 = vld [vmem:[#allocation70_spill] sm:$0xff] }
0x12c1   : > { %7835 = vmatpush.msk.msra.mxu0 %vm13076_vm11, %v12992_v19  ;;  %vm13103_vm11 = vnez %v13102_v26  ;;  %v13151_v26 = vld [vmem:[#allocation73_spill] sm:$0xff] }
0x12c3   : > { %7836 = vmatpush.msk.msra.mxu0 %vm13078_vm4, %v12992_v19  ;;  %vm13104_vm4 = vmmov %vm13070_vm6 }
0x12c4   : > { %7800 = vmatmul.msk.f32.gmra.mxu0 %vm3180_vm3, %v7798_v9  ;;  %v5738_v39 = vpop.f32.mrf.mxu2 }
0x12c5   : > { %7837 = vmatpush.msk.msra.mxu0 %vm13080_vm0, %v12992_v19 }
0x12c7   : > { %7838 = vmatpush.msk.msra.mxu0 %vm13082_vm7, %v12992_v19  ;;  %vm13109_vm7 = vnez %v13108_v30  ;;  %v13155_v30 = vld [vmem:[#allocation75_spill] sm:$0xff] }
0x12c9   : > { %7839 = vmatpush.msk.msra.mxu0 %vm13084_vm10, %v12992_v19  ;;  %vm13111_vm10 = vcmp.eq.s32.totalorder %v13110_v52, %v13106_v59 }
0x12cb   : > { %7840 = vmatpush.msk.msra.mxu0 %vm13086_vm8, %v12992_v19  ;;  %vm13113_vm8 = vnez %v13112_v49  ;;  %v13157_v49 = vld [vmem:[#allocation74_spill] sm:$0xff] }
0x12cc   : > { %7813 = vmatmul.msk.f32.vlgmr.msrb.gmra.mxu0 %vm13087_vm15, %v11304_v56  ;;  %v5741_v51 = vpop.f32.mrf.mxu2 }
0x12cd   : > { %7841 = vmatpush.msk.msra.mxu0 %vm13089_vm9, %v12992_v19  ;;  %vm13117_vm9 = vcmp.eq.s32.totalorder %v13116_v14, %v13106_v59 }
0x12cf   : > { %7842 = vmatpush.msk.msra.mxu0 %vm13091_vm5, %v12992_v19  ;;  %vm13118_vm5 = vmmov %vm13104_vm4 }
0x12d1   : > { %7858 = vmatpush.msk.msrb.mxu0 %vm13093_vm2, %v12992_v19  ;;  %vm13120_vm2 = vcmp.eq.s32.totalorder %v13119_v44, %v13106_v59 }
0x12d3   : > { %7859 = vmatpush.msk.msrb.mxu0 %vm13095_vm1, %v12992_v19  ;;  %vm13122_vm1 = vcmp.eq.s32.totalorder %v13121_v12, %v13106_v59 }
0x12d4   : > { %7814 = vmatmul.msk.f32.gmra.mxu0 %vm13070_vm6, %v11310_v47  ;;  %v5744_v56 = vpop.f32.mrf.mxu2  ;;  %v13105_v47 = vld [vmem:[#allocation31_spill] sm:$0xff]  ;;  %vm13123_vm6 = vcmp.eq.s32.totalorder %v13009_v63, %v13106_v59 }
0x12d5   : > { %5768 = vmatpush.msra.mxu1 %v5744_v56  ;;  %7860 = vmatpush.msk.msrb.mxu0 %vm13097_vm14, %v12992_v19  ;;  %vm13107_vm0 = vcmp.eq.s32.totalorder %v13105_v47, %v13106_v59  ;;  %vm13124_vm14 = vcmp.eq.s32.totalorder %v13012_v57, %v13106_v59 }
0x12d7   : > { %5769 = vmatpush.msra.mxu1 %v5741_v51  ;;  %7861 = vmatpush.msk.msrb.mxu0 %vm13099_vm13, %v12992_v19  ;;  %vm13126_vm13 = vnez %v13125_v10  ;;  %v13177_v10 = vld [vmem:[#allocation85_spill] sm:$0xff] }
0x12d9   : > { %5770 = vmatpush.msra.mxu1 %v5738_v39  ;;  %7862 = vmatpush.msk.msrb.mxu0 %vm13101_vm12, %v12992_v19  ;;  %v5784_v39 = vpop.permute.xlu0 %5783 }
0x12db   : > { %5771 = vmatpush.msra.mxu1 %v5735_v18  ;;  %7863 = vmatpush.msk.msrb.mxu0 %vm13103_vm11, %v12992_v19  ;;  %vm13130_vm11 = vnez %v13129_v15  ;;  %v13185_v15 = vld [vmem:[#allocation87_spill] sm:$0xff] }
0x12dc   : > { %7815 = vmatmul.msk.f32.gmra.mxu0 %vm13104_vm4, %v11316_v27  ;;  %v13114_v27 = vld [vmem:[#allocation33_spill] sm:$0xff]  ;;  %7829 = vmatmul.msk.f32.vlgmr.msra.gmra.mxu1 %vm3180_vm3, %v7827_v1  ;;  %vm13132_vm4 = vnez %v13131_v54  ;;  %v13175_v1 = vld [vmem:[#allocation82_spill] sm:$0xff] }
0x12dd   : > { %7845 = vmatpush.msk.msrb.mxu1 %vm13107_vm0, %v12992_v19  ;;  %7864 = vmatpush.msk.msrb.mxu0 %vm13109_vm7, %v12992_v19  ;;  %vm13115_vm15 = vcmp.eq.s32.totalorder %v13114_v27, %v13106_v59  ;;  %vm13134_vm0 = vnez %v13133_v29  ;;  %vm13136_vm7 = vnez %v13135_v23  ;;  %v13153_v59 = vld [vmem:[#allocation72_spill] sm:$0xff]  ;;  %v13189_v54 = vld [vmem:[#allocation89_spill] sm:$0xff]  ;;  %v13192_v29 = vld [vmem:[#allocation90_spill] sm:$0xff] }
0x12de   : > { %v13194_v23 = vld [vmem:[#allocation91_spill] sm:$0xff] }
0x12df   : > { %7846 = vmatpush.msk.msrb.mxu1 %vm13111_vm10, %v12992_v19  ;;  %7865 = vmatpush.msk.msrb.mxu0 %vm13113_vm8, %v12992_v19  ;;  %vm13138_vm10 = vnez %v13137_v20  ;;  %vm13140_vm8 = vnez %v13139_v0  ;;  %v13196_v20 = vld [vmem:[#allocation92_spill] sm:$0xff] }
0x12e1   : > { %7847 = vmatpush.msk.msrb.mxu1 %vm13115_vm15, %v12992_v19  ;;  %vm5801_vm15 = vcmp.eq.s32.totalorder %v13009_v63, %v5799_v48 }
0x12e3   : > { %7848 = vmatpush.msk.msrb.mxu1 %vm13117_vm9, %v12992_v19  ;;  %vm5800_vm9 = vcmp.eq.s32.totalorder %v13012_v57, %v5799_v48 }
0x12e4   : > { %7816 = vmatmul.msk.f32.gmra.mxu0 %vm13118_vm5, %v11322_v61  ;;  %v5527_v61 = vadd.f32 %v11400_v4, %v5493_v22  ;;  %v13127_v4 = vld [vmem:[#allocation56_spill] sm:$0xff]  ;;  %7830 = vmatmul.msk.f32.gmra.mxu1 %vm3180_vm3, %v7828_v60  ;;  %v13183_v60 = vld [vmem:[#allocation86_spill] sm:$0xff] }
0x12e5   : > { %7849 = vmatpush.msk.msrb.mxu1 %vm13120_vm2, %v12992_v19  ;;  %vm13128_vm12 = vnez %v13127_v4  ;;  %v7817_v22 = vld [vmem:[%s12137_s11 + $0x70] sm:$0xff]  ;;  %vm13145_vm2 = vcmask 523264  }
0x12e6   : > { %v13179_v4 = vld [vmem:[#allocation84_spill] sm:$0xff] }
0x12e7   : > { %7850 = vmatpush.msk.msrb.mxu1 %vm13122_vm1, %v12992_v19  ;;  %vm13146_vm1 = vmmov %vm13145_vm2 }
0x12e9   : > { %7851 = vmatpush.msk.msrb.mxu1 %vm13123_vm6, %v12992_v19  ;;  %vm13148_vm6 = vnez %v13147_v25 }
0x12eb   : > { %7852 = vmatpush.msk.msrb.mxu1 %vm13124_vm14, %v12992_v19  ;;  %vm13150_vm14 = vnez %v13149_v7 }
0x12ed   : > { %7870 = vmatpush.msk.msra.mxu1 %vm13126_vm13, %v12992_v19  ;;  %vm13152_vm13 = vnez %v13151_v26 }
0x12ef   : > { %7871 = vmatpush.msk.msra.mxu1 %vm13128_vm12, %v12992_v19  ;;  %vm13154_vm12 = vnez %v13153_v59 }
0x12f1   : > { %7872 = vmatpush.msk.msra.mxu1 %vm13130_vm11, %v12992_v19  ;;  %vm13156_vm11 = vnez %v13155_v30 }
0x12f3   : > { %7873 = vmatpush.msk.msra.mxu1 %vm13132_vm4, %v12992_v19  ;;  %vm13158_vm4 = vnez %v13157_v49 }
0x12f5   : > { %7874 = vmatpush.msk.msra.mxu1 %vm13134_vm0, %v12992_v19 }
0x12f7   : > { %7875 = vmatpush.msk.msra.mxu1 %vm13136_vm7, %v12992_v19 }
0x12f9   : > { %7876 = vmatpush.msk.msra.mxu1 %vm13138_vm10, %v12992_v19  ;;  %vm13163_vm10 = vmmov %vm13146_vm1 }
0x12fb   : > { %7877 = vmatpush.msk.msra.mxu1 %vm13140_vm8, %v12992_v19  ;;  %vm13164_vm8 = vmmov %vm13146_vm1 }
0x1339   : > { %v5584_v58 = vpop.f32.mrf.mxu0 }
0x133a   : > { %v5590_v62 = vadd.f32 %v5584_v58, %v5527_v61  ;;  %v13159_v58 = vld [vmem:[#allocation77_spill] sm:$0xff] }
0x133b   : > { %vm13160_vm0 = vnez %v13159_v58  ;;  %v6262_v58 = vshra.s32 %v13024_v13, 4 }
0x133c   : > { %v5653_v31 = vadd.f32 %v5647_v8, %v5590_v62  ;;  %v13161_v62 = vld [vmem:[#allocation76_spill] sm:$0xff] }
0x133d   : > { %vm13162_vm7 = vnez %v13161_v62  ;;  %v7880_v8 = vld [vmem:[%s12139_s13 + $0xc] sm:$0xf] }
0x133e   : > { %v13222_v62 = vld [vmem:[#allocation4_spill] sm:$0xff] }
0x1341   : > { %v5587_v35 = vpop.f32.mrf.mxu0 }
0x1342   : > { %v5591_v24 = vadd.f32 %v5587_v35, %v5528_v45  ;;  %v13165_v45 = vld [vmem:[#allocation79_spill] sm:$0xff]  ;;  %v13167_v35 = vld [vmem:[#allocation78_spill] sm:$0xff] }
0x1344   : > { %v5654_v17 = vadd.f32 %v5650_v5, %v5591_v24  ;;  %v13169_v24 = vld [vmem:[#allocation81_spill] sm:$0xff]  ;;  %v7868_v5 = vld [vmem:[%s12139_s13 + $0x8] sm:$0xf] }
0x1349   : > { %v5672_v6 = vpop.f32.mrf.mxu0 }
0x1351   : > { %v5675_v21 = vpop.f32.mrf.mxu0 }
0x1359   : > { %v5678_v16 = vpop.f32.mrf.mxu0  ;;  %v5773_v18 = vpop.f32.mrf.mxu1 }
0x1361   : > { %v5681_v34 = vpop.f32.mrf.mxu0  ;;  %v5776_v51 = vpop.f32.mrf.mxu1 }
0x1362   : > { %5705 = vmatpush.msra.mxu3 %v5681_v34 }
0x1364   : > { %5706 = vmatpush.msra.mxu3 %v5678_v16  ;;  %v13187_v16 = vld [vmem:[#allocation88_spill] sm:$0xff] }
0x1366   : > { %5707 = vmatpush.msra.mxu3 %v5675_v21  ;;  %v13173_v21 = vld [vmem:[#allocation83_spill] sm:$0xff] }
0x1368   : > { %5708 = vmatpush.msra.mxu3 %v5672_v6  ;;  %v13171_v6 = vld [vmem:[#allocation80_spill] sm:$0xff] }
0x1369   : > { %7819 = vmatmul.msk.f32.vlgmr.msra.gmra.mxu3 %vm3180_vm3, %v7817_v22 }
0x136a   : > { %7831 = vmatpush.msk.msrb.mxu3 %vm5801_vm15, %v12992_v19  ;;  %vm13166_vm15 = vnez %v13165_v45  ;;  %v6263_v45 = vshra.s32 %v13222_v62, 4  ;;  %v13256_v62 = vld [vmem:[#allocation24_spill] sm:$0xff] }
0x136c   : > { %7832 = vmatpush.msk.msrb.mxu3 %vm5800_vm9, %v12992_v19  ;;  %vm13168_vm9 = vnez %v13167_v35  ;;  %v6264_v35 = vshra.s32 %v6262_v58, 1 }
0x1371   : > { %7820 = vmatmul.msk.f32.gmra.mxu3 %vm3180_vm3, %v7818_v53  ;;  %vm13143_vm3 = vmmov %vm13118_vm5 }
0x1372   : > { %vm13144_vm5 = vmmov %vm13143_vm3 }
0x13ec   : > { %v5710_v3 = vpop.f32.mrf.mxu3 }
0x13ed   : > { %v5716_v9 = vadd.f32 %v5710_v3, %v5653_v31  ;;  %v7882_v3 = vld [vmem:[%s12139_s13 + $0x10] sm:$0xf] }
0x13ef   : > { %v5779_v37 = vadd.f32 %v5773_v18, %v5716_v9 }
0x13f1   : > { %v5791_v42 = vadd.f32 %v5784_v39, %v5779_v37  ;;  %v7894_v39 = vld [vmem:[%s12139_s13 + $0x14] sm:$0xf] }
0x13f3   : > { %v5793_v2 = vmax.f32 %v5791_v42, 0.0  ;;  %v7906_v42 = vld [vmem:[%s12139_s13 + $0x18] sm:$0xf] }
0x13f4   : > { %v5713_v38 = vpop.f32.mrf.mxu3 }
0x13f5   : > { %v5717_v36 = vadd.f32 %v5713_v38, %v5654_v17  ;;  %7833 = vmatmul.msk.f32.vlgmr.msrb.gmra.mxu3 %vm13143_vm3, %v5793_v2  ;;  %vm13170_vm3 = vnez %v13169_v24  ;;  %v13209_v17 = vld [vmem:[#allocation68_spill] sm:$0xff]  ;;  %v6265_v24 = vshra.s32 %v6263_v45, 1 }
0x13f7   : > { %v5780_v41 = vadd.f32 %v5776_v51, %v5717_v36 }
0x13f9   : > { %v5792_v32 = vadd.f32 %v5789_v33, %v5780_v41 }
0x13fb   : > { %v5794_v56 = vmax.f32 %v5792_v32, 0.0 }
0x13fd   : > { %7834 = vmatmul.msk.f32.gmra.mxu3 %vm13144_vm5, %v5794_v56  ;;  %vm13172_vm5 = vnez %v13171_v6  ;;  %v6266_v6 = vmul.u32 8, %v6264_v35 }
0x1478   : > { %v11603_v28 = vpop.f32.mrf.mxu3 }
0x1479   : > { %7843 = vmatmul.msk.f32.vlgmr.msra.gmra.mxu0 %vm13145_vm2, %v11603_v28  ;;  %7853 = vmatmul.msk.f32.vlgmr.msrb.gmra.mxu1 %vm13146_vm1, %v11603_v28  ;;  %vm13174_vm2 = vnez %v13173_v21  ;;  %vm13176_vm1 = vnez %v13175_v1  ;;  %v6267_v21 = vmul.u32 8, %v6265_v24  ;;  %v13223_v1 = vld [vmem:[#allocation10_spill] sm:$0xff]  ;;  %v13258_v24 = vld [vmem:[#allocation13_spill] sm:$0xff] }
0x147a   : > { %7884 = vmatpush.msk.msra.mxu0 %vm13148_vm6, %v12992_v19  ;;  %7896 = vmatpush.msk.msrb.mxu1 %vm13150_vm14, %v12992_v19  ;;  %vm13178_vm6 = vnez %v13177_v10  ;;  %vm13180_vm14 = vnez %v13179_v4  ;;  %v6268_v10 = vshra.s32 %v13223_v1, 1  ;;  %v13224_v4 = vld [vmem:[#allocation11_spill] sm:$0xff] }
0x147c   : > { %7885 = vmatpush.msk.msra.mxu0 %vm13152_vm13, %v12992_v19  ;;  %7897 = vmatpush.msk.msrb.mxu1 %vm13154_vm12, %v12992_v19  ;;  %vm13181_vm13 = vmmov %vm13164_vm8 }
0x147d   : > { %vm13182_vm12 = vmmov %vm13164_vm8 }
0x147e   : > { %7886 = vmatpush.msk.msra.mxu0 %vm13156_vm11, %v12992_v19  ;;  %7898 = vmatpush.msk.msrb.mxu1 %vm13158_vm4, %v12992_v19  ;;  %vm13184_vm11 = vnez %v13183_v60  ;;  %vm13186_vm4 = vnez %v13185_v15  ;;  %v6269_v60 = vshra.s32 %v13224_v4, 1  ;;  %v6270_v15 = vadd.s32 %v6268_v10, %v6266_v6 }
0x1480   : > { %v11627_v61 = vpop.f32.mrf.mxu3  ;;  %7887 = vmatpush.msk.msra.mxu0 %vm13160_vm0, %v12992_v19  ;;  %7899 = vmatpush.msk.msrb.mxu1 %vm13162_vm7, %v12992_v19  ;;  %vm13188_vm0 = vnez %v13187_v16  ;;  %vm13190_vm7 = vnez %v13189_v54  ;;  %v6271_v16 = vadd.s32 %v6269_v60, %v6267_v21  ;;  %v6257_v54 = vpop.permute.xlu2 %6256  ;;  %v7948_v60 = vld [vmem:[%s12141_s15 + $0x4] sm:$0xf] }
0x1481   : > { %7844 = vmatmul.msk.f32.gmra.mxu0 %vm13163_vm10, %v11627_v61  ;;  %7854 = vmatmul.msk.f32.gmra.mxu1 %vm13164_vm8, %v11627_v61  ;;  %vm13191_vm10 = vmmov %vm13164_vm8 }
0x1482   : > { %7888 = vmatpush.msk.msra.mxu0 %vm13166_vm15, %v12992_v19  ;;  %7900 = vmatpush.msk.msrb.mxu1 %vm13168_vm9, %v12992_v19  ;;  %vm13193_vm15 = vnez %v13192_v29  ;;  %vm13195_vm9 = vnez %v13194_v23 }
0x1484   : > { %7889 = vmatpush.msk.msra.mxu0 %vm13170_vm3, %v12992_v19  ;;  %7901 = vmatpush.msk.msrb.mxu1 %vm13172_vm5, %v12992_v19  ;;  %vm13197_vm3 = vnez %v13196_v20  ;;  %vm13198_vm5 = vmmov %vm13164_vm8  ;;  %v6958_v20 = vld [vmem:[#allocation2] sm:$0x1] }
0x1486   : > { %7890 = vmatpush.msk.msra.mxu0 %vm13174_vm2, %v12992_v19  ;;  %7902 = vmatpush.msk.msrb.mxu1 %vm13176_vm1, %v12992_v19  ;;  %vm13199_vm2 = vmmov %vm13198_vm5 }
0x1487   : > { %vm13200_vm1 = vmmov %vm13199_vm2 }
0x1488   : > { %7891 = vmatpush.msk.msra.mxu0 %vm13178_vm6, %v12992_v19  ;;  %7903 = vmatpush.msk.msrb.mxu1 %vm13180_vm14, %v12992_v19  ;;  %vm13201_vm6 = vmmov %vm13200_vm1 }
0x1489   : > { %7866 = vmatmul.msk.f32.vlgmr.msrb.gmra.mxu0 %vm13181_vm13, %v11603_v28  ;;  %7878 = vmatmul.msk.f32.vlgmr.msra.gmra.mxu1 %vm13182_vm12, %v11603_v28  ;;  %vm13202_vm14 = vmmov %vm13200_vm1  ;;  %vm13204_vm12 = vcmask 130048  }
0x148a   : > { %7919 = vmatpush.msk.msrb.mxu0 %vm13184_vm11, %v12992_v19  ;;  %vm13203_vm13 = vmmov %vm13200_vm1 }
0x148b   : > { %vm13205_vm11 = vmmov %vm13204_vm12 }
0x148c   : > { %7920 = vmatpush.msk.msrb.mxu0 %vm13186_vm4, %v12992_v19  ;;  %vm13206_vm4 = vmmov %vm13205_vm11 }
0x148e   : > { %7921 = vmatpush.msk.msrb.mxu0 %vm13188_vm0, %v12992_v19  ;;  %vm13207_vm0 = vmmov %vm13206_vm4 }
0x1490   : > { %7922 = vmatpush.msk.msrb.mxu0 %vm13190_vm7, %v12992_v19  ;;  %vm13208_vm7 = vmmov %vm13207_vm0 }
0x1491   : > { %7867 = vmatmul.msk.f32.gmra.mxu0 %vm13191_vm10, %v11627_v61  ;;  %7879 = vmatmul.msk.f32.gmra.mxu1 %vm13164_vm8, %v11627_v61  ;;  %vm13210_vm10 = vcmp.eq.s32.totalorder %v13105_v47, %v13209_v17  ;;  %vm13211_vm8 = vmmov %vm13207_vm0 }
0x1492   : > { %7923 = vmatpush.msk.msrb.mxu0 %vm13193_vm15, %v12992_v19  ;;  %vm13212_vm15 = vmmov %vm13207_vm0 }
0x1494   : > { %7924 = vmatpush.msk.msrb.mxu0 %vm13195_vm9, %v12992_v19  ;;  %vm13213_vm9 = vcmp.eq.s32.totalorder %v13110_v52, %v13209_v17 }
0x1496   : > { %7925 = vmatpush.msk.msrb.mxu0 %vm13197_vm3, %v12992_v19  ;;  %vm13214_vm3 = vcmp.eq.s32.totalorder %v13114_v27, %v13209_v17 }
0x1498   : > { %6220 = vmatpush.msrb.mxu0 %v13027_v55 }
0x1499   : > { %7892 = vmatmul.msk.f32.vlgmr.msra.gmra.mxu0 %vm13198_vm5, %v11603_v28  ;;  %7904 = vmatmul.msk.f32.vlgmr.msrb.gmra.mxu1 %vm13199_vm2, %v11603_v28  ;;  %vm13215_vm5 = vcmp.eq.s32.totalorder %v13116_v14, %v13209_v17  ;;  %vm13216_vm2 = vcmp.eq.s32.totalorder %v13119_v44, %v13209_v17 }
0x14a1   : > { %7893 = vmatmul.msk.f32.gmra.mxu0 %vm13200_vm1, %v11627_v61  ;;  %7905 = vmatmul.msk.f32.gmra.mxu1 %vm13201_vm6, %v11627_v61  ;;  %vm13217_vm1 = vcmp.eq.s32.totalorder %v13121_v12, %v13209_v17  ;;  %vm13218_vm6 = vcmp.eq.s32.totalorder %v13009_v63, %v13209_v17 }
0x14a9   : > { %7926 = vmatmul.msk.f32.vlgmr.msrb.gmra.mxu0 %vm13202_vm14, %v11603_v28  ;;  %vm13219_vm14 = vmmov %vm13203_vm13 }
0x14b1   : > { %7927 = vmatmul.msk.f32.gmra.mxu0 %vm13203_vm13, %v11627_v61 }
0x14f6   : > { %v5856_v34 = vpop.f32.mrf.mxu0  ;;  %v5880_v0 = vpop.f32.mrf.mxu1 }
0x14fe   : > { %v5859_v22 = vpop.f32.mrf.mxu0  ;;  %v5883_v53 = vpop.f32.mrf.mxu1 }
0x14ff   : > { %5905 = vmatpush.msra.mxu3 %v5883_v53  ;;  %5928 = vmatpush.msrb.mxu2 %v5859_v22 }
0x1501   : > { %5906 = vmatpush.msra.mxu3 %v5880_v0  ;;  %5929 = vmatpush.msrb.mxu2 %v5856_v34 }
0x1502   : > { %7856 = vmatmul.msk.f32.vlgmr.msra.gmra.mxu3 %vm13204_vm12, %v7855_v46  ;;  %7857 = vmatmul.msk.f32.vlgmr.msrb.gmra.mxu2 %vm13205_vm11, %v5862_v50  ;;  %vm13220_vm12 = vmmov %vm13207_vm0 }
0x1503   : > { %vm13221_vm11 = vmmov %vm13207_vm0 }
0x1506   : > { %v5951_v43 = vpop.f32.mrf.mxu0  ;;  %v6000_v40 = vpop.f32.mrf.mxu1 }
0x150e   : > { %v5954_v11 = vpop.f32.mrf.mxu0  ;;  %v6003_v48 = vpop.f32.mrf.mxu1 }
0x150f   : > { %5976 = vmatpush.msrb.mxu3 %v5954_v11  ;;  %6025 = vmatpush.msra.mxu2 %v6003_v48  ;;  %v13234_v11 = vld [vmem:[#allocation8_spill] sm:$0xff] }
0x1511   : > { %5977 = vmatpush.msrb.mxu3 %v5951_v43  ;;  %6026 = vmatpush.msra.mxu2 %v6000_v40  ;;  %v13233_v40 = vmov 0  }
0x1512   : > { %7881 = vmatmul.msk.f32.vlgmr.msra.gmra.mxu2 %vm13206_vm4, %v7880_v8  ;;  %7869 = vmatmul.msk.f32.vlgmr.msrb.gmra.mxu3 %vm13207_vm0, %v7868_v5  ;;  %vm6286_vm4 = vcmp.eq.s32.totalorder %v13105_v47, %v6270_v15  ;;  %vm6287_vm0 = vcmp.eq.s32.totalorder %v13105_v47, %v6271_v16  ;;  %v13236_v8 = vld [vmem:[#allocation9_spill] sm:$0xff] }
0x1513   : > { %6051 = vmatpush.msra.mxu3 %v11627_v61  ;;  %7930 = vmatpush.msk.msra.mxu1 %vm6286_vm4, %v12992_v19  ;;  %vm13225_vm4 = vcmask 523264  }
0x1515   : > { %6052 = vmatpush.msra.mxu3 %v11603_v28 }
0x1516   : > { %v6075_v18 = vpop.f32.mrf.mxu0  ;;  %v6124_v31 = vpop.f32.mrf.mxu1 }
0x151a   : > { %7883 = vmatmul.msk.f32.vlgmr.msra.gmra.mxu3 %vm13208_vm7, %v7882_v3  ;;  %vm6284_vm7 = vcmp.eq.s32.totalorder %v13110_v52, %v6270_v15 }
0x151b   : > { %7931 = vmatpush.msk.msra.mxu1 %vm6284_vm7, %v12992_v19  ;;  %vm13235_vm7 = vnez %v13234_v11 }
0x151c   : > { %v6386_v48 = vsel %vm13235_vm7, 1, %v13233_v40  ;;  %vm13260_vm7 = vcmp.lt.s32.totalorder %v13024_v13, 16 }
0x151e   : > { %v6078_v9 = vpop.f32.mrf.mxu0  ;;  %v6127_v37 = vpop.f32.mrf.mxu1 }
0x151f   : > { %6100 = vmatpush.msrb.mxu2 %v6078_v9  ;;  %6149 = vmatpush.msrb.mxu3 %v6127_v37  ;;  %v13240_v9 = vld [vmem:[#allocation6_spill] sm:$0xff] }
0x1521   : > { %6101 = vmatpush.msrb.mxu2 %v6075_v18  ;;  %6150 = vmatpush.msrb.mxu3 %v6124_v31  ;;  %v13238_v31 = vld [vmem:[#allocation7_spill] sm:$0xff] }
0x1522   : > { %7895 = vmatmul.msk.f32.vlgmr.msrb.gmra.mxu2 %vm13211_vm8, %v7894_v39  ;;  %7907 = vmatmul.msk.f32.vlgmr.msrb.gmra.mxu3 %vm13212_vm15, %v7906_v42  ;;  %vm6282_vm8 = vcmp.eq.s32.totalorder %v13114_v27, %v6270_v15  ;;  %vm6283_vm15 = vcmp.eq.s32.totalorder %v13114_v27, %v6271_v16  ;;  %v6388_v39 = vperm.slane %v6386_v48, 0 }
0x1523   : > { %7908 = vmatpush.msk.msra.mxu2 %vm13210_vm10, %v12992_v19  ;;  %vm6285_vm10 = vcmp.eq.s32.totalorder %v13110_v52, %v6271_v16  ;;  %7932 = vmatpush.msk.msra.mxu1 %vm6282_vm8, %v12992_v19  ;;  %vm13239_vm8 = vnez %v13238_v31 }
0x1524   : > { %v6360_v3 = vsel %vm13239_vm8, 1, %v13233_v40  ;;  %vm13262_vm8 = vcmp.lt.s32.totalorder %v13024_v13, 112 }
0x1525   : > { %7909 = vmatpush.msk.msra.mxu2 %vm13213_vm9, %v12992_v19  ;;  %vm6280_vm9 = vcmp.eq.s32.totalorder %v13116_v14, %v6270_v15  ;;  %v6362_v17 = vperm.slane %v6360_v3, 0 }
0x1526   : > { %v6222_v30 = vpop.f32.mrf.mxu0  ;;  %7933 = vmatpush.msk.msra.mxu1 %vm6280_vm9, %v12992_v19  ;;  %vm11867_vm9 = vcmp.eq.s32.totalorder %v6388_v39, 1  ;;  %v13293_v39 = vld [vmem:[#allocation18_spill] sm:$0xff] }
0x1527   : > { %7910 = vmatpush.msk.msra.mxu2 %vm13214_vm3, %v12992_v19  ;;  %vm6281_vm3 = vcmp.eq.s32.totalorder %v13116_v14, %v6271_v16 }
0x1529   : > { %7911 = vmatpush.msk.msra.mxu2 %vm13215_vm5, %v12992_v19  ;;  %vm6278_vm5 = vcmp.eq.s32.totalorder %v13119_v44, %v6270_v15 }
0x152a   : > { %7934 = vmatpush.msk.msra.mxu1 %vm6278_vm5, %v12992_v19 }
0x152b   : > { %7912 = vmatpush.msk.msra.mxu2 %vm13216_vm2, %v12992_v19  ;;  %vm6279_vm2 = vcmp.eq.s32.totalorder %v13119_v44, %v6271_v16 }
0x152d   : > { %7913 = vmatpush.msk.msra.mxu2 %vm13217_vm1, %v12992_v19  ;;  %vm6276_vm1 = vcmp.eq.s32.totalorder %v13121_v12, %v6270_v15 }
0x152e   : > { %v6225_v49 = vpop.f32.mrf.mxu0  ;;  %7935 = vmatpush.msk.msra.mxu1 %vm6276_vm1, %v12992_v19  ;;  %vm13248_vm1 = vcmp.lt.s32.totalorder %v13024_v13, 17 }
0x152f   : > { %7914 = vmatpush.msk.msra.mxu2 %vm13218_vm6, %v12992_v19  ;;  %vm6277_vm6 = vcmp.eq.s32.totalorder %v13121_v12, %v6271_v16 }
0x1531   : > { %6171 = vmatpush.msra.mxu2 %v13027_v55 }
0x1532   : > { %7915 = vmatmul.msk.f32.vlgmr.msra.gmra.mxu2 %vm13219_vm14, %v11603_v28  ;;  %v7917_v28 = vld [vmem:[%s12139_s13 + $0x1c] sm:$0xf]  ;;  %vm6274_vm14 = vcmp.eq.s32.totalorder %v13009_v63, %v6270_v15 }
0x1533   : > { %7939 = vmatpush.msk.msrb.mxu2 %vm6287_vm0, %v12992_v19  ;;  %7936 = vmatpush.msk.msra.mxu1 %vm6274_vm14, %v12992_v19  ;;  %vm13226_vm0 = vmmov %vm13225_vm4 }
0x1535   : > { %7940 = vmatpush.msk.msrb.mxu2 %vm6285_vm10, %v12992_v19  ;;  %vm13237_vm10 = vnez %v13236_v8 }
0x1536   : > { %v6387_v5 = vsel %vm13237_vm10, 1, %v13233_v40  ;;  %vm13261_vm10 = vmmov %vm13260_vm7 }
0x1537   : > { %7941 = vmatpush.msk.msrb.mxu2 %vm6283_vm15, %v12992_v19  ;;  %vm13241_vm15 = vnez %v13240_v9  ;;  %v6389_v42 = vperm.slane %v6387_v5, 0 }
0x1538   : > { %v6359_v37 = vsel %vm13241_vm15, 1, %v13233_v40  ;;  %vm13263_vm15 = vmmov %vm13262_vm8 }
0x1539   : > { %7942 = vmatpush.msk.msrb.mxu2 %vm6281_vm3, %v12992_v19  ;;  %vm11871_vm3 = vcmp.eq.s32.totalorder %v6389_v42, 1  ;;  %v13295_v42 = vld [vmem:[#allocation16_spill] sm:$0xff] }
0x153a   : > { %7916 = vmatmul.msk.f32.gmra.mxu2 %vm13203_vm13, %v11627_v61  ;;  %v7928_v61 = vld [vmem:[%s12139_s13 + $0x20] sm:$0xf]  ;;  %vm6275_vm13 = vcmp.eq.s32.totalorder %v13009_v63, %v6271_v16 }
0x153b   : > { %7943 = vmatpush.msk.msrb.mxu2 %vm6279_vm2, %v12992_v19  ;;  %vm6364_vm2 = vcmp.eq.s32.totalorder %v6362_v17, 1 }
0x153d   : > { %7944 = vmatpush.msk.msrb.mxu2 %vm6277_vm6, %v12992_v19  ;;  %vm13249_vm6 = vcmp.lt.s32.totalorder %v13024_v13, 111 }
0x153e   : > { %vm13250_vm14 = vmmov %vm13249_vm6 }
0x153f   : > { %7945 = vmatpush.msk.msrb.mxu2 %vm6275_vm13, %v12992_v19 }
0x1585   : > { %v5908_v2 = vpop.f32.mrf.mxu3  ;;  %v5931_v38 = vpop.f32.mrf.mxu2 }
0x1586   : > { %v5932_v51 = vadd.f32 %v5931_v38, %v5908_v2  ;;  %v6361_v38 = vperm.slane %v6359_v37, 0 }
0x1588   : > { %vm11890_vm13 = vcmp.eq.s32.totalorder %v6361_v38, 1 }
0x1595   : > { %v5979_v36 = vpop.f32.mrf.mxu3  ;;  %v6028_v33 = vpop.f32.mrf.mxu2 }
0x1596   : > { %v5982_v41 = vadd.f32 %v5979_v36, %v5932_v51 }
0x1598   : > { %v6031_v32 = vadd.f32 %v6028_v33, %v5982_v41  ;;  %v13246_v41 = vld [vmem:[#allocation17_spill] sm:$0xff] }
0x1599   : > { %vm13247_vm5 = vnez %v13246_v41 }
0x159a   : > { %v6512_v33 = vsel %vm13247_vm5, 1, %v13233_v40  ;;  %vm13264_vm5 = vcmask 1043456  }
0x159b   : > { %v6514_v58 = vperm.slane %v6512_v33, 0  ;;  %v13300_v33 = vld [vmem:[#allocation12_spill] sm:$0xff] }
0x159d   : > { %v6054_v56 = vpop.f32.mrf.mxu3 }
0x159e   : > { %v6057_v25 = vadd.f32 %v6054_v56, %v6031_v32 }
0x15a5   : > { %v6103_v7 = vpop.f32.mrf.mxu2  ;;  %v6152_v47 = vpop.f32.mrf.mxu3 }
0x15a6   : > { %v6106_v26 = vadd.f32 %v6103_v7, %v6057_v25 }
0x15a8   : > { %v6155_v27 = vadd.f32 %v6152_v47, %v6106_v26 }
0x15b5   : > { %v6173_v59 = vpop.f32.mrf.mxu2 }
0x15bd   : > { %v6176_v55 = vpop.f32.mrf.mxu2 }
0x15be   : > { %6198 = vmatpush.msra.mxu3 %v6176_v55 }
0x15c0   : > { %6199 = vmatpush.msra.mxu3 %v6173_v59 }
0x15c1   : > { %7918 = vmatmul.msk.f32.vlgmr.msra.gmra.mxu3 %vm13220_vm12, %v7917_v28  ;;  %vm6272_vm12 = vcmp.eq.s32.totalorder %v13012_v57, %v6270_v15 }
0x15c2   : > { %6247 = vmatpush.msrb.mxu3 %v6225_v49  ;;  %7937 = vmatpush.msk.msra.mxu1 %vm6272_vm12, %v12992_v19 }
0x15c4   : > { %6248 = vmatpush.msrb.mxu3 %v6222_v30  ;;  %v13253_v30 = vld [vmem:[#allocation19_spill] sm:$0xff] }
0x15c5   : > { %vm13254_vm12 = vnez %v13253_v30 }
0x15c6   : > { %v6513_v55 = vsel %vm13254_vm12, 1, %v13233_v40  ;;  %vm13273_vm12 = vmmov %vm13264_vm5 }
0x15c7   : > { %v6515_v15 = vperm.slane %v6513_v55, 0 }
0x15c9   : > { %7929 = vmatmul.msk.f32.vlgmr.msrb.gmra.mxu3 %vm13221_vm11, %v7928_v61  ;;  %vm6273_vm11 = vcmp.eq.s32.totalorder %v13012_v57, %v6271_v16  ;;  %v6261_v57 = vld [vmem:[%s12142_s16] sm:$0xf]  ;;  %v13265_v16 = vld [vmem:[#allocation25_spill] sm:$0xff] }
0x15ca   : > { %7946 = vmatpush.msk.msrb.mxu2 %vm6273_vm11, %v12992_v19  ;;  %vm13255_vm11 = vmmov %vm13248_vm1  ;;  %v6373_v61 = vld [vmem:[%s12141_s15] sm:$0xf] }
0x1644   : > { %v6201_v52 = vpop.f32.mrf.mxu3 }
0x1645   : > { %v6204_v14 = vadd.f32 %v6201_v52, %v6155_v27 }
0x164c   : > { %v6250_v44 = vpop.f32.mrf.mxu3 }
0x164d   : > { %v6253_v12 = vadd.f32 %v6250_v44, %v6204_v14  ;;  %v13268_v14 = vld [vmem:[#allocation14_spill] sm:$0xff] }
0x164f   : > { %v6259_v63 = vadd.f32 %v6257_v54, %v6253_v12  ;;  %v13270_v12 = vld [vmem:[#allocation5_spill] sm:$0xff] }
0x1651   : > { %v6260_v29 = vmax.f32 %v6259_v63, 0.0 }
0x1653   : > { %7938 = vmatmul.msk.f32.vlgmr.msra.gmra.mxu1 %vm13225_vm4, %v6260_v29  ;;  %7947 = vmatmul.msk.f32.vlgmr.msrb.gmra.mxu2 %vm13226_vm0, %v6260_v29  ;;  %vm13257_vm4 = vnez %v13256_v62  ;;  %vm13259_vm0 = vcmp.ge.s32.totalorder %v13258_v24, 0 }
0x1654   : > { %v6768_v45 = vsel %vm13257_vm4, 1, %v13233_v40  ;;  %vm11959_vm4 = vcmp.eq.s32.totalorder %v6515_v15, 1  ;;  %v13321_v15 = vld [vmem:[#allocation39_spill] sm:$0xff] }
0x1655   : > { %v6770_v63 = vperm.slane %v6768_v45, 0 }
0x16d0   : > { %v11814_v23 = vpop.f32.mrf.mxu1 }
0x16d1   : > { %6347 = vrot.lane.b32.xlu1 %v11814_v23, %s12515_s1  ;;  %6380 = vrot.lane.b32.xlu2 %v11814_v23, %s13227_s3 }
0x16d2   : > { %6374 = vrot.lane.b32.xlu0 %v11814_v23, %s12516_s24 }
0x16d6   : > { %v11828_v19 = vpop.f32.mrf.mxu2 }
0x16d9   : > { %6506 = vrot.lane.b32.xlu1 %v11814_v23, %s13228_s28  ;;  %6500 = vrot.lane.b32.xlu2 %v11814_v23, %s13229_s30 }
0x16da   : > { %6353 = vrot.lane.b32.xlu0 %v11814_v23, %s13230_s2 }
0x16e1   : > { %6376 = vrot.lane.b32.xlu1 %v11828_v19, %s12516_s24  ;;  %6349 = vrot.lane.b32.xlu2 %v11828_v19, %s12515_s1 }
0x16e2   : > { %6579 = vrot.lane.b32.xlu0 %v11814_v23, %s13231_s26 }
0x16e9   : > { %6355 = vrot.lane.b32.xlu1 %v11828_v19, %s13230_s2  ;;  %6508 = vrot.lane.b32.xlu2 %v11828_v19, %s13228_s28 }
0x16ea   : > { %6382 = vrot.lane.b32.xlu0 %v11828_v19, %s13227_s3 }
0x16f1   : > { %6581 = vrot.lane.b32.xlu1 %v11828_v19, %s13231_s26  ;;  %6585 = vrot.lane.b32.xlu2 %v11814_v23, %s13232_s22  ;;  %s13364_s26 = sshll.u32 %s13367_s21, 1 }
0x16f2   : > { %6502 = vrot.lane.b32.xlu0 %v11828_v19, %s13229_s30  ;;  %s599_s24 = scalar_lea.vmem %s12145_s19, %s13364_s26 }
0x16f9   : > { %6951 = vperm.xlu1 %8018, %v6261_v57   ;;  %6962 = vperm.xlu2 %8019, %v6958_v20  }
0x16fa   : > { %6587 = vrot.lane.b32.xlu0 %v11828_v19, %s13232_s22 }
0x172b   : > { %v6381_v0 = vpop.permute.xlu2 %6380 }
0x1733   : > { %v6501_v50 = vpop.permute.xlu2 %6500 }
0x173b   : > { %v6350_v2 = vpop.permute.xlu2 %6349 }
0x1743   : > { %v6348_v34 = vpop.permute.xlu1 %6347  ;;  %v6509_v29 = vpop.permute.xlu2 %6508 }
0x1744   : > { %v6375_v22 = vpop.permute.xlu0 %6374  ;;  %v11880_v56 = vsel %vm13248_vm1, %v6348_v34, %v6350_v2  ;;  %v11899_v28 = vsel %vm13255_vm11, %v6350_v2, %v6348_v34  ;;  %vm13267_vm1 = vcmask 31744   ;;  %v13347_v34 = vld [vmem:[#allocation20_spill] sm:$0xff] }
0x1745   : > { %vm13275_vm11 = vmmov %vm13267_vm1 }
0x174b   : > { %v6507_v53 = vpop.permute.xlu1 %6506  ;;  %v6586_v55 = vpop.permute.xlu2 %6585 }
0x174c   : > { %v6354_v46 = vpop.permute.xlu0 %6353 }
0x1753   : > { %v6377_v43 = vpop.permute.xlu1 %6376 }
0x1754   : > { %v11859_v18 = vpop.permute.xlu0 %6579  ;;  %v11917_v21 = vsel %vm13260_vm7, %v6375_v22, %v6377_v43  ;;  %v11921_v1 = vsel %vm13261_vm10, %v6377_v43, %v6375_v22  ;;  %vm13284_vm10 = vmmov %vm13264_vm5 }
0x175b   : > { %v6356_v32 = vpop.permute.xlu1 %6355 }
0x175c   : > { %v11884_v25 = vsel %vm13249_vm6, %v6354_v46, %v6356_v32  ;;  %v11888_v7 = vsel %vm13250_vm14, %v6356_v32, %v6354_v46  ;;  %v6383_v26 = vpop.permute.xlu0 %6382  ;;  %vm13269_vm6 = vnez %v13268_v14  ;;  %vm13271_vm14 = vcmp.ge.s32.totalorder %v13270_v12, 0  ;;  %v13282_v46 = vld [vmem:[#allocation22_spill] sm:$0xff] }
0x175d   : > { %v6366_v49 = vsel %vm6364_vm2, %v11880_v56, %v11888_v7  ;;  %v6365_v35 = vsel %vm11890_vm13, %v11899_v28, %v11884_v25  ;;  %v11925_v10 = vsel %vm13262_vm8, %v6381_v0, %v6383_v26  ;;  %v11929_v4 = vsel %vm13263_vm15, %v6383_v26, %v6381_v0  ;;  %vm13272_vm13 = vmmov %vm13264_vm5  ;;  %v13280_v0 = vld [vmem:[#allocation21_spill] sm:$0xff]  ;;  %v13304_v26 = vld [vmem:[#allocation27_spill] sm:$0xff] }
0x175e   : > { %v6372_v6 = vsel %vm13259_vm0, %v6366_v49, 0.0  ;;  %vm13266_vm2 = vnez %v13265_v16  ;;  %v6392_v52 = vsel %vm11867_vm9, %v11921_v1, %v11925_v10  ;;  %v6393_v27 = vsel %vm11871_vm3, %v11917_v21, %v11929_v4  ;;  %vm13274_vm9 = vmmov %vm13267_vm1  ;;  %v13312_v49 = vld [vmem:[#allocation42_spill] sm:$0xff] }
0x175f   : > { %7955 = vmatpush.msk.msra.mxu0 %vm13264_vm5, %v6372_v6  ;;  %v6769_v47 = vsel %vm13266_vm2, 1, %v13233_v40  ;;  %v6371_v44 = vsel %vm13269_vm6, %v6365_v35, 0.0  ;;  %v6398_v54 = vsel %vm13271_vm14, %v6392_v52, 0.0  ;;  %7951 = vmatpush.msk.msrb.mxu1 %vm13272_vm13, %v6393_v27  ;;  %vm11955_vm3 = vcmp.eq.s32.totalorder %v6514_v58, 1  ;;  %v13319_v6 = vld [vmem:[#allocation38_spill] sm:$0xff]  ;;  %v13326_v27 = vld [vmem:[#allocation15_spill] sm:$0xff] }
0x1760   : > { %7956 = vmatmul.msk.f32.vlgmr.msra.gmra.mxu0 %vm13267_vm1, %v6373_v61  ;;  %7949 = vmatpush.msk.msra.mxu3 %vm13273_vm12, %v6398_v54  ;;  %v6771_v57 = vperm.slane %v6769_v47, 0  ;;  %vm13281_vm0 = vnez %v13280_v0  ;;  %vm13283_vm7 = vnez %v13282_v46  ;;  %vm13285_vm8 = vcmp.lt.s32.totalorder %v13024_v13, 113  ;;  %vm13297_vm12 = vmmov %vm13284_vm10  ;;  %v13323_v47 = vld [vmem:[#allocation23_spill] sm:$0xff]  ;;  %v7972_v46 = vld [vmem:[%s12141_s15 + $0x14] sm:$0xf] }
0x1761   : > { %7952 = vmatmul.msk.f32.vlgmr.msrb.gmra.mxu1 %vm13274_vm9, %v7948_v60  ;;  %7950 = vmatmul.msk.f32.vlgmr.msra.gmra.mxu3 %vm13275_vm11, %v7948_v60  ;;  %v6591_v22 = vsel %vm13281_vm0, 1, %v13233_v40  ;;  %v6592_v43 = vsel %vm13283_vm7, 1, %v13233_v40  ;;  %v6510_v48 = vsel %vm13285_vm8, %v6507_v53, %v6509_v29  ;;  %vm13286_vm15 = vmmov %vm13285_vm8  ;;  %vm13287_vm5 = vcmp.lt.s32.totalorder %v13024_v13, 15  ;;  %v13330_v54 = vld [vmem:[#allocation43_spill] sm:$0xff] }
0x1762   : > { %7953 = vmatpush.msk.msrb.mxu3 %vm13284_vm10, %v6371_v44  ;;  %v6511_v8 = vsel %vm13286_vm15, %v6509_v29, %v6507_v53  ;;  %vm13288_vm2 = vmmov %vm13287_vm5  ;;  %vm11978_vm1 = vcmp.eq.s32.totalorder %v6770_v63, 1  ;;  %v7957_v53 = vld [vmem:[%s12141_s15 + $0x8] sm:$0xf]  ;;  %vm11989_vm6 = vcmp.eq.s32.totalorder %v6771_v57, 1  ;;  %vm13294_vm14 = vnez %v13293_v39  ;;  %v13328_v44 = vld [vmem:[#allocation26_spill] sm:$0xff] }
0x1763   : > { %vm13296_vm13 = vcmp.lt.s32.totalorder %v13295_v42, 16  ;;  %v6593_v38 = vperm.slane %v6591_v22, 0  ;;  %v6594_v51 = vperm.slane %v6592_v43, 0  ;;  %vm13298_vm9 = vmmov %vm13284_vm10  ;;  %v6582_v41 = vpop.permute.xlu1 %6581  ;;  %vm13305_vm10 = vnez %v13304_v26  ;;  %v13334_v29 = vld [vmem:[#allocation41_spill] sm:$0xff] }
0x1764   : > { %v6503_v11 = vpop.permute.xlu0 %6502  ;;  %vm13302_vm0 = vmmov %vm13275_vm11  ;;  %v7977_v22 = vld [vmem:[%s12141_s15 + $0x18] sm:$0xf] }
0x1765   : > { %v6504_v5 = vsel %vm13287_vm5, %v6501_v50, %v6503_v11  ;;  %v6505_v31 = vsel %vm13288_vm2, %v6503_v11, %v6501_v50  ;;  %vm13306_vm8 = vmmov %vm13302_vm0  ;;  %vm12015_vm5 = vcmp.eq.s32.totalorder %v6593_v38, 1  ;;  %vm12019_vm2 = vcmp.eq.s32.totalorder %v6594_v51, 1 }
0x1766   : > { %v6518_v40 = vsel %vm11955_vm3, %v6505_v31, %v6510_v48  ;;  %v6519_v9 = vsel %vm11959_vm4, %v6504_v5, %v6511_v8  ;;  %v6774_v2 = vsel %vm11978_vm1, %v6510_v48, %v6505_v31  ;;  %v6775_v36 = vsel %vm11989_vm6, %v6511_v8, %v6504_v5  ;;  %vm13299_vm3 = vmmov %vm13298_vm9 }
0x1767   : > { %v6524_v50 = vsel %vm13294_vm14, %v6518_v40, 0.0  ;;  %v6525_v17 = vsel %vm13296_vm13, %v6519_v9, 0.0  ;;  %vm13301_vm4 = vcmp.ge.s32.totalorder %v13300_v33, 0  ;;  %vm13303_vm7 = vmmov %vm13299_vm3  ;;  %v6781_v59 = vsel %vm13305_vm10, %v6775_v36, 0.0 }
0x1768   : > { %7958 = vmatpush.msk.msra.mxu1 %vm13297_vm12, %v6524_v50  ;;  %7960 = vmatpush.msk.msra.mxu2 %vm13298_vm9, %v6525_v17  ;;  %v6780_v32 = vsel %vm13301_vm4, %v6774_v2, 0.0  ;;  %vm13307_vm15 = vmmov %vm13299_vm3  ;;  %vm13313_vm1 = vnez %v13312_v49  ;;  %vm13315_vm14 = vcmp.lt.s32.totalorder %v13024_v13, 1  ;;  %vm13317_vm12 = vcmp.lt.s32.totalorder %v13024_v13, 127 }
0x1769   : > { %7961 = vmatmul.msk.f32.vlgmr.msra.gmra.mxu2 %vm13275_vm11, %v7957_v53  ;;  %7959 = vmatmul.msk.f32.vlgmr.msra.gmra.mxu1 %vm13302_vm0, %v7957_v53  ;;  %vm13314_vm6 = vmmov %vm13299_vm3  ;;  %vm13320_vm11 = vnez %v13319_v6  ;;  %vm13324_vm4 = vnez %v13323_v47  ;;  %vm13325_vm0 = vcmp.ge.s32.totalorder %v13258_v24, 0  ;;  %vm13329_vm10 = vnez %v13328_v44  ;;  %v7962_v24 = vld [vmem:[%s12141_s15 + $0xc] sm:$0xf] }
0x176a   : > { %7968 = vmatpush.msk.msrb.mxu1 %vm13299_vm3, %v11814_v23  ;;  %7970 = vmatpush.msk.msrb.mxu2 %vm13303_vm7, %v11828_v19  ;;  %v6892_v19 = vsel %vm13313_vm1, %v11884_v25, %v11899_v28  ;;  %vm13316_vm13 = vmmov %vm13315_vm14  ;;  %vm13322_vm3 = vnez %v13321_v15  ;;  %vm13327_vm7 = vcmp.lt.s32.totalorder %v13326_v27, 16  ;;  %vm13336_vm1 = vcmask 31744  }
0x176b   : > { %7954 = vmatmul.msk.f32.vlgmr.msrb.gmra.mxu3 %vm13306_vm8, %v6373_v61  ;;  %v6583_v61 = vsel %vm13315_vm14, %v11859_v18, %v6582_v41  ;;  %v6584_v62 = vsel %vm13316_vm13, %v6582_v41, %v11859_v18  ;;  %vm13318_vm9 = vmmov %vm13317_vm12  ;;  %v7967_v18 = vld [vmem:[%s12141_s15 + $0x10] sm:$0xf]  ;;  %vm13331_vm8 = vnez %v13330_v54 }
0x176c   : > { %7978 = vmatpush.msk.msra.mxu1 %vm13307_vm15, %v6780_v32  ;;  %7980 = vmatpush.msk.msra.mxu2 %vm13314_vm6, %v6781_v59  ;;  %v6588_v58 = vpop.permute.xlu0 %6587  ;;  %v6893_v63 = vsel %vm13331_vm8, %v11888_v7, %v11880_v56  ;;  %vm13332_vm15 = vmmov %vm13314_vm6  ;;  %v13341_v7 = vld [vmem:[#allocation28_spill] sm:$0xff] }
0x176d   : > { %v6589_v45 = vsel %vm13317_vm12, %v6586_v55, %v6588_v58  ;;  %v6590_v35 = vsel %vm13318_vm9, %v6588_v58, %v6586_v55  ;;  %vm13338_vm14 = vmmov %vm13327_vm7  ;;  %vm13342_vm9 = vnez %v13341_v7 }
0x176e   : > { %v6597_v25 = vsel %vm12015_vm5, %v6584_v62, %v6589_v45  ;;  %v6598_v28 = vsel %vm12019_vm2, %v6583_v61, %v6590_v35  ;;  %v6711_v60 = vsel %vm13320_vm11, %v6589_v45, %v6584_v62  ;;  %v6712_v16 = vsel %vm13322_vm3, %v6590_v35, %v6583_v61  ;;  %vm13333_vm5 = vmmov %vm13314_vm6 }
0x176f   : > { %v6603_v13 = vsel %vm13324_vm4, %v6597_v25, 0.0  ;;  %v6604_v52 = vsel %vm13325_vm0, %v6598_v28, 0.0  ;;  %v6713_v14 = vsel %vm13327_vm7, %v6711_v60, 0.0  ;;  %v6714_v12 = vsel %vm13329_vm10, %v6712_v16, 0.0  ;;  %vm13337_vm6 = vmmov %vm13333_vm5  ;;  %v6959_v60 = vld [vmem:[%s12143_s17] sm:$0x1] }
0x1770   : > { %7963 = vmatpush.msk.msra.mxu3 %vm13332_vm15, %v6603_v13  ;;  %7965 = vmatpush.msk.msrb.mxu0 %vm13333_vm5, %v6604_v52  ;;  %vm13335_vm2 = vnez %v13334_v29  ;;  %v6894_v56 = vsel %vm13338_vm14, %v6892_v19, 0.0  ;;  %vm13339_vm13 = vmmov %vm13336_vm1  ;;  %v6895_v20 = vsel %vm13342_vm9, %v6893_v63, 0.0  ;;  %vm13348_vm0 = vcmp.lt.s32.totalorder %v13347_v34, 256  ;;  %v6952_v19 = vpop.permute.xlu1 %6951 }
0x1771   : > { %v6836_v57 = vsel %vm13335_vm2, %v11929_v4, %v11917_v21  ;;  %7971 = vmatmul.msk.f32.vlgmr.msrb.gmra.mxu2 %vm13336_vm1, %v7967_v18  ;;  %7969 = vmatmul.msk.f32.vlgmr.msrb.gmra.mxu1 %vm13339_vm13, %v7967_v18  ;;  %vm13340_vm12 = vmmov %vm13333_vm5  ;;  %v13345_v21 = vld [vmem:[#allocation40_spill] sm:$0xff]  ;;  %v6963_v18 = vpop.permute.xlu2 %6962 }
0x1772   : > { %7973 = vmatpush.msk.msrb.mxu3 %vm13337_vm6, %v6713_v14  ;;  %7975 = vmatpush.msk.msra.mxu0 %vm13340_vm12, %v6714_v12  ;;  %vm13343_vm11 = vmmov %vm13336_vm1  ;;  %vm13346_vm4 = vnez %v13345_v21  ;;  %v6838_v0 = vsel %vm13348_vm0, %v6836_v57, 0.0  ;;  %v6965_v13 = vperm.slane %v6963_v18, 0  ;;  %v13365_v12 = vlaneseq }
0x1773   : > { %7964 = vmatmul.msk.f32.vlgmr.msra.gmra.mxu3 %vm13343_vm11, %v7962_v24  ;;  %vm13344_vm3 = vmmov %vm13333_vm5  ;;  %v6835_v4 = vsel %vm13346_vm4, %v11925_v10, %v11921_v1  ;;  %v7987_v1 = vld [vmem:[%s12141_s15 + $0x20] sm:$0xf]  ;;  %v7982_v10 = vld [vmem:[%s12141_s15 + $0x1c] sm:$0xf] }
0x1774   : > { %7988 = vmatpush.msk.msrb.mxu1 %vm13344_vm3, %v6894_v56  ;;  %vm13349_vm7 = vmmov %vm13344_vm3 }
0x1775   : > { %7990 = vmatpush.msk.msrb.mxu2 %vm13349_vm7, %v6895_v20  ;;  %vm13350_vm10 = vmmov %vm13336_vm1 }
0x1776   : > { %7966 = vmatmul.msk.f32.vlgmr.msrb.gmra.mxu0 %vm13350_vm10, %v7962_v24  ;;  %vm13351_vm8 = vmmov %vm13344_vm3  ;;  %vm7023_vm10 = vcmp.lt.s32.totalorder %v13365_v12, 256 }
0x1777   : > { %7983 = vmatpush.msk.msra.mxu3 %vm13351_vm8, %v6835_v4  ;;  %vm13352_vm15 = vmmov %vm13344_vm3 }
0x1778   : > { %7985 = vmatpush.msk.msrb.mxu0 %vm13352_vm15, %v6838_v0  ;;  %vm13353_vm5 = vmmov %vm13336_vm1 }
0x1779   : > { %7981 = vmatmul.msk.f32.vlgmr.msra.gmra.mxu2 %vm13353_vm5, %v7977_v22  ;;  %vm13354_vm2 = vmmov %vm13336_vm1 }
0x177a   : > { %7979 = vmatmul.msk.f32.vlgmr.msra.gmra.mxu1 %vm13354_vm2, %v7977_v22  ;;  %vm13355_vm6 = vmmov %vm13336_vm1 }
0x177b   : > { %7974 = vmatmul.msk.f32.vlgmr.msrb.gmra.mxu3 %vm13336_vm1, %v7972_v46  ;;  %vm13356_vm14 = vmmov %vm13336_vm1 }
0x177c   : > { %vm13357_vm13 = vmmov %vm13336_vm1 }
0x177d   : > { %vm13358_vm12 = vmmov %vm13336_vm1 }
0x177e   : > { %7976 = vmatmul.msk.f32.vlgmr.msra.gmra.mxu0 %vm13355_vm6, %v7972_v46  ;;  %vm13359_vm9 = vmmov %vm13336_vm1 }
0x177f   : > { %vm13360_vm11 = vmmov %vm13344_vm3 }
0x1780   : > { %vm13361_vm3 = vmmov %vm13336_vm1 }
0x1781   : > { %7991 = vmatmul.msk.f32.vlgmr.msrb.gmra.mxu2 %vm13356_vm14, %v7987_v1  ;;  %vm13362_vm4 = vmmov %vm13349_vm7  ;;  %vm7018_vm7 = vcmask 1040384  }
0x1782   : > { %7989 = vmatmul.msk.f32.vlgmr.msrb.gmra.mxu1 %vm13357_vm13, %v7987_v1  ;;  %vm13363_vm0 = vmmov %vm13336_vm1 }
0x1783   : > { %7984 = vmatmul.msk.f32.vlgmr.msra.gmra.mxu3 %vm13358_vm12, %v7982_v10 }
0x1786   : > { %7986 = vmatmul.msk.f32.vlgmr.msrb.gmra.mxu0 %vm13359_vm9, %v7982_v10 }
0x17dd   : > { %v6497_v48 = vpop.f32.mrf.mxu0 }
0x17de   : > { %v6448_v43 = vpop.f32.mrf.mxu1 }
0x17df   : > { %v6498_v3 = vadd.f32 %v6497_v48, %v6448_v43 }
0x17e4   : > { %v6428_v11 = vpop.f32.mrf.mxu3 }
0x17e6   : > { %v6554_v8 = vpop.f32.mrf.mxu1 }
0x17ec   : > { %v6574_v5 = vpop.f32.mrf.mxu2 }
0x17ed   : > { %v6578_v53 = vadd.f32 %v6574_v5, %v6498_v3 }
0x17ee   : > { %v6477_v31 = vpop.f32.mrf.mxu3  ;;  %v6686_v9 = vpop.f32.mrf.mxu1 }
0x17ef   : > { %v6478_v39 = vadd.f32 %v6477_v31, %v6428_v11 }
0x17f1   : > { %v6577_v17 = vadd.f32 %v6554_v8, %v6478_v39 }
0x17f3   : > { %v6653_v40 = vpop.f32.mrf.mxu0 }
0x17f4   : > { %v6706_v37 = vpop.f32.mrf.mxu2  ;;  %v6657_v42 = vadd.f32 %v6653_v40, %v6578_v53 }
0x17f6   : > { %v6633_v50 = vpop.f32.mrf.mxu3  ;;  %v6710_v2 = vadd.f32 %v6706_v37, %v6657_v42 }
0x17f7   : > { %v6656_v51 = vadd.f32 %v6633_v50, %v6577_v17  ;;  %v6810_v41 = vpop.f32.mrf.mxu1 }
0x17f9   : > { %v6709_v26 = vadd.f32 %v6686_v9, %v6656_v51 }
0x17fb   : > { %v6763_v38 = vpop.f32.mrf.mxu0 }
0x17fc   : > { %v6830_v36 = vpop.f32.mrf.mxu2  ;;  %v6767_v33 = vadd.f32 %v6763_v38, %v6710_v2 }
0x17fe   : > { %v6743_v32 = vpop.f32.mrf.mxu3  ;;  %v6834_v59 = vadd.f32 %v6830_v36, %v6767_v33 }
0x17ff   : > { %v6766_v30 = vadd.f32 %v6743_v32, %v6709_v26  ;;  %v6924_v45 = vpop.f32.mrf.mxu1 }
0x1801   : > { %v6833_v58 = vadd.f32 %v6810_v41, %v6766_v30 }
0x1803   : > { %v6887_v23 = vpop.f32.mrf.mxu0 }
0x1804   : > { %v6891_v55 = vadd.f32 %v6887_v23, %v6834_v59  ;;  %v6944_v49 = vpop.f32.mrf.mxu2 }
0x1806   : > { %v6948_v61 = vadd.f32 %v6944_v49, %v6891_v55  ;;  %v6867_v62 = vpop.f32.mrf.mxu3 }
0x1807   : > { %v6890_v35 = vadd.f32 %v6867_v62, %v6833_v58 }
0x1808   : > { %v6955_v25 = vadd.f32 %v6952_v19, %v6948_v61 }
0x1809   : > { %v6947_v6 = vadd.f32 %v6924_v45, %v6890_v35 }
0x180a   : > { %v6957_v28 = vmax.f32 %v6955_v25, 0.0 }
0x180b   : > { %v6954_v15 = vadd.f32 %v6952_v19, %v6947_v6 }
0x180c   : > { %7994 = vmatpush.msk.msra.mxu0 %vm13360_vm11, %v6957_v28 }
0x180d   : > { %7995 = vmatmul.msk.f32.vlgmr.msra.gmra.mxu0 %vm13361_vm3, %v6959_v60  ;;  %v6956_v16 = vmax.f32 %v6954_v15, 0.0 }
0x180f   : > { %7992 = vmatpush.msk.msrb.mxu3 %vm13362_vm4, %v6956_v16 }
0x1810   : > { %7993 = vmatmul.msk.f32.vlgmr.msrb.gmra.mxu3 %vm13363_vm0, %v6959_v60 }
0x188a   : > { %v7012_v47 = vpop.f32.mrf.mxu0 }
0x188b   : > { %v7013_v52 = vadd.f32 %v7012_v47, %v6965_v13 }
0x188d   : > { %v7017_v14 = vrot.slane %v7013_v52, 7 }
0x1893   : > { %v6992_v27 = vpop.f32.mrf.mxu3 }
0x1894   : > { %v6993_v44 = vadd.f32 %v6992_v27, %v6965_v13 }
0x1896   : > { %v7019_v54 = vsel %vm7018_vm7, %v6993_v44, %v7017_v14 }
0x1897   : > { %7025 = vst.msk [vmem:[%s599_s24] sm:$0x3] %vm7023_vm10, %v7019_v54 }
0x1898 PF: > { %s31_s20 = sadd.s32 1, %s8056_s20  }
0x1899   : > { %p28_p4 = scmp.ge.s32.totalorder %s31_s20, 4  }
0x189b   :  { %30 = sbr.rel (!%p28_p4) target bundleno = 5 (0x5), region = 190 }

</bundles_post_ra>
